<compile_context>
chip_gen: v7x
topology: tpu7x:2x2x1
jax: 0.10.0
libtpu: 0.0.40
codegen_flags: <defaults>
</compile_context>

<pallas_src>
import functools

import jax
import jax.numpy as jnp
from jax.experimental import pallas as pl
from jax.experimental.pallas import tpu as pltpu

KERNEL_SIZE = 13     # GA(kernel_size=13, dilation=3) as used in the flownet block
DILATION = 3
SIGMA = 9.0
SC = 0.1
NEG_INF = -1e30


# ----------------------------- Linear (MXU) ---------------------------------

def _linear_kernel(x_ref, w_ref, b_ref, o_ref):
    y = jnp.dot(x_ref[...], w_ref[...], preferred_element_type=jnp.float32)
    o_ref[...] = (y + b_ref[...]).astype(o_ref.dtype)


def linear(x, w, b, tm=512):
    """y = x @ w + b with lane-dense (multiple-of-128) output tiles."""
    n, cin = x.shape
    cout = w.shape[1]
    coutp = -(-cout // 128) * 128
    if coutp != cout:
        w = jnp.pad(w, ((0, 0), (0, coutp - cout)))
        b = jnp.pad(b, ((0, coutp - cout),))
    npad = -(-n // tm) * tm
    xp = jnp.pad(x, ((0, npad - n), (0, 0))) if npad != n else x
    out = pl.pallas_call(
        _linear_kernel,
        out_shape=jax.ShapeDtypeStruct((npad, coutp), x.dtype),
        grid=(npad // tm,),
        in_specs=[pl.BlockSpec((tm, cin), lambda i: (i, 0)),
                  pl.BlockSpec((cin, coutp), lambda i: (0, 0)),
                  pl.BlockSpec((1, coutp), lambda i: (0, 0))],
        out_specs=pl.BlockSpec((tm, coutp), lambda i: (i, 0)),
        compiler_params=pltpu.CompilerParams(
            dimension_semantics=("parallel",)),
    )(xp, w, b.reshape(1, coutp))
    return out[:n, :cout]


# ------------------- NATTEN + gaussian modulation (MXU) ---------------------

def _natten_kernel(sh_ref, ph_ref, q_ref, k_ref, v_ref, rpbb_ref, gsc_ref,
                   neg_ref, o_ref, *, k_size, dilation, scale, n_rows):
    # q/k/v/o refs: (Hp, Wp, d); rpbb: (2K-1, Wp, Wp); gsc: (K, Wp, Wp);
    # neg: (Wp, Wp); sh/ph: (Hp,) int32 in SMEM (scalar prefetch).
    neg = neg_ref[...]                                     # 0 / -1e30 col mask

    def row_body(i, carry):
        sh = sh_ref[i]                                     # window start row
        ph = ph_ref[i]                                     # rpb row offset
        q_row = q_ref[i].astype(jnp.float32) * scale       # (Wp, d)
        wp = q_row.shape[0]
        m = jnp.full((wp, 1), NEG_INF, jnp.float32)
        s = jnp.zeros((wp, 1), jnp.float32)
        acc = jnp.zeros(q_row.shape, jnp.float32)
        for a in range(k_size):                            # static unroll (K=13)
            y = sh + a * dilation
            k_row = k_ref[y].astype(jnp.float32)           # (Wp, d)
            v_row = v_ref[y].astype(jnp.float32)           # (Wp, d)
            # logits[j, x] = q[j] . k[x]  -- MXU, contraction over head_dim
            logit = jax.lax.dot_general(
                q_row, k_row, (((1,), (1,)), ((), ())),
                preferred_element_type=jnp.float32)        # (Wp, Wp)
            bias = rpbb_ref[ph + a]                        # (Wp, Wp)
            l = (logit + bias) * gsc_ref[a] + neg          # gaussian mod + mask
            # online softmax over the (a, x) neighborhood axes
            m_new = jnp.maximum(m, jnp.max(l, axis=-1, keepdims=True))
            alpha = jnp.exp(m - m_new)
            p = jnp.exp(l - m_new)
            s = alpha * s + jnp.sum(p, axis=-1, keepdims=True)
            acc = alpha * acc + jnp.dot(p, v_row,
                                        preferred_element_type=jnp.float32)
            m = m_new
        o_ref[i] = (acc * pl.reciprocal(s, approx=True)).astype(o_ref.dtype)
        return carry

    jax.lax.fori_loop(0, n_rows, row_body, 0)


def natten_attention(q, k, v, rpbb, gscale, neg, start_h, pb_h, *,
                     k_size, dilation):
    B, H, Hp, Wp, d = q.shape
    nk2 = 2 * k_size - 1
    kern = functools.partial(_natten_kernel, k_size=k_size, dilation=dilation,
                             scale=d ** -0.5, n_rows=Hp)
    grid_spec = pltpu.PrefetchScalarGridSpec(
        num_scalar_prefetch=2,
        grid=(B, H),
        in_specs=[
            pl.BlockSpec((None, None, Hp, Wp, d),
                         lambda b, h, *_: (b, h, 0, 0, 0)),                # q
            pl.BlockSpec((None, None, Hp, Wp, d),
                         lambda b, h, *_: (b, h, 0, 0, 0)),                # k
            pl.BlockSpec((None, None, Hp, Wp, d),
                         lambda b, h, *_: (b, h, 0, 0, 0)),                # v
            pl.BlockSpec((None, nk2, Wp, Wp),
                         lambda b, h, *_: (h, 0, 0, 0)),                   # rpbb
            pl.BlockSpec((k_size, Wp, Wp), lambda b, h, *_: (0, 0, 0)),    # gsc
            pl.BlockSpec((Wp, Wp), lambda b, h, *_: (0, 0)),               # neg
        ],
        out_specs=pl.BlockSpec((None, None, Hp, Wp, d),
                               lambda b, h, *_: (b, h, 0, 0, 0)),
    )
    return pl.pallas_call(
        kern,
        out_shape=jax.ShapeDtypeStruct(q.shape, q.dtype),
        grid_spec=grid_spec,
        compiler_params=pltpu.CompilerParams(
            dimension_semantics=("parallel", "parallel")),
    )(start_h, pb_h, q, k, v, rpbb, gscale, neg)


# ------------------- NATTEN index / bias tables (tiny, JAX-side) ------------

def _natten_1d_starts(length, k, dilation):
    """Per-coordinate window-start and rpb-start (matches NATTEN CUDA)."""
    nhs = (k - 1) // 2
    idx = jnp.arange(length, dtype=jnp.int32)
    if dilation <= 1:
        start = jnp.maximum(idx - nhs, 0) + jnp.where(
            idx + nhs >= length, length - idx - nhs - 1, 0)
        pb = nhs + jnp.where(idx < nhs, nhs - idx, 0) + jnp.where(
            idx + nhs >= length, length - idx - 1 - nhs, 0)
    else:
        ni = idx - nhs * dilation
        imodd = idx % dilation
        a = (length // dilation) * dilation
        b = length - a
        upper = jnp.where(imodd < b,
                          length - b + imodd - 2 * nhs * dilation,
                          a + imodd - k * dilation)
        start = jnp.where(ni < 0, imodd,
                          jnp.where(idx + nhs * dilation >= length, upper, ni))
        pb = jnp.where(ni < 0, (k - 1) - idx // dilation,
                       jnp.where(idx + nhs * dilation >= length,
                                 (length - idx - 1) // dilation, nhs))
    return start.astype(jnp.int32), pb.astype(jnp.int32)


def _build_natten_tables(Hp, Wp, k, dil, rpb, lr_m):
    start_h, pb_h = _natten_1d_starts(Hp, k, dil)
    start_w, pb_w = _natten_1d_starts(Wp, k, dil)
    ar = jnp.arange(k, dtype=jnp.int32)
    nbr_w = start_w[:, None] + ar[None, :] * dil               # (Wp, K)
    xs = jnp.arange(Wp, dtype=jnp.int32)
    eq = nbr_w[:, :, None] == xs[None, None, :]                # (Wp_j, K_b, Wp_x)
    wmask = jnp.any(eq, axis=1)                                # (Wp_j, Wp_x)
    wb = jnp.argmax(eq, axis=1).astype(jnp.int32)              # width nbr index
    rw = pb_w[:, None] + wb                                    # rpb column index
    crd = jnp.arange(k, dtype=jnp.float32)
    hk = (k - 1) // 2
    gauss = jnp.exp(-((crd[None, :] - hk) ** 2 + (crd[:, None] - hk) ** 2)
                    / (2.0 * SIGMA ** 2))
    ker_s = gauss + lr_m / SC                                  # (K_a, K_b)
    gscale = jnp.where(wmask[None], ker_s[:, wb], 0.0).astype(jnp.float32)
    rpbb = jnp.where(wmask[None, None], rpb[:, :, rw], 0.0).astype(jnp.float32)
    neg = jnp.where(wmask, 0.0, NEG_INF).astype(jnp.float32)
    return start_h, pb_h, gscale, rpbb, neg


# ----------------------------- GA forward ------------------------------------

def ga_forward(params, x, num_heads, kernel_size=KERNEL_SIZE, dilation=DILATION):
    """GA forward.  x: (B, H, W, C) channels-last, like the PyTorch module."""
    B, H0, W0, C = x.shape
    assert C % num_heads == 0
    k, dil = kernel_size, dilation
    window = k * dil
    Hp, Wp = max(H0, window), max(W0, window)
    if (Hp, Wp) != (H0, W0):
        x = jnp.pad(x, ((0, 0), (0, Hp - H0), (0, Wp - W0), (0, 0)))
    d = C // num_heads

    qkv = linear(x.reshape(-1, C), params["w_qkv"], params["b_qkv"])
    qkv = qkv.reshape(B, Hp, Wp, 3, num_heads, d)
    qkv = jnp.transpose(qkv, (3, 0, 4, 1, 2, 5))               # (3, B, h, Hp, Wp, d)
    q, kk, v = qkv[0], qkv[1], qkv[2]                          # (B, h, Hp, Wp, d)

    start_h, pb_h, gscale, rpbb, neg = _build_natten_tables(
        Hp, Wp, k, dil, params["rpb"], params["lr_m"])

    out = natten_attention(q, kk, v, rpbb, gscale, neg, start_h, pb_h,
                           k_size=k, dilation=dil)
    out = jnp.transpose(out, (0, 2, 3, 1, 4)).reshape(B, Hp, Wp, C)
    out = out[:, :H0, :W0, :]
    out = linear(out.reshape(-1, C), params["w_proj"], params["b_proj"])
    return out.reshape(B, H0, W0, C)


# ----------------------------- Pure-JAX reference ----------------------------

def ga_reference(params, x, num_heads, kernel_size=KERNEL_SIZE, dilation=DILATION):
    B, H0, W0, C = x.shape
    k, dil = kernel_size, dilation
    window = k * dil
    Hp, Wp = max(H0, window), max(W0, window)
    if (Hp, Wp) != (H0, W0):
        x = jnp.pad(x, ((0, 0), (0, Hp - H0), (0, Wp - W0), (0, 0)))
    d = C // num_heads
    scale = d ** -0.5

    qkv = x.reshape(-1, C) @ params["w_qkv"] + params["b_qkv"]
    qkv = qkv.reshape(B, Hp, Wp, 3, num_heads, d)
    qkv = jnp.transpose(qkv, (3, 0, 4, 1, 2, 5))
    q, kk, v = qkv[0] * scale, qkv[1], qkv[2]                  # (B, h, Hp, Wp, d)

    start_h, pb_h = _natten_1d_starts(Hp, k, dil)
    start_w, pb_w = _natten_1d_starts(Wp, k, dil)
    ar = jnp.arange(k, dtype=jnp.int32)
    nbr_h = start_h[:, None] + ar[None, :] * dil
    nbr_w = start_w[:, None] + ar[None, :] * dil
    pbi_h = pb_h[:, None] + ar[None, :]
    pbi_w = pb_w[:, None] + ar[None, :]

    kg = kk[:, :, nbr_h][:, :, :, :, nbr_w]                    # (B,h,Hp,Ka,Wp,Kb,d)
    vg = v[:, :, nbr_h][:, :, :, :, nbr_w]
    logits = jnp.einsum('nmijc,nmiajbc->nmijab', q, kg)
    bias = params["rpb"][:, pbi_h[:, None, :, None], pbi_w[None, :, None, :]]
    logits = logits + bias[None]
    crd = jnp.arange(k, dtype=jnp.float32)
    hk = (k - 1) // 2
    gauss = jnp.exp(-((crd[None, :] - hk) ** 2 + (crd[:, None] - hk) ** 2)
                    / (2.0 * SIGMA ** 2))
    logits = logits * (gauss + params["lr_m"] / SC)
    attn = jax.nn.softmax(logits.reshape(B, num_heads, Hp, Wp, k * k), axis=-1)
    attn = attn.reshape(B, num_heads, Hp, Wp, k, k)
    out = jnp.einsum('nmijab,nmiajbc->nmijc', attn, vg)
    out = jnp.transpose(out, (0, 2, 3, 1, 4)).reshape(B, Hp, Wp, C)
    out = out[:, :H0, :W0, :]
    out = out.reshape(-1, C) @ params["w_proj"] + params["b_proj"]
    return out.reshape(B, H0, W0, C)


# ----------------------------- Deterministic init ----------------------------

def init_params(key, dim, num_heads, k=KERNEL_SIZE):
    k0, k1, k2, k3, k4 = jax.random.split(key, 5)
    return {
        "w_qkv": 0.02 * jax.random.normal(k0, (dim, 3 * dim), jnp.float32),
        "b_qkv": 0.02 * jax.random.normal(k3, (3 * dim,), jnp.float32),
        "w_proj": 0.02 * jax.random.normal(k1, (dim, dim), jnp.float32),
        "b_proj": 0.02 * jax.random.normal(k4, (dim,), jnp.float32),
        "rpb": 0.02 * jax.random.normal(k2, (num_heads, 2 * k - 1, 2 * k - 1),
                                        jnp.float32),
        "lr_m": jnp.full((k, k), SC * 0.5, jnp.float32),
    }


# ----------------------------- Main -------------------------------------------

if __name__ == "__main__":
    B, H, W, C = 2, 16, 16, 32
    num_heads = 4                                 # head_dim = 8
    key = jax.random.PRNGKey(0)
    k_x, k_p = jax.random.split(key)
    x = jax.random.normal(k_x, (B, H, W, C), jnp.float32)
    params = init_params(k_p, C, num_heads)

    fwd = jax.jit(functools.partial(ga_forward, num_heads=num_heads))
    out = jax.block_until_ready(fwd(params, x))
    assert out.shape == (B, H, W, C)
    assert bool(jnp.all(jnp.isfinite(out)))

    # Cross-check against a pure-JAX/XLA reference of the same module.
    ref = jax.block_until_ready(
        jax.jit(functools.partial(ga_reference, num_heads=num_heads))(params, x))
    err = float(jnp.max(jnp.abs(out - ref)))
    tol = 2e-2 * float(jnp.max(jnp.abs(ref))) + 1e-5
    assert err < tol, f"mismatch vs reference: max|diff|={err} tol={tol}"

    print("KERNEL_OK")
</pallas_src>

<mosaic_0001>
module attributes {stable_mosaic.version = 11 : i64} {
  func.func @_linear_kernel(%arg0: i32, %arg1: memref<512x32xf32, #tpu.memory_space<vmem>>, %arg2: memref<32x128xf32, #tpu.memory_space<vmem>>, %arg3: memref<1x128xf32, #tpu.memory_space<vmem>>, %arg4: memref<512x128xf32, #tpu.memory_space<vmem>>) attributes {dimension_semantics = [#tpu.dimension_semantics<parallel>], iteration_bounds = array<i64: 6>, scalar_prefetch = 0 : i64, scratch_operands = 0 : i64, tpu.core_type = #tpu.core_type<tc>, window_params = [{transform_indices = @transform_0, window_bounds = array<i64: 512, 32>}, {pipeline_mode = #tpu.pipeline_mode<synchronous>, transform_indices = @transform_1, window_bounds = array<i64: 32, 128>}, {pipeline_mode = #tpu.pipeline_mode<synchronous>, transform_indices = @transform_2, window_bounds = array<i64: 1, 128>}, {transform_indices = @transform_3, window_bounds = array<i64: 512, 128>}]} {
    %c0 = arith.constant 0 : index
    %c0_0 = arith.constant 0 : index
    %0 = vector.load %arg1[%c0, %c0_0] : memref<512x32xf32, #tpu.memory_space<vmem>>, vector<512x32xf32>
    %c0_1 = arith.constant 0 : index
    %c0_2 = arith.constant 0 : index
    %1 = vector.load %arg2[%c0_1, %c0_2] : memref<32x128xf32, #tpu.memory_space<vmem>>, vector<32x128xf32>
    %cst = arith.constant dense<0.000000e+00> : vector<512x128xf32>
    %2 = tpu.matmul %0, %1, %cst {dimension_numbers = #tpu.dot_dimension_numbers<[1], [0], [0], [1], [0, 0, 1, 1], [], []>} : vector<512x32xf32>, vector<32x128xf32>, vector<512x128xf32> -> vector<512x128xf32>
    %c0_3 = arith.constant 0 : index
    %c0_4 = arith.constant 0 : index
    %3 = vector.load %arg3[%c0_3, %c0_4] : memref<1x128xf32, #tpu.memory_space<vmem>>, vector<1x128xf32>
    %4 = vector.broadcast %3 : vector<1x128xf32> to vector<512x128xf32>
    %5 = arith.addf %2, %4 : vector<512x128xf32>
    %c0_5 = arith.constant 0 : index
    %c0_6 = arith.constant 0 : index
    %6 = vector.load %arg4[%c0_5, %c0_6] : memref<512x128xf32, #tpu.memory_space<vmem>>, vector<512x128xf32>
    tpu.vector_store %arg4[%c0_5, %c0_6], %5 {strides = array<i32>} : memref<512x128xf32, #tpu.memory_space<vmem>>, vector<512x128xf32>,
    return
  }
  func.func @transform_0(%arg0: i32) -> (i32, i32) {
    %c0_i32 = arith.constant 0 : i32
    %c0_i32_0 = arith.constant 0 : i32
    return %arg0, %c0_i32 : i32, i32
  }
  func.func @transform_1(%arg0: i32) -> (i32, i32) {
    %c0_i32 = arith.constant 0 : i32
    %c0_i32_0 = arith.constant 0 : i32
    %c0_i32_1 = arith.constant 0 : i32
    return %c0_i32, %c0_i32_0 : i32, i32
  }
  func.func @transform_2(%arg0: i32) -> (i32, i32) {
    %c0_i32 = arith.constant 0 : i32
    %c0_i32_0 = arith.constant 0 : i32
    %c0_i32_1 = arith.constant 0 : i32
    return %c0_i32, %c0_i32_0 : i32, i32
  }
  func.func @transform_3(%arg0: i32) -> (i32, i32) {
    %c0_i32 = arith.constant 0 : i32
    %c0_i32_0 = arith.constant 0 : i32
    return %arg0, %c0_i32 : i32, i32
  }
}

module attributes {stable_mosaic.version = 11 : i64} {
  func.func @_natten_kernel(%arg0: i32, %arg1: i32, %arg2: memref<39xi32, #tpu.memory_space<smem>>, %arg3: memref<39xi32, #tpu.memory_space<smem>>, %arg4: memref<1x1x39x39x8xf32, #tpu.memory_space<vmem>>, %arg5: memref<1x1x39x39x8xf32, #tpu.memory_space<vmem>>, %arg6: memref<1x1x39x39x8xf32, #tpu.memory_space<vmem>>, %arg7: memref<1x25x39x39xf32, #tpu.memory_space<vmem>>, %arg8: memref<13x39x39xf32, #tpu.memory_space<vmem>>, %arg9: memref<39x39xf32, #tpu.memory_space<vmem>>, %arg10: memref<1x1x39x39x8xf32, #tpu.memory_space<vmem>>) attributes {dimension_semantics = [#tpu.dimension_semantics<parallel>, #tpu.dimension_semantics<parallel>], iteration_bounds = array<i64: 2, 4>, scalar_prefetch = 2 : i64, scratch_operands = 0 : i64, tpu.core_type = #tpu.core_type<tc>, window_params = [{transform_indices = @transform_0, window_bounds = array<i64: 1, 1, 39, 39, 8>}, {transform_indices = @transform_1, window_bounds = array<i64: 1, 1, 39, 39, 8>}, {transform_indices = @transform_2, window_bounds = array<i64: 1, 1, 39, 39, 8>}, {transform_indices = @transform_3, window_bounds = array<i64: 1, 25, 39, 39>}, {pipeline_mode = #tpu.pipeline_mode<synchronous>, transform_indices = @transform_4, window_bounds = array<i64: 13, 39, 39>}, {pipeline_mode = #tpu.pipeline_mode<synchronous>, transform_indices = @transform_5, window_bounds = array<i64: 39, 39>}, {transform_indices = @transform_6, window_bounds = array<i64: 1, 1, 39, 39, 8>}]} {
    %c0 = arith.constant 0 : index
    %c0_0 = arith.constant 0 : index
    %0 = vector.load %arg9[%c0, %c0_0] : memref<39x39xf32, #tpu.memory_space<vmem>>, vector<39x39xf32>
    %c0_i32 = arith.constant 0 : i32
    %c39_i32 = arith.constant 39 : i32
    %1 = arith.addi %c0_i32, %c39_i32 : i32
    %c1_i32 = arith.constant 1 : i32
    scf.for %arg11 = %c0_i32 to %1 step %c1_i32  : i32 {
      %2 = arith.index_cast %arg11 : i32 to index
      %3 = memref.load %arg2[%2] : memref<39xi32, #tpu.memory_space<smem>>
      %4 = arith.index_cast %arg11 : i32 to index
      %5 = memref.load %arg3[%4] : memref<39xi32, #tpu.memory_space<smem>>
      %c0_2 = arith.constant 0 : index
      %c0_3 = arith.constant 0 : index
      %6 = arith.index_cast %arg11 : i32 to index
      %c0_4 = arith.constant 0 : index
      %c0_5 = arith.constant 0 : index
      %7 = vector.load %arg4[%c0_2, %c0_3, %6, %c0_4, %c0_5] : memref<1x1x39x39x8xf32, #tpu.memory_space<vmem>>, vector<1x1x1x39x8xf32>
      %8 = vector.shape_cast %7 : vector<1x1x1x39x8xf32> to vector<39x8xf32>
      %cst = arith.constant 0.353553385 : f32
      %9 = vector.broadcast %cst : f32 to vector<39x8xf32>
      %10 = arith.mulf %8, %9 : vector<39x8xf32>
      %cst_6 = arith.constant -1.000000e+30 : f32
      %11 = vector.broadcast %cst_6 : f32 to vector<39x1xf32>
      %cst_7 = arith.constant 0.000000e+00 : f32
      %12 = vector.broadcast %cst_7 : f32 to vector<39x1xf32>
      %cst_8 = arith.constant 0.000000e+00 : f32
      %13 = vector.broadcast %cst_8 : f32 to vector<39x8xf32>
      %c0_i32_9 = arith.constant 0 : i32
      %14 = arith.addi %3, %c0_i32_9 : i32
      %c0_10 = arith.constant 0 : index
      %c0_11 = arith.constant 0 : index
      %15 = arith.index_cast %14 : i32 to index
      %c0_12 = arith.constant 0 : index
      %c0_13 = arith.constant 0 : index
      %16 = vector.load %arg5[%c0_10, %c0_11, %15, %c0_12, %c0_13] : memref<1x1x39x39x8xf32, #tpu.memory_space<vmem>>, vector<1x1x1x39x8xf32>
      %17 = vector.shape_cast %16 : vector<1x1x1x39x8xf32> to vector<39x8xf32>
      %c0_14 = arith.constant 0 : index
      %c0_15 = arith.constant 0 : index
      %18 = arith.index_cast %14 : i32 to index
      %c0_16 = arith.constant 0 : index
      %c0_17 = arith.constant 0 : index
      %19 = vector.load %arg6[%c0_14, %c0_15, %18, %c0_16, %c0_17] : memref<1x1x39x39x8xf32, #tpu.memory_space<vmem>>, vector<1x1x1x39x8xf32>
      %20 = vector.shape_cast %19 : vector<1x1x1x39x8xf32> to vector<39x8xf32>
      %cst_18 = arith.constant dense<0.000000e+00> : vector<39x39xf32>
      %21 = tpu.matmul %10, %17, %cst_18 {dimension_numbers = #tpu.dot_dimension_numbers<[1], [1], [0], [0], [0, 0, 1, 0], [], []>} : vector<39x8xf32>, vector<39x8xf32>, vector<39x39xf32> -> vector<39x39xf32>
      %c0_i32_19 = arith.constant 0 : i32
      %22 = arith.addi %5, %c0_i32_19 : i32
      %c0_20 = arith.constant 0 : index
      %23 = arith.index_cast %22 : i32 to index
      %c0_21 = arith.constant 0 : index
      %c0_22 = arith.constant 0 : index
      %24 = vector.load %arg7[%c0_20, %23, %c0_21, %c0_22] : memref<1x25x39x39xf32, #tpu.memory_space<vmem>>, vector<1x1x39x39xf32>
      %25 = vector.shape_cast %24 : vector<1x1x39x39xf32> to vector<39x39xf32>
      %26 = arith.addf %21, %25 : vector<39x39xf32>
      %c0_23 = arith.constant 0 : index
      %c0_24 = arith.constant 0 : index
      %c0_25 = arith.constant 0 : index
      %27 = vector.load %arg8[%c0_23, %c0_24, %c0_25] : memref<13x39x39xf32, #tpu.memory_space<vmem>>, vector<1x39x39xf32>
      %28 = vector.shape_cast %27 : vector<1x39x39xf32> to vector<39x39xf32>
      %29 = arith.mulf %26, %28 : vector<39x39xf32>
      %30 = arith.addf %29, %0 : vector<39x39xf32>
      %cst_26 = arith.constant dense<0xFF800000> : vector<39xf32>
      %31 = vector.multi_reduction <maximumf>, %30, %cst_26 [1] : vector<39x39xf32> to vector<39xf32>
      %32 = vector.shape_cast %31 : vector<39xf32> to vector<39x1xf32>
      %33 = arith.maximumf %11, %32 : vector<39x1xf32>
      %34 = arith.subf %11, %33 : vector<39x1xf32>
      %35 = math.exp %34 : vector<39x1xf32>
      %36 = vector.broadcast %33 : vector<39x1xf32> to vector<39x39xf32>
      %37 = arith.subf %30, %36 : vector<39x39xf32>
      %38 = math.exp %37 : vector<39x39xf32>
      %39 = arith.mulf %35, %12 : vector<39x1xf32>
      %cst_27 = arith.constant dense<0.000000e+00> : vector<39xf32>
      %40 = vector.multi_reduction <add>, %38, %cst_27 [1] : vector<39x39xf32> to vector<39xf32>
      %41 = vector.shape_cast %40 : vector<39xf32> to vector<39x1xf32>
      %42 = arith.addf %39, %41 : vector<39x1xf32>
      %43 = vector.broadcast %35 : vector<39x1xf32> to vector<39x8xf32>
      %44 = arith.mulf %43, %13 : vector<39x8xf32>
      %cst_28 = arith.constant dense<0.000000e+00> : vector<39x8xf32>
      %45 = tpu.matmul %38, %20, %cst_28 {dimension_numbers = #tpu.dot_dimension_numbers<[1], [0], [0], [1], [0, 0, 1, 1], [], []>} : vector<39x39xf32>, vector<39x8xf32>, vector<39x8xf32> -> vector<39x8xf32>
      %46 = arith.addf %44, %45 : vector<39x8xf32>
      %c3_i32 = arith.constant 3 : i32
      %47 = arith.addi %3, %c3_i32 : i32
      %c0_29 = arith.constant 0 : index
      %c0_30 = arith.constant 0 : index
      %48 = arith.index_cast %47 : i32 to index
      %c0_31 = arith.constant 0 : index
      %c0_32 = arith.constant 0 : index
      %49 = vector.load %arg5[%c0_29, %c0_30, %48, %c0_31, %c0_32] : memref<1x1x39x39x8xf32, #tpu.memory_space<vmem>>, vector<1x1x1x39x8xf32>
      %50 = vector.shape_cast %49 : vector<1x1x1x39x8xf32> to vector<39x8xf32>
      %c0_33 = arith.constant 0 : index
      %c0_34 = arith.constant 0 : index
      %51 = arith.index_cast %47 : i32 to index
      %c0_35 = arith.constant 0 : index
      %c0_36 = arith.constant 0 : index
      %52 = vector.load %arg6[%c0_33, %c0_34, %51, %c0_35, %c0_36] : memref<1x1x39x39x8xf32, #tpu.memory_space<vmem>>, vector<1x1x1x39x8xf32>
      %53 = vector.shape_cast %52 : vector<1x1x1x39x8xf32> to vector<39x8xf32>
      %cst_37 = arith.constant dense<0.000000e+00> : vector<39x39xf32>
      %54 = tpu.matmul %10, %50, %cst_37 {dimension_numbers = #tpu.dot_dimension_numbers<[1], [1], [0], [0], [0, 0, 1, 0], [], []>} : vector<39x8xf32>, vector<39x8xf32>, vector<39x39xf32> -> vector<39x39xf32>
      %c1_i32_38 = arith.constant 1 : i32
      %55 = arith.addi %5, %c1_i32_38 : i32
      %c0_39 = arith.constant 0 : index
      %56 = arith.index_cast %55 : i32 to index
      %c0_40 = arith.constant 0 : index
      %c0_41 = arith.constant 0 : index
      %57 = vector.load %arg7[%c0_39, %56, %c0_40, %c0_41] : memref<1x25x39x39xf32, #tpu.memory_space<vmem>>, vector<1x1x39x39xf32>
      %58 = vector.shape_cast %57 : vector<1x1x39x39xf32> to vector<39x39xf32>
      %59 = arith.addf %54, %58 : vector<39x39xf32>
      %c1 = arith.constant 1 : index
      %c0_42 = arith.constant 0 : index
      %c0_43 = arith.constant 0 : index
      %60 = vector.load %arg8[%c1, %c0_42, %c0_43] : memref<13x39x39xf32, #tpu.memory_space<vmem>>, vector<1x39x39xf32>
      %61 = vector.shape_cast %60 : vector<1x39x39xf32> to vector<39x39xf32>
      %62 = arith.mulf %59, %61 : vector<39x39xf32>
      %63 = arith.addf %62, %0 : vector<39x39xf32>
      %cst_44 = arith.constant dense<0xFF800000> : vector<39xf32>
      %64 = vector.multi_reduction <maximumf>, %63, %cst_44 [1] : vector<39x39xf32> to vector<39xf32>
      %65 = vector.shape_cast %64 : vector<39xf32> to vector<39x1xf32>
      %66 = arith.maximumf %33, %65 : vector<39x1xf32>
      %67 = arith.subf %33, %66 : vector<39x1xf32>
      %68 = math.exp %67 : vector<39x1xf32>
      %69 = vector.broadcast %66 : vector<39x1xf32> to vector<39x39xf32>
      %70 = arith.subf %63, %69 : vector<39x39xf32>
      %71 = math.exp %70 : vector<39x39xf32>
      %72 = arith.mulf %68, %42 : vector<39x1xf32>
      %cst_45 = arith.constant dense<0.000000e+00> : vector<39xf32>
      %73 = vector.multi_reduction <add>, %71, %cst_45 [1] : vector<39x39xf32> to vector<39xf32>
      %74 = vector.shape_cast %73 : vector<39xf32> to vector<39x1xf32>
      %75 = arith.addf %72, %74 : vector<39x1xf32>
      %76 = vector.broadcast %68 : vector<39x1xf32> to vector<39x8xf32>
      %77 = arith.mulf %76, %46 : vector<39x8xf32>
      %cst_46 = arith.constant dense<0.000000e+00> : vector<39x8xf32>
      %78 = tpu.matmul %71, %53, %cst_46 {dimension_numbers = #tpu.dot_dimension_numbers<[1], [0], [0], [1], [0, 0, 1, 1], [], []>} : vector<39x39xf32>, vector<39x8xf32>, vector<39x8xf32> -> vector<39x8xf32>
      %79 = arith.addf %77, %78 : vector<39x8xf32>
      %c6_i32 = arith.constant 6 : i32
      %80 = arith.addi %3, %c6_i32 : i32
      %c0_47 = arith.constant 0 : index
      %c0_48 = arith.constant 0 : index
      %81 = arith.index_cast %80 : i32 to index
      %c0_49 = arith.constant 0 : index
      %c0_50 = arith.constant 0 : index
      %82 = vector.load %arg5[%c0_47, %c0_48, %81, %c0_49, %c0_50] : memref<1x1x39x39x8xf32, #tpu.memory_space<vmem>>, vector<1x1x1x39x8xf32>
      %83 = vector.shape_cast %82 : vector<1x1x1x39x8xf32> to vector<39x8xf32>
      %c0_51 = arith.constant 0 : index
      %c0_52 = arith.constant 0 : index
      %84 = arith.index_cast %80 : i32 to index
      %c0_53 = arith.constant 0 : index
      %c0_54 = arith.constant 0 : index
      %85 = vector.load %arg6[%c0_51, %c0_52, %84, %c0_53, %c0_54] : memref<1x1x39x39x8xf32, #tpu.memory_space<vmem>>, vector<1x1x1x39x8xf32>
      %86 = vector.shape_cast %85 : vector<1x1x1x39x8xf32> to vector<39x8xf32>
      %cst_55 = arith.constant dense<0.000000e+00> : vector<39x39xf32>
      %87 = tpu.matmul %10, %83, %cst_55 {dimension_numbers = #tpu.dot_dimension_numbers<[1], [1], [0], [0], [0, 0, 1, 0], [], []>} : vector<39x8xf32>, vector<39x8xf32>, vector<39x39xf32> -> vector<39x39xf32>
      %c2_i32 = arith.constant 2 : i32
      %88 = arith.addi %5, %c2_i32 : i32
      %c0_56 = arith.constant 0 : index
      %89 = arith.index_cast %88 : i32 to index
      %c0_57 = arith.constant 0 : index
      %c0_58 = arith.constant 0 : index
      %90 = vector.load %arg7[%c0_56, %89, %c0_57, %c0_58] : memref<1x25x39x39xf32, #tpu.memory_space<vmem>>, vector<1x1x39x39xf32>
      %91 = vector.shape_cast %90 : vector<1x1x39x39xf32> to vector<39x39xf32>
      %92 = arith.addf %87, %91 : vector<39x39xf32>
      %c2 = arith.constant 2 : index
      %c0_59 = arith.constant 0 : index
      %c0_60 = arith.constant 0 : index
      %93 = vector.load %arg8[%c2, %c0_59, %c0_60] : memref<13x39x39xf32, #tpu.memory_space<vmem>>, vector<1x39x39xf32>
      %94 = vector.shape_cast %93 : vector<1x39x39xf32> to vector<39x39xf32>
      %95 = arith.mulf %92, %94 : vector<39x39xf32>
      %96 = arith.addf %95, %0 : vector<39x39xf32>
      %cst_61 = arith.constant dense<0xFF800000> : vector<39xf32>
      %97 = vector.multi_reduction <maximumf>, %96, %cst_61 [1] : vector<39x39xf32> to vector<39xf32>
      %98 = vector.shape_cast %97 : vector<39xf32> to vector<39x1xf32>
      %99 = arith.maximumf %66, %98 : vector<39x1xf32>
      %100 = arith.subf %66, %99 : vector<39x1xf32>
      %101 = math.exp %100 : vector<39x1xf32>
      %102 = vector.broadcast %99 : vector<39x1xf32> to vector<39x39xf32>
      %103 = arith.subf %96, %102 : vector<39x39xf32>
      %104 = math.exp %103 : vector<39x39xf32>
      %105 = arith.mulf %101, %75 : vector<39x1xf32>
      %cst_62 = arith.constant dense<0.000000e+00> : vector<39xf32>
      %106 = vector.multi_reduction <add>, %104, %cst_62 [1] : vector<39x39xf32> to vector<39xf32>
      %107 = vector.shape_cast %106 : vector<39xf32> to vector<39x1xf32>
      %108 = arith.addf %105, %107 : vector<39x1xf32>
      %109 = vector.broadcast %101 : vector<39x1xf32> to vector<39x8xf32>
      %110 = arith.mulf %109, %79 : vector<39x8xf32>
      %cst_63 = arith.constant dense<0.000000e+00> : vector<39x8xf32>
      %111 = tpu.matmul %104, %86, %cst_63 {dimension_numbers = #tpu.dot_dimension_numbers<[1], [0], [0], [1], [0, 0, 1, 1], [], []>} : vector<39x39xf32>, vector<39x8xf32>, vector<39x8xf32> -> vector<39x8xf32>
      %112 = arith.addf %110, %111 : vector<39x8xf32>
      %c9_i32 = arith.constant 9 : i32
      %113 = arith.addi %3, %c9_i32 : i32
      %c0_64 = arith.constant 0 : index
      %c0_65 = arith.constant 0 : index
      %114 = arith.index_cast %113 : i32 to index
      %c0_66 = arith.constant 0 : index
      %c0_67 = arith.constant 0 : index
      %115 = vector.load %arg5[%c0_64, %c0_65, %114, %c0_66, %c0_67] : memref<1x1x39x39x8xf32, #tpu.memory_space<vmem>>, vector<1x1x1x39x8xf32>
      %116 = vector.shape_cast %115 : vector<1x1x1x39x8xf32> to vector<39x8xf32>
      %c0_68 = arith.constant 0 : index
      %c0_69 = arith.constant 0 : index
      %117 = arith.index_cast %113 : i32 to index
      %c0_70 = arith.constant 0 : index
      %c0_71 = arith.constant 0 : index
      %118 = vector.load %arg6[%c0_68, %c0_69, %117, %c0_70, %c0_71] : memref<1x1x39x39x8xf32, #tpu.memory_space<vmem>>, vector<1x1x1x39x8xf32>
      %119 = vector.shape_cast %118 : vector<1x1x1x39x8xf32> to vector<39x8xf32>
      %cst_72 = arith.constant dense<0.000000e+00> : vector<39x39xf32>
      %120 = tpu.matmul %10, %116, %cst_72 {dimension_numbers = #tpu.dot_dimension_numbers<[1], [1], [0], [0], [0, 0, 1, 0], [], []>} : vector<39x8xf32>, vector<39x8xf32>, vector<39x39xf32> -> vector<39x39xf32>
      %c3_i32_73 = arith.constant 3 : i32
      %121 = arith.addi %5, %c3_i32_73 : i32
      %c0_74 = arith.constant 0 : index
      %122 = arith.index_cast %121 : i32 to index
      %c0_75 = arith.constant 0 : index
      %c0_76 = arith.constant 0 : index
      %123 = vector.load %arg7[%c0_74, %122, %c0_75, %c0_76] : memref<1x25x39x39xf32, #tpu.memory_space<vmem>>, vector<1x1x39x39xf32>
      %124 = vector.shape_cast %123 : vector<1x1x39x39xf32> to vector<39x39xf32>
      %125 = arith.addf %120, %124 : vector<39x39xf32>
      %c3 = arith.constant 3 : index
      %c0_77 = arith.constant 0 : index
      %c0_78 = arith.constant 0 : index
      %126 = vector.load %arg8[%c3, %c0_77, %c0_78] : memref<13x39x39xf32, #tpu.memory_space<vmem>>, vector<1x39x39xf32>
      %127 = vector.shape_cast %126 : vector<1x39x39xf32> to vector<39x39xf32>
      %128 = arith.mulf %125, %127 : vector<39x39xf32>
      %129 = arith.addf %128, %0 : vector<39x39xf32>
      %cst_79 = arith.constant dense<0xFF800000> : vector<39xf32>
      %130 = vector.multi_reduction <maximumf>, %129, %cst_79 [1] : vector<39x39xf32> to vector<39xf32>
      %131 = vector.shape_cast %130 : vector<39xf32> to vector<39x1xf32>
      %132 = arith.maximumf %99, %131 : vector<39x1xf32>
      %133 = arith.subf %99, %132 : vector<39x1xf32>
      %134 = math.exp %133 : vector<39x1xf32>
      %135 = vector.broadcast %132 : vector<39x1xf32> to vector<39x39xf32>
      %136 = arith.subf %129, %135 : vector<39x39xf32>
      %137 = math.exp %136 : vector<39x39xf32>
      %138 = arith.mulf %134, %108 : vector<39x1xf32>
      %cst_80 = arith.constant dense<0.000000e+00> : vector<39xf32>
      %139 = vector.multi_reduction <add>, %137, %cst_80 [1] : vector<39x39xf32> to vector<39xf32>
      %140 = vector.shape_cast %139 : vector<39xf32> to vector<39x1xf32>
      %141 = arith.addf %138, %140 : vector<39x1xf32>
      %142 = vector.broadcast %134 : vector<39x1xf32> to vector<39x8xf32>
      %143 = arith.mulf %142, %112 : vector<39x8xf32>
      %cst_81 = arith.constant dense<0.000000e+00> : vector<39x8xf32>
      %144 = tpu.matmul %137, %119, %cst_81 {dimension_numbers = #tpu.dot_dimension_numbers<[1], [0], [0], [1], [0, 0, 1, 1], [], []>} : vector<39x39xf32>, vector<39x8xf32>, vector<39x8xf32> -> vector<39x8xf32>
      %145 = arith.addf %143, %144 : vector<39x8xf32>
      %c12_i32 = arith.constant 12 : i32
      %146 = arith.addi %3, %c12_i32 : i32
      %c0_82 = arith.constant 0 : index
      %c0_83 = arith.constant 0 : index
      %147 = arith.index_cast %146 : i32 to index
      %c0_84 = arith.constant 0 : index
      %c0_85 = arith.constant 0 : index
      %148 = vector.load %arg5[%c0_82, %c0_83, %147, %c0_84, %c0_85] : memref<1x1x39x39x8xf32, #tpu.memory_space<vmem>>, vector<1x1x1x39x8xf32>
      %149 = vector.shape_cast %148 : vector<1x1x1x39x8xf32> to vector<39x8xf32>
      %c0_86 = arith.constant 0 : index
      %c0_87 = arith.constant 0 : index
      %150 = arith.index_cast %146 : i32 to index
      %c0_88 = arith.constant 0 : index
      %c0_89 = arith.constant 0 : index
      %151 = vector.load %arg6[%c0_86, %c0_87, %150, %c0_88, %c0_89] : memref<1x1x39x39x8xf32, #tpu.memory_space<vmem>>, vector<1x1x1x39x8xf32>
      %152 = vector.shape_cast %151 : vector<1x1x1x39x8xf32> to vector<39x8xf32>
      %cst_90 = arith.constant dense<0.000000e+00> : vector<39x39xf32>
      %153 = tpu.matmul %10, %149, %cst_90 {dimension_numbers = #tpu.dot_dimension_numbers<[1], [1], [0], [0], [0, 0, 1, 0], [], []>} : vector<39x8xf32>, vector<39x8xf32>, vector<39x39xf32> -> vector<39x39xf32>
      %c4_i32 = arith.constant 4 : i32
      %154 = arith.addi %5, %c4_i32 : i32
      %c0_91 = arith.constant 0 : index
      %155 = arith.index_cast %154 : i32 to index
      %c0_92 = arith.constant 0 : index
      %c0_93 = arith.constant 0 : index
      %156 = vector.load %arg7[%c0_91, %155, %c0_92, %c0_93] : memref<1x25x39x39xf32, #tpu.memory_space<vmem>>, vector<1x1x39x39xf32>
      %157 = vector.shape_cast %156 : vector<1x1x39x39xf32> to vector<39x39xf32>
      %158 = arith.addf %153, %157 : vector<39x39xf32>
      %c4 = arith.constant 4 : index
      %c0_94 = arith.constant 0 : index
      %c0_95 = arith.constant 0 : index
      %159 = vector.load %arg8[%c4, %c0_94, %c0_95] : memref<13x39x39xf32, #tpu.memory_space<vmem>>, vector<1x39x39xf32>
      %160 = vector.shape_cast %159 : vector<1x39x39xf32> to vector<39x39xf32>
      %161 = arith.mulf %158, %160 : vector<39x39xf32>
      %162 = arith.addf %161, %0 : vector<39x39xf32>
      %cst_96 = arith.constant dense<0xFF800000> : vector<39xf32>
      %163 = vector.multi_reduction <maximumf>, %162, %cst_96 [1] : vector<39x39xf32> to vector<39xf32>
      %164 = vector.shape_cast %163 : vector<39xf32> to vector<39x1xf32>
      %165 = arith.maximumf %132, %164 : vector<39x1xf32>
      %166 = arith.subf %132, %165 : vector<39x1xf32>
      %167 = math.exp %166 : vector<39x1xf32>
      %168 = vector.broadcast %165 : vector<39x1xf32> to vector<39x39xf32>
      %169 = arith.subf %162, %168 : vector<39x39xf32>
      %170 = math.exp %169 : vector<39x39xf32>
      %171 = arith.mulf %167, %141 : vector<39x1xf32>
      %cst_97 = arith.constant dense<0.000000e+00> : vector<39xf32>
      %172 = vector.multi_reduction <add>, %170, %cst_97 [1] : vector<39x39xf32> to vector<39xf32>
      %173 = vector.shape_cast %172 : vector<39xf32> to vector<39x1xf32>
      %174 = arith.addf %171, %173 : vector<39x1xf32>
      %175 = vector.broadcast %167 : vector<39x1xf32> to vector<39x8xf32>
      %176 = arith.mulf %175, %145 : vector<39x8xf32>
      %cst_98 = arith.constant dense<0.000000e+00> : vector<39x8xf32>
      %177 = tpu.matmul %170, %152, %cst_98 {dimension_numbers = #tpu.dot_dimension_numbers<[1], [0], [0], [1], [0, 0, 1, 1], [], []>} : vector<39x39xf32>, vector<39x8xf32>, vector<39x8xf32> -> vector<39x8xf32>
      %178 = arith.addf %176, %177 : vector<39x8xf32>
      %c15_i32 = arith.constant 15 : i32
      %179 = arith.addi %3, %c15_i32 : i32
      %c0_99 = arith.constant 0 : index
      %c0_100 = arith.constant 0 : index
      %180 = arith.index_cast %179 : i32 to index
      %c0_101 = arith.constant 0 : index
      %c0_102 = arith.constant 0 : index
      %181 = vector.load %arg5[%c0_99, %c0_100, %180, %c0_101, %c0_102] : memref<1x1x39x39x8xf32, #tpu.memory_space<vmem>>, vector<1x1x1x39x8xf32>
      %182 = vector.shape_cast %181 : vector<1x1x1x39x8xf32> to vector<39x8xf32>
      %c0_103 = arith.constant 0 : index
      %c0_104 = arith.constant 0 : index
      %183 = arith.index_cast %179 : i32 to index
      %c0_105 = arith.constant 0 : index
      %c0_106 = arith.constant 0 : index
      %184 = vector.load %arg6[%c0_103, %c0_104, %183, %c0_105, %c0_106] : memref<1x1x39x39x8xf32, #tpu.memory_space<vmem>>, vector<1x1x1x39x8xf32>
      %185 = vector.shape_cast %184 : vector<1x1x1x39x8xf32> to vector<39x8xf32>
      %cst_107 = arith.constant dense<0.000000e+00> : vector<39x39xf32>
      %186 = tpu.matmul %10, %182, %cst_107 {dimension_numbers = #tpu.dot_dimension_numbers<[1], [1], [0], [0], [0, 0, 1, 0], [], []>} : vector<39x8xf32>, vector<39x8xf32>, vector<39x39xf32> -> vector<39x39xf32>
      %c5_i32 = arith.constant 5 : i32
      %187 = arith.addi %5, %c5_i32 : i32
      %c0_108 = arith.constant 0 : index
      %188 = arith.index_cast %187 : i32 to index
      %c0_109 = arith.constant 0 : index
      %c0_110 = arith.constant 0 : index
      %189 = vector.load %arg7[%c0_108, %188, %c0_109, %c0_110] : memref<1x25x39x39xf32, #tpu.memory_space<vmem>>, vector<1x1x39x39xf32>
      %190 = vector.shape_cast %189 : vector<1x1x39x39xf32> to vector<39x39xf32>
      %191 = arith.addf %186, %190 : vector<39x39xf32>
      %c5 = arith.constant 5 : index
      %c0_111 = arith.constant 0 : index
      %c0_112 = arith.constant 0 : index
      %192 = vector.load %arg8[%c5, %c0_111, %c0_112] : memref<13x39x39xf32, #tpu.memory_space<vmem>>, vector<1x39x39xf32>
      %193 = vector.shape_cast %192 : vector<1x39x39xf32> to vector<39x39xf32>
      %194 = arith.mulf %191, %193 : vector<39x39xf32>
      %195 = arith.addf %194, %0 : vector<39x39xf32>
      %cst_113 = arith.constant dense<0xFF800000> : vector<39xf32>
      %196 = vector.multi_reduction <maximumf>, %195, %cst_113 [1] : vector<39x39xf32> to vector<39xf32>
      %197 = vector.shape_cast %196 : vector<39xf32> to vector<39x1xf32>
      %198 = arith.maximumf %165, %197 : vector<39x1xf32>
      %199 = arith.subf %165, %198 : vector<39x1xf32>
      %200 = math.exp %199 : vector<39x1xf32>
      %201 = vector.broadcast %198 : vector<39x1xf32> to vector<39x39xf32>
      %202 = arith.subf %195, %201 : vector<39x39xf32>
      %203 = math.exp %202 : vector<39x39xf32>
      %204 = arith.mulf %200, %174 : vector<39x1xf32>
      %cst_114 = arith.constant dense<0.000000e+00> : vector<39xf32>
      %205 = vector.multi_reduction <add>, %203, %cst_114 [1] : vector<39x39xf32> to vector<39xf32>
      %206 = vector.shape_cast %205 : vector<39xf32> to vector<39x1xf32>
      %207 = arith.addf %204, %206 : vector<39x1xf32>
      %208 = vector.broadcast %200 : vector<39x1xf32> to vector<39x8xf32>
      %209 = arith.mulf %208, %178 : vector<39x8xf32>
      %cst_115 = arith.constant dense<0.000000e+00> : vector<39x8xf32>
      %210 = tpu.matmul %203, %185, %cst_115 {dimension_numbers = #tpu.dot_dimension_numbers<[1], [0], [0], [1], [0, 0, 1, 1], [], []>} : vector<39x39xf32>, vector<39x8xf32>, vector<39x8xf32> -> vector<39x8xf32>
      %211 = arith.addf %209, %210 : vector<39x8xf32>
      %c18_i32 = arith.constant 18 : i32
      %212 = arith.addi %3, %c18_i32 : i32
      %c0_116 = arith.constant 0 : index
      %c0_117 = arith.constant 0 : index
      %213 = arith.index_cast %212 : i32 to index
      %c0_118 = arith.constant 0 : index
      %c0_119 = arith.constant 0 : index
      %214 = vector.load %arg5[%c0_116, %c0_117, %213, %c0_118, %c0_119] : memref<1x1x39x39x8xf32, #tpu.memory_space<vmem>>, vector<1x1x1x39x8xf32>
      %215 = vector.shape_cast %214 : vector<1x1x1x39x8xf32> to vector<39x8xf32>
      %c0_120 = arith.constant 0 : index
      %c0_121 = arith.constant 0 : index
      %216 = arith.index_cast %212 : i32 to index
      %c0_122 = arith.constant 0 : index
      %c0_123 = arith.constant 0 : index
      %217 = vector.load %arg6[%c0_120, %c0_121, %216, %c0_122, %c0_123] : memref<1x1x39x39x8xf32, #tpu.memory_space<vmem>>, vector<1x1x1x39x8xf32>
      %218 = vector.shape_cast %217 : vector<1x1x1x39x8xf32> to vector<39x8xf32>
      %cst_124 = arith.constant dense<0.000000e+00> : vector<39x39xf32>
      %219 = tpu.matmul %10, %215, %cst_124 {dimension_numbers = #tpu.dot_dimension_numbers<[1], [1], [0], [0], [0, 0, 1, 0], [], []>} : vector<39x8xf32>, vector<39x8xf32>, vector<39x39xf32> -> vector<39x39xf32>
      %c6_i32_125 = arith.constant 6 : i32
      %220 = arith.addi %5, %c6_i32_125 : i32
      %c0_126 = arith.constant 0 : index
      %221 = arith.index_cast %220 : i32 to index
      %c0_127 = arith.constant 0 : index
      %c0_128 = arith.constant 0 : index
      %222 = vector.load %arg7[%c0_126, %221, %c0_127, %c0_128] : memref<1x25x39x39xf32, #tpu.memory_space<vmem>>, vector<1x1x39x39xf32>
      %223 = vector.shape_cast %222 : vector<1x1x39x39xf32> to vector<39x39xf32>
      %224 = arith.addf %219, %223 : vector<39x39xf32>
      %c6 = arith.constant 6 : index
      %c0_129 = arith.constant 0 : index
      %c0_130 = arith.constant 0 : index
      %225 = vector.load %arg8[%c6, %c0_129, %c0_130] : memref<13x39x39xf32, #tpu.memory_space<vmem>>, vector<1x39x39xf32>
      %226 = vector.shape_cast %225 : vector<1x39x39xf32> to vector<39x39xf32>
      %227 = arith.mulf %224, %226 : vector<39x39xf32>
      %228 = arith.addf %227, %0 : vector<39x39xf32>
      %cst_131 = arith.constant dense<0xFF800000> : vector<39xf32>
      %229 = vector.multi_reduction <maximumf>, %228, %cst_131 [1] : vector<39x39xf32> to vector<39xf32>
      %230 = vector.shape_cast %229 : vector<39xf32> to vector<39x1xf32>
      %231 = arith.maximumf %198, %230 : vector<39x1xf32>
      %232 = arith.subf %198, %231 : vector<39x1xf32>
      %233 = math.exp %232 : vector<39x1xf32>
      %234 = vector.broadcast %231 : vector<39x1xf32> to vector<39x39xf32>
      %235 = arith.subf %228, %234 : vector<39x39xf32>
      %236 = math.exp %235 : vector<39x39xf32>
      %237 = arith.mulf %233, %207 : vector<39x1xf32>
      %cst_132 = arith.constant dense<0.000000e+00> : vector<39xf32>
      %238 = vector.multi_reduction <add>, %236, %cst_132 [1] : vector<39x39xf32> to vector<39xf32>
      %239 = vector.shape_cast %238 : vector<39xf32> to vector<39x1xf32>
      %240 = arith.addf %237, %239 : vector<39x1xf32>
      %241 = vector.broadcast %233 : vector<39x1xf32> to vector<39x8xf32>
      %242 = arith.mulf %241, %211 : vector<39x8xf32>
      %cst_133 = arith.constant dense<0.000000e+00> : vector<39x8xf32>
      %243 = tpu.matmul %236, %218, %cst_133 {dimension_numbers = #tpu.dot_dimension_numbers<[1], [0], [0], [1], [0, 0, 1, 1], [], []>} : vector<39x39xf32>, vector<39x8xf32>, vector<39x8xf32> -> vector<39x8xf32>
      %244 = arith.addf %242, %243 : vector<39x8xf32>
      %c21_i32 = arith.constant 21 : i32
      %245 = arith.addi %3, %c21_i32 : i32
      %c0_134 = arith.constant 0 : index
      %c0_135 = arith.constant 0 : index
      %246 = arith.index_cast %245 : i32 to index
      %c0_136 = arith.constant 0 : index
      %c0_137 = arith.constant 0 : index
      %247 = vector.load %arg5[%c0_134, %c0_135, %246, %c0_136, %c0_137] : memref<1x1x39x39x8xf32, #tpu.memory_space<vmem>>, vector<1x1x1x39x8xf32>
      %248 = vector.shape_cast %247 : vector<1x1x1x39x8xf32> to vector<39x8xf32>
      %c0_138 = arith.constant 0 : index
      %c0_139 = arith.constant 0 : index
      %249 = arith.index_cast %245 : i32 to index
      %c0_140 = arith.constant 0 : index
      %c0_141 = arith.constant 0 : index
      %250 = vector.load %arg6[%c0_138, %c0_139, %249, %c0_140, %c0_141] : memref<1x1x39x39x8xf32, #tpu.memory_space<vmem>>, vector<1x1x1x39x8xf32>
      %251 = vector.shape_cast %250 : vector<1x1x1x39x8xf32> to vector<39x8xf32>
      %cst_142 = arith.constant dense<0.000000e+00> : vector<39x39xf32>
      %252 = tpu.matmul %10, %248, %cst_142 {dimension_numbers = #tpu.dot_dimension_numbers<[1], [1], [0], [0], [0, 0, 1, 0], [], []>} : vector<39x8xf32>, vector<39x8xf32>, vector<39x39xf32> -> vector<39x39xf32>
      %c7_i32 = arith.constant 7 : i32
      %253 = arith.addi %5, %c7_i32 : i32
      %c0_143 = arith.constant 0 : index
      %254 = arith.index_cast %253 : i32 to index
      %c0_144 = arith.constant 0 : index
      %c0_145 = arith.constant 0 : index
      %255 = vector.load %arg7[%c0_143, %254, %c0_144, %c0_145] : memref<1x25x39x39xf32, #tpu.memory_space<vmem>>, vector<1x1x39x39xf32>
      %256 = vector.shape_cast %255 : vector<1x1x39x39xf32> to vector<39x39xf32>
      %257 = arith.addf %252, %256 : vector<39x39xf32>
      %c7 = arith.constant 7 : index
      %c0_146 = arith.constant 0 : index
      %c0_147 = arith.constant 0 : index
      %258 = vector.load %arg8[%c7, %c0_146, %c0_147] : memref<13x39x39xf32, #tpu.memory_space<vmem>>, vector<1x39x39xf32>
      %259 = vector.shape_cast %258 : vector<1x39x39xf32> to vector<39x39xf32>
      %260 = arith.mulf %257, %259 : vector<39x39xf32>
      %261 = arith.addf %260, %0 : vector<39x39xf32>
      %cst_148 = arith.constant dense<0xFF800000> : vector<39xf32>
      %262 = vector.multi_reduction <maximumf>, %261, %cst_148 [1] : vector<39x39xf32> to vector<39xf32>
      %263 = vector.shape_cast %262 : vector<39xf32> to vector<39x1xf32>
      %264 = arith.maximumf %231, %263 : vector<39x1xf32>
      %265 = arith.subf %231, %264 : vector<39x1xf32>
      %266 = math.exp %265 : vector<39x1xf32>
      %267 = vector.broadcast %264 : vector<39x1xf32> to vector<39x39xf32>
      %268 = arith.subf %261, %267 : vector<39x39xf32>
      %269 = math.exp %268 : vector<39x39xf32>
      %270 = arith.mulf %266, %240 : vector<39x1xf32>
      %cst_149 = arith.constant dense<0.000000e+00> : vector<39xf32>
      %271 = vector.multi_reduction <add>, %269, %cst_149 [1] : vector<39x39xf32> to vector<39xf32>
      %272 = vector.shape_cast %271 : vector<39xf32> to vector<39x1xf32>
      %273 = arith.addf %270, %272 : vector<39x1xf32>
      %274 = vector.broadcast %266 : vector<39x1xf32> to vector<39x8xf32>
      %275 = arith.mulf %274, %244 : vector<39x8xf32>
      %cst_150 = arith.constant dense<0.000000e+00> : vector<39x8xf32>
      %276 = tpu.matmul %269, %251, %cst_150 {dimension_numbers = #tpu.dot_dimension_numbers<[1], [0], [0], [1], [0, 0, 1, 1], [], []>} : vector<39x39xf32>, vector<39x8xf32>, vector<39x8xf32> -> vector<39x8xf32>
      %277 = arith.addf %275, %276 : vector<39x8xf32>
      %c24_i32 = arith.constant 24 : i32
      %278 = arith.addi %3, %c24_i32 : i32
      %c0_151 = arith.constant 0 : index
      %c0_152 = arith.constant 0 : index
      %279 = arith.index_cast %278 : i32 to index
      %c0_153 = arith.constant 0 : index
      %c0_154 = arith.constant 0 : index
      %280 = vector.load %arg5[%c0_151, %c0_152, %279, %c0_153, %c0_154] : memref<1x1x39x39x8xf32, #tpu.memory_space<vmem>>, vector<1x1x1x39x8xf32>
      %281 = vector.shape_cast %280 : vector<1x1x1x39x8xf32> to vector<39x8xf32>
      %c0_155 = arith.constant 0 : index
      %c0_156 = arith.constant 0 : index
      %282 = arith.index_cast %278 : i32 to index
      %c0_157 = arith.constant 0 : index
      %c0_158 = arith.constant 0 : index
      %283 = vector.load %arg6[%c0_155, %c0_156, %282, %c0_157, %c0_158] : memref<1x1x39x39x8xf32, #tpu.memory_space<vmem>>, vector<1x1x1x39x8xf32>
      %284 = vector.shape_cast %283 : vector<1x1x1x39x8xf32> to vector<39x8xf32>
      %cst_159 = arith.constant dense<0.000000e+00> : vector<39x39xf32>
      %285 = tpu.matmul %10, %281, %cst_159 {dimension_numbers = #tpu.dot_dimension_numbers<[1], [1], [0], [0], [0, 0, 1, 0], [], []>} : vector<39x8xf32>, vector<39x8xf32>, vector<39x39xf32> -> vector<39x39xf32>
      %c8_i32 = arith.constant 8 : i32
      %286 = arith.addi %5, %c8_i32 : i32
      %c0_160 = arith.constant 0 : index
      %287 = arith.index_cast %286 : i32 to index
      %c0_161 = arith.constant 0 : index
      %c0_162 = arith.constant 0 : index
      %288 = vector.load %arg7[%c0_160, %287, %c0_161, %c0_162] : memref<1x25x39x39xf32, #tpu.memory_space<vmem>>, vector<1x1x39x39xf32>
      %289 = vector.shape_cast %288 : vector<1x1x39x39xf32> to vector<39x39xf32>
      %290 = arith.addf %285, %289 : vector<39x39xf32>
      %c8 = arith.constant 8 : index
      %c0_163 = arith.constant 0 : index
      %c0_164 = arith.constant 0 : index
      %291 = vector.load %arg8[%c8, %c0_163, %c0_164] : memref<13x39x39xf32, #tpu.memory_space<vmem>>, vector<1x39x39xf32>
      %292 = vector.shape_cast %291 : vector<1x39x39xf32> to vector<39x39xf32>
      %293 = arith.mulf %290, %292 : vector<39x39xf32>
      %294 = arith.addf %293, %0 : vector<39x39xf32>
      %cst_165 = arith.constant dense<0xFF800000> : vector<39xf32>
      %295 = vector.multi_reduction <maximumf>, %294, %cst_165 [1] : vector<39x39xf32> to vector<39xf32>
      %296 = vector.shape_cast %295 : vector<39xf32> to vector<39x1xf32>
      %297 = arith.maximumf %264, %296 : vector<39x1xf32>
      %298 = arith.subf %264, %297 : vector<39x1xf32>
      %299 = math.exp %298 : vector<39x1xf32>
      %300 = vector.broadcast %297 : vector<39x1xf32> to vector<39x39xf32>
      %301 = arith.subf %294, %300 : vector<39x39xf32>
      %302 = math.exp %301 : vector<39x39xf32>
      %303 = arith.mulf %299, %273 : vector<39x1xf32>
      %cst_166 = arith.constant dense<0.000000e+00> : vector<39xf32>
      %304 = vector.multi_reduction <add>, %302, %cst_166 [1] : vector<39x39xf32> to vector<39xf32>
      %305 = vector.shape_cast %304 : vector<39xf32> to vector<39x1xf32>
      %306 = arith.addf %303, %305 : vector<39x1xf32>
      %307 = vector.broadcast %299 : vector<39x1xf32> to vector<39x8xf32>
      %308 = arith.mulf %307, %277 : vector<39x8xf32>
      %cst_167 = arith.constant dense<0.000000e+00> : vector<39x8xf32>
      %309 = tpu.matmul %302, %284, %cst_167 {dimension_numbers = #tpu.dot_dimension_numbers<[1], [0], [0], [1], [0, 0, 1, 1], [], []>} : vector<39x39xf32>, vector<39x8xf32>, vector<39x8xf32> -> vector<39x8xf32>
      %310 = arith.addf %308, %309 : vector<39x8xf32>
      %c27_i32 = arith.constant 27 : i32
      %311 = arith.addi %3, %c27_i32 : i32
      %c0_168 = arith.constant 0 : index
      %c0_169 = arith.constant 0 : index
      %312 = arith.index_cast %311 : i32 to index
      %c0_170 = arith.constant 0 : index
      %c0_171 = arith.constant 0 : index
      %313 = vector.load %arg5[%c0_168, %c0_169, %312, %c0_170, %c0_171] : memref<1x1x39x39x8xf32, #tpu.memory_space<vmem>>, vector<1x1x1x39x8xf32>
      %314 = vector.shape_cast %313 : vector<1x1x1x39x8xf32> to vector<39x8xf32>
      %c0_172 = arith.constant 0 : index
      %c0_173 = arith.constant 0 : index
      %315 = arith.index_cast %311 : i32 to index
      %c0_174 = arith.constant 0 : index
      %c0_175 = arith.constant 0 : index
      %316 = vector.load %arg6[%c0_172, %c0_173, %315, %c0_174, %c0_175] : memref<1x1x39x39x8xf32, #tpu.memory_space<vmem>>, vector<1x1x1x39x8xf32>
      %317 = vector.shape_cast %316 : vector<1x1x1x39x8xf32> to vector<39x8xf32>
      %cst_176 = arith.constant dense<0.000000e+00> : vector<39x39xf32>
      %318 = tpu.matmul %10, %314, %cst_176 {dimension_numbers = #tpu.dot_dimension_numbers<[1], [1], [0], [0], [0, 0, 1, 0], [], []>} : vector<39x8xf32>, vector<39x8xf32>, vector<39x39xf32> -> vector<39x39xf32>
      %c9_i32_177 = arith.constant 9 : i32
      %319 = arith.addi %5, %c9_i32_177 : i32
      %c0_178 = arith.constant 0 : index
      %320 = arith.index_cast %319 : i32 to index
      %c0_179 = arith.constant 0 : index
      %c0_180 = arith.constant 0 : index
      %321 = vector.load %arg7[%c0_178, %320, %c0_179, %c0_180] : memref<1x25x39x39xf32, #tpu.memory_space<vmem>>, vector<1x1x39x39xf32>
      %322 = vector.shape_cast %321 : vector<1x1x39x39xf32> to vector<39x39xf32>
      %323 = arith.addf %318, %322 : vector<39x39xf32>
      %c9 = arith.constant 9 : index
      %c0_181 = arith.constant 0 : index
      %c0_182 = arith.constant 0 : index
      %324 = vector.load %arg8[%c9, %c0_181, %c0_182] : memref<13x39x39xf32, #tpu.memory_space<vmem>>, vector<1x39x39xf32>
      %325 = vector.shape_cast %324 : vector<1x39x39xf32> to vector<39x39xf32>
      %326 = arith.mulf %323, %325 : vector<39x39xf32>
      %327 = arith.addf %326, %0 : vector<39x39xf32>
      %cst_183 = arith.constant dense<0xFF800000> : vector<39xf32>
      %328 = vector.multi_reduction <maximumf>, %327, %cst_183 [1] : vector<39x39xf32> to vector<39xf32>
      %329 = vector.shape_cast %328 : vector<39xf32> to vector<39x1xf32>
      %330 = arith.maximumf %297, %329 : vector<39x1xf32>
      %331 = arith.subf %297, %330 : vector<39x1xf32>
      %332 = math.exp %331 : vector<39x1xf32>
      %333 = vector.broadcast %330 : vector<39x1xf32> to vector<39x39xf32>
      %334 = arith.subf %327, %333 : vector<39x39xf32>
      %335 = math.exp %334 : vector<39x39xf32>
      %336 = arith.mulf %332, %306 : vector<39x1xf32>
      %cst_184 = arith.constant dense<0.000000e+00> : vector<39xf32>
      %337 = vector.multi_reduction <add>, %335, %cst_184 [1] : vector<39x39xf32> to vector<39xf32>
      %338 = vector.shape_cast %337 : vector<39xf32> to vector<39x1xf32>
      %339 = arith.addf %336, %338 : vector<39x1xf32>
      %340 = vector.broadcast %332 : vector<39x1xf32> to vector<39x8xf32>
      %341 = arith.mulf %340, %310 : vector<39x8xf32>
      %cst_185 = arith.constant dense<0.000000e+00> : vector<39x8xf32>
      %342 = tpu.matmul %335, %317, %cst_185 {dimension_numbers = #tpu.dot_dimension_numbers<[1], [0], [0], [1], [0, 0, 1, 1], [], []>} : vector<39x39xf32>, vector<39x8xf32>, vector<39x8xf32> -> vector<39x8xf32>
      %343 = arith.addf %341, %342 : vector<39x8xf32>
      %c30_i32 = arith.constant 30 : i32
      %344 = arith.addi %3, %c30_i32 : i32
      %c0_186 = arith.constant 0 : index
      %c0_187 = arith.constant 0 : index
      %345 = arith.index_cast %344 : i32 to index
      %c0_188 = arith.constant 0 : index
      %c0_189 = arith.constant 0 : index
      %346 = vector.load %arg5[%c0_186, %c0_187, %345, %c0_188, %c0_189] : memref<1x1x39x39x8xf32, #tpu.memory_space<vmem>>, vector<1x1x1x39x8xf32>
      %347 = vector.shape_cast %346 : vector<1x1x1x39x8xf32> to vector<39x8xf32>
      %c0_190 = arith.constant 0 : index
      %c0_191 = arith.constant 0 : index
      %348 = arith.index_cast %344 : i32 to index
      %c0_192 = arith.constant 0 : index
      %c0_193 = arith.constant 0 : index
      %349 = vector.load %arg6[%c0_190, %c0_191, %348, %c0_192, %c0_193] : memref<1x1x39x39x8xf32, #tpu.memory_space<vmem>>, vector<1x1x1x39x8xf32>
      %350 = vector.shape_cast %349 : vector<1x1x1x39x8xf32> to vector<39x8xf32>
      %cst_194 = arith.constant dense<0.000000e+00> : vector<39x39xf32>
      %351 = tpu.matmul %10, %347, %cst_194 {dimension_numbers = #tpu.dot_dimension_numbers<[1], [1], [0], [0], [0, 0, 1, 0], [], []>} : vector<39x8xf32>, vector<39x8xf32>, vector<39x39xf32> -> vector<39x39xf32>
      %c10_i32 = arith.constant 10 : i32
      %352 = arith.addi %5, %c10_i32 : i32
      %c0_195 = arith.constant 0 : index
      %353 = arith.index_cast %352 : i32 to index
      %c0_196 = arith.constant 0 : index
      %c0_197 = arith.constant 0 : index
      %354 = vector.load %arg7[%c0_195, %353, %c0_196, %c0_197] : memref<1x25x39x39xf32, #tpu.memory_space<vmem>>, vector<1x1x39x39xf32>
      %355 = vector.shape_cast %354 : vector<1x1x39x39xf32> to vector<39x39xf32>
      %356 = arith.addf %351, %355 : vector<39x39xf32>
      %c10 = arith.constant 10 : index
      %c0_198 = arith.constant 0 : index
      %c0_199 = arith.constant 0 : index
      %357 = vector.load %arg8[%c10, %c0_198, %c0_199] : memref<13x39x39xf32, #tpu.memory_space<vmem>>, vector<1x39x39xf32>
      %358 = vector.shape_cast %357 : vector<1x39x39xf32> to vector<39x39xf32>
      %359 = arith.mulf %356, %358 : vector<39x39xf32>
      %360 = arith.addf %359, %0 : vector<39x39xf32>
      %cst_200 = arith.constant dense<0xFF800000> : vector<39xf32>
      %361 = vector.multi_reduction <maximumf>, %360, %cst_200 [1] : vector<39x39xf32> to vector<39xf32>
      %362 = vector.shape_cast %361 : vector<39xf32> to vector<39x1xf32>
      %363 = arith.maximumf %330, %362 : vector<39x1xf32>
      %364 = arith.subf %330, %363 : vector<39x1xf32>
      %365 = math.exp %364 : vector<39x1xf32>
      %366 = vector.broadcast %363 : vector<39x1xf32> to vector<39x39xf32>
      %367 = arith.subf %360, %366 : vector<39x39xf32>
      %368 = math.exp %367 : vector<39x39xf32>
      %369 = arith.mulf %365, %339 : vector<39x1xf32>
      %cst_201 = arith.constant dense<0.000000e+00> : vector<39xf32>
      %370 = vector.multi_reduction <add>, %368, %cst_201 [1] : vector<39x39xf32> to vector<39xf32>
      %371 = vector.shape_cast %370 : vector<39xf32> to vector<39x1xf32>
      %372 = arith.addf %369, %371 : vector<39x1xf32>
      %373 = vector.broadcast %365 : vector<39x1xf32> to vector<39x8xf32>
      %374 = arith.mulf %373, %343 : vector<39x8xf32>
      %cst_202 = arith.constant dense<0.000000e+00> : vector<39x8xf32>
      %375 = tpu.matmul %368, %350, %cst_202 {dimension_numbers = #tpu.dot_dimension_numbers<[1], [0], [0], [1], [0, 0, 1, 1], [], []>} : vector<39x39xf32>, vector<39x8xf32>, vector<39x8xf32> -> vector<39x8xf32>
      %376 = arith.addf %374, %375 : vector<39x8xf32>
      %c33_i32 = arith.constant 33 : i32
      %377 = arith.addi %3, %c33_i32 : i32
      %c0_203 = arith.constant 0 : index
      %c0_204 = arith.constant 0 : index
      %378 = arith.index_cast %377 : i32 to index
      %c0_205 = arith.constant 0 : index
      %c0_206 = arith.constant 0 : index
      %379 = vector.load %arg5[%c0_203, %c0_204, %378, %c0_205, %c0_206] : memref<1x1x39x39x8xf32, #tpu.memory_space<vmem>>, vector<1x1x1x39x8xf32>
      %380 = vector.shape_cast %379 : vector<1x1x1x39x8xf32> to vector<39x8xf32>
      %c0_207 = arith.constant 0 : index
      %c0_208 = arith.constant 0 : index
      %381 = arith.index_cast %377 : i32 to index
      %c0_209 = arith.constant 0 : index
      %c0_210 = arith.constant 0 : index
      %382 = vector.load %arg6[%c0_207, %c0_208, %381, %c0_209, %c0_210] : memref<1x1x39x39x8xf32, #tpu.memory_space<vmem>>, vector<1x1x1x39x8xf32>
      %383 = vector.shape_cast %382 : vector<1x1x1x39x8xf32> to vector<39x8xf32>
      %cst_211 = arith.constant dense<0.000000e+00> : vector<39x39xf32>
      %384 = tpu.matmul %10, %380, %cst_211 {dimension_numbers = #tpu.dot_dimension_numbers<[1], [1], [0], [0], [0, 0, 1, 0], [], []>} : vector<39x8xf32>, vector<39x8xf32>, vector<39x39xf32> -> vector<39x39xf32>
      %c11_i32 = arith.constant 11 : i32
      %385 = arith.addi %5, %c11_i32 : i32
      %c0_212 = arith.constant 0 : index
      %386 = arith.index_cast %385 : i32 to index
      %c0_213 = arith.constant 0 : index
      %c0_214 = arith.constant 0 : index
      %387 = vector.load %arg7[%c0_212, %386, %c0_213, %c0_214] : memref<1x25x39x39xf32, #tpu.memory_space<vmem>>, vector<1x1x39x39xf32>
      %388 = vector.shape_cast %387 : vector<1x1x39x39xf32> to vector<39x39xf32>
      %389 = arith.addf %384, %388 : vector<39x39xf32>
      %c11 = arith.constant 11 : index
      %c0_215 = arith.constant 0 : index
      %c0_216 = arith.constant 0 : index
      %390 = vector.load %arg8[%c11, %c0_215, %c0_216] : memref<13x39x39xf32, #tpu.memory_space<vmem>>, vector<1x39x39xf32>
      %391 = vector.shape_cast %390 : vector<1x39x39xf32> to vector<39x39xf32>
      %392 = arith.mulf %389, %391 : vector<39x39xf32>
      %393 = arith.addf %392, %0 : vector<39x39xf32>
      %cst_217 = arith.constant dense<0xFF800000> : vector<39xf32>
      %394 = vector.multi_reduction <maximumf>, %393, %cst_217 [1] : vector<39x39xf32> to vector<39xf32>
      %395 = vector.shape_cast %394 : vector<39xf32> to vector<39x1xf32>
      %396 = arith.maximumf %363, %395 : vector<39x1xf32>
      %397 = arith.subf %363, %396 : vector<39x1xf32>
      %398 = math.exp %397 : vector<39x1xf32>
      %399 = vector.broadcast %396 : vector<39x1xf32> to vector<39x39xf32>
      %400 = arith.subf %393, %399 : vector<39x39xf32>
      %401 = math.exp %400 : vector<39x39xf32>
      %402 = arith.mulf %398, %372 : vector<39x1xf32>
      %cst_218 = arith.constant dense<0.000000e+00> : vector<39xf32>
      %403 = vector.multi_reduction <add>, %401, %cst_218 [1] : vector<39x39xf32> to vector<39xf32>
      %404 = vector.shape_cast %403 : vector<39xf32> to vector<39x1xf32>
      %405 = arith.addf %402, %404 : vector<39x1xf32>
      %406 = vector.broadcast %398 : vector<39x1xf32> to vector<39x8xf32>
      %407 = arith.mulf %406, %376 : vector<39x8xf32>
      %cst_219 = arith.constant dense<0.000000e+00> : vector<39x8xf32>
      %408 = tpu.matmul %401, %383, %cst_219 {dimension_numbers = #tpu.dot_dimension_numbers<[1], [0], [0], [1], [0, 0, 1, 1], [], []>} : vector<39x39xf32>, vector<39x8xf32>, vector<39x8xf32> -> vector<39x8xf32>
      %409 = arith.addf %407, %408 : vector<39x8xf32>
      %c36_i32 = arith.constant 36 : i32
      %410 = arith.addi %3, %c36_i32 : i32
      %c0_220 = arith.constant 0 : index
      %c0_221 = arith.constant 0 : index
      %411 = arith.index_cast %410 : i32 to index
      %c0_222 = arith.constant 0 : index
      %c0_223 = arith.constant 0 : index
      %412 = vector.load %arg5[%c0_220, %c0_221, %411, %c0_222, %c0_223] : memref<1x1x39x39x8xf32, #tpu.memory_space<vmem>>, vector<1x1x1x39x8xf32>
      %413 = vector.shape_cast %412 : vector<1x1x1x39x8xf32> to vector<39x8xf32>
      %c0_224 = arith.constant 0 : index
      %c0_225 = arith.constant 0 : index
      %414 = arith.index_cast %410 : i32 to index
      %c0_226 = arith.constant 0 : index
      %c0_227 = arith.constant 0 : index
      %415 = vector.load %arg6[%c0_224, %c0_225, %414, %c0_226, %c0_227] : memref<1x1x39x39x8xf32, #tpu.memory_space<vmem>>, vector<1x1x1x39x8xf32>
      %416 = vector.shape_cast %415 : vector<1x1x1x39x8xf32> to vector<39x8xf32>
      %cst_228 = arith.constant dense<0.000000e+00> : vector<39x39xf32>
      %417 = tpu.matmul %10, %413, %cst_228 {dimension_numbers = #tpu.dot_dimension_numbers<[1], [1], [0], [0], [0, 0, 1, 0], [], []>} : vector<39x8xf32>, vector<39x8xf32>, vector<39x39xf32> -> vector<39x39xf32>
      %c12_i32_229 = arith.constant 12 : i32
      %418 = arith.addi %5, %c12_i32_229 : i32
      %c0_230 = arith.constant 0 : index
      %419 = arith.index_cast %418 : i32 to index
      %c0_231 = arith.constant 0 : index
      %c0_232 = arith.constant 0 : index
      %420 = vector.load %arg7[%c0_230, %419, %c0_231, %c0_232] : memref<1x25x39x39xf32, #tpu.memory_space<vmem>>, vector<1x1x39x39xf32>
      %421 = vector.shape_cast %420 : vector<1x1x39x39xf32> to vector<39x39xf32>
      %422 = arith.addf %417, %421 : vector<39x39xf32>
      %c12 = arith.constant 12 : index
      %c0_233 = arith.constant 0 : index
      %c0_234 = arith.constant 0 : index
      %423 = vector.load %arg8[%c12, %c0_233, %c0_234] : memref<13x39x39xf32, #tpu.memory_space<vmem>>, vector<1x39x39xf32>
      %424 = vector.shape_cast %423 : vector<1x39x39xf32> to vector<39x39xf32>
      %425 = arith.mulf %422, %424 : vector<39x39xf32>
      %426 = arith.addf %425, %0 : vector<39x39xf32>
      %cst_235 = arith.constant dense<0xFF800000> : vector<39xf32>
      %427 = vector.multi_reduction <maximumf>, %426, %cst_235 [1] : vector<39x39xf32> to vector<39xf32>
      %428 = vector.shape_cast %427 : vector<39xf32> to vector<39x1xf32>
      %429 = arith.maximumf %396, %428 : vector<39x1xf32>
      %430 = arith.subf %396, %429 : vector<39x1xf32>
      %431 = math.exp %430 : vector<39x1xf32>
      %432 = vector.broadcast %429 : vector<39x1xf32> to vector<39x39xf32>
      %433 = arith.subf %426, %432 : vector<39x39xf32>
      %434 = math.exp %433 : vector<39x39xf32>
      %435 = arith.mulf %431, %405 : vector<39x1xf32>
      %cst_236 = arith.constant dense<0.000000e+00> : vector<39xf32>
      %436 = vector.multi_reduction <add>, %434, %cst_236 [1] : vector<39x39xf32> to vector<39xf32>
      %437 = vector.shape_cast %436 : vector<39xf32> to vector<39x1xf32>
      %438 = arith.addf %435, %437 : vector<39x1xf32>
      %439 = vector.broadcast %431 : vector<39x1xf32> to vector<39x8xf32>
      %440 = arith.mulf %439, %409 : vector<39x8xf32>
      %cst_237 = arith.constant dense<0.000000e+00> : vector<39x8xf32>
      %441 = tpu.matmul %434, %416, %cst_237 {dimension_numbers = #tpu.dot_dimension_numbers<[1], [0], [0], [1], [0, 0, 1, 1], [], []>} : vector<39x39xf32>, vector<39x8xf32>, vector<39x8xf32> -> vector<39x8xf32>
      %442 = arith.addf %440, %441 : vector<39x8xf32>
      %443 = tpu.reciprocal %438 {approx = true} : vector<39x1xf32> -> vector<39x1xf32>
      %444 = vector.broadcast %443 : vector<39x1xf32> to vector<39x8xf32>
      %445 = arith.mulf %442, %444 : vector<39x8xf32>
      %c0_238 = arith.constant 0 : index
      %c0_239 = arith.constant 0 : index
      %446 = arith.index_cast %arg11 : i32 to index
      %c0_240 = arith.constant 0 : index
      %c0_241 = arith.constant 0 : index
      %447 = vector.load %arg10[%c0_238, %c0_239, %446, %c0_240, %c0_241] : memref<1x1x39x39x8xf32, #tpu.memory_space<vmem>>, vector<1x1x1x39x8xf32>
      %448 = vector.shape_cast %447 : vector<1x1x1x39x8xf32> to vector<39x8xf32>
      %449 = vector.shape_cast %445 : vector<39x8xf32> to vector<1x1x1x39x8xf32>
      tpu.vector_store %arg10[%c0_238, %c0_239, %446, %c0_240, %c0_241], %449 {strides = array<i32>} : memref<1x1x39x39x8xf32, #tpu.memory_space<vmem>>, vector<1x1x1x39x8xf32>,
    }
    %c39_i32_1 = arith.constant 39 : i32
    return
  }
  func.func @transform_0(%arg0: i32, %arg1: i32, %arg2: memref<39xi32, #tpu.memory_space<smem>>, %arg3: memref<39xi32, #tpu.memory_space<smem>>) -> (i32, i32, i32, i32, i32) {
    %c0_i32 = arith.constant 0 : i32
    %c0_i32_0 = arith.constant 0 : i32
    %c0_i32_1 = arith.constant 0 : i32
    %c0_i32_2 = arith.constant 0 : i32
    return %arg0, %arg1, %c0_i32, %c0_i32_0, %c0_i32_1 : i32, i32, i32, i32, i32
  }
  func.func @transform_1(%arg0: i32, %arg1: i32, %arg2: memref<39xi32, #tpu.memory_space<smem>>, %arg3: memref<39xi32, #tpu.memory_space<smem>>) -> (i32, i32, i32, i32, i32) {
    %c0_i32 = arith.constant 0 : i32
    %c0_i32_0 = arith.constant 0 : i32
    %c0_i32_1 = arith.constant 0 : i32
    %c0_i32_2 = arith.constant 0 : i32
    return %arg0, %arg1, %c0_i32, %c0_i32_0, %c0_i32_1 : i32, i32, i32, i32, i32
  }
  func.func @transform_2(%arg0: i32, %arg1: i32, %arg2: memref<39xi32, #tpu.memory_space<smem>>, %arg3: memref<39xi32, #tpu.memory_space<smem>>) -> (i32, i32, i32, i32, i32) {
    %c0_i32 = arith.constant 0 : i32
    %c0_i32_0 = arith.constant 0 : i32
    %c0_i32_1 = arith.constant 0 : i32
    %c0_i32_2 = arith.constant 0 : i32
    return %arg0, %arg1, %c0_i32, %c0_i32_0, %c0_i32_1 : i32, i32, i32, i32, i32
  }
  func.func @transform_3(%arg0: i32, %arg1: i32, %arg2: memref<39xi32, #tpu.memory_space<smem>>, %arg3: memref<39xi32, #tpu.memory_space<smem>>) -> (i32, i32, i32, i32) {
    %c0_i32 = arith.constant 0 : i32
    %c0_i32_0 = arith.constant 0 : i32
    %c0_i32_1 = arith.constant 0 : i32
    %c0_i32_2 = arith.constant 0 : i32
    return %arg1, %c0_i32, %c0_i32_0, %c0_i32_1 : i32, i32, i32, i32
  }
  func.func @transform_4(%arg0: i32, %arg1: i32, %arg2: memref<39xi32, #tpu.memory_space<smem>>, %arg3: memref<39xi32, #tpu.memory_space<smem>>) -> (i32, i32, i32) {
    %c0_i32 = arith.constant 0 : i32
    %c0_i32_0 = arith.constant 0 : i32
    %c0_i32_1 = arith.constant 0 : i32
    %c0_i32_2 = arith.constant 0 : i32
    return %c0_i32, %c0_i32_0, %c0_i32_1 : i32, i32, i32
  }
  func.func @transform_5(%arg0: i32, %arg1: i32, %arg2: memref<39xi32, #tpu.memory_space<smem>>, %arg3: memref<39xi32, #tpu.memory_space<smem>>) -> (i32, i32) {
    %c0_i32 = arith.constant 0 : i32
    %c0_i32_0 = arith.constant 0 : i32
    %c0_i32_1 = arith.constant 0 : i32
    return %c0_i32, %c0_i32_0 : i32, i32
  }
  func.func @transform_6(%arg0: i32, %arg1: i32, %arg2: memref<39xi32, #tpu.memory_space<smem>>, %arg3: memref<39xi32, #tpu.memory_space<smem>>) -> (i32, i32, i32, i32, i32) {
    %c0_i32 = arith.constant 0 : i32
    %c0_i32_0 = arith.constant 0 : i32
    %c0_i32_1 = arith.constant 0 : i32
    %c0_i32_2 = arith.constant 0 : i32
    return %arg0, %arg1, %c0_i32, %c0_i32_0, %c0_i32_1 : i32, i32, i32, i32, i32
  }
}

module attributes {stable_mosaic.version = 11 : i64} {
  func.func @_linear_kernel(%arg0: i32, %arg1: memref<512x32xf32, #tpu.memory_space<vmem>>, %arg2: memref<32x128xf32, #tpu.memory_space<vmem>>, %arg3: memref<1x128xf32, #tpu.memory_space<vmem>>, %arg4: memref<512x128xf32, #tpu.memory_space<vmem>>) attributes {dimension_semantics = [#tpu.dimension_semantics<parallel>], iteration_bounds = array<i64: 1>, scalar_prefetch = 0 : i64, scratch_operands = 0 : i64, tpu.core_type = #tpu.core_type<tc>, window_params = [{transform_indices = @transform_0, window_bounds = array<i64: 512, 32>}, {pipeline_mode = #tpu.pipeline_mode<synchronous>, transform_indices = @transform_1, window_bounds = array<i64: 32, 128>}, {pipeline_mode = #tpu.pipeline_mode<synchronous>, transform_indices = @transform_2, window_bounds = array<i64: 1, 128>}, {transform_indices = @transform_3, window_bounds = array<i64: 512, 128>}]} {
    %c0 = arith.constant 0 : index
    %c0_0 = arith.constant 0 : index
    %0 = vector.load %arg1[%c0, %c0_0] : memref<512x32xf32, #tpu.memory_space<vmem>>, vector<512x32xf32>
    %c0_1 = arith.constant 0 : index
    %c0_2 = arith.constant 0 : index
    %1 = vector.load %arg2[%c0_1, %c0_2] : memref<32x128xf32, #tpu.memory_space<vmem>>, vector<32x128xf32>
    %cst = arith.constant dense<0.000000e+00> : vector<512x128xf32>
    %2 = tpu.matmul %0, %1, %cst {dimension_numbers = #tpu.dot_dimension_numbers<[1], [0], [0], [1], [0, 0, 1, 1], [], []>} : vector<512x32xf32>, vector<32x128xf32>, vector<512x128xf32> -> vector<512x128xf32>
    %c0_3 = arith.constant 0 : index
    %c0_4 = arith.constant 0 : index
    %3 = vector.load %arg3[%c0_3, %c0_4] : memref<1x128xf32, #tpu.memory_space<vmem>>, vector<1x128xf32>
    %4 = vector.broadcast %3 : vector<1x128xf32> to vector<512x128xf32>
    %5 = arith.addf %2, %4 : vector<512x128xf32>
    %c0_5 = arith.constant 0 : index
    %c0_6 = arith.constant 0 : index
    %6 = vector.load %arg4[%c0_5, %c0_6] : memref<512x128xf32, #tpu.memory_space<vmem>>, vector<512x128xf32>
    tpu.vector_store %arg4[%c0_5, %c0_6], %5 {strides = array<i32>} : memref<512x128xf32, #tpu.memory_space<vmem>>, vector<512x128xf32>,
    return
  }
  func.func @transform_0(%arg0: i32) -> (i32, i32) {
    %c0_i32 = arith.constant 0 : i32
    %c0_i32_0 = arith.constant 0 : i32
    return %arg0, %c0_i32 : i32, i32
  }
  func.func @transform_1(%arg0: i32) -> (i32, i32) {
    %c0_i32 = arith.constant 0 : i32
    %c0_i32_0 = arith.constant 0 : i32
    %c0_i32_1 = arith.constant 0 : i32
    return %c0_i32, %c0_i32_0 : i32, i32
  }
  func.func @transform_2(%arg0: i32) -> (i32, i32) {
    %c0_i32 = arith.constant 0 : i32
    %c0_i32_0 = arith.constant 0 : i32
    %c0_i32_1 = arith.constant 0 : i32
    return %c0_i32, %c0_i32_0 : i32, i32
  }
  func.func @transform_3(%arg0: i32) -> (i32, i32) {
    %c0_i32 = arith.constant 0 : i32
    %c0_i32_0 = arith.constant 0 : i32
    return %arg0, %c0_i32 : i32, i32
  }
}

</mosaic_0001>

<bundles_post_ra>
// kernel: ga_forward.3
= control target key start
LH: loop header
LB: loop body
LE: loop exit
PB: predicated region body
PF: predicated region fallthrough
CT: control target
= control target key end

     0   :  { %s1243_s12 = smov 0   ;;  %s1544_s0 = inlined_call_operand.vmem [shape: f32[3072,32], index: 0, kind: input, shape index: {}]   ;;  %s1545_s1 = inlined_call_operand.vmem [shape: f32[32,128], index: 1, kind: input, shape index: {}]   ;;  %s1546_s2 = inlined_call_operand.vmem [shape: f32[1,128], index: 2, kind: input, shape index: {}]   ;;  %s1547_s3 = inlined_call_operand.vmem [shape: f32[3072,128], index: 3, kind: output, shape index: {}]  }
   0x1 LB: > { %s947_s13 = sadd.s32 4294967295, %s1221_s12   ;;  %p951_p0 = scmp.ge.s32.totalorder %s1221_s12, 1  ;;  %s1221_s12 = sphi %s1243_s12, %s13_s12  }
   0x2   : > { %p138_p1 = scmp.lt.s32.totalorder %s1221_s12, 7 }
   0x4   : > { %p139_p2 = pnand %p951_p0, %p138_p1 }
   0x5   : > { %v238_v0 = vld [vmem:[%s1545_s1] sm:$0xff] (!%p139_p2)  ;;  %v239_v1 = vld [vmem:[%s1545_s1 + $0x8] sm:$0xff] (!%p139_p2)  ;;  %v240_v2 = vld [vmem:[%s1545_s1 + $0x10] sm:$0xff] (!%p139_p2)  ;;  %s952_s20 = sshll.u32 (!%p139_p2), %s947_s13, 6  ;;  %vm249_vm0 = vcmask (!%p139_p2), 261120  }
   0x6   : > { %142 = sbr.rel (%p139_p2) target bundleno = 295 (0x127), region = 32  ;;  %v1195_v3 = vpack.c.bf16 (!%p139_p2), %v239_v1, %v238_v0  ;;  %v241_v4 = vld [vmem:[%s1545_s1 + $0x18] sm:$0xff] (!%p139_p2)  ;;  %p163_p3 = scmp.lt.s32.totalorder (!%p139_p2), %s952_s20, 383 }
   0x7   : > { %v1199_v5 = vpack.c.bf16 (!%p139_p2), %v241_v4, %v240_v2 }
   0x8   : > { %1196 = vmatprep.subr.bf16.mxu0 (!%p139_p2), %v1195_v3  ;;  %1203 = vmatprep.subr.bf16.mxu1 (!%p139_p2), %v1195_v3 }
   0x9   : > { %1198 = vmatpush3.bf16.msra.mxu0 (!%p139_p2), %v1195_v3  ;;  %1205 = vmatpush3.bf16.msra.mxu1 (!%p139_p2), %v1195_v3 }
   0xa   : > { %1200 = vmatprep.subr.bf16.mxu0 (!%p139_p2), %v1199_v5  ;;  %1204 = vmatprep.subr.bf16.mxu1 (!%p139_p2), %v1199_v5 }
   0xd   : > { %s1549_s20 = smov (!%p163_p3, %s952_s20), 383  ;;  %1202 = vmatpush3.bf16.msra.mxu0 %v1199_v5  ;;  %1206 = vmatpush3.bf16.msra.mxu1 %v1199_v5 }
   0xe   : > { %s953_s23 = sshll.u32 %s1549_s20, 3 }
   0xf   : > { %s1271_s26 = scalar_lea.vmem %s1544_s0, %s953_s23  ;;  %s1411_s4 = scalar_lea.vmem %s1547_s3, %s953_s23 }
  0x10   : > { %v174_v6 = vld [vmem:[%s1271_s26] sm:$0xff]  ;;  %v175_v8 = vld [vmem:[%s1271_s26 + $0x8] sm:$0xff]  ;;  %v176_v10 = vld [vmem:[%s1271_s26 + $0x10] sm:$0xff] }
  0x11   : > { %v206_v7 = vld [vmem:[%s1271_s26 + $0x100] sm:$0xff]  ;;  %v207_v9 = vld [vmem:[%s1271_s26 + $0x108] sm:$0xff]  ;;  %1099 = vmatprep.mubr.msk.f32.mxu0 %vm249_vm0, %v174_v6  ;;  %v208_v11 = vld [vmem:[%s1271_s26 + $0x110] sm:$0xff] }
  0x12   : > { %1147 = vmatprep.mubr.msk.f32.mxu1 %vm249_vm0, %v206_v7  ;;  %1100 = vmatmul.mubr.msk.f32.vlgmr.msra.gmra.mrb[0].mxu0 %vm249_vm0, %v175_v8  ;;  %v177_v12 = vld [vmem:[%s1271_s26 + $0x18] sm:$0xff]  ;;  %v178_v14 = vld [vmem:[%s1271_s26 + $0x20] sm:$0xff]  ;;  %v179_v16 = vld [vmem:[%s1271_s26 + $0x28] sm:$0xff] }
  0x13   : > { %1148 = vmatmul.mubr.msk.f32.vlgmr.msra.gmra.mrb[0].mxu1 %vm249_vm0, %v207_v9  ;;  %1102 = vmatprep.mubr.msk.f32.mxu0 %vm249_vm0, %v176_v10  ;;  %v209_v13 = vld [vmem:[%s1271_s26 + $0x118] sm:$0xff]  ;;  %v210_v15 = vld [vmem:[%s1271_s26 + $0x120] sm:$0xff]  ;;  %v211_v17 = vld [vmem:[%s1271_s26 + $0x128] sm:$0xff] }
  0x14   : > { %1150 = vmatprep.mubr.msk.f32.mxu1 %vm249_vm0, %v208_v11  ;;  %v180_v18 = vld [vmem:[%s1271_s26 + $0x30] sm:$0xff]  ;;  %v181_v20 = vld [vmem:[%s1271_s26 + $0x38] sm:$0xff]  ;;  %v182_v22 = vld [vmem:[%s1271_s26 + $0x40] sm:$0xff] }
  0x15   : > { %v212_v19 = vld [vmem:[%s1271_s26 + $0x130] sm:$0xff]  ;;  %v213_v21 = vld [vmem:[%s1271_s26 + $0x138] sm:$0xff]  ;;  %v214_v23 = vld [vmem:[%s1271_s26 + $0x140] sm:$0xff] }
  0x16   : > { %1103 = vmatmul.mubr.msk.f32.gmra.mrb[2].mxu0 %vm249_vm0, %v177_v12  ;;  %v183_v24 = vld [vmem:[%s1271_s26 + $0x48] sm:$0xff]  ;;  %v184_v26 = vld [vmem:[%s1271_s26 + $0x50] sm:$0xff]  ;;  %v185_v28 = vld [vmem:[%s1271_s26 + $0x58] sm:$0xff] }
  0x17   : > { %1151 = vmatmul.mubr.msk.f32.gmra.mrb[2].mxu1 %vm249_vm0, %v209_v13  ;;  %1105 = vmatprep.mubr.msk.f32.mxu0 %vm249_vm0, %v178_v14  ;;  %v215_v25 = vld [vmem:[%s1271_s26 + $0x148] sm:$0xff]  ;;  %v216_v27 = vld [vmem:[%s1271_s26 + $0x150] sm:$0xff]  ;;  %v217_v29 = vld [vmem:[%s1271_s26 + $0x158] sm:$0xff] }
  0x18   : > { %1153 = vmatprep.mubr.msk.f32.mxu1 %vm249_vm0, %v210_v15  ;;  %v186_v30 = vld [vmem:[%s1271_s26 + $0x60] sm:$0xff]  ;;  %v187_v32 = vld [vmem:[%s1271_s26 + $0x68] sm:$0xff]  ;;  %v188_v34 = vld [vmem:[%s1271_s26 + $0x70] sm:$0xff] }
  0x19   : > { %v218_v31 = vld [vmem:[%s1271_s26 + $0x160] sm:$0xff]  ;;  %v219_v33 = vld [vmem:[%s1271_s26 + $0x168] sm:$0xff]  ;;  %v220_v35 = vld [vmem:[%s1271_s26 + $0x170] sm:$0xff] }
  0x1a   : > { %1106 = vmatmul.mubr.msk.f32.gmra.mrb[4].mxu0 %vm249_vm0, %v179_v16  ;;  %v189_v36 = vld [vmem:[%s1271_s26 + $0x78] sm:$0xff]  ;;  %v190_v38 = vld [vmem:[%s1271_s26 + $0x80] sm:$0xff]  ;;  %v191_v40 = vld [vmem:[%s1271_s26 + $0x88] sm:$0xff] }
  0x1b   : > { %1154 = vmatmul.mubr.msk.f32.gmra.mrb[4].mxu1 %vm249_vm0, %v211_v17  ;;  %1108 = vmatprep.mubr.msk.f32.mxu0 %vm249_vm0, %v180_v18  ;;  %v221_v37 = vld [vmem:[%s1271_s26 + $0x178] sm:$0xff]  ;;  %v222_v39 = vld [vmem:[%s1271_s26 + $0x180] sm:$0xff]  ;;  %v223_v41 = vld [vmem:[%s1271_s26 + $0x188] sm:$0xff] }
  0x1c   : > { %1156 = vmatprep.mubr.msk.f32.mxu1 %vm249_vm0, %v212_v19  ;;  %v192_v42 = vld [vmem:[%s1271_s26 + $0x90] sm:$0xff]  ;;  %v193_v44 = vld [vmem:[%s1271_s26 + $0x98] sm:$0xff]  ;;  %v194_v46 = vld [vmem:[%s1271_s26 + $0xa0] sm:$0xff] }
  0x1d   : > { %v224_v43 = vld [vmem:[%s1271_s26 + $0x190] sm:$0xff]  ;;  %v225_v45 = vld [vmem:[%s1271_s26 + $0x198] sm:$0xff]  ;;  %v226_v47 = vld [vmem:[%s1271_s26 + $0x1a0] sm:$0xff] }
  0x1e   : > { %1109 = vmatmul.mubr.msk.f32.gmra.mrb[6].mxu0 %vm249_vm0, %v181_v20  ;;  %v195_v48 = vld [vmem:[%s1271_s26 + $0xa8] sm:$0xff]  ;;  %v196_v50 = vld [vmem:[%s1271_s26 + $0xb0] sm:$0xff]  ;;  %v197_v52 = vld [vmem:[%s1271_s26 + $0xb8] sm:$0xff] }
  0x1f   : > { %1157 = vmatmul.mubr.msk.f32.gmra.mrb[6].mxu1 %vm249_vm0, %v213_v21  ;;  %1111 = vmatprep.mubr.msk.f32.mxu0 %vm249_vm0, %v182_v22  ;;  %v227_v49 = vld [vmem:[%s1271_s26 + $0x1a8] sm:$0xff]  ;;  %v228_v51 = vld [vmem:[%s1271_s26 + $0x1b0] sm:$0xff]  ;;  %v229_v53 = vld [vmem:[%s1271_s26 + $0x1b8] sm:$0xff] }
  0x20   : > { %1159 = vmatprep.mubr.msk.f32.mxu1 %vm249_vm0, %v214_v23  ;;  %v198_v54 = vld [vmem:[%s1271_s26 + $0xc0] sm:$0xff]  ;;  %v199_v56 = vld [vmem:[%s1271_s26 + $0xc8] sm:$0xff]  ;;  %v200_v58 = vld [vmem:[%s1271_s26 + $0xd0] sm:$0xff] }
  0x21   : > { %v230_v55 = vld [vmem:[%s1271_s26 + $0x1c0] sm:$0xff]  ;;  %v231_v57 = vld [vmem:[%s1271_s26 + $0x1c8] sm:$0xff]  ;;  %v232_v59 = vld [vmem:[%s1271_s26 + $0x1d0] sm:$0xff] }
  0x22   : > { %1112 = vmatmul.mubr.msk.f32.gmra.mrb[8].mxu0 %vm249_vm0, %v183_v24  ;;  %v201_v60 = vld [vmem:[%s1271_s26 + $0xd8] sm:$0xff]  ;;  %v202_v62 = vld [vmem:[%s1271_s26 + $0xe0] sm:$0xff]  ;;  %v203_v0 = vld [vmem:[%s1271_s26 + $0xe8] sm:$0xff] }
  0x23   : > { %1160 = vmatmul.mubr.msk.f32.gmra.mrb[8].mxu1 %vm249_vm0, %v215_v25  ;;  %1114 = vmatprep.mubr.msk.f32.mxu0 %vm249_vm0, %v184_v26  ;;  %v233_v61 = vld [vmem:[%s1271_s26 + $0x1d8] sm:$0xff]  ;;  %v234_v63 = vld [vmem:[%s1271_s26 + $0x1e0] sm:$0xff]  ;;  %v235_v1 = vld [vmem:[%s1271_s26 + $0x1e8] sm:$0xff] }
  0x24   : > { %1162 = vmatprep.mubr.msk.f32.mxu1 %vm249_vm0, %v216_v27  ;;  %v204_v2 = vld [vmem:[%s1271_s26 + $0xf0] sm:$0xff]  ;;  %v205_v4 = vld [vmem:[%s1271_s26 + $0xf8] sm:$0xff]  ;;  %v1404_v6 = vld [vmem:[%s1546_s2] ss:$0 sm:$0xff] }
  0x25   : > { %v236_v3 = vld [vmem:[%s1271_s26 + $0x1f0] sm:$0xff]  ;;  %v237_v5 = vld [vmem:[%s1271_s26 + $0x1f8] sm:$0xff] }
  0x26   : > { %1115 = vmatmul.mubr.msk.f32.gmra.mrb[10].mxu0 %vm249_vm0, %v185_v28 }
  0x27   : > { %1163 = vmatmul.mubr.msk.f32.gmra.mrb[10].mxu1 %vm249_vm0, %v217_v29  ;;  %1117 = vmatprep.mubr.msk.f32.mxu0 %vm249_vm0, %v186_v30 }
  0x28   : > { %1165 = vmatprep.mubr.msk.f32.mxu1 %vm249_vm0, %v218_v31 }
  0x2a   : > { %1118 = vmatmul.mubr.msk.f32.gmra.mrb[12].mxu0 %vm249_vm0, %v187_v32 }
  0x2b   : > { %1166 = vmatmul.mubr.msk.f32.gmra.mrb[12].mxu1 %vm249_vm0, %v219_v33  ;;  %1120 = vmatprep.mubr.msk.f32.mxu0 %vm249_vm0, %v188_v34 }
  0x2c   : > { %1168 = vmatprep.mubr.msk.f32.mxu1 %vm249_vm0, %v220_v35 }
  0x2e   : > { %1121 = vmatmul.mubr.msk.f32.gmra.mrb[14].mxu0 %vm249_vm0, %v189_v36 }
  0x2f   : > { %1169 = vmatmul.mubr.msk.f32.gmra.mrb[14].mxu1 %vm249_vm0, %v221_v37  ;;  %1123 = vmatprep.mubr.msk.f32.mxu0 %vm249_vm0, %v190_v38 }
  0x30   : > { %1171 = vmatprep.mubr.msk.f32.mxu1 %vm249_vm0, %v222_v39 }
  0x32   : > { %1124 = vmatmul.mubr.msk.f32.gmra.mrb[16].mxu0 %vm249_vm0, %v191_v40 }
  0x33   : > { %1172 = vmatmul.mubr.msk.f32.gmra.mrb[16].mxu1 %vm249_vm0, %v223_v41  ;;  %1126 = vmatprep.mubr.msk.f32.mxu0 %vm249_vm0, %v192_v42 }
  0x34   : > { %1174 = vmatprep.mubr.msk.f32.mxu1 %vm249_vm0, %v224_v43 }
  0x36   : > { %1127 = vmatmul.mubr.msk.f32.gmra.mrb[18].mxu0 %vm249_vm0, %v193_v44 }
  0x37   : > { %1175 = vmatmul.mubr.msk.f32.gmra.mrb[18].mxu1 %vm249_vm0, %v225_v45  ;;  %1129 = vmatprep.mubr.msk.f32.mxu0 %vm249_vm0, %v194_v46 }
  0x38   : > { %1177 = vmatprep.mubr.msk.f32.mxu1 %vm249_vm0, %v226_v47 }
  0x3a   : > { %1130 = vmatmul.mubr.msk.f32.gmra.mrb[20].mxu0 %vm249_vm0, %v195_v48 }
  0x3b   : > { %1178 = vmatmul.mubr.msk.f32.gmra.mrb[20].mxu1 %vm249_vm0, %v227_v49  ;;  %1132 = vmatprep.mubr.msk.f32.mxu0 %vm249_vm0, %v196_v50 }
  0x3c   : > { %1180 = vmatprep.mubr.msk.f32.mxu1 %vm249_vm0, %v228_v51 }
  0x3e   : > { %1133 = vmatmul.mubr.msk.f32.gmra.mrb[22].mxu0 %vm249_vm0, %v197_v52 }
  0x3f   : > { %1181 = vmatmul.mubr.msk.f32.gmra.mrb[22].mxu1 %vm249_vm0, %v229_v53  ;;  %1135 = vmatprep.mubr.msk.f32.mxu0 %vm249_vm0, %v198_v54 }
  0x40   : > { %1183 = vmatprep.mubr.msk.f32.mxu1 %vm249_vm0, %v230_v55 }
  0x42   : > { %1136 = vmatmul.mubr.msk.f32.gmra.mrb[24].mxu0 %vm249_vm0, %v199_v56 }
  0x43   : > { %1184 = vmatmul.mubr.msk.f32.gmra.mrb[24].mxu1 %vm249_vm0, %v231_v57  ;;  %1138 = vmatprep.mubr.msk.f32.mxu0 %vm249_vm0, %v200_v58 }
  0x44   : > { %1186 = vmatprep.mubr.msk.f32.mxu1 %vm249_vm0, %v232_v59 }
  0x46   : > { %1139 = vmatmul.mubr.msk.f32.gmra.mrb[26].mxu0 %vm249_vm0, %v201_v60 }
  0x47   : > { %1187 = vmatmul.mubr.msk.f32.gmra.mrb[26].mxu1 %vm249_vm0, %v233_v61  ;;  %1141 = vmatprep.mubr.msk.f32.mxu0 %vm249_vm0, %v202_v62 }
  0x48   : > { %1189 = vmatprep.mubr.msk.f32.mxu1 %vm249_vm0, %v234_v63 }
  0x4a   : > { %1142 = vmatmul.mubr.msk.f32.gmra.mrb[28].mxu0 %vm249_vm0, %v203_v0 }
  0x4b   : > { %1190 = vmatmul.mubr.msk.f32.gmra.mrb[28].mxu1 %vm249_vm0, %v235_v1  ;;  %1144 = vmatprep.mubr.msk.f32.mxu0 %vm249_vm0, %v204_v2 }
  0x4c   : > { %1192 = vmatprep.mubr.msk.f32.mxu1 %vm249_vm0, %v236_v3 }
  0x4e   : > { %1145 = vmatmul.mubr.msk.f32.gmra.mrb[30].mxu0 %vm249_vm0, %v205_v4 }
  0x4f   : > { %1193 = vmatmul.mubr.msk.f32.gmra.mrb[30].mxu1 %vm249_vm0, %v237_v5 }
  0xe5   : > { %v1101_v7 = vpop.f32.mrb[0].mxu0 }
  0xe6   : > { %v1149_v8 = vpop.f32.mrb[0].mxu1  ;;  %v514_v9 = vadd.f32 %v1101_v7, %v1404_v6  ;;  %v508_v11 = vpop.f32.mrb[1].mxu0 }
  0xe7   : > { %v674_v10 = vadd.f32 %v1149_v8, %v1404_v6  ;;  %v668_v12 = vpop.f32.mrb[1].mxu1  ;;  %v509_v13 = vadd.f32 %v1404_v6, %v508_v11 }
  0xe8   : > { %v669_v14 = vadd.f32 %v1404_v6, %v668_v12  ;;  %828 = vst [vmem:[%s1411_s4 + $0x8] sm:$0xff] %v514_v9 }
  0xe9   : > { %860 = vst [vmem:[%s1411_s4 + $0x108] sm:$0xff] %v674_v10  ;;  %827 = vst [vmem:[%s1411_s4] sm:$0xff] %v509_v13  ;;  %v1104_v15 = vpop.f32.mrb[2].mxu0 }
  0xea   : > { %859 = vst [vmem:[%s1411_s4 + $0x100] sm:$0xff] %v669_v14  ;;  %v1152_v16 = vpop.f32.mrb[2].mxu1  ;;  %v524_v17 = vadd.f32 %v1104_v15, %v1404_v6  ;;  %v518_v19 = vpop.f32.mrb[3].mxu0 }
  0xeb   : > { %v684_v18 = vadd.f32 %v1152_v16, %v1404_v6  ;;  %v678_v20 = vpop.f32.mrb[3].mxu1  ;;  %v519_v21 = vadd.f32 %v1404_v6, %v518_v19 }
  0xec   : > { %v679_v22 = vadd.f32 %v1404_v6, %v678_v20  ;;  %830 = vst [vmem:[%s1411_s4 + $0x18] sm:$0xff] %v524_v17 }
  0xed   : > { %862 = vst [vmem:[%s1411_s4 + $0x118] sm:$0xff] %v684_v18  ;;  %829 = vst [vmem:[%s1411_s4 + $0x10] sm:$0xff] %v519_v21  ;;  %v1107_v23 = vpop.f32.mrb[4].mxu0 }
  0xee   : > { %861 = vst [vmem:[%s1411_s4 + $0x110] sm:$0xff] %v679_v22  ;;  %v1155_v24 = vpop.f32.mrb[4].mxu1  ;;  %v534_v25 = vadd.f32 %v1107_v23, %v1404_v6  ;;  %v528_v27 = vpop.f32.mrb[5].mxu0 }
  0xef   : > { %v694_v26 = vadd.f32 %v1155_v24, %v1404_v6  ;;  %v688_v28 = vpop.f32.mrb[5].mxu1  ;;  %v529_v29 = vadd.f32 %v1404_v6, %v528_v27 }
  0xf0   : > { %v689_v30 = vadd.f32 %v1404_v6, %v688_v28  ;;  %832 = vst [vmem:[%s1411_s4 + $0x28] sm:$0xff] %v534_v25 }
  0xf1   : > { %864 = vst [vmem:[%s1411_s4 + $0x128] sm:$0xff] %v694_v26  ;;  %831 = vst [vmem:[%s1411_s4 + $0x20] sm:$0xff] %v529_v29  ;;  %v1110_v31 = vpop.f32.mrb[6].mxu0 }
  0xf2   : > { %863 = vst [vmem:[%s1411_s4 + $0x120] sm:$0xff] %v689_v30  ;;  %v1158_v32 = vpop.f32.mrb[6].mxu1  ;;  %v544_v33 = vadd.f32 %v1110_v31, %v1404_v6  ;;  %v538_v35 = vpop.f32.mrb[7].mxu0 }
  0xf3   : > { %v704_v34 = vadd.f32 %v1158_v32, %v1404_v6  ;;  %v698_v36 = vpop.f32.mrb[7].mxu1  ;;  %v539_v37 = vadd.f32 %v1404_v6, %v538_v35 }
  0xf4   : > { %v699_v38 = vadd.f32 %v1404_v6, %v698_v36  ;;  %834 = vst [vmem:[%s1411_s4 + $0x38] sm:$0xff] %v544_v33 }
  0xf5   : > { %866 = vst [vmem:[%s1411_s4 + $0x138] sm:$0xff] %v704_v34  ;;  %833 = vst [vmem:[%s1411_s4 + $0x30] sm:$0xff] %v539_v37  ;;  %v1113_v39 = vpop.f32.mrb[8].mxu0 }
  0xf6   : > { %865 = vst [vmem:[%s1411_s4 + $0x130] sm:$0xff] %v699_v38  ;;  %v1161_v40 = vpop.f32.mrb[8].mxu1  ;;  %v554_v41 = vadd.f32 %v1113_v39, %v1404_v6  ;;  %v548_v43 = vpop.f32.mrb[9].mxu0 }
  0xf7   : > { %v714_v42 = vadd.f32 %v1161_v40, %v1404_v6  ;;  %v708_v44 = vpop.f32.mrb[9].mxu1  ;;  %v549_v45 = vadd.f32 %v1404_v6, %v548_v43 }
  0xf8   : > { %v709_v46 = vadd.f32 %v1404_v6, %v708_v44  ;;  %836 = vst [vmem:[%s1411_s4 + $0x48] sm:$0xff] %v554_v41 }
  0xf9   : > { %868 = vst [vmem:[%s1411_s4 + $0x148] sm:$0xff] %v714_v42  ;;  %835 = vst [vmem:[%s1411_s4 + $0x40] sm:$0xff] %v549_v45  ;;  %v1116_v47 = vpop.f32.mrb[10].mxu0 }
  0xfa   : > { %867 = vst [vmem:[%s1411_s4 + $0x140] sm:$0xff] %v709_v46  ;;  %v1164_v48 = vpop.f32.mrb[10].mxu1  ;;  %v564_v49 = vadd.f32 %v1116_v47, %v1404_v6  ;;  %v558_v51 = vpop.f32.mrb[11].mxu0 }
  0xfb   : > { %v724_v50 = vadd.f32 %v1164_v48, %v1404_v6  ;;  %v718_v52 = vpop.f32.mrb[11].mxu1  ;;  %v559_v53 = vadd.f32 %v1404_v6, %v558_v51 }
  0xfc   : > { %v719_v54 = vadd.f32 %v1404_v6, %v718_v52  ;;  %838 = vst [vmem:[%s1411_s4 + $0x58] sm:$0xff] %v564_v49 }
  0xfd   : > { %870 = vst [vmem:[%s1411_s4 + $0x158] sm:$0xff] %v724_v50  ;;  %837 = vst [vmem:[%s1411_s4 + $0x50] sm:$0xff] %v559_v53  ;;  %v1119_v55 = vpop.f32.mrb[12].mxu0 }
  0xfe   : > { %869 = vst [vmem:[%s1411_s4 + $0x150] sm:$0xff] %v719_v54  ;;  %v1167_v56 = vpop.f32.mrb[12].mxu1  ;;  %v574_v57 = vadd.f32 %v1119_v55, %v1404_v6  ;;  %v568_v59 = vpop.f32.mrb[13].mxu0 }
  0xff   : > { %v734_v58 = vadd.f32 %v1167_v56, %v1404_v6  ;;  %v728_v60 = vpop.f32.mrb[13].mxu1  ;;  %v569_v61 = vadd.f32 %v1404_v6, %v568_v59 }
 0x100   : > { %v729_v62 = vadd.f32 %v1404_v6, %v728_v60  ;;  %840 = vst [vmem:[%s1411_s4 + $0x68] sm:$0xff] %v574_v57 }
 0x101   : > { %872 = vst [vmem:[%s1411_s4 + $0x168] sm:$0xff] %v734_v58  ;;  %839 = vst [vmem:[%s1411_s4 + $0x60] sm:$0xff] %v569_v61  ;;  %v1122_v63 = vpop.f32.mrb[14].mxu0 }
 0x102   : > { %871 = vst [vmem:[%s1411_s4 + $0x160] sm:$0xff] %v729_v62  ;;  %v1170_v0 = vpop.f32.mrb[14].mxu1  ;;  %v584_v1 = vadd.f32 %v1122_v63, %v1404_v6  ;;  %v578_v3 = vpop.f32.mrb[15].mxu0 }
 0x103   : > { %v744_v2 = vadd.f32 %v1170_v0, %v1404_v6  ;;  %v738_v4 = vpop.f32.mrb[15].mxu1  ;;  %v579_v5 = vadd.f32 %v1404_v6, %v578_v3 }
 0x104   : > { %v739_v7 = vadd.f32 %v1404_v6, %v738_v4  ;;  %842 = vst [vmem:[%s1411_s4 + $0x78] sm:$0xff] %v584_v1 }
 0x105   : > { %874 = vst [vmem:[%s1411_s4 + $0x178] sm:$0xff] %v744_v2  ;;  %841 = vst [vmem:[%s1411_s4 + $0x70] sm:$0xff] %v579_v5  ;;  %v1125_v8 = vpop.f32.mrb[16].mxu0 }
 0x106   : > { %873 = vst [vmem:[%s1411_s4 + $0x170] sm:$0xff] %v739_v7  ;;  %v1173_v9 = vpop.f32.mrb[16].mxu1  ;;  %v594_v10 = vadd.f32 %v1125_v8, %v1404_v6  ;;  %v588_v12 = vpop.f32.mrb[17].mxu0 }
 0x107   : > { %v754_v11 = vadd.f32 %v1173_v9, %v1404_v6  ;;  %v748_v13 = vpop.f32.mrb[17].mxu1  ;;  %v589_v14 = vadd.f32 %v1404_v6, %v588_v12 }
 0x108   : > { %v749_v15 = vadd.f32 %v1404_v6, %v748_v13  ;;  %844 = vst [vmem:[%s1411_s4 + $0x88] sm:$0xff] %v594_v10 }
 0x109   : > { %876 = vst [vmem:[%s1411_s4 + $0x188] sm:$0xff] %v754_v11  ;;  %843 = vst [vmem:[%s1411_s4 + $0x80] sm:$0xff] %v589_v14  ;;  %v1128_v16 = vpop.f32.mrb[18].mxu0 }
 0x10a   : > { %875 = vst [vmem:[%s1411_s4 + $0x180] sm:$0xff] %v749_v15  ;;  %v1176_v17 = vpop.f32.mrb[18].mxu1  ;;  %v604_v18 = vadd.f32 %v1128_v16, %v1404_v6  ;;  %v598_v20 = vpop.f32.mrb[19].mxu0 }
 0x10b   : > { %v764_v19 = vadd.f32 %v1176_v17, %v1404_v6  ;;  %v758_v21 = vpop.f32.mrb[19].mxu1  ;;  %v599_v22 = vadd.f32 %v1404_v6, %v598_v20 }
 0x10c   : > { %v759_v23 = vadd.f32 %v1404_v6, %v758_v21  ;;  %846 = vst [vmem:[%s1411_s4 + $0x98] sm:$0xff] %v604_v18 }
 0x10d   : > { %878 = vst [vmem:[%s1411_s4 + $0x198] sm:$0xff] %v764_v19  ;;  %845 = vst [vmem:[%s1411_s4 + $0x90] sm:$0xff] %v599_v22  ;;  %v1131_v24 = vpop.f32.mrb[20].mxu0 }
 0x10e   : > { %877 = vst [vmem:[%s1411_s4 + $0x190] sm:$0xff] %v759_v23  ;;  %v1179_v25 = vpop.f32.mrb[20].mxu1  ;;  %v614_v26 = vadd.f32 %v1131_v24, %v1404_v6  ;;  %v608_v28 = vpop.f32.mrb[21].mxu0 }
 0x10f   : > { %v774_v27 = vadd.f32 %v1179_v25, %v1404_v6  ;;  %v768_v29 = vpop.f32.mrb[21].mxu1  ;;  %v609_v30 = vadd.f32 %v1404_v6, %v608_v28 }
 0x110   : > { %v769_v31 = vadd.f32 %v1404_v6, %v768_v29  ;;  %848 = vst [vmem:[%s1411_s4 + $0xa8] sm:$0xff] %v614_v26 }
 0x111   : > { %880 = vst [vmem:[%s1411_s4 + $0x1a8] sm:$0xff] %v774_v27  ;;  %847 = vst [vmem:[%s1411_s4 + $0xa0] sm:$0xff] %v609_v30  ;;  %v1134_v32 = vpop.f32.mrb[22].mxu0 }
 0x112   : > { %879 = vst [vmem:[%s1411_s4 + $0x1a0] sm:$0xff] %v769_v31  ;;  %v1182_v33 = vpop.f32.mrb[22].mxu1  ;;  %v624_v34 = vadd.f32 %v1134_v32, %v1404_v6  ;;  %v618_v36 = vpop.f32.mrb[23].mxu0 }
 0x113   : > { %v784_v35 = vadd.f32 %v1182_v33, %v1404_v6  ;;  %v778_v37 = vpop.f32.mrb[23].mxu1  ;;  %v619_v38 = vadd.f32 %v1404_v6, %v618_v36 }
 0x114   : > { %v779_v39 = vadd.f32 %v1404_v6, %v778_v37  ;;  %850 = vst [vmem:[%s1411_s4 + $0xb8] sm:$0xff] %v624_v34 }
 0x115   : > { %882 = vst [vmem:[%s1411_s4 + $0x1b8] sm:$0xff] %v784_v35  ;;  %849 = vst [vmem:[%s1411_s4 + $0xb0] sm:$0xff] %v619_v38  ;;  %v1137_v40 = vpop.f32.mrb[24].mxu0 }
 0x116   : > { %881 = vst [vmem:[%s1411_s4 + $0x1b0] sm:$0xff] %v779_v39  ;;  %v1185_v41 = vpop.f32.mrb[24].mxu1  ;;  %v634_v42 = vadd.f32 %v1137_v40, %v1404_v6  ;;  %v628_v44 = vpop.f32.mrb[25].mxu0 }
 0x117   : > { %v794_v43 = vadd.f32 %v1185_v41, %v1404_v6  ;;  %v788_v45 = vpop.f32.mrb[25].mxu1  ;;  %v629_v46 = vadd.f32 %v1404_v6, %v628_v44 }
 0x118   : > { %v789_v47 = vadd.f32 %v1404_v6, %v788_v45  ;;  %852 = vst [vmem:[%s1411_s4 + $0xc8] sm:$0xff] %v634_v42 }
 0x119   : > { %884 = vst [vmem:[%s1411_s4 + $0x1c8] sm:$0xff] %v794_v43  ;;  %851 = vst [vmem:[%s1411_s4 + $0xc0] sm:$0xff] %v629_v46  ;;  %v1140_v48 = vpop.f32.mrb[26].mxu0 }
 0x11a   : > { %883 = vst [vmem:[%s1411_s4 + $0x1c0] sm:$0xff] %v789_v47  ;;  %v1188_v49 = vpop.f32.mrb[26].mxu1  ;;  %v644_v50 = vadd.f32 %v1140_v48, %v1404_v6  ;;  %v638_v52 = vpop.f32.mrb[27].mxu0 }
 0x11b   : > { %v804_v51 = vadd.f32 %v1188_v49, %v1404_v6  ;;  %v798_v53 = vpop.f32.mrb[27].mxu1  ;;  %v639_v54 = vadd.f32 %v1404_v6, %v638_v52 }
 0x11c   : > { %v799_v55 = vadd.f32 %v1404_v6, %v798_v53  ;;  %854 = vst [vmem:[%s1411_s4 + $0xd8] sm:$0xff] %v644_v50 }
 0x11d   : > { %886 = vst [vmem:[%s1411_s4 + $0x1d8] sm:$0xff] %v804_v51  ;;  %853 = vst [vmem:[%s1411_s4 + $0xd0] sm:$0xff] %v639_v54  ;;  %v1143_v56 = vpop.f32.mrb[28].mxu0 }
 0x11e   : > { %885 = vst [vmem:[%s1411_s4 + $0x1d0] sm:$0xff] %v799_v55  ;;  %v1191_v57 = vpop.f32.mrb[28].mxu1  ;;  %v654_v58 = vadd.f32 %v1143_v56, %v1404_v6  ;;  %v648_v60 = vpop.f32.mrb[29].mxu0 }
 0x11f   : > { %v814_v59 = vadd.f32 %v1191_v57, %v1404_v6  ;;  %v808_v61 = vpop.f32.mrb[29].mxu1  ;;  %v649_v62 = vadd.f32 %v1404_v6, %v648_v60 }
 0x120   : > { %v809_v63 = vadd.f32 %v1404_v6, %v808_v61  ;;  %856 = vst [vmem:[%s1411_s4 + $0xe8] sm:$0xff] %v654_v58 }
 0x121   : > { %888 = vst [vmem:[%s1411_s4 + $0x1e8] sm:$0xff] %v814_v59  ;;  %855 = vst [vmem:[%s1411_s4 + $0xe0] sm:$0xff] %v649_v62  ;;  %v1146_v0 = vpop.f32.mrb[30].mxu0 }
 0x122   : > { %887 = vst [vmem:[%s1411_s4 + $0x1e0] sm:$0xff] %v809_v63  ;;  %v1194_v1 = vpop.f32.mrb[30].mxu1  ;;  %v664_v2 = vadd.f32 %v1146_v0, %v1404_v6  ;;  %v658_v4 = vpop.f32.mrb[31].mxu0 }
 0x123   : > { %v824_v3 = vadd.f32 %v1194_v1, %v1404_v6  ;;  %v818_v5 = vpop.f32.mrb[31].mxu1  ;;  %v659_v7 = vadd.f32 %v1404_v6, %v658_v4 }
 0x124   : > { %v819_v8 = vadd.f32 %v1404_v6, %v818_v5  ;;  %858 = vst [vmem:[%s1411_s4 + $0xf8] sm:$0xff] %v664_v2 }
 0x125   : > { %890 = vst [vmem:[%s1411_s4 + $0x1f8] sm:$0xff] %v824_v3  ;;  %857 = vst [vmem:[%s1411_s4 + $0xf0] sm:$0xff] %v659_v7 }
 0x126   : > { %889 = vst [vmem:[%s1411_s4 + $0x1f0] sm:$0xff] %v819_v8 }
 0x127 PF: > { %s13_s12 = sadd.s32 1, %s1221_s12  }
 0x128   : > { %p10_p4 = scmp.ge.s32.totalorder %s13_s12, 8  }
 0x12a   :  { %12 = sbr.rel (!%p10_p4) target bundleno = 1 (0x1), region = 62 }

// kernel: ga_forward.5
= control target key start
LH: loop header
LB: loop body
LE: loop exit
PB: predicated region body
PF: predicated region fallthrough
CT: control target
= control target key end

     0   :  { %vm90_vm0 = vcmask 261120   ;;  %s1396_s0 = inlined_call_operand.vmem [shape: f32[512,32], index: 0, kind: input, shape index: {}]   ;;  %s1397_s1 = inlined_call_operand.vmem [shape: f32[32,128], index: 1, kind: input, shape index: {}]   ;;  %s1398_s2 = inlined_call_operand.vmem [shape: f32[1,128], index: 2, kind: input, shape index: {}]   ;;  %s1399_s3 = inlined_call_operand.hbm [shape: f32[512,128], index: 3, kind: output, shape index: {}]  }
   0x1   :  { %v79_v0 = vld [vmem:[%s1397_s1] sm:$0xff]  ;;  %v80_v1 = vld [vmem:[%s1397_s1 + $0x8] sm:$0xff]  ;;  %v81_v2 = vld [vmem:[%s1397_s1 + $0x10] sm:$0xff] }
   0x2   :  { %v985_v3 = vpack.c.bf16 %v80_v1, %v79_v0  ;;  %v82_v4 = vld [vmem:[%s1397_s1 + $0x18] sm:$0xff]  ;;  %v15_v5 = vld [vmem:[%s1396_s0] sm:$0xff]  ;;  %v16_v8 = vld [vmem:[%s1396_s0 + $0x8] sm:$0xff] }
   0x3   :  { %v47_v6 = vld [vmem:[%s1396_s0 + $0x100] sm:$0xff]  ;;  %v989_v7 = vpack.c.bf16 %v82_v4, %v81_v2  ;;  %889 = vmatprep.mubr.msk.f32.mxu0 %vm90_vm0, %v15_v5  ;;  %v48_v9 = vld [vmem:[%s1396_s0 + $0x108] sm:$0xff]  ;;  %v17_v10 = vld [vmem:[%s1396_s0 + $0x10] sm:$0xff] }
   0x4   :  { %937 = vmatprep.mubr.msk.f32.mxu1 %vm90_vm0, %v47_v6  ;;  %986 = vmatprep.subr.bf16.mxu0 %v985_v3  ;;  %v49_v11 = vld [vmem:[%s1396_s0 + $0x110] sm:$0xff]  ;;  %v18_v12 = vld [vmem:[%s1396_s0 + $0x18] sm:$0xff]  ;;  %v19_v14 = vld [vmem:[%s1396_s0 + $0x20] sm:$0xff] }
   0x5   :  { %993 = vmatprep.subr.bf16.mxu1 %v985_v3  ;;  %988 = vmatpush3.bf16.msra.mxu0 %v985_v3  ;;  %v50_v13 = vld [vmem:[%s1396_s0 + $0x118] sm:$0xff]  ;;  %v51_v15 = vld [vmem:[%s1396_s0 + $0x120] sm:$0xff]  ;;  %v20_v16 = vld [vmem:[%s1396_s0 + $0x28] sm:$0xff] }
   0x6   :  { %995 = vmatpush3.bf16.msra.mxu1 %v985_v3  ;;  %990 = vmatprep.subr.bf16.mxu0 %v989_v7  ;;  %v52_v17 = vld [vmem:[%s1396_s0 + $0x128] sm:$0xff]  ;;  %v21_v18 = vld [vmem:[%s1396_s0 + $0x30] sm:$0xff]  ;;  %v22_v20 = vld [vmem:[%s1396_s0 + $0x38] sm:$0xff] }
   0x7   :  { %994 = vmatprep.subr.bf16.mxu1 %v989_v7  ;;  %v53_v19 = vld [vmem:[%s1396_s0 + $0x130] sm:$0xff]  ;;  %v54_v21 = vld [vmem:[%s1396_s0 + $0x138] sm:$0xff]  ;;  %v23_v22 = vld [vmem:[%s1396_s0 + $0x40] sm:$0xff] }
   0x8   :  { %v55_v23 = vld [vmem:[%s1396_s0 + $0x140] sm:$0xff] }
   0x9   :  { %992 = vmatpush3.bf16.msra.mxu0 %v989_v7 }
   0xa   :  { %996 = vmatpush3.bf16.msra.mxu1 %v989_v7 }
   0xc   :  { %890 = vmatmul.mubr.msk.f32.vlgmr.msra.gmra.mrb[0].mxu0 %vm90_vm0, %v16_v8 }
   0xd   :  { %938 = vmatmul.mubr.msk.f32.vlgmr.msra.gmra.mrb[0].mxu1 %vm90_vm0, %v48_v9  ;;  %892 = vmatprep.mubr.msk.f32.mxu0 %vm90_vm0, %v17_v10 }
   0xe   :  { %940 = vmatprep.mubr.msk.f32.mxu1 %vm90_vm0, %v49_v11 }
  0x10   :  { %893 = vmatmul.mubr.msk.f32.gmra.mrb[2].mxu0 %vm90_vm0, %v18_v12 }
  0x11   :  { %941 = vmatmul.mubr.msk.f32.gmra.mrb[2].mxu1 %vm90_vm0, %v50_v13  ;;  %895 = vmatprep.mubr.msk.f32.mxu0 %vm90_vm0, %v19_v14 }
  0x12   :  { %943 = vmatprep.mubr.msk.f32.mxu1 %vm90_vm0, %v51_v15 }
  0x14   :  { %896 = vmatmul.mubr.msk.f32.gmra.mrb[4].mxu0 %vm90_vm0, %v20_v16 }
  0x15   :  { %944 = vmatmul.mubr.msk.f32.gmra.mrb[4].mxu1 %vm90_vm0, %v52_v17  ;;  %898 = vmatprep.mubr.msk.f32.mxu0 %vm90_vm0, %v21_v18 }
  0x16   :  { %946 = vmatprep.mubr.msk.f32.mxu1 %vm90_vm0, %v53_v19 }
  0x17   :  { %8 = vsyncpa [#allocation3], 0  ;;  %v24_v24 = vld [vmem:[%s1396_s0 + $0x48] sm:$0xff]  ;;  %v25_v26 = vld [vmem:[%s1396_s0 + $0x50] sm:$0xff] }
  0x18   :  { %899 = vmatmul.mubr.msk.f32.gmra.mrb[6].mxu0 %vm90_vm0, %v22_v20  ;;  %v56_v25 = vld [vmem:[%s1396_s0 + $0x148] sm:$0xff]  ;;  %v57_v27 = vld [vmem:[%s1396_s0 + $0x150] sm:$0xff]  ;;  %v26_v28 = vld [vmem:[%s1396_s0 + $0x58] sm:$0xff] }
  0x19   :  { %947 = vmatmul.mubr.msk.f32.gmra.mrb[6].mxu1 %vm90_vm0, %v54_v21  ;;  %901 = vmatprep.mubr.msk.f32.mxu0 %vm90_vm0, %v23_v22  ;;  %v58_v29 = vld [vmem:[%s1396_s0 + $0x158] sm:$0xff]  ;;  %v27_v30 = vld [vmem:[%s1396_s0 + $0x60] sm:$0xff]  ;;  %v28_v32 = vld [vmem:[%s1396_s0 + $0x68] sm:$0xff] }
  0x1a   :  { %949 = vmatprep.mubr.msk.f32.mxu1 %vm90_vm0, %v55_v23  ;;  %v59_v31 = vld [vmem:[%s1396_s0 + $0x160] sm:$0xff]  ;;  %v60_v33 = vld [vmem:[%s1396_s0 + $0x168] sm:$0xff]  ;;  %v29_v34 = vld [vmem:[%s1396_s0 + $0x70] sm:$0xff] }
  0x1b   :  { %v61_v35 = vld [vmem:[%s1396_s0 + $0x170] sm:$0xff]  ;;  %v30_v36 = vld [vmem:[%s1396_s0 + $0x78] sm:$0xff]  ;;  %v31_v38 = vld [vmem:[%s1396_s0 + $0x80] sm:$0xff] }
  0x1c   :  { %902 = vmatmul.mubr.msk.f32.gmra.mrb[8].mxu0 %vm90_vm0, %v24_v24  ;;  %v62_v37 = vld [vmem:[%s1396_s0 + $0x178] sm:$0xff]  ;;  %v63_v39 = vld [vmem:[%s1396_s0 + $0x180] sm:$0xff]  ;;  %v32_v40 = vld [vmem:[%s1396_s0 + $0x88] sm:$0xff] }
  0x1d   :  { %950 = vmatmul.mubr.msk.f32.gmra.mrb[8].mxu1 %vm90_vm0, %v56_v25  ;;  %904 = vmatprep.mubr.msk.f32.mxu0 %vm90_vm0, %v25_v26  ;;  %v64_v41 = vld [vmem:[%s1396_s0 + $0x188] sm:$0xff]  ;;  %v33_v42 = vld [vmem:[%s1396_s0 + $0x90] sm:$0xff]  ;;  %v34_v44 = vld [vmem:[%s1396_s0 + $0x98] sm:$0xff] }
  0x1e   :  { %952 = vmatprep.mubr.msk.f32.mxu1 %vm90_vm0, %v57_v27  ;;  %v65_v43 = vld [vmem:[%s1396_s0 + $0x190] sm:$0xff]  ;;  %v66_v45 = vld [vmem:[%s1396_s0 + $0x198] sm:$0xff]  ;;  %v35_v46 = vld [vmem:[%s1396_s0 + $0xa0] sm:$0xff] }
  0x1f   :  { %v67_v47 = vld [vmem:[%s1396_s0 + $0x1a0] sm:$0xff]  ;;  %v36_v48 = vld [vmem:[%s1396_s0 + $0xa8] sm:$0xff]  ;;  %v37_v50 = vld [vmem:[%s1396_s0 + $0xb0] sm:$0xff] }
  0x20   :  { %905 = vmatmul.mubr.msk.f32.gmra.mrb[10].mxu0 %vm90_vm0, %v26_v28  ;;  %v68_v49 = vld [vmem:[%s1396_s0 + $0x1a8] sm:$0xff]  ;;  %v69_v51 = vld [vmem:[%s1396_s0 + $0x1b0] sm:$0xff]  ;;  %v38_v52 = vld [vmem:[%s1396_s0 + $0xb8] sm:$0xff] }
  0x21   :  { %953 = vmatmul.mubr.msk.f32.gmra.mrb[10].mxu1 %vm90_vm0, %v58_v29  ;;  %907 = vmatprep.mubr.msk.f32.mxu0 %vm90_vm0, %v27_v30  ;;  %v70_v53 = vld [vmem:[%s1396_s0 + $0x1b8] sm:$0xff]  ;;  %v39_v54 = vld [vmem:[%s1396_s0 + $0xc0] sm:$0xff]  ;;  %v40_v56 = vld [vmem:[%s1396_s0 + $0xc8] sm:$0xff] }
  0x22   :  { %955 = vmatprep.mubr.msk.f32.mxu1 %vm90_vm0, %v59_v31  ;;  %v71_v55 = vld [vmem:[%s1396_s0 + $0x1c0] sm:$0xff]  ;;  %v72_v57 = vld [vmem:[%s1396_s0 + $0x1c8] sm:$0xff]  ;;  %v41_v58 = vld [vmem:[%s1396_s0 + $0xd0] sm:$0xff] }
  0x23   :  { %v73_v59 = vld [vmem:[%s1396_s0 + $0x1d0] sm:$0xff]  ;;  %v42_v60 = vld [vmem:[%s1396_s0 + $0xd8] sm:$0xff]  ;;  %v43_v62 = vld [vmem:[%s1396_s0 + $0xe0] sm:$0xff] }
  0x24   :  { %908 = vmatmul.mubr.msk.f32.gmra.mrb[12].mxu0 %vm90_vm0, %v28_v32  ;;  %v74_v61 = vld [vmem:[%s1396_s0 + $0x1d8] sm:$0xff]  ;;  %v75_v63 = vld [vmem:[%s1396_s0 + $0x1e0] sm:$0xff]  ;;  %v44_v0 = vld [vmem:[%s1396_s0 + $0xe8] sm:$0xff] }
  0x25   :  { %956 = vmatmul.mubr.msk.f32.gmra.mrb[12].mxu1 %vm90_vm0, %v60_v33  ;;  %910 = vmatprep.mubr.msk.f32.mxu0 %vm90_vm0, %v29_v34  ;;  %v76_v1 = vld [vmem:[%s1396_s0 + $0x1e8] sm:$0xff]  ;;  %v45_v2 = vld [vmem:[%s1396_s0 + $0xf0] sm:$0xff]  ;;  %v46_v4 = vld [vmem:[%s1396_s0 + $0xf8] sm:$0xff] }
  0x26   :  { %958 = vmatprep.mubr.msk.f32.mxu1 %vm90_vm0, %v61_v35  ;;  %v77_v3 = vld [vmem:[%s1396_s0 + $0x1f0] sm:$0xff]  ;;  %v78_v5 = vld [vmem:[%s1396_s0 + $0x1f8] sm:$0xff]  ;;  %v1318_v6 = vld [vmem:[%s1398_s2] ss:$0 sm:$0xff]  ;;  %s1024_s0 = smov [#allocation2]  }
  0x27   :  { %s737_s2 = sshll.u32 %s1024_s0, 4  ;;  %s738_s2 = int_to_ptr.vmem [resolvable:$true] %s737_s2 }
  0x28   :  { %911 = vmatmul.mubr.msk.f32.gmra.mrb[14].mxu0 %vm90_vm0, %v30_v36  ;;  %s1000_s10 = scalar_lea.vmem %s738_s2, 8192  ;;  %p1005_p1 = scmp.lt.s32.totalorder %s738_s2, %s738_s2 }
  0x29   :  { %959 = vmatmul.mubr.msk.f32.gmra.mrb[14].mxu1 %vm90_vm0, %v62_v37  ;;  %913 = vmatprep.mubr.msk.f32.mxu0 %vm90_vm0, %v31_v38  ;;  %p1001_p0 = scmp.ne.s32.totalorder %s738_s2, %s1000_s10  ;;  %p1006_p2 = scmp.lt.s32.totalorder %s1000_s10, %s1000_s10 }
  0x2a   :  { %961 = vmatprep.mubr.msk.f32.mxu1 %vm90_vm0, %v63_v39 }
  0x2b   :  { %p1007_p3 = por %p1006_p2, %p1005_p1 }
  0x2c   :  { %914 = vmatmul.mubr.msk.f32.gmra.mrb[16].mxu0 %vm90_vm0, %v32_v40 }
  0x2d   :  { %962 = vmatmul.mubr.msk.f32.gmra.mrb[16].mxu1 %vm90_vm0, %v64_v41  ;;  %916 = vmatprep.mubr.msk.f32.mxu0 %vm90_vm0, %v33_v42  ;;  %p1008_p4 = pnand %p1007_p3, %p1001_p0 }
  0x2e   :  { %964 = vmatprep.mubr.msk.f32.mxu1 %vm90_vm0, %v65_v43 }
  0x30   :  { %917 = vmatmul.mubr.msk.f32.gmra.mrb[18].mxu0 %vm90_vm0, %v34_v44 }
  0x31   :  { %965 = vmatmul.mubr.msk.f32.gmra.mrb[18].mxu1 %vm90_vm0, %v66_v45  ;;  %919 = vmatprep.mubr.msk.f32.mxu0 %vm90_vm0, %v35_v46 }
  0x32   :  { %967 = vmatprep.mubr.msk.f32.mxu1 %vm90_vm0, %v67_v47 }
  0x34   :  { %920 = vmatmul.mubr.msk.f32.gmra.mrb[20].mxu0 %vm90_vm0, %v36_v48 }
  0x35   :  { %968 = vmatmul.mubr.msk.f32.gmra.mrb[20].mxu1 %vm90_vm0, %v68_v49  ;;  %922 = vmatprep.mubr.msk.f32.mxu0 %vm90_vm0, %v37_v50 }
  0x36   :  { %970 = vmatprep.mubr.msk.f32.mxu1 %vm90_vm0, %v69_v51 }
  0x38   :  { %923 = vmatmul.mubr.msk.f32.gmra.mrb[22].mxu0 %vm90_vm0, %v38_v52 }
  0x39   :  { %971 = vmatmul.mubr.msk.f32.gmra.mrb[22].mxu1 %vm90_vm0, %v70_v53  ;;  %925 = vmatprep.mubr.msk.f32.mxu0 %vm90_vm0, %v39_v54 }
  0x3a   :  { %973 = vmatprep.mubr.msk.f32.mxu1 %vm90_vm0, %v71_v55 }
  0x3c   :  { %926 = vmatmul.mubr.msk.f32.gmra.mrb[24].mxu0 %vm90_vm0, %v40_v56 }
  0x3d   :  { %974 = vmatmul.mubr.msk.f32.gmra.mrb[24].mxu1 %vm90_vm0, %v72_v57  ;;  %928 = vmatprep.mubr.msk.f32.mxu0 %vm90_vm0, %v41_v58 }
  0x3e   :  { %976 = vmatprep.mubr.msk.f32.mxu1 %vm90_vm0, %v73_v59 }
  0x40   :  { %929 = vmatmul.mubr.msk.f32.gmra.mrb[26].mxu0 %vm90_vm0, %v42_v60 }
  0x41   :  { %977 = vmatmul.mubr.msk.f32.gmra.mrb[26].mxu1 %vm90_vm0, %v74_v61  ;;  %931 = vmatprep.mubr.msk.f32.mxu0 %vm90_vm0, %v43_v62 }
  0x42   :  { %979 = vmatprep.mubr.msk.f32.mxu1 %vm90_vm0, %v75_v63 }
  0x44   :  { %932 = vmatmul.mubr.msk.f32.gmra.mrb[28].mxu0 %vm90_vm0, %v44_v0 }
  0x45   :  { %980 = vmatmul.mubr.msk.f32.gmra.mrb[28].mxu1 %vm90_vm0, %v76_v1  ;;  %934 = vmatprep.mubr.msk.f32.mxu0 %vm90_vm0, %v45_v2 }
  0x46   :  { %982 = vmatprep.mubr.msk.f32.mxu1 %vm90_vm0, %v77_v3 }
  0x48   :  { %935 = vmatmul.mubr.msk.f32.gmra.mrb[30].mxu0 %vm90_vm0, %v46_v4 }
  0x49   :  { %983 = vmatmul.mubr.msk.f32.gmra.mrb[30].mxu1 %vm90_vm0, %v78_v5 }
  0xdf   :  { %v891_v7 = vpop.f32.mrb[0].mxu0 }
  0xe0   :  { %v939_v8 = vpop.f32.mrb[0].mxu1  ;;  %v355_v9 = vadd.f32 %v891_v7, %v1318_v6  ;;  %v349_v11 = vpop.f32.mrb[1].mxu0 }
  0xe1   :  { %v515_v10 = vadd.f32 %v939_v8, %v1318_v6  ;;  %v509_v12 = vpop.f32.mrb[1].mxu1  ;;  %v350_v13 = vadd.f32 %v1318_v6, %v349_v11 }
  0xe2   :  { %v510_v14 = vadd.f32 %v1318_v6, %v509_v12  ;;  %669 = vst [vmem:[#allocation2 + $0x8] sm:$0xff] %v355_v9 }
  0xe3   :  { %701 = vst [vmem:[#allocation2 + $0x108] sm:$0xff] %v515_v10  ;;  %668 = vst [vmem:[#allocation2] sm:$0xff] %v350_v13  ;;  %v894_v15 = vpop.f32.mrb[2].mxu0 }
  0xe4   :  { %700 = vst [vmem:[#allocation2 + $0x100] sm:$0xff] %v510_v14  ;;  %v942_v16 = vpop.f32.mrb[2].mxu1  ;;  %v365_v17 = vadd.f32 %v894_v15, %v1318_v6  ;;  %v359_v19 = vpop.f32.mrb[3].mxu0 }
  0xe5   :  { %v525_v18 = vadd.f32 %v942_v16, %v1318_v6  ;;  %v519_v20 = vpop.f32.mrb[3].mxu1  ;;  %v360_v21 = vadd.f32 %v1318_v6, %v359_v19 }
  0xe6   :  { %v520_v22 = vadd.f32 %v1318_v6, %v519_v20  ;;  %671 = vst [vmem:[#allocation2 + $0x18] sm:$0xff] %v365_v17 }
  0xe7   :  { %703 = vst [vmem:[#allocation2 + $0x118] sm:$0xff] %v525_v18  ;;  %670 = vst [vmem:[#allocation2 + $0x10] sm:$0xff] %v360_v21  ;;  %v897_v23 = vpop.f32.mrb[4].mxu0 }
  0xe8   :  { %702 = vst [vmem:[#allocation2 + $0x110] sm:$0xff] %v520_v22  ;;  %v945_v24 = vpop.f32.mrb[4].mxu1  ;;  %v375_v25 = vadd.f32 %v897_v23, %v1318_v6  ;;  %v369_v27 = vpop.f32.mrb[5].mxu0 }
  0xe9   :  { %v535_v26 = vadd.f32 %v945_v24, %v1318_v6  ;;  %v529_v28 = vpop.f32.mrb[5].mxu1  ;;  %v370_v29 = vadd.f32 %v1318_v6, %v369_v27 }
  0xea   :  { %v530_v30 = vadd.f32 %v1318_v6, %v529_v28  ;;  %673 = vst [vmem:[#allocation2 + $0x28] sm:$0xff] %v375_v25 }
  0xeb   :  { %705 = vst [vmem:[#allocation2 + $0x128] sm:$0xff] %v535_v26  ;;  %672 = vst [vmem:[#allocation2 + $0x20] sm:$0xff] %v370_v29  ;;  %v900_v31 = vpop.f32.mrb[6].mxu0 }
  0xec   :  { %704 = vst [vmem:[#allocation2 + $0x120] sm:$0xff] %v530_v30  ;;  %v948_v32 = vpop.f32.mrb[6].mxu1  ;;  %v385_v33 = vadd.f32 %v900_v31, %v1318_v6  ;;  %v379_v35 = vpop.f32.mrb[7].mxu0 }
  0xed   :  { %v545_v34 = vadd.f32 %v948_v32, %v1318_v6  ;;  %v539_v36 = vpop.f32.mrb[7].mxu1  ;;  %v380_v37 = vadd.f32 %v1318_v6, %v379_v35 }
  0xee   :  { %v540_v38 = vadd.f32 %v1318_v6, %v539_v36  ;;  %675 = vst [vmem:[#allocation2 + $0x38] sm:$0xff] %v385_v33 }
  0xef   :  { %707 = vst [vmem:[#allocation2 + $0x138] sm:$0xff] %v545_v34  ;;  %674 = vst [vmem:[#allocation2 + $0x30] sm:$0xff] %v380_v37  ;;  %v903_v39 = vpop.f32.mrb[8].mxu0 }
  0xf0   :  { %706 = vst [vmem:[#allocation2 + $0x130] sm:$0xff] %v540_v38  ;;  %v951_v40 = vpop.f32.mrb[8].mxu1  ;;  %v395_v41 = vadd.f32 %v903_v39, %v1318_v6  ;;  %v389_v43 = vpop.f32.mrb[9].mxu0 }
  0xf1   :  { %v555_v42 = vadd.f32 %v951_v40, %v1318_v6  ;;  %v549_v44 = vpop.f32.mrb[9].mxu1  ;;  %v390_v45 = vadd.f32 %v1318_v6, %v389_v43 }
  0xf2   :  { %v550_v46 = vadd.f32 %v1318_v6, %v549_v44  ;;  %677 = vst [vmem:[#allocation2 + $0x48] sm:$0xff] %v395_v41 }
  0xf3   :  { %709 = vst [vmem:[#allocation2 + $0x148] sm:$0xff] %v555_v42  ;;  %676 = vst [vmem:[#allocation2 + $0x40] sm:$0xff] %v390_v45  ;;  %v906_v47 = vpop.f32.mrb[10].mxu0 }
  0xf4   :  { %708 = vst [vmem:[#allocation2 + $0x140] sm:$0xff] %v550_v46  ;;  %v954_v48 = vpop.f32.mrb[10].mxu1  ;;  %v405_v49 = vadd.f32 %v906_v47, %v1318_v6  ;;  %v399_v51 = vpop.f32.mrb[11].mxu0 }
  0xf5   :  { %v565_v50 = vadd.f32 %v954_v48, %v1318_v6  ;;  %v559_v52 = vpop.f32.mrb[11].mxu1  ;;  %v400_v53 = vadd.f32 %v1318_v6, %v399_v51 }
  0xf6   :  { %v560_v54 = vadd.f32 %v1318_v6, %v559_v52  ;;  %679 = vst [vmem:[#allocation2 + $0x58] sm:$0xff] %v405_v49 }
  0xf7   :  { %711 = vst [vmem:[#allocation2 + $0x158] sm:$0xff] %v565_v50  ;;  %678 = vst [vmem:[#allocation2 + $0x50] sm:$0xff] %v400_v53  ;;  %v909_v55 = vpop.f32.mrb[12].mxu0 }
  0xf8   :  { %710 = vst [vmem:[#allocation2 + $0x150] sm:$0xff] %v560_v54  ;;  %v957_v56 = vpop.f32.mrb[12].mxu1  ;;  %v415_v57 = vadd.f32 %v909_v55, %v1318_v6  ;;  %v409_v59 = vpop.f32.mrb[13].mxu0 }
  0xf9   :  { %v575_v58 = vadd.f32 %v957_v56, %v1318_v6  ;;  %v569_v60 = vpop.f32.mrb[13].mxu1  ;;  %v410_v61 = vadd.f32 %v1318_v6, %v409_v59 }
  0xfa   :  { %v570_v62 = vadd.f32 %v1318_v6, %v569_v60  ;;  %681 = vst [vmem:[#allocation2 + $0x68] sm:$0xff] %v415_v57 }
  0xfb   :  { %713 = vst [vmem:[#allocation2 + $0x168] sm:$0xff] %v575_v58  ;;  %680 = vst [vmem:[#allocation2 + $0x60] sm:$0xff] %v410_v61  ;;  %v912_v63 = vpop.f32.mrb[14].mxu0 }
  0xfc   :  { %712 = vst [vmem:[#allocation2 + $0x160] sm:$0xff] %v570_v62  ;;  %v960_v0 = vpop.f32.mrb[14].mxu1  ;;  %v425_v1 = vadd.f32 %v912_v63, %v1318_v6  ;;  %v419_v3 = vpop.f32.mrb[15].mxu0 }
  0xfd   :  { %v585_v2 = vadd.f32 %v960_v0, %v1318_v6  ;;  %v579_v4 = vpop.f32.mrb[15].mxu1  ;;  %v420_v5 = vadd.f32 %v1318_v6, %v419_v3 }
  0xfe   :  { %v580_v7 = vadd.f32 %v1318_v6, %v579_v4  ;;  %683 = vst [vmem:[#allocation2 + $0x78] sm:$0xff] %v425_v1 }
  0xff   :  { %715 = vst [vmem:[#allocation2 + $0x178] sm:$0xff] %v585_v2  ;;  %682 = vst [vmem:[#allocation2 + $0x70] sm:$0xff] %v420_v5  ;;  %v915_v8 = vpop.f32.mrb[16].mxu0 }
 0x100   :  { %714 = vst [vmem:[#allocation2 + $0x170] sm:$0xff] %v580_v7  ;;  %v963_v9 = vpop.f32.mrb[16].mxu1  ;;  %v435_v10 = vadd.f32 %v915_v8, %v1318_v6  ;;  %v429_v12 = vpop.f32.mrb[17].mxu0 }
 0x101   :  { %v595_v11 = vadd.f32 %v963_v9, %v1318_v6  ;;  %v589_v13 = vpop.f32.mrb[17].mxu1  ;;  %v430_v14 = vadd.f32 %v1318_v6, %v429_v12 }
 0x102   :  { %v590_v15 = vadd.f32 %v1318_v6, %v589_v13  ;;  %685 = vst [vmem:[#allocation2 + $0x88] sm:$0xff] %v435_v10 }
 0x103   :  { %717 = vst [vmem:[#allocation2 + $0x188] sm:$0xff] %v595_v11  ;;  %684 = vst [vmem:[#allocation2 + $0x80] sm:$0xff] %v430_v14  ;;  %v918_v16 = vpop.f32.mrb[18].mxu0 }
 0x104   :  { %716 = vst [vmem:[#allocation2 + $0x180] sm:$0xff] %v590_v15  ;;  %v966_v17 = vpop.f32.mrb[18].mxu1  ;;  %v445_v18 = vadd.f32 %v918_v16, %v1318_v6  ;;  %v439_v20 = vpop.f32.mrb[19].mxu0 }
 0x105   :  { %v605_v19 = vadd.f32 %v966_v17, %v1318_v6  ;;  %v599_v21 = vpop.f32.mrb[19].mxu1  ;;  %v440_v22 = vadd.f32 %v1318_v6, %v439_v20 }
 0x106   :  { %v600_v23 = vadd.f32 %v1318_v6, %v599_v21  ;;  %687 = vst [vmem:[#allocation2 + $0x98] sm:$0xff] %v445_v18 }
 0x107   :  { %719 = vst [vmem:[#allocation2 + $0x198] sm:$0xff] %v605_v19  ;;  %686 = vst [vmem:[#allocation2 + $0x90] sm:$0xff] %v440_v22  ;;  %v921_v24 = vpop.f32.mrb[20].mxu0 }
 0x108   :  { %718 = vst [vmem:[#allocation2 + $0x190] sm:$0xff] %v600_v23  ;;  %v969_v25 = vpop.f32.mrb[20].mxu1  ;;  %v455_v26 = vadd.f32 %v921_v24, %v1318_v6  ;;  %v449_v28 = vpop.f32.mrb[21].mxu0 }
 0x109   :  { %v615_v27 = vadd.f32 %v969_v25, %v1318_v6  ;;  %v609_v29 = vpop.f32.mrb[21].mxu1  ;;  %v450_v30 = vadd.f32 %v1318_v6, %v449_v28 }
 0x10a   :  { %v610_v31 = vadd.f32 %v1318_v6, %v609_v29  ;;  %689 = vst [vmem:[#allocation2 + $0xa8] sm:$0xff] %v455_v26 }
 0x10b   :  { %721 = vst [vmem:[#allocation2 + $0x1a8] sm:$0xff] %v615_v27  ;;  %688 = vst [vmem:[#allocation2 + $0xa0] sm:$0xff] %v450_v30  ;;  %v924_v32 = vpop.f32.mrb[22].mxu0 }
 0x10c   :  { %720 = vst [vmem:[#allocation2 + $0x1a0] sm:$0xff] %v610_v31  ;;  %v972_v33 = vpop.f32.mrb[22].mxu1  ;;  %v465_v34 = vadd.f32 %v924_v32, %v1318_v6  ;;  %v459_v36 = vpop.f32.mrb[23].mxu0 }
 0x10d   :  { %v625_v35 = vadd.f32 %v972_v33, %v1318_v6  ;;  %v619_v37 = vpop.f32.mrb[23].mxu1  ;;  %v460_v38 = vadd.f32 %v1318_v6, %v459_v36 }
 0x10e   :  { %v620_v39 = vadd.f32 %v1318_v6, %v619_v37  ;;  %691 = vst [vmem:[#allocation2 + $0xb8] sm:$0xff] %v465_v34 }
 0x10f   :  { %723 = vst [vmem:[#allocation2 + $0x1b8] sm:$0xff] %v625_v35  ;;  %690 = vst [vmem:[#allocation2 + $0xb0] sm:$0xff] %v460_v38  ;;  %v927_v40 = vpop.f32.mrb[24].mxu0 }
 0x110   :  { %722 = vst [vmem:[#allocation2 + $0x1b0] sm:$0xff] %v620_v39  ;;  %v975_v41 = vpop.f32.mrb[24].mxu1  ;;  %v475_v42 = vadd.f32 %v927_v40, %v1318_v6  ;;  %v469_v44 = vpop.f32.mrb[25].mxu0 }
 0x111   :  { %v635_v43 = vadd.f32 %v975_v41, %v1318_v6  ;;  %v629_v45 = vpop.f32.mrb[25].mxu1  ;;  %v470_v46 = vadd.f32 %v1318_v6, %v469_v44 }
 0x112   :  { %v630_v47 = vadd.f32 %v1318_v6, %v629_v45  ;;  %693 = vst [vmem:[#allocation2 + $0xc8] sm:$0xff] %v475_v42 }
 0x113   :  { %725 = vst [vmem:[#allocation2 + $0x1c8] sm:$0xff] %v635_v43  ;;  %692 = vst [vmem:[#allocation2 + $0xc0] sm:$0xff] %v470_v46  ;;  %v930_v48 = vpop.f32.mrb[26].mxu0 }
 0x114   :  { %724 = vst [vmem:[#allocation2 + $0x1c0] sm:$0xff] %v630_v47  ;;  %v978_v49 = vpop.f32.mrb[26].mxu1  ;;  %v485_v50 = vadd.f32 %v930_v48, %v1318_v6  ;;  %v479_v52 = vpop.f32.mrb[27].mxu0 }
 0x115   :  { %v645_v51 = vadd.f32 %v978_v49, %v1318_v6  ;;  %v639_v53 = vpop.f32.mrb[27].mxu1  ;;  %v480_v54 = vadd.f32 %v1318_v6, %v479_v52 }
 0x116   :  { %v640_v55 = vadd.f32 %v1318_v6, %v639_v53  ;;  %695 = vst [vmem:[#allocation2 + $0xd8] sm:$0xff] %v485_v50 }
 0x117   :  { %727 = vst [vmem:[#allocation2 + $0x1d8] sm:$0xff] %v645_v51  ;;  %694 = vst [vmem:[#allocation2 + $0xd0] sm:$0xff] %v480_v54  ;;  %v933_v56 = vpop.f32.mrb[28].mxu0 }
 0x118   :  { %726 = vst [vmem:[#allocation2 + $0x1d0] sm:$0xff] %v640_v55  ;;  %v981_v57 = vpop.f32.mrb[28].mxu1  ;;  %v495_v58 = vadd.f32 %v933_v56, %v1318_v6  ;;  %v489_v60 = vpop.f32.mrb[29].mxu0 }
 0x119   :  { %v655_v59 = vadd.f32 %v981_v57, %v1318_v6  ;;  %v649_v61 = vpop.f32.mrb[29].mxu1  ;;  %v490_v62 = vadd.f32 %v1318_v6, %v489_v60 }
 0x11a   :  { %v650_v63 = vadd.f32 %v1318_v6, %v649_v61  ;;  %697 = vst [vmem:[#allocation2 + $0xe8] sm:$0xff] %v495_v58 }
 0x11b   :  { %729 = vst [vmem:[#allocation2 + $0x1e8] sm:$0xff] %v655_v59  ;;  %696 = vst [vmem:[#allocation2 + $0xe0] sm:$0xff] %v490_v62  ;;  %v936_v0 = vpop.f32.mrb[30].mxu0 }
 0x11c   :  { %728 = vst [vmem:[#allocation2 + $0x1e0] sm:$0xff] %v650_v63  ;;  %v984_v1 = vpop.f32.mrb[30].mxu1  ;;  %v505_v2 = vadd.f32 %v936_v0, %v1318_v6  ;;  %v499_v4 = vpop.f32.mrb[31].mxu0 }
 0x11d   :  { %v665_v3 = vadd.f32 %v984_v1, %v1318_v6  ;;  %v659_v5 = vpop.f32.mrb[31].mxu1  ;;  %v500_v7 = vadd.f32 %v1318_v6, %v499_v4 }
 0x11e   :  { %v660_v8 = vadd.f32 %v1318_v6, %v659_v5  ;;  %699 = vst [vmem:[#allocation2 + $0xf8] sm:$0xff] %v505_v2 }
 0x11f   :  { %731 = vst [vmem:[#allocation2 + $0x1f8] sm:$0xff] %v665_v3  ;;  %698 = vst [vmem:[#allocation2 + $0xf0] sm:$0xff] %v500_v7 }
 0x120   :  { %730 = vst [vmem:[#allocation2 + $0x1f0] sm:$0xff] %v660_v8 }
 0x121   :  { %1011 = shalt.err (!%p1008_p4)
}
 0x122   :  { %s1012_s13 = scalar_lea.hbm %s1399_s3, 8192 }
 0x123   :  { %p1013_p5 = scmp.ne.s32.totalorder %s1399_s3, %s1012_s13  ;;  %p1016_p6 = scmp.lt.u32.totalorder %s1012_s13, %s1399_s3 }
 0x125   :  { %p1018_p7 = pnand %p1016_p6, %p1013_p5 }
 0x127   :  { %1021 = shalt.err (!%p1018_p7)
}
 0x128   :  { %s1025_s18 = smov 128   ;;  %s1026_s19 = smov 8  }
 0x129   :  { %743 = dma.vmem_to_hbm [thread:$0]  %s738_s2, 8192, %s1399_s3, [#allocation3], %s1025_s18, %s1025_s18, %s1026_s19  }
 0x12a   :  { %1022 = dma.done.wait [#allocation3], 8192  }
 0x12b   :  { %1023 = vsyncadd [#allocation3], 4294959104 }
 0x12c   :  { %747 = vsyncpa [#allocation3], 1 }

// kernel: ga_forward.4
= control target key start
LH: loop header
LB: loop body
LE: loop exit
PB: predicated region body
PF: predicated region fallthrough
CT: control target
= control target key end

     0   :  { %s9741_s0 = inlined_call_operand.vmem [shape: s32[39], index: 0, kind: input, shape index: {}]   ;;  %s9742_s2 = inlined_call_operand.vmem [shape: f32[2,4,39,39,8], index: 2, kind: input, shape index: {}]   ;;  %s9743_s3 = inlined_call_operand.vmem [shape: f32[2,4,39,39,8], index: 3, kind: input, shape index: {}]   ;;  %s9744_s4 = inlined_call_operand.vmem [shape: f32[2,4,39,39,8], index: 4, kind: input, shape index: {}]   ;;  %s9745_s5 = inlined_call_operand.vmem [shape: f32[4,25,39,39], index: 5, kind: input, shape index: {}]   ;;  %s9746_s6 = inlined_call_operand.vmem [shape: f32[13,39,39], index: 6, kind: input, shape index: {}]   ;;  %s9747_s7 = inlined_call_operand.vmem [shape: f32[39,39], index: 7, kind: input, shape index: {}]   ;;  %s9748_s8 = inlined_call_operand.vmem [shape: f32[2,4,39,39,8], index: 8, kind: output, shape index: {}]   ;;  %s9749_s1 = inlined_call_operand.vmem [shape: s32[39], index: 1, kind: input, shape index: {}]  }
   0x1   :  { %s13_s29 = sshll.u32 %s9741_s0, 4  ;;  %s17_s10 = sshll.u32 %s9749_s1, 4  ;;  %s14_s29 = int_to_ptr.vmem [resolvable:$true] %s13_s29  ;;  %s18_s10 = int_to_ptr.vmem [resolvable:$true] %s17_s10 }
   0x2   :  { %s6965_s11 = scalar_lea.vmem %s14_s29, 16  ;;  %p6970_p1 = scmp.lt.s32.totalorder %s14_s29, %s14_s29 }
   0x3   :  { %p6966_p0 = scmp.ne.s32.totalorder %s14_s29, %s6965_s11  ;;  %p6971_p2 = scmp.lt.s32.totalorder %s6965_s11, %s6965_s11 }
   0x5   :  { %p6972_p3 = por %p6971_p2, %p6970_p1 }
   0x7   :  { %p6973_p4 = pnand %p6972_p3, %p6966_p0 }
   0x9   :  { %6976 = shalt.err (!%p6973_p4)  }
   0xa   :  { %s7039_s12 = smov [#allocation3]   ;;  %s6977_s13 = scalar_lea.vmem %s18_s10, 16 }
   0xb   :  { %16 = dma.vmem_to_smem %s14_s29, 16, %s7039_s12, [#allocation2] }
   0xc   :  { %p6978_p5 = scmp.ne.s32.totalorder %s18_s10, %s6977_s13  ;;  %p6982_p6 = scmp.lt.s32.totalorder %s18_s10, %s18_s10 }
   0xd   :  { %p6983_p7 = scmp.lt.s32.totalorder %s6977_s13, %s6977_s13 }
   0xf   :  { %p6984_p8 = por %p6983_p7, %p6982_p6 }
  0x11   :  { %p6985_p9 = pnand %p6984_p8, %p6978_p5 }
  0x13   :  { %6988 = shalt.err (!%p6985_p9)  }
  0x14   :  { %s7040_s0 = smov [#allocation4]  }
  0x15   :  { %20 = dma.vmem_to_smem %s18_s10, 16, %s7040_s0, [#allocation2] }
  0x16   :  { %7013 = dma.done.wait [#allocation2], 32 }
  0x17   :  { %7014 = vsyncadd [#allocation2], 4294967264 }
  0x18   :  { %22 = sfence }
  0x19   :  { %s7095_s1 = smov 0   ;;  %s7097_s14 = smov 0  }
  0x1a   :  { %s7099_s15 = smov 0   ;;  %s7101_s16 = smov 0  }
  0x1b   :  { %s7103_s17 = smov 0  }
  0x1c LB: > { %s37_s18 = sadd.s32 1, %s7025_s15  ;;  %s40_s19 = sadd.s32 1, %s7029_s16  ;;  %s7033_s17 = sphi %s7103_s17, %s28_s17   ;;  %s7029_s16 = sphi %s7101_s16, %s10058_s16   ;;  %s7025_s15 = sphi %s7099_s15, %s10057_s15   ;;  %s7021_s14 = sphi %s7097_s14, %s10056_s14   ;;  %s7017_s1 = sphi %s7095_s1, %s10055_s1  }
  0x1d   : > { %p38_p10 = scmp.ge.s32.totalorder %s37_s18, 4  ;;  %p5085_p11 = scmp.ge.s32.totalorder %s7033_s17, 1 }
  0x1e   : > { %p286_p12 = scmp.lt.s32.totalorder %s7033_s17, 9 }
  0x1f   : > { %s10060_s18 = smov (%p38_p10, %s37_s18), 0  ;;  %s10062_s19 = smov (!%p38_p10, %s40_s19), %s7029_s16 }
  0x20   : > { %p287_p13 = pnand %p5085_p11, %p286_p12  ;;  %p42_p0 = scmp.ge.s32.totalorder %s10062_s19, 2 }
  0x21   : > { %p347_p1 = scmp.lt.s32.totalorder (!%p287_p13), %s7021_s14, 1  ;;  %p349_p2 = scmp.lt.s32.totalorder (!%p287_p13), %s7017_s1, 3  ;;  %v7128_v0 = vld [vmem:[%s9747_s7] sm:$0xff] (!%p287_p13)  ;;  %v7133_v1 = vld [vmem:[%s9747_s7 + $0x8] sm:$0xff] (!%p287_p13)  ;;  %v7138_v2 = vld [vmem:[%s9747_s7 + $0x10] sm:$0xff] (!%p287_p13) }
  0x22   : > { %s10064_s19 = smov (%p42_p0, %s10062_s19), 0  ;;  %290 = sbr.rel (%p287_p13) target bundleno = 1311 (0x51f), region = 44 }
  0x23   : > { %9846 = vst [vmem:[#allocation6_spill] sm:$0xff] (!%p287_p13), %v7128_v0  ;;  %9847 = vst [vmem:[#allocation7_spill] sm:$0xff] (!%p287_p13), %v7133_v1  ;;  %v7143_v3 = vld [vmem:[%s9747_s7 + $0x18] sm:$0xff] (!%p287_p13)  ;;  %v7148_v4 = vld [vmem:[%s9747_s7 + $0x20] sm:$0x7f] (!%p287_p13) }
  0x24   : > { %9848 = vst [vmem:[#allocation8_spill] sm:$0xff] (!%p287_p13), %v7138_v2  ;;  %9849 = vst [vmem:[#allocation9_spill] sm:$0xff] (!%p287_p13), %v7143_v3 }
  0x25   : > { %9850 = vst [vmem:[#allocation10_spill] sm:$0xff] (!%p287_p13), %v7148_v4 }
  0x29   : > { %s10066_s14 = smov (!%p347_p1, %s7021_s14), 1  ;;  %s10068_s1 = smov (!%p349_p2, %s7017_s1), 3 }
  0x2a   : > { %s6640_s30 = smul.u32 780, %s10066_s14 }
  0x2b   : > { %s6639_s9 = smul.u32 195, %s10068_s1 }
  0x2c   : > { %s6641_s10 = smul.u32 1000, %s10068_s1 }
  0x2d   : > { %s353_s11 = sadd.s32 %s6640_s30, %s6639_s9  ;;  %s7173_s9 = smov 0  }
  0x2e   : > { %s7150_s12 = sshll.u32 %s353_s11, 3  ;;  %s7155_s20 = scalar_lea.vmem %s9745_s5, %s6641_s10 }
  0x2f   : > { %s355_s23 = scalar_lea.vmem %s9742_s2, %s7150_s12  ;;  %s364_s1 = scalar_lea.vmem %s9743_s3, %s7150_s12 }
  0x30   : > { %s373_s27 = scalar_lea.vmem %s9744_s4, %s7150_s12  ;;  %s387_s30 = scalar_lea.vmem %s9748_s8, %s7150_s12 }
  0x31 LB: >> { %v9851_v4 = vld [vmem:[#allocation10_spill] sm:$0xff]  ;;  %v9852_v3 = vld [vmem:[#allocation9_spill] sm:$0xff]  ;;  %v9853_v2 = vld [vmem:[#allocation8_spill] sm:$0xff]  ;;  %v9750_v5 = vmov 0.0|0.0   ;;  %vm7042_vm0 = vmmov 0   ;;  %v9752_v6 = vmov 0.0   ;;  %s7037_s9 = sphi %s7173_s9, %s398_s9  }
  0x32   : >> { %v9854_v1 = vld [vmem:[#allocation7_spill] sm:$0xff]  ;;  %v9855_v0 = vld [vmem:[#allocation6_spill] sm:$0xff]  ;;  %6451 = vmatprep.subr.bf16.mxu0 %v9750_v5  ;;  %5811 = vmatprep.mubr.msk.f32.mxu0 %vm7042_vm0, %v9752_v6  ;;  %s7182_s10 = sld [smem:[#allocation3 + %s7037_s9]]  ;;  %vm433_vm1 = vcmask 64512   ;;  %s401_s22 = smul.u32 40, %s7037_s9  ;;  %vm569_vm3 = vcmask 318464  }
  0x33   : >> { %6459 = vmatprep.subr.bf16.mxu1 %v9750_v5  ;;  %5836 = vmatprep.mubr.msk.f32.mxu1 %vm7042_vm0, %v9752_v6  ;;  %vm7201_vm2 = vmpackc.low %vm433_vm1, %vm433_vm1  ;;  %s400_s26 = sld [smem:[#allocation4 + %s7037_s9]]  ;;  %v554_v27 = vld [vmem:[%s9746_s6] sm:$0xff]  ;;  %v555_v33 = vld [vmem:[%s9746_s6 + $0x8] sm:$0xff]  ;;  %vm582_vm4 = vcmask 317440   ;;  %vm661_vm5 = vcmask 1046528   ;;  %vm4807_vm6 = vcmask 63488  }
  0x34   : >> { %s402_s25 = scalar_lea.vmem %s355_s23, %s401_s22  ;;  %v556_v41 = vld [vmem:[%s9746_s6 + $0x10] sm:$0xff]  ;;  %v557_v49 = vld [vmem:[%s9746_s6 + $0x18] sm:$0xff]  ;;  %v558_v57 = vld [vmem:[%s9746_s6 + $0x20] sm:$0x7f]  ;;  %s4802_s13 = scalar_lea.vmem %s387_s30, %s401_s22 }
  0x35   : >> { %v403_v14 = vld [vmem:[%s402_s25] sm:$0xff]  ;;  %v404_v17 = vld [vmem:[%s402_s25 + $0x8] sm:$0xff]  ;;  %v405_v19 = vld [vmem:[%s402_s25 + $0x10] sm:$0xff]  ;;  %s398_s9 = sadd.s32 1, %s7037_s9  }
  0x36   : >> { %v7222_v16 = vmul.f32 0.35355338, %v403_v14  ;;  %v7228_v18 = vmul.f32 0.35355338, %v404_v17  ;;  %v7234_v20 = vmul.f32 0.35355338, %v405_v19 }
  0x37   : >> { %v406_v21 = vld [vmem:[%s402_s25 + $0x18] sm:$0xff]  ;;  %v407_v23 = vld [vmem:[%s402_s25 + $0x20] sm:$0x7f]  ;;  %p395_p3 = scmp.ge.s32.totalorder %s398_s9, 39  }
  0x38   : >> { %s413_s11 = smul.u32 40, %s7182_s10  ;;  %v7240_v22 = vmul.f32 0.35355338, %v406_v21  ;;  %v7246_v24 = vmul.f32 0.35355338, %v407_v23 }
  0x39   : >> { %s426_s28 = smul.u32 40, %s400_s26 }
  0x3a   : >> { %s7195_s21 = scalar_lea.vmem %s364_s1, %s413_s11  ;;  %s7294_s26 = scalar_lea.vmem %s373_s27, %s413_s11 }
  0x3b   : >> { %v415_v7 = vld [vmem:[%s7195_s21] sm:$0xff]  ;;  %v416_v8 = vld [vmem:[%s7195_s21 + $0x8] sm:$0xff]  ;;  %v417_v11 = vld [vmem:[%s7195_s21 + $0x10] sm:$0xff]  ;;  %s7256_s29 = scalar_lea.vmem %s7155_s20, %s426_s28 }
  0x3c   : >> { %v6452_v10 = vpack.c.bf16 %v416_v8, %v415_v7  ;;  %v418_v12 = vld [vmem:[%s7195_s21 + $0x18] sm:$0xff]  ;;  %v419_v15 = vld [vmem:[%s7195_s21 + $0x20] sm:$0x7f]  ;;  %v429_v30 = vld [vmem:[%s7256_s29 + $0x8] sm:$0xff] }
  0x3d   : >> { %v6456_v13 = vpack.c.bf16 %v418_v12, %v417_v11  ;;  %v428_v25 = vld [vmem:[%s7256_s29] sm:$0xff]  ;;  %v430_v37 = vld [vmem:[%s7256_s29 + $0x10] sm:$0xff]  ;;  %v431_v45 = vld [vmem:[%s7256_s29 + $0x18] sm:$0xff] }
  0x3e   : >> { %6454 = vmatpush3.bf16.xpose.msk.msra.mxu0 %vm7201_vm2, %v6452_v10  ;;  %v432_v53 = vld [vmem:[%s7256_s29 + $0x20] sm:$0x7f]  ;;  %v422_v8 = vld [vmem:[%s7294_s26 + $0x8] sm:$0xff]  ;;  %v423_v12 = vld [vmem:[%s7294_s26 + $0x10] sm:$0xff] }
  0x3f   : >> { %6455 = vmatprep.subr.bf16.mxu0 %v9750_v5  ;;  %v421_v7 = vld [vmem:[%s7294_s26] sm:$0xff] }
  0x40   : >> { %v6460_v11 = vpack.c.bf16 %v422_v8, %v421_v7  ;;  %v5182_v7 = vld [vmem:[%s7195_s21 + $0x180] sm:$0xff] }
  0x42   : >> { %6461 = vmatpush3.bf16.msra.mxu1 %v6460_v11  ;;  %v5215_v11 = vld [vmem:[%s7195_s21 + $0x1e0] sm:$0xff] }
  0x43   : >> { %6462 = vmatprep.subr.bf16.mxu1 %v9750_v5 }
  0x46   : >> { %6458 = vmatpush3.bf16.xpose.msk.msra.mxu0 %vm7201_vm2, %v6456_v13  ;;  %v424_v13 = vld [vmem:[%s7294_s26 + $0x18] sm:$0xff] }
  0x47   : >> { %5809 = vmatprep.subr.mxu0 %v9752_v6  ;;  %v6463_v14 = vpack.c.bf16 %v424_v13, %v423_v12  ;;  %v5216_v12 = vld [vmem:[%s7195_s21 + $0x1e8] sm:$0xff] }
  0x48   : >> { %v6508_v13 = vpack.c.bf16 %v5216_v12, %v5215_v11  ;;  %v5399_v11 = vld [vmem:[%s7195_s21 + $0x458] sm:$0x7f]  ;;  %v5431_v12 = vld [vmem:[%s7195_s21 + $0x4b0] sm:$0xff] }
  0x49   : >> { %6464 = vmatpush3.bf16.msra.mxu1 %v6463_v14  ;;  %v5217_v14 = vld [vmem:[%s7195_s21 + $0x1f0] sm:$0xff] }
  0x4a   : >> { %5834 = vmatprep.subr.mxu1 %v9752_v6 }
  0x4e   : >> { %5810 = vmatpush3.xpose.msk.msra.mxu0 %vm433_vm1, %v419_v15  ;;  %v425_v15 = vld [vmem:[%s7294_s26 + $0x20] sm:$0x7f] }
  0x4f   : >> { %6473 = vmatprep.subr.bf16.mxu0 %v9750_v5  ;;  %5835 = vmatpush3.msk.msra.mxu1 %vm661_vm5, %v425_v15  ;;  %v5218_v15 = vld [vmem:[%s7195_s21 + $0x1f8] sm:$0xff] }
  0x50   : >> { %6465 = vmatprep.subr.bf16.mxu1 %v9750_v5 }
  0x51   : >> { %5812 = vmatmul.mubr.msk.f32.vlgmr.msra.gmra.mrb[0].mxu0 %vm433_vm1, %v7222_v16 }
  0x52   : >> { %5814 = vmatprep.mubr.msk.f32.mxu0 %vm7042_vm0, %v9752_v6 }
  0x55   : >> { %5815 = vmatmul.mubr.msk.f32.gmra.mrb[2].mxu0 %vm433_vm1, %v7228_v18 }
  0x56   : >> { %5817 = vmatprep.mubr.msk.f32.mxu0 %vm7042_vm0, %v9752_v6 }
  0x59   : >> { %5818 = vmatmul.mubr.msk.f32.gmra.mrb[4].mxu0 %vm433_vm1, %v7234_v20 }
  0x5a   : >> { %5820 = vmatprep.mubr.msk.f32.mxu0 %vm7042_vm0, %v9752_v6 }
  0x5d   : >> { %5821 = vmatmul.mubr.msk.f32.gmra.mrb[6].mxu0 %vm433_vm1, %v7240_v22 }
  0x5e   : >> { %5823 = vmatprep.mubr.msk.f32.mxu0 %vm7042_vm0, %v9752_v6 }
  0x61   : >> { %5824 = vmatmul.mubr.msk.f32.gmra.mrb[8].mxu0 %vm433_vm1, %v7246_v24 }
  0x62   : >> { %5886 = vmatprep.mubr.msk.f32.mxu0 %vm7042_vm0, %v9752_v6 }
 0x124   : >> { %v530_v26 = vpop.f32.mrb[0].mxu0 }
 0x125   : >> { %v531_v28 = vadd.f32 %v530_v26, %v428_v25  ;;  %v5813_v29 = vpop.f32.mrb[1].mxu0 }
 0x127   : >> { %v559_v31 = vmul.f32 %v554_v27, %v531_v28 }
 0x128   : >> { %v535_v32 = vpop.f32.mrb[2].mxu0 }
 0x129   : >> { %v536_v34 = vadd.f32 %v535_v32, %v429_v30  ;;  %v5816_v35 = vpop.f32.mrb[3].mxu0  ;;  %v564_v36 = vadd.f32 %v559_v31, %v9855_v0 }
 0x12b   : >> { %v560_v38 = vmul.f32 %v555_v33, %v536_v34  ;;  %v570_v39 = vsel %vm569_vm3, %v564_v36, -inf  ;;  %v5107_v33 = vld [vmem:[%s7195_s21 + $0x78] sm:$0xff]  ;;  %v5108_v34 = vld [vmem:[%s7195_s21 + $0x80] sm:$0xff] }
 0x12c   : >> { %571 = vmax.xlane.f32.xlu0 %v570_v39  ;;  %v540_v40 = vpop.f32.mrb[4].mxu0 }
 0x12d   : >> { %v541_v42 = vadd.f32 %v540_v40, %v430_v37  ;;  %v5819_v43 = vpop.f32.mrb[5].mxu0  ;;  %v565_v44 = vadd.f32 %v560_v38, %v9854_v1  ;;  %v6466_v38 = vpack.c.bf16 %v5108_v34, %v5107_v33  ;;  %v5287_v33 = vld [vmem:[%s7195_s21 + $0x2d0] sm:$0xff]  ;;  %v5288_v34 = vld [vmem:[%s7195_s21 + $0x2d8] sm:$0xff] }
 0x12f   : >> { %v573_v46 = vsel %vm569_vm3, %v565_v44, -inf  ;;  %v561_v47 = vmul.f32 %v556_v41, %v541_v42 }
 0x130   : >> { %574 = vmax.xlane.f32.xlu0 %v573_v46  ;;  %v545_v48 = vpop.f32.mrb[6].mxu0 }
 0x131   : >> { %v546_v50 = vadd.f32 %v545_v48, %v431_v45  ;;  %v5822_v51 = vpop.f32.mrb[7].mxu0  ;;  %v566_v52 = vadd.f32 %v561_v47, %v9853_v2  ;;  %v5110_v45 = vld [vmem:[%s7195_s21 + $0x90] sm:$0xff] }
 0x132   : >> { %v5111_v51 = vld [vmem:[%s7195_s21 + $0x98] sm:$0x7f] }
 0x133   : >> { %v562_v54 = vmul.f32 %v557_v49, %v546_v50  ;;  %v576_v55 = vsel %vm569_vm3, %v566_v52, -inf }
 0x134   : >> { %577 = vmax.xlane.f32.xlu1 %v576_v55  ;;  %v550_v56 = vpop.f32.mrb[8].mxu0 }
 0x135   : >> { %v551_v58 = vadd.f32 %v550_v56, %v432_v53  ;;  %v5825_v59 = vpop.f32.mrb[9].mxu0  ;;  %v567_v60 = vadd.f32 %v562_v54, %v9852_v3  ;;  %v5144_v53 = vld [vmem:[%s7195_s21 + $0xf8] sm:$0xff]  ;;  %v5145_v56 = vld [vmem:[%s7195_s21 + $0x100] sm:$0xff] }
 0x136   : >> { %v5147_v59 = vld [vmem:[%s7195_s21 + $0x110] sm:$0x7f] }
 0x137   : >> { %v563_v61 = vmul.f32 %v558_v57, %v551_v58  ;;  %v579_v62 = vsel %vm569_vm3, %v567_v60, -inf  ;;  %v5146_v57 = vld [vmem:[%s7195_s21 + $0x108] sm:$0xff] }
 0x138   : >> { %580 = vmax.xlane.f32.xlu1 %v579_v62  ;;  %v6484_v58 = vpack.c.bf16 %v5146_v57, %v5145_v56  ;;  %v5361_v57 = vld [vmem:[%s7195_s21 + $0x3d0] sm:$0xff] }
 0x139   : >> { %v568_v63 = vadd.f32 %v563_v61, %v9851_v4  ;;  %v5180_v61 = vld [vmem:[%s7195_s21 + $0x170] sm:$0xff] }
 0x13b   : >> { %v583_v10 = vsel %vm582_vm4, %v568_v63, -inf }
 0x13c   : >> { %584 = vmax.xlane.f32.xlu0 %v583_v10  ;;  %v5183_v10 = vld [vmem:[%s7195_s21 + $0x188] sm:$0x7f] }
 0x1b9   : >> { %v572_v17 = vpop.xlane.xlu0 %571 }
 0x1ba   : >> { %v7306_v19 = vmax.f32 %v572_v17, -1e+30  ;;  %v6512_v17 = vpack.c.bf16 %v5218_v15, %v5217_v14  ;;  %v5433_v15 = vld [vmem:[%s7195_s21 + $0x4c0] sm:$0xff] }
 0x1bc   : >> { %v606_v21 = vsub.f32 %v564_v36, %v7306_v19 }
 0x1bd   : >> { %v575_v23 = vpop.xlane.xlu0 %574 }
 0x1be   : >> { %v611_v25 = vmul.f32 1.442695, %v606_v21  ;;  %v7309_v26 = vmax.f32 %v575_v23, -1e+30  ;;  %v5219_v21 = vld [vmem:[%s7195_s21 + $0x200] sm:$0x7f] }
 0x1bf   : >> { %v5251_v23 = vld [vmem:[%s7195_s21 + $0x258] sm:$0xff] }
 0x1c0   : >> { %6695 = vpow2.f32 %v611_v25  ;;  %v607_v27 = vsub.f32 %v565_v44, %v7309_v26  ;;  %v5109_v44 = vld [vmem:[%s7195_s21 + $0x88] sm:$0xff]  ;;  %v5252_v25 = vld [vmem:[%s7195_s21 + $0x260] sm:$0xff] }
 0x1c1   : >> { %v578_v28 = vpop.xlane.xlu1 %577  ;;  %v6470_v48 = vpack.c.bf16 %v5110_v45, %v5109_v44  ;;  %v5324_v44 = vld [vmem:[%s7195_s21 + $0x350] sm:$0xff] }
 0x1c2   : >> { %v613_v29 = vmul.f32 1.442695, %v607_v27  ;;  %v7312_v30 = vmax.f32 %v578_v28, -1e+30  ;;  %v6522_v27 = vpack.c.bf16 %v5252_v25, %v5251_v23  ;;  %v5253_v28 = vld [vmem:[%s7195_s21 + $0x268] sm:$0xff] }
 0x1c3   : >> { %v5435_v23 = vld [vmem:[%s7195_s21 + $0x4d0] sm:$0x7f]  ;;  %v5467_v25 = vld [vmem:[%s7195_s21 + $0x528] sm:$0xff] }
 0x1c4   : >> { %6697 = vpow2.f32 %v613_v29  ;;  %v608_v31 = vsub.f32 %v566_v52, %v7312_v30  ;;  %v5143_v52 = vld [vmem:[%s7195_s21 + $0xf0] sm:$0xff] }
 0x1c5   : >> { %v581_v32 = vpop.xlane.xlu1 %580  ;;  %v6480_v55 = vpack.c.bf16 %v5144_v53, %v5143_v52  ;;  %v5254_v29 = vld [vmem:[%s7195_s21 + $0x270] sm:$0xff]  ;;  %v5327_v52 = vld [vmem:[%s7195_s21 + $0x368] sm:$0x7f]  ;;  %v5359_v53 = vld [vmem:[%s7195_s21 + $0x3c0] sm:$0xff] }
 0x1c6   : >> { %v615_v35 = vmul.f32 1.442695, %v608_v31  ;;  %v7317_v36 = vmax.f32 %v581_v32, -1e+30  ;;  %v6526_v31 = vpack.c.bf16 %v5254_v29, %v5253_v28  ;;  %v5255_v32 = vld [vmem:[%s7195_s21 + $0x278] sm:$0x7f] }
 0x1c7   : >> { %v5469_v29 = vld [vmem:[%s7195_s21 + $0x538] sm:$0xff] }
 0x1c8   : >> { %6699 = vpow2.f32 %v615_v35  ;;  %v609_v37 = vsub.f32 %v567_v60, %v7317_v36  ;;  %v5179_v60 = vld [vmem:[%s7195_s21 + $0x168] sm:$0xff]  ;;  %v6536_v35 = vpack.c.bf16 %v5288_v34, %v5287_v33 }
 0x1c9   : >> { %v585_v39 = vpop.xlane.xlu0 %584  ;;  %v6494_v62 = vpack.c.bf16 %v5180_v61, %v5179_v60  ;;  %v5363_v60 = vld [vmem:[%s7195_s21 + $0x3e0] sm:$0x7f]  ;;  %v5395_v61 = vld [vmem:[%s7195_s21 + $0x438] sm:$0xff] }
 0x1ca   : >> { %v7320_v40 = vpop.eup %6695  ;;  %v617_v41 = vmul.f32 1.442695, %v609_v37  ;;  %v7322_v42 = vmax.f32 %v585_v39, -1e+30  ;;  %v5289_v37 = vld [vmem:[%s7195_s21 + $0x2e0] sm:$0xff] }
 0x1cb   : >> { %5837 = vmatmul.mubr.msk.f32.vlgmr.msra.gmra.mrb[0].mxu1 %vm569_vm3, %v7320_v40 }
 0x1cc   : >> { %6701 = vpow2.f32 %v617_v41  ;;  %v610_v43 = vsub.f32 %v568_v63, %v7322_v42  ;;  %6468 = vmatpush3.bf16.xpose.msk.msra.mxu1 %vm7201_vm2, %v6466_v38  ;;  %5839 = vmatprep.mubr.msk.f32.mxu1 %vm7042_vm0, %v9752_v6  ;;  %v5181_v63 = vld [vmem:[%s7195_s21 + $0x178] sm:$0xff]  ;;  %v5290_v38 = vld [vmem:[%s7195_s21 + $0x2e8] sm:$0xff]  ;;  %v5291_v41 = vld [vmem:[%s7195_s21 + $0x2f0] sm:$0x7f] }
 0x1cd   : >> { %6469 = vmatprep.subr.bf16.mxu1 %v9750_v5  ;;  %v6498_v8 = vpack.c.bf16 %v5182_v7, %v5181_v63  ;;  %v6540_v39 = vpack.c.bf16 %v5290_v38, %v5289_v37  ;;  %v5397_v7 = vld [vmem:[%s7195_s21 + $0x448] sm:$0xff]  ;;  %v5503_v37 = vld [vmem:[%s7195_s21 + $0x5a0] sm:$0xff] }
 0x1ce   : >> { %v7334_v46 = vpop.eup %6697  ;;  %v619_v47 = vmul.f32 1.442695, %v610_v43  ;;  %v5323_v43 = vld [vmem:[%s7195_s21 + $0x348] sm:$0xff] }
 0x1cf   : >> { %5840 = vmatmul.mubr.msk.f32.gmra.mrb[2].mxu1 %vm569_vm3, %v7334_v46  ;;  %v6550_v45 = vpack.c.bf16 %v5324_v44, %v5323_v43  ;;  %v5504_v38 = vld [vmem:[%s7195_s21 + $0x5a8] sm:$0xff] }
 0x1d0   : >> { %6703 = vpow2.f32 %v619_v47  ;;  %5842 = vmatprep.mubr.msk.f32.mxu1 %vm7042_vm0, %v9752_v6  ;;  %v5325_v47 = vld [vmem:[%s7195_s21 + $0x358] sm:$0xff]  ;;  %v6620_v43 = vpack.c.bf16 %v5504_v38, %v5503_v37  ;;  %v5121_v38 = vld [vmem:[%s7256_s29 + $0x48] sm:$0x7f] }
 0x1d2   : >> { %v7340_v49 = vpop.eup %6699 }
 0x1d3   : >> { %5843 = vmatmul.mubr.msk.f32.gmra.mrb[4].mxu1 %vm569_vm3, %v7340_v49 }
 0x1d4   : >> { %6472 = vmatpush3.bf16.xpose.msk.msra.mxu1 %vm7201_vm2, %v6470_v48  ;;  %5845 = vmatprep.mubr.msk.f32.mxu1 %vm7042_vm0, %v9752_v6  ;;  %v5326_v48 = vld [vmem:[%s7195_s21 + $0x360] sm:$0xff] }
 0x1d5   : >> { %5859 = vmatprep.subr.mxu1 %v9752_v6 }
 0x1d6   : >> { %v7349_v50 = vpop.eup %6701 }
 0x1d7   : >> { %9858 = vst [vmem:[#allocation11_spill] sm:$0xff] %v7349_v50  ;;  %5846 = vmatmul.mubr.msk.f32.gmra.mrb[6].mxu1 %vm569_vm3, %v7349_v50 }
 0x1d8   : >> { %5848 = vmatprep.mubr.msk.f32.mxu1 %vm7042_vm0, %v9752_v6 }
 0x1da   : >> { %v7358_v54 = vpop.eup %6703 }
 0x1db   : >> { %5849 = vmatmul.mubr.msk.f32.gmra.mrb[8].mxu1 %vm569_vm3, %v7358_v54 }
 0x1dc   : >> { %5860 = vmatpush3.xpose.msk.msra.mxu1 %vm433_vm1, %v5111_v51  ;;  %5861 = vmatprep.mubr.msk.f32.mxu1 %vm7042_vm0, %v9752_v6  ;;  %v6554_v51 = vpack.c.bf16 %v5326_v48, %v5325_v47  ;;  %v5505_v47 = vld [vmem:[%s7195_s21 + $0x5b0] sm:$0xff]  ;;  %v5506_v48 = vld [vmem:[%s7195_s21 + $0x5b8] sm:$0xff] }
 0x1dd   : >> { %6479 = vmatprep.subr.bf16.mxu1 %v9750_v5 }
 0x1df   : >> { %5862 = vmatmul.mubr.msk.f32.vlgmr.msra.gmra.mrb[10].mxu1 %vm433_vm1, %v7222_v16 }
 0x1e0   : >> { %6482 = vmatpush3.bf16.xpose.msk.msra.mxu1 %vm7201_vm2, %v6480_v55  ;;  %5864 = vmatprep.mubr.msk.f32.mxu1 %vm7042_vm0, %v9752_v6  ;;  %v5360_v55 = vld [vmem:[%s7195_s21 + $0x3c8] sm:$0xff] }
 0x1e1   : >> { %6483 = vmatprep.subr.bf16.mxu1 %v9750_v5  ;;  %v6564_v56 = vpack.c.bf16 %v5360_v55, %v5359_v53  ;;  %v6624_v53 = vpack.c.bf16 %v5506_v48, %v5505_v47  ;;  %v5136_v47 = vld [vmem:[%s9746_s6 + $0x48] sm:$0x7f] }
 0x1e3   : >> { %5865 = vmatmul.mubr.msk.f32.gmra.mrb[12].mxu1 %vm433_vm1, %v7228_v18 }
 0x1e4   : >> { %5867 = vmatprep.mubr.msk.f32.mxu1 %vm7042_vm0, %v9752_v6 }
 0x1e7   : >> { %5868 = vmatmul.mubr.msk.f32.gmra.mrb[14].mxu1 %vm433_vm1, %v7234_v20 }
 0x1e8   : >> { %6486 = vmatpush3.bf16.xpose.msk.msra.mxu1 %vm7201_vm2, %v6484_v58  ;;  %5870 = vmatprep.mubr.msk.f32.mxu1 %vm7042_vm0, %v9752_v6  ;;  %v5362_v58 = vld [vmem:[%s7195_s21 + $0x3d8] sm:$0xff] }
 0x1e9   : >> { %5909 = vmatprep.subr.mxu1 %v9752_v6 }
 0x1eb   : >> { %5871 = vmatmul.mubr.msk.f32.gmra.mrb[16].mxu1 %vm433_vm1, %v7240_v22 }
 0x1ec   : >> { %5873 = vmatprep.mubr.msk.f32.mxu1 %vm7042_vm0, %v9752_v6 }
 0x1ef   : >> { %5874 = vmatmul.mubr.msk.f32.gmra.mrb[18].mxu1 %vm433_vm1, %v7246_v24 }
 0x1f0   : >> { %5910 = vmatpush3.xpose.msk.msra.mxu1 %vm433_vm1, %v5147_v59  ;;  %5911 = vmatprep.mubr.msk.f32.mxu1 %vm7042_vm0, %v9752_v6  ;;  %v6568_v59 = vpack.c.bf16 %v5362_v58, %v5361_v57  ;;  %v5117_v57 = vld [vmem:[%s7256_s29 + $0x28] sm:$0xff] }
 0x1f1   : >> { %6493 = vmatprep.subr.bf16.mxu1 %v9750_v5 }
 0x1f3   : >> { %5912 = vmatmul.mubr.msk.f32.vlgmr.msra.gmra.mrb[20].mxu1 %vm433_vm1, %v7222_v16 }
 0x1f4   : >> { %6496 = vmatpush3.bf16.xpose.msk.msra.mxu1 %vm7201_vm2, %v6494_v62  ;;  %5914 = vmatprep.mubr.msk.f32.mxu1 %vm7042_vm0, %v9752_v6  ;;  %v5396_v62 = vld [vmem:[%s7195_s21 + $0x440] sm:$0xff] }
 0x1f5   : >> { %6497 = vmatprep.subr.bf16.mxu1 %v9750_v5  ;;  %v6578_v63 = vpack.c.bf16 %v5396_v62, %v5395_v61  ;;  %v5118_v62 = vld [vmem:[%s7256_s29 + $0x30] sm:$0xff] }
 0x1f7   : >> { %5915 = vmatmul.mubr.msk.f32.gmra.mrb[22].mxu1 %vm433_vm1, %v7228_v18 }
 0x1f8   : >> { %5917 = vmatprep.mubr.msk.f32.mxu1 %vm7042_vm0, %v9752_v6 }
 0x1fb   : >> { %5918 = vmatmul.mubr.msk.f32.gmra.mrb[24].mxu1 %vm433_vm1, %v7234_v20 }
 0x1fc   : >> { %6500 = vmatpush3.bf16.xpose.msk.msra.mxu1 %vm7201_vm2, %v6498_v8  ;;  %5920 = vmatprep.mubr.msk.f32.mxu1 %vm7042_vm0, %v9752_v6  ;;  %v5398_v8 = vld [vmem:[%s7195_s21 + $0x450] sm:$0xff] }
 0x1fd   : >> { %5959 = vmatprep.subr.mxu1 %v9752_v6 }
 0x1ff   : >> { %5921 = vmatmul.mubr.msk.f32.gmra.mrb[26].mxu1 %vm433_vm1, %v7240_v22 }
 0x200   : >> { %5923 = vmatprep.mubr.msk.f32.mxu1 %vm7042_vm0, %v9752_v6 }
 0x203   : >> { %5924 = vmatmul.mubr.msk.f32.gmra.mrb[28].mxu1 %vm433_vm1, %v7246_v24 }
 0x204   : >> { %5960 = vmatpush3.xpose.msk.msra.mxu1 %vm433_vm1, %v5183_v10  ;;  %5961 = vmatprep.mubr.msk.f32.mxu1 %vm7042_vm0, %v9752_v6  ;;  %v6582_v10 = vpack.c.bf16 %v5398_v8, %v5397_v7  ;;  %v5133_v8 = vld [vmem:[%s9746_s6 + $0x30] sm:$0xff] }
 0x205   : >> { %6507 = vmatprep.subr.bf16.mxu1 %v9750_v5 }
 0x207   : >> { %5962 = vmatmul.mubr.msk.f32.vlgmr.msra.gmra.mrb[30].mxu1 %vm433_vm1, %v7222_v16 }
 0x208   : >> { %6510 = vmatpush3.bf16.xpose.msk.msra.mxu1 %vm7201_vm2, %v6508_v13  ;;  %5964 = vmatprep.mubr.msk.f32.mxu1 %vm7042_vm0, %v9752_v6  ;;  %v5432_v13 = vld [vmem:[%s7195_s21 + $0x4b8] sm:$0xff] }
 0x209   : >> { %6511 = vmatprep.subr.bf16.mxu1 %v9750_v5  ;;  %v6592_v14 = vpack.c.bf16 %v5432_v13, %v5431_v12  ;;  %v5119_v13 = vld [vmem:[%s7256_s29 + $0x38] sm:$0xff] }
 0x20b   : >> { %5965 = vmatmul.mubr.msk.f32.gmra.mrb[32].mxu1 %vm433_vm1, %v7228_v18 }
 0x20c   : >> { %5967 = vmatprep.mubr.msk.f32.mxu1 %vm7042_vm0, %v9752_v6 }
 0x20f   : >> { %5968 = vmatmul.mubr.msk.f32.gmra.mrb[34].mxu1 %vm433_vm1, %v7234_v20 }
 0x210   : >> { %6514 = vmatpush3.bf16.xpose.msk.msra.mxu1 %vm7201_vm2, %v6512_v17  ;;  %5970 = vmatprep.mubr.msk.f32.mxu1 %vm7042_vm0, %v9752_v6  ;;  %v5434_v17 = vld [vmem:[%s7195_s21 + $0x4c8] sm:$0xff] }
 0x211   : >> { %6009 = vmatprep.subr.mxu1 %v9752_v6 }
 0x213   : >> { %5971 = vmatmul.mubr.msk.f32.gmra.mrb[36].mxu1 %vm433_vm1, %v7240_v22 }
 0x214   : >> { %5973 = vmatprep.mubr.msk.f32.mxu1 %vm7042_vm0, %v9752_v6 }
 0x217   : >> { %5974 = vmatmul.mubr.msk.f32.gmra.mrb[38].mxu1 %vm433_vm1, %v7246_v24 }
 0x218   : >> { %6010 = vmatpush3.xpose.msk.msra.mxu1 %vm433_vm1, %v5219_v21  ;;  %6011 = vmatprep.mubr.msk.f32.mxu1 %vm7042_vm0, %v9752_v6  ;;  %v6596_v21 = vpack.c.bf16 %v5434_v17, %v5433_v15 }
 0x219   : >> { %6521 = vmatprep.subr.bf16.mxu1 %v9750_v5 }
 0x21b   : >> { %6012 = vmatmul.mubr.msk.f32.vlgmr.msra.gmra.mrb[40].mxu1 %vm433_vm1, %v7222_v16 }
 0x21c   : >> { %6524 = vmatpush3.bf16.xpose.msk.msra.mxu1 %vm7201_vm2, %v6522_v27  ;;  %6014 = vmatprep.mubr.msk.f32.mxu1 %vm7042_vm0, %v9752_v6  ;;  %v5468_v27 = vld [vmem:[%s7195_s21 + $0x530] sm:$0xff] }
 0x21d   : >> { %6525 = vmatprep.subr.bf16.mxu1 %v9750_v5  ;;  %v6606_v28 = vpack.c.bf16 %v5468_v27, %v5467_v25 }
 0x21f   : >> { %6015 = vmatmul.mubr.msk.f32.gmra.mrb[42].mxu1 %vm433_vm1, %v7228_v18 }
 0x220   : >> { %6017 = vmatprep.mubr.msk.f32.mxu1 %vm7042_vm0, %v9752_v6 }
 0x223   : >> { %6018 = vmatmul.mubr.msk.f32.gmra.mrb[44].mxu1 %vm433_vm1, %v7234_v20 }
 0x224   : >> { %6528 = vmatpush3.bf16.xpose.msk.msra.mxu1 %vm7201_vm2, %v6526_v31  ;;  %6020 = vmatprep.mubr.msk.f32.mxu1 %vm7042_vm0, %v9752_v6  ;;  %v5470_v31 = vld [vmem:[%s7195_s21 + $0x540] sm:$0xff] }
 0x225   : >> { %6059 = vmatprep.subr.mxu1 %v9752_v6 }
 0x227   : >> { %6021 = vmatmul.mubr.msk.f32.gmra.mrb[46].mxu1 %vm433_vm1, %v7240_v22 }
 0x228   : >> { %6023 = vmatprep.mubr.msk.f32.mxu1 %vm7042_vm0, %v9752_v6 }
 0x22b   : >> { %6024 = vmatmul.mubr.msk.f32.gmra.mrb[48].mxu1 %vm433_vm1, %v7246_v24 }
 0x22c   : >> { %6060 = vmatpush3.xpose.msk.msra.mxu1 %vm433_vm1, %v5255_v32  ;;  %6061 = vmatprep.mubr.msk.f32.mxu1 %vm7042_vm0, %v9752_v6  ;;  %v6610_v32 = vpack.c.bf16 %v5470_v31, %v5469_v29 }
 0x22d   : >> { %6535 = vmatprep.subr.bf16.mxu1 %v9750_v5 }
 0x22f   : >> { %6062 = vmatmul.mubr.msk.f32.vlgmr.msra.gmra.mrb[50].mxu1 %vm433_vm1, %v7222_v16 }
 0x230   : >> { %6538 = vmatpush3.bf16.xpose.msk.msra.mxu1 %vm7201_vm2, %v6536_v35  ;;  %6064 = vmatprep.mubr.msk.f32.mxu1 %vm7042_vm0, %v9752_v6  ;;  %v5471_v35 = vld [vmem:[%s7195_s21 + $0x548] sm:$0x7f] }
 0x231   : >> { %6539 = vmatprep.subr.bf16.mxu1 %v9750_v5 }
 0x233   : >> { %6065 = vmatmul.mubr.msk.f32.gmra.mrb[52].mxu1 %vm433_vm1, %v7228_v18 }
 0x234   : >> { %6067 = vmatprep.mubr.msk.f32.mxu1 %vm7042_vm0, %v9752_v6 }
 0x237   : >> { %6068 = vmatmul.mubr.msk.f32.gmra.mrb[54].mxu1 %vm433_vm1, %v7234_v20 }
 0x238   : >> { %6542 = vmatpush3.bf16.xpose.msk.msra.mxu1 %vm7201_vm2, %v6540_v39  ;;  %6070 = vmatprep.mubr.msk.f32.mxu1 %vm7042_vm0, %v9752_v6 }
 0x239   : >> { %6109 = vmatprep.subr.mxu1 %v9752_v6 }
 0x23b   : >> { %6071 = vmatmul.mubr.msk.f32.gmra.mrb[56].mxu1 %vm433_vm1, %v7240_v22 }
 0x23c   : >> { %6073 = vmatprep.mubr.msk.f32.mxu1 %vm7042_vm0, %v9752_v6 }
 0x23f   : >> { %6074 = vmatmul.mubr.msk.f32.gmra.mrb[58].mxu1 %vm433_vm1, %v7246_v24 }
 0x240   : >> { %6110 = vmatpush3.xpose.msk.msra.mxu1 %vm433_vm1, %v5291_v41  ;;  %6111 = vmatprep.mubr.msk.f32.mxu1 %vm7042_vm0, %v9752_v6 }
 0x241   : >> { %6549 = vmatprep.subr.bf16.mxu1 %v9750_v5 }
 0x243   : >> { %6112 = vmatmul.mubr.msk.f32.vlgmr.msra.gmra.mrb[60].mxu1 %vm433_vm1, %v7222_v16 }
 0x244   : >> { %6552 = vmatpush3.bf16.xpose.msk.msra.mxu1 %vm7201_vm2, %v6550_v45  ;;  %6114 = vmatprep.mubr.msk.f32.mxu1 %vm7042_vm0, %v9752_v6 }
 0x245   : >> { %6553 = vmatprep.subr.bf16.mxu1 %v9750_v5 }
 0x247   : >> { %6115 = vmatmul.mubr.msk.f32.gmra.mrb[62].mxu1 %vm433_vm1, %v7228_v18 }
 0x248   : >> { %6117 = vmatprep.mubr.msk.f32.mxu1 %vm7042_vm0, %v9752_v6 }
 0x24b   : >> { %6118 = vmatmul.mubr.msk.f32.gmra.mrb[64].mxu1 %vm433_vm1, %v7234_v20 }
 0x24c   : >> { %6556 = vmatpush3.bf16.xpose.msk.msra.mxu1 %vm7201_vm2, %v6554_v51  ;;  %6120 = vmatprep.mubr.msk.f32.mxu1 %vm7042_vm0, %v9752_v6 }
 0x24d   : >> { %6159 = vmatprep.subr.mxu1 %v9752_v6 }
 0x24f   : >> { %6121 = vmatmul.mubr.msk.f32.gmra.mrb[66].mxu1 %vm433_vm1, %v7240_v22 }
 0x250   : >> { %6123 = vmatprep.mubr.msk.f32.mxu1 %vm7042_vm0, %v9752_v6 }
 0x253   : >> { %6124 = vmatmul.mubr.msk.f32.gmra.mrb[68].mxu1 %vm433_vm1, %v7246_v24 }
 0x254   : >> { %6160 = vmatpush3.xpose.msk.msra.mxu1 %vm433_vm1, %v5327_v52  ;;  %6161 = vmatprep.mubr.msk.f32.mxu1 %vm7042_vm0, %v9752_v6 }
 0x255   : >> { %6563 = vmatprep.subr.bf16.mxu1 %v9750_v5 }
 0x257   : >> { %6162 = vmatmul.mubr.msk.f32.vlgmr.msra.gmra.mrb[70].mxu1 %vm433_vm1, %v7222_v16 }
 0x258   : >> { %6566 = vmatpush3.bf16.xpose.msk.msra.mxu1 %vm7201_vm2, %v6564_v56  ;;  %6164 = vmatprep.mubr.msk.f32.mxu1 %vm7042_vm0, %v9752_v6 }
 0x259   : >> { %6567 = vmatprep.subr.bf16.mxu1 %v9750_v5 }
 0x25b   : >> { %6165 = vmatmul.mubr.msk.f32.gmra.mrb[72].mxu1 %vm433_vm1, %v7228_v18 }
 0x25c   : >> { %6167 = vmatprep.mubr.msk.f32.mxu1 %vm7042_vm0, %v9752_v6 }
 0x25f   : >> { %6168 = vmatmul.mubr.msk.f32.gmra.mrb[74].mxu1 %vm433_vm1, %v7234_v20 }
 0x260   : >> { %6570 = vmatpush3.bf16.xpose.msk.msra.mxu1 %vm7201_vm2, %v6568_v59  ;;  %6170 = vmatprep.mubr.msk.f32.mxu1 %vm7042_vm0, %v9752_v6  ;;  %v5132_v59 = vld [vmem:[%s9746_s6 + $0x28] sm:$0xff] }
 0x261   : >> { %6209 = vmatprep.subr.mxu1 %v9752_v6 }
 0x263   : >> { %6171 = vmatmul.mubr.msk.f32.gmra.mrb[76].mxu1 %vm433_vm1, %v7240_v22 }
 0x264   : >> { %6173 = vmatprep.mubr.msk.f32.mxu1 %vm7042_vm0, %v9752_v6 }
 0x267   : >> { %6174 = vmatmul.mubr.msk.f32.gmra.mrb[78].mxu1 %vm433_vm1, %v7246_v24 }
 0x268   : >> { %6210 = vmatpush3.xpose.msk.msra.mxu1 %vm433_vm1, %v5363_v60  ;;  %6211 = vmatprep.mubr.msk.f32.mxu1 %vm7042_vm0, %v9752_v6 }
 0x269   : >> { %6577 = vmatprep.subr.bf16.mxu1 %v9750_v5 }
 0x26b   : >> { %6212 = vmatmul.mubr.msk.f32.vlgmr.msra.gmra.mrb[80].mxu1 %vm433_vm1, %v7222_v16 }
 0x26c   : >> { %6580 = vmatpush3.bf16.xpose.msk.msra.mxu1 %vm7201_vm2, %v6578_v63  ;;  %6214 = vmatprep.mubr.msk.f32.mxu1 %vm7042_vm0, %v9752_v6  ;;  %v5507_v63 = vld [vmem:[%s7195_s21 + $0x5c0] sm:$0x7f] }
 0x26d   : >> { %6581 = vmatprep.subr.bf16.mxu1 %v9750_v5 }
 0x26f   : >> { %6215 = vmatmul.mubr.msk.f32.gmra.mrb[82].mxu1 %vm433_vm1, %v7228_v18 }
 0x270   : >> { %6217 = vmatprep.mubr.msk.f32.mxu1 %vm7042_vm0, %v9752_v6 }
 0x273   : >> { %6218 = vmatmul.mubr.msk.f32.gmra.mrb[84].mxu1 %vm433_vm1, %v7234_v20 }
 0x274   : >> { %6584 = vmatpush3.bf16.xpose.msk.msra.mxu1 %vm7201_vm2, %v6582_v10  ;;  %6220 = vmatprep.mubr.msk.f32.mxu1 %vm7042_vm0, %v9752_v6 }
 0x275   : >> { %6259 = vmatprep.subr.mxu1 %v9752_v6 }
 0x277   : >> { %6221 = vmatmul.mubr.msk.f32.gmra.mrb[86].mxu1 %vm433_vm1, %v7240_v22 }
 0x278   : >> { %6223 = vmatprep.mubr.msk.f32.mxu1 %vm7042_vm0, %v9752_v6 }
 0x27b   : >> { %6224 = vmatmul.mubr.msk.f32.gmra.mrb[88].mxu1 %vm433_vm1, %v7246_v24 }
 0x27c   : >> { %6260 = vmatpush3.xpose.msk.msra.mxu1 %vm433_vm1, %v5399_v11  ;;  %6261 = vmatprep.mubr.msk.f32.mxu1 %vm7042_vm0, %v9752_v6 }
 0x27d   : >> { %6591 = vmatprep.subr.bf16.mxu1 %v9750_v5 }
 0x27f   : >> { %6262 = vmatmul.mubr.msk.f32.vlgmr.msra.gmra.mrb[90].mxu1 %vm433_vm1, %v7222_v16 }
 0x280   : >> { %6594 = vmatpush3.bf16.xpose.msk.msra.mxu1 %vm7201_vm2, %v6592_v14  ;;  %6264 = vmatprep.mubr.msk.f32.mxu1 %vm7042_vm0, %v9752_v6 }
 0x281   : >> { %6595 = vmatprep.subr.bf16.mxu1 %v9750_v5 }
 0x283   : >> { %6265 = vmatmul.mubr.msk.f32.gmra.mrb[92].mxu1 %vm433_vm1, %v7228_v18 }
 0x284   : >> { %6267 = vmatprep.mubr.msk.f32.mxu1 %vm7042_vm0, %v9752_v6 }
 0x287   : >> { %6268 = vmatmul.mubr.msk.f32.gmra.mrb[94].mxu1 %vm433_vm1, %v7234_v20 }
 0x288   : >> { %6598 = vmatpush3.bf16.xpose.msk.msra.mxu1 %vm7201_vm2, %v6596_v21  ;;  %6270 = vmatprep.mubr.msk.f32.mxu1 %vm7042_vm0, %v9752_v6  ;;  %v5134_v21 = vld [vmem:[%s9746_s6 + $0x38] sm:$0xff] }
 0x289   : >> { %6309 = vmatprep.subr.mxu1 %v9752_v6 }
 0x28b   : >> { %6271 = vmatmul.mubr.msk.f32.gmra.mrb[96].mxu1 %vm433_vm1, %v7240_v22 }
 0x28c   : >> { %6273 = vmatprep.mubr.msk.f32.mxu1 %vm7042_vm0, %v9752_v6 }
 0x28f   : >> { %6274 = vmatmul.mubr.msk.f32.gmra.mrb[98].mxu1 %vm433_vm1, %v7246_v24 }
 0x290   : >> { %6310 = vmatpush3.xpose.msk.msra.mxu1 %vm433_vm1, %v5435_v23  ;;  %6311 = vmatprep.mubr.msk.f32.mxu1 %vm7042_vm0, %v9752_v6 }
 0x291   : >> { %6605 = vmatprep.subr.bf16.mxu1 %v9750_v5 }
 0x293   : >> { %6312 = vmatmul.mubr.msk.f32.vlgmr.msra.gmra.mrb[100].mxu1 %vm433_vm1, %v7222_v16 }
 0x294   : >> { %6608 = vmatpush3.bf16.xpose.msk.msra.mxu1 %vm7201_vm2, %v6606_v28  ;;  %6314 = vmatprep.mubr.msk.f32.mxu1 %vm7042_vm0, %v9752_v6  ;;  %v5120_v28 = vld [vmem:[%s7256_s29 + $0x40] sm:$0xff] }
 0x295   : >> { %6609 = vmatprep.subr.bf16.mxu1 %v9750_v5 }
 0x297   : >> { %6315 = vmatmul.mubr.msk.f32.gmra.mrb[102].mxu1 %vm433_vm1, %v7228_v18 }
 0x298   : >> { %6317 = vmatprep.mubr.msk.f32.mxu1 %vm7042_vm0, %v9752_v6 }
 0x29b   : >> { %6318 = vmatmul.mubr.msk.f32.gmra.mrb[104].mxu1 %vm433_vm1, %v7234_v20 }
 0x29c   : >> { %6612 = vmatpush3.bf16.xpose.msk.msra.mxu1 %vm7201_vm2, %v6610_v32  ;;  %6320 = vmatprep.mubr.msk.f32.mxu1 %vm7042_vm0, %v9752_v6 }
 0x29d   : >> { %6359 = vmatprep.subr.mxu1 %v9752_v6 }
 0x29e   : >> { %v7683_v33 = vpop.f32.mrb[0].mxu1 }
 0x29f   : >> { %v5838_v34 = vpop.f32.mrb[1].mxu1  ;;  %6321 = vmatmul.mubr.msk.f32.gmra.mrb[106].mxu1 %vm433_vm1, %v7240_v22 }
 0x2a0   : >> { %6323 = vmatprep.mubr.msk.f32.mxu1 %vm7042_vm0, %v9752_v6  ;;  %v5135_v34 = vld [vmem:[%s9746_s6 + $0x40] sm:$0xff] }
 0x2a2   : >> { %v7692_v39 = vpop.f32.mrb[2].mxu1 }
 0x2a3   : >> { %v5841_v41 = vpop.f32.mrb[3].mxu1  ;;  %6324 = vmatmul.mubr.msk.f32.gmra.mrb[108].mxu1 %vm433_vm1, %v7246_v24 }
 0x2a4   : >> { %6360 = vmatpush3.xpose.msk.msra.mxu1 %vm433_vm1, %v5471_v35  ;;  %6361 = vmatprep.mubr.msk.f32.mxu1 %vm7042_vm0, %v9752_v6 }
 0x2a5   : >> { %6619 = vmatprep.subr.bf16.mxu1 %v9750_v5 }
 0x2a6   : >> { %v7700_v44 = vpop.f32.mrb[4].mxu1 }
 0x2a7   : >> { %v5844_v45 = vpop.f32.mrb[5].mxu1  ;;  %6362 = vmatmul.mubr.msk.f32.vlgmr.msra.gmra.mrb[110].mxu1 %vm433_vm1, %v7222_v16 }
 0x2a8   : >> { %6622 = vmatpush3.bf16.xpose.msk.msra.mxu1 %vm7201_vm2, %v6620_v43  ;;  %6364 = vmatprep.mubr.msk.f32.mxu1 %vm7042_vm0, %v9752_v6 }
 0x2a9   : >> { %6623 = vmatprep.subr.bf16.mxu1 %v9750_v5 }
 0x2aa   : >> { %v7711_v51 = vpop.f32.mrb[6].mxu1 }
 0x2ab   : >> { %v5847_v52 = vpop.f32.mrb[7].mxu1  ;;  %6365 = vmatmul.mubr.msk.f32.gmra.mrb[112].mxu1 %vm433_vm1, %v7228_v18 }
 0x2ac   : >> { %6367 = vmatprep.mubr.msk.f32.mxu1 %vm7042_vm0, %v9752_v6 }
 0x2ae   : >> { %v7717_v55 = vpop.f32.mrb[8].mxu1 }
 0x2af   : >> { %v5850_v56 = vpop.f32.mrb[9].mxu1  ;;  %6368 = vmatmul.mubr.msk.f32.gmra.mrb[114].mxu1 %vm433_vm1, %v7234_v20 }
 0x2b0   : >> { %6626 = vmatpush3.bf16.xpose.msk.msra.mxu1 %vm7201_vm2, %v6624_v53  ;;  %6370 = vmatprep.mubr.msk.f32.mxu1 %vm7042_vm0, %v9752_v6  ;;  %v5153_v53 = vld [vmem:[%s7256_s29 + $0x50] sm:$0xff] }
 0x2b1   : >> { %6409 = vmatprep.subr.mxu1 %v9752_v6 }
 0x2b2   : >> { %v863_v58 = vpop.f32.mrb[10].mxu1 }
 0x2b3   : >> { %v864_v60 = vadd.f32 %v5117_v57, %v863_v58  ;;  %v5863_v61 = vpop.f32.mrb[11].mxu1  ;;  %6371 = vmatmul.mubr.msk.f32.gmra.mrb[116].mxu1 %vm433_vm1, %v7240_v22 }
 0x2b4   : >> { %6373 = vmatprep.mubr.msk.f32.mxu1 %vm7042_vm0, %v9752_v6 }
 0x2b5   : >> { %v893_v9 = vmul.f32 %v5132_v59, %v864_v60  ;;  %v5168_v59 = vld [vmem:[%s9746_s6 + $0x50] sm:$0xff] }
 0x2b6   : >> { %v868_v7 = vpop.f32.mrb[12].mxu1 }
 0x2b7   : >> { %v869_v10 = vadd.f32 %v5118_v62, %v868_v7  ;;  %v5866_v11 = vpop.f32.mrb[13].mxu1  ;;  %6374 = vmatmul.mubr.msk.f32.gmra.mrb[118].mxu1 %vm433_vm1, %v7246_v24  ;;  %v7742_v12 = vadd.f32 %v893_v9, %v9855_v0  ;;  %v5154_v62 = vld [vmem:[%s7256_s29 + $0x58] sm:$0xff] }
 0x2b8   : >> { %6410 = vmatpush3.xpose.msk.msra.mxu1 %vm433_vm1, %v5507_v63  ;;  %6411 = vmatprep.mubr.msk.f32.mxu1 %vm7042_vm0, %v9752_v6 }
 0x2b9   : >> { %v894_v14 = vmul.f32 %v5133_v8, %v869_v10  ;;  %v903_v15 = vsel %vm569_vm3, %v7742_v12, -inf  ;;  %6633 = vmatprep.subr.bf16.mxu1 %v9750_v5  ;;  %v5169_v8 = vld [vmem:[%s9746_s6 + $0x58] sm:$0xff] }
 0x2ba   : >> { %904 = vmax.xlane.f32.xlu1 %v903_v15  ;;  %v873_v17 = vpop.f32.mrb[14].mxu1 }
 0x2bb   : >> { %v874_v23 = vadd.f32 %v5119_v13, %v873_v17  ;;  %v5869_v25 = vpop.f32.mrb[15].mxu1  ;;  %6412 = vmatmul.mubr.msk.f32.vlgmr.msra.gmra.mrb[120].mxu1 %vm433_vm1, %v7222_v16  ;;  %v7757_v27 = vadd.f32 %v894_v14, %v9854_v1  ;;  %v5155_v13 = vld [vmem:[%s7256_s29 + $0x60] sm:$0xff] }
 0x2bc   : >> { %6414 = vmatprep.mubr.msk.f32.mxu1 %vm7042_vm0, %v9752_v6 }
 0x2bd   : >> { %v895_v29 = vmul.f32 %v5134_v21, %v874_v23  ;;  %v906_v31 = vsel %vm569_vm3, %v7757_v27, -inf  ;;  %v5170_v21 = vld [vmem:[%s9746_s6 + $0x60] sm:$0xff] }
 0x2be   : >> { %907 = vmax.xlane.f32.xlu0 %v906_v31  ;;  %v878_v32 = vpop.f32.mrb[16].mxu1  ;;  %v5113_v23 = vld [vmem:[%s7294_s26 + $0x80] sm:$0xff] }
 0x2bf   : >> { %v879_v35 = vadd.f32 %v5120_v28, %v878_v32  ;;  %v5872_v16 = vpop.f32.mrb[17].mxu1  ;;  %6415 = vmatmul.mubr.msk.f32.gmra.mrb[122].mxu1 %vm433_vm1, %v7228_v18  ;;  %v7770_v37 = vadd.f32 %v895_v29, %v9853_v2  ;;  %v5156_v32 = vld [vmem:[%s7256_s29 + $0x68] sm:$0xff] }
 0x2c0   : >> { %6417 = vmatprep.mubr.msk.f32.mxu1 %vm7042_vm0, %v9752_v6 }
 0x2c1   : >> { %v896_v41 = vmul.f32 %v5135_v34, %v879_v35  ;;  %v909_v43 = vsel %vm569_vm3, %v7770_v37, -inf }
 0x2c2   : >> { %910 = vmax.xlane.f32.xlu1 %v909_v43  ;;  %v883_v45 = vpop.f32.mrb[18].mxu1  ;;  %v5115_v43 = vld [vmem:[%s7294_s26 + $0x90] sm:$0xff] }
 0x2c3   : >> { %v884_v48 = vadd.f32 %v5121_v38, %v883_v45  ;;  %v5875_v18 = vpop.f32.mrb[19].mxu1  ;;  %6418 = vmatmul.mubr.msk.f32.gmra.mrb[124].mxu1 %vm433_vm1, %v7234_v20  ;;  %v7783_v52 = vadd.f32 %v896_v41, %v9852_v3  ;;  %v5171_v38 = vld [vmem:[%s9746_s6 + $0x68] sm:$0xff] }
 0x2c4   : >> { %6420 = vmatprep.mubr.msk.f32.mxu1 %vm7042_vm0, %v9752_v6  ;;  %v5114_v41 = vld [vmem:[%s7294_s26 + $0x88] sm:$0xff] }
 0x2c5   : >> { %v897_v56 = vmul.f32 %v5136_v47, %v884_v48  ;;  %v912_v57 = vsel %vm569_vm3, %v7783_v52, -inf  ;;  %v6477_v18 = vpack.c.bf16 %v5115_v43, %v5114_v41  ;;  %v5206_v41 = vld [vmem:[%s9746_s6 + $0x88] sm:$0xff] }
 0x2c6   : >> { %913 = vmax.xlane.f32.xlu0 %v912_v57  ;;  %v1199_v58 = vpop.f32.mrb[20].mxu1 }
 0x2c7   : >> { %v1200_v60 = vadd.f32 %v5153_v53, %v1199_v58  ;;  %v5913_v20 = vpop.f32.mrb[21].mxu1  ;;  %6421 = vmatmul.mubr.msk.f32.gmra.mrb[126].mxu1 %vm433_vm1, %v7240_v22  ;;  %v7796_v61 = vadd.f32 %v897_v56, %v9851_v4  ;;  %v5157_v53 = vld [vmem:[%s7256_s29 + $0x70] sm:$0x7f] }
 0x2c8   : >> { %6423 = vmatprep.mubr.msk.f32.mxu1 %vm7042_vm0, %v9752_v6 }
 0x2c9   : >> { %v1229_v9 = vmul.f32 %v5168_v59, %v1200_v60  ;;  %v915_v63 = vsel %vm582_vm4, %v7796_v61, -inf  ;;  %v5172_v59 = vld [vmem:[%s9746_s6 + $0x70] sm:$0x7f] }
 0x2ca   : >> { %916 = vmax.xlane.f32.xlu1 %v915_v63  ;;  %v1204_v7 = vpop.f32.mrb[22].mxu1  ;;  %v5116_v63 = vld [vmem:[%s7294_s26 + $0x98] sm:$0x7f] }
 0x2cb   : >> { %v1205_v22 = vadd.f32 %v5154_v62, %v1204_v7  ;;  %v5916_v10 = vpop.f32.mrb[23].mxu1  ;;  %6424 = vmatmul.mubr.msk.f32.gmra.mrb[128].mxu1 %vm433_vm1, %v7246_v24  ;;  %v7809_v11 = vadd.f32 %v1229_v9, %v9855_v0  ;;  %v5112_v24 = vld [vmem:[%s7294_s26 + $0x78] sm:$0xff] }
 0x2cc   : >> { %6448 = vmatprep.mubr.msk.f32.mxu1 %vm7042_vm0, %v9752_v6  ;;  %v6474_v31 = vpack.c.bf16 %v5113_v23, %v5112_v24  ;;  %v5189_v9 = vld [vmem:[%s7256_s29 + $0x78] sm:$0xff] }
 0x2cd   : >> { %v1230_v14 = vmul.f32 %v5169_v8, %v1205_v22  ;;  %v1239_v15 = vsel %vm569_vm3, %v7809_v11, -inf  ;;  %v5204_v10 = vld [vmem:[%s9746_s6 + $0x78] sm:$0xff] }
 0x2ce   : >> { %1240 = vmax.xlane.f32.xlu0 %v1239_v15  ;;  %v1209_v17 = vpop.f32.mrb[24].mxu1  ;;  %6475 = vmatpush3.bf16.msra.mxu0 %v6474_v31 }
 0x2cf   : >> { %v1210_v25 = vadd.f32 %v5155_v13, %v1209_v17  ;;  %v5919_v28 = vpop.f32.mrb[25].mxu1  ;;  %v7822_v29 = vadd.f32 %v1230_v14, %v9854_v1  ;;  %6476 = vmatprep.subr.bf16.mxu0 %v9750_v5  ;;  %v5190_v17 = vld [vmem:[%s7256_s29 + $0x80] sm:$0xff] }
 0x2d1   : >> { %v1231_v34 = vmul.f32 %v5170_v21, %v1210_v25  ;;  %v1242_v35 = vsel %vm569_vm3, %v7822_v29, -inf  ;;  %v5205_v25 = vld [vmem:[%s9746_s6 + $0x80] sm:$0xff] }
 0x2d2   : >> { %1243 = vmax.xlane.f32.xlu1 %v1242_v35  ;;  %v1214_v16 = vpop.f32.mrb[26].mxu1  ;;  %6478 = vmatpush3.bf16.msra.mxu0 %v6477_v18  ;;  %v5192_v18 = vld [vmem:[%s7256_s29 + $0x90] sm:$0xff] }
 0x2d3   : >> { %v1215_v45 = vadd.f32 %v5156_v32, %v1214_v16  ;;  %v5922_v47 = vpop.f32.mrb[27].mxu1  ;;  %v7834_v48 = vadd.f32 %v1231_v34, %v9853_v2  ;;  %5884 = vmatprep.subr.mxu0 %v9752_v6  ;;  %v5191_v34 = vld [vmem:[%s7256_s29 + $0x88] sm:$0xff] }
 0x2d5   : >> { %v1232_v56 = vmul.f32 %v5171_v38, %v1215_v45  ;;  %v1245_v57 = vsel %vm569_vm3, %v7834_v48, -inf }
 0x2d6   : >> { %1246 = vmax.xlane.f32.xlu0 %v1245_v57  ;;  %v1219_v58 = vpop.f32.mrb[28].mxu1  ;;  %5885 = vmatpush3.msk.msra.mxu0 %vm661_vm5, %v5116_v63 }
 0x2d7   : >> { %v1220_v60 = vadd.f32 %v5157_v53, %v1219_v58  ;;  %v5925_v20 = vpop.f32.mrb[29].mxu1  ;;  %v7844_v62 = vadd.f32 %v1232_v56, %v9852_v3  ;;  %6487 = vmatprep.subr.bf16.mxu0 %v9750_v5  ;;  %v5207_v58 = vld [vmem:[%s9746_s6 + $0x90] sm:$0xff] }
 0x2d9   : >> { %v1233_v7 = vmul.f32 %v5172_v59, %v1220_v60  ;;  %v1248_v8 = vsel %vm569_vm3, %v7844_v62, -inf }
 0x2da   : >> { %1249 = vmax.xlane.f32.xlu1 %v1248_v8  ;;  %v1535_v22 = vpop.f32.mrb[30].mxu1 }
 0x2db   : >> { %v1536_v13 = vadd.f32 %v5189_v9, %v1535_v22  ;;  %v5963_v14 = vpop.f32.mrb[31].mxu1  ;;  %v7856_v15 = vadd.f32 %v1233_v7, %v9851_v4  ;;  %v5193_v9 = vld [vmem:[%s7256_s29 + $0x98] sm:$0x7f] }
 0x2dc   : >> { %v5208_v22 = vld [vmem:[%s9746_s6 + $0x98] sm:$0x7f] }
 0x2dd   : >> { %v1565_v21 = vmul.f32 %v5204_v10, %v1536_v13  ;;  %v1251_v24 = vsel %vm582_vm4, %v7856_v15, -inf }
 0x2de   : >> { %1252 = vmax.xlane.f32.xlu0 %v1251_v24  ;;  %v1540_v23 = vpop.f32.mrb[32].mxu1 }
 0x2df   : >> { %v1541_v28 = vadd.f32 %v5190_v17, %v1540_v23  ;;  %v5966_v31 = vpop.f32.mrb[33].mxu1  ;;  %v7865_v32 = vadd.f32 %v1565_v21, %v9855_v0  ;;  %v5225_v17 = vld [vmem:[%s7256_s29 + $0xa0] sm:$0xff] }
 0x2e1   : >> { %v1566_v35 = vmul.f32 %v5205_v25, %v1541_v28  ;;  %v1575_v16 = vsel %vm569_vm3, %v7865_v32, -inf  ;;  %v5240_v25 = vld [vmem:[%s9746_s6 + $0xa0] sm:$0xff] }
 0x2e2   : >> { %1576 = vmax.xlane.f32.xlu1 %v1575_v16  ;;  %v1545_v38 = vpop.f32.mrb[34].mxu1 }
 0x2e3   : >> { %v1546_v43 = vadd.f32 %v5191_v34, %v1545_v38  ;;  %v5969_v45 = vpop.f32.mrb[35].mxu1  ;;  %v7874_v47 = vadd.f32 %v1566_v35, %v9854_v1  ;;  %v5226_v35 = vld [vmem:[%s7256_s29 + $0xa8] sm:$0xff] }
 0x2e5   : >> { %v1567_v53 = vmul.f32 %v5206_v41, %v1546_v43  ;;  %v1578_v56 = vsel %vm569_vm3, %v7874_v47, -inf  ;;  %v5241_v43 = vld [vmem:[%s9746_s6 + $0xa8] sm:$0xff] }
 0x2e6   : >> { %1579 = vmax.xlane.f32.xlu0 %v1578_v56  ;;  %v1550_v57 = vpop.f32.mrb[36].mxu1  ;;  %v5227_v56 = vld [vmem:[%s7256_s29 + $0xb0] sm:$0xff] }
 0x2e7   : >> { %v1551_v59 = vadd.f32 %v5192_v18, %v1550_v57  ;;  %v5972_v60 = vpop.f32.mrb[37].mxu1  ;;  %v7883_v20 = vadd.f32 %v1567_v53, %v9853_v2 }
 0x2e8   : >> { %v5242_v60 = vld [vmem:[%s9746_s6 + $0xb0] sm:$0xff] }
 0x2e9   : >> { %v1568_v63 = vmul.f32 %v5207_v58, %v1551_v59  ;;  %v1581_v7 = vsel %vm569_vm3, %v7883_v20, -inf }
 0x2ea   : >> { %1582 = vmax.xlane.f32.xlu1 %v1581_v7  ;;  %v1555_v8 = vpop.f32.mrb[38].mxu1 }
 0x2eb   : >> { %v1556_v10 = vadd.f32 %v5193_v9, %v1555_v8  ;;  %v5975_v13 = vpop.f32.mrb[39].mxu1  ;;  %v7892_v14 = vadd.f32 %v1568_v63, %v9852_v3  ;;  %v5228_v8 = vld [vmem:[%s7256_s29 + $0xb8] sm:$0xff] }
 0x2ed   : >> { %v1569_v21 = vmul.f32 %v5208_v22, %v1556_v10  ;;  %v1584_v24 = vsel %vm569_vm3, %v7892_v14, -inf }
 0x2ee   : >> { %1585 = vmax.xlane.f32.xlu0 %v1584_v24  ;;  %v1871_v23 = vpop.f32.mrb[40].mxu1 }
 0x2ef   : >> { %v1872_v28 = vadd.f32 %v5225_v17, %v1871_v23  ;;  %v6013_v31 = vpop.f32.mrb[41].mxu1  ;;  %v7901_v34 = vadd.f32 %v1569_v21, %v9851_v4  ;;  %v5243_v17 = vld [vmem:[%s9746_s6 + $0xb8] sm:$0xff] }
 0x2f1   : >> { %v1901_v16 = vmul.f32 %v5240_v25, %v1872_v28  ;;  %v1587_v38 = vsel %vm582_vm4, %v7901_v34, -inf  ;;  %v5229_v25 = vld [vmem:[%s7256_s29 + $0xc0] sm:$0x7f] }
 0x2f2   : >> { %1588 = vmax.xlane.f32.xlu1 %v1587_v38  ;;  %v1876_v41 = vpop.f32.mrb[42].mxu1 }
 0x2f3   : >> { %v1877_v45 = vadd.f32 %v5226_v35, %v1876_v41  ;;  %v6016_v18 = vpop.f32.mrb[43].mxu1  ;;  %v7910_v53 = vadd.f32 %v1901_v16, %v9855_v0  ;;  %v5244_v16 = vld [vmem:[%s9746_s6 + $0xc0] sm:$0x7f] }
 0x2f5   : >> { %v1902_v57 = vmul.f32 %v5241_v43, %v1877_v45  ;;  %v1911_v58 = vsel %vm569_vm3, %v7910_v53, -inf  ;;  %v5261_v45 = vld [vmem:[%s7256_s29 + $0xc8] sm:$0xff] }
 0x2f6   : >> { %1912 = vmax.xlane.f32.xlu0 %v1911_v58  ;;  %v1881_v59 = vpop.f32.mrb[44].mxu1  ;;  %v5276_v58 = vld [vmem:[%s9746_s6 + $0xc8] sm:$0xff] }
 0x2f7   : >> { %v1882_v9 = vadd.f32 %v5227_v56, %v1881_v59  ;;  %v6019_v63 = vpop.f32.mrb[45].mxu1  ;;  %v7919_v7 = vadd.f32 %v1902_v57, %v9854_v1 }
 0x2f8   : >> { %v5262_v63 = vld [vmem:[%s7256_s29 + $0xd0] sm:$0xff] }
 0x2f9   : >> { %v1903_v22 = vmul.f32 %v5242_v60, %v1882_v9  ;;  %v1914_v10 = vsel %vm569_vm3, %v7919_v7, -inf }
 0x2fa   : >> { %1915 = vmax.xlane.f32.xlu1 %v1914_v10  ;;  %v1886_v13 = vpop.f32.mrb[46].mxu1 }
 0x2fb   : >> { %v1887_v21 = vadd.f32 %v5228_v8, %v1886_v13  ;;  %v6022_v24 = vpop.f32.mrb[47].mxu1  ;;  %v7928_v23 = vadd.f32 %v1903_v22, %v9853_v2  ;;  %v5277_v13 = vld [vmem:[%s9746_s6 + $0xd0] sm:$0xff] }
 0x2fd   : >> { %v1904_v28 = vmul.f32 %v5243_v17, %v1887_v21  ;;  %v1917_v31 = vsel %vm569_vm3, %v7928_v23, -inf }
 0x2fe   : >> { %1918 = vmax.xlane.f32.xlu0 %v1917_v31  ;;  %v1891_v35 = vpop.f32.mrb[48].mxu1 }
 0x2ff   : >> { %v1892_v38 = vadd.f32 %v5229_v25, %v1891_v35  ;;  %v6025_v41 = vpop.f32.mrb[49].mxu1  ;;  %v7937_v43 = vadd.f32 %v1904_v28, %v9852_v3  ;;  %v5263_v25 = vld [vmem:[%s7256_s29 + $0xd8] sm:$0xff] }
 0x301   : >> { %v1905_v18 = vmul.f32 %v5244_v16, %v1892_v38  ;;  %v1920_v56 = vsel %vm569_vm3, %v7937_v43, -inf  ;;  %v5278_v16 = vld [vmem:[%s9746_s6 + $0xd8] sm:$0xff] }
 0x302   : >> { %1921 = vmax.xlane.f32.xlu1 %v1920_v56  ;;  %v2207_v57 = vpop.f32.mrb[50].mxu1 }
 0x303   : >> { %v2208_v59 = vadd.f32 %v5261_v45, %v2207_v57  ;;  %v6063_v60 = vpop.f32.mrb[51].mxu1  ;;  %v7946_v9 = vadd.f32 %v1905_v18, %v9851_v4  ;;  %v5264_v18 = vld [vmem:[%s7256_s29 + $0xe0] sm:$0xff] }
 0x305   : >> { %v2237_v8 = vmul.f32 %v5276_v58, %v2208_v59  ;;  %v1923_v22 = vsel %vm582_vm4, %v7946_v9, -inf  ;;  %v5279_v59 = vld [vmem:[%s9746_s6 + $0xe0] sm:$0xff] }
 0x306   : >> { %1924 = vmax.xlane.f32.xlu0 %v1923_v22  ;;  %v2212_v10 = vpop.f32.mrb[52].mxu1  ;;  %v5265_v22 = vld [vmem:[%s7256_s29 + $0xe8] sm:$0x7f] }
 0x307   : >> { %v2213_v17 = vadd.f32 %v5262_v63, %v2212_v10  ;;  %v6066_v21 = vpop.f32.mrb[53].mxu1  ;;  %v7955_v24 = vadd.f32 %v2237_v8, %v9855_v0 }
 0x308   : >> { %v5280_v21 = vld [vmem:[%s9746_s6 + $0xe8] sm:$0x7f] }
 0x309   : >> { %v2238_v28 = vmul.f32 %v5277_v13, %v2213_v17  ;;  %v2247_v31 = vsel %vm569_vm3, %v7955_v24, -inf }
 0x30a   : >> { %2248 = vmax.xlane.f32.xlu1 %v2247_v31  ;;  %v2217_v35 = vpop.f32.mrb[54].mxu1 }
 0x30b   : >> { %v2218_v38 = vadd.f32 %v5263_v25, %v2217_v35  ;;  %v6069_v41 = vpop.f32.mrb[55].mxu1  ;;  %v7964_v45 = vadd.f32 %v2238_v28, %v9854_v1  ;;  %v5297_v35 = vld [vmem:[%s7256_s29 + $0xf0] sm:$0xff] }
 0x30d   : >> { %v2239_v56 = vmul.f32 %v5278_v16, %v2218_v38  ;;  %v2250_v57 = vsel %vm569_vm3, %v7964_v45, -inf }
 0x30e   : >> { %2251 = vmax.xlane.f32.xlu0 %v2250_v57  ;;  %v2222_v58 = vpop.f32.mrb[56].mxu1 }
 0x30f   : >> { %v2223_v60 = vadd.f32 %v5264_v18, %v2222_v58  ;;  %v6072_v63 = vpop.f32.mrb[57].mxu1  ;;  %v7973_v8 = vadd.f32 %v2239_v56, %v9853_v2  ;;  %v5312_v18 = vld [vmem:[%s9746_s6 + $0xf0] sm:$0xff] }
 0x311   : >> { %v2240_v10 = vmul.f32 %v5279_v59, %v2223_v60  ;;  %v2253_v13 = vsel %vm569_vm3, %v7973_v8, -inf  ;;  %v5298_v59 = vld [vmem:[%s7256_s29 + $0xf8] sm:$0xff] }
 0x312   : >> { %2254 = vmax.xlane.f32.xlu1 %v2253_v13  ;;  %v2227_v17 = vpop.f32.mrb[58].mxu1 }
 0x313   : >> { %v2228_v25 = vadd.f32 %v5265_v22, %v2227_v17  ;;  %v6075_v28 = vpop.f32.mrb[59].mxu1  ;;  %v7982_v31 = vadd.f32 %v2240_v10, %v9852_v3  ;;  %v5313_v10 = vld [vmem:[%s9746_s6 + $0xf8] sm:$0xff] }
 0x315   : >> { %v2241_v16 = vmul.f32 %v5280_v21, %v2228_v25  ;;  %v2256_v38 = vsel %vm569_vm3, %v7982_v31, -inf  ;;  %v5299_v25 = vld [vmem:[%s7256_s29 + $0x100] sm:$0xff] }
 0x316   : >> { %2257 = vmax.xlane.f32.xlu0 %v2256_v38  ;;  %v2543_v41 = vpop.f32.mrb[60].mxu1  ;;  %v5314_v38 = vld [vmem:[%s9746_s6 + $0x100] sm:$0xff] }
 0x317   : >> { %v2544_v56 = vadd.f32 %v5297_v35, %v2543_v41  ;;  %v6113_v57 = vpop.f32.mrb[61].mxu1  ;;  %v7991_v58 = vadd.f32 %v2241_v16, %v9851_v4 }
 0x318   : >> { %v5300_v57 = vld [vmem:[%s7256_s29 + $0x108] sm:$0xff] }
 0x319   : >> { %v2573_v60 = vmul.f32 %v5312_v18, %v2544_v56  ;;  %v2259_v63 = vsel %vm582_vm4, %v7991_v58, -inf }
 0x31a   : >> { %2260 = vmax.xlane.f32.xlu1 %v2259_v63  ;;  %v2548_v22 = vpop.f32.mrb[62].mxu1 }
 0x31b   : >> { %v2549_v13 = vadd.f32 %v5298_v59, %v2548_v22  ;;  %v6116_v17 = vpop.f32.mrb[63].mxu1  ;;  %v8000_v21 = vadd.f32 %v2573_v60, %v9855_v0  ;;  %v5315_v22 = vld [vmem:[%s9746_s6 + $0x108] sm:$0xff] }
 0x31d   : >> { %9859 = vst [vmem:[#allocation12_spill] sm:$0xff] %v8000_v21  ;;  %v2574_v28 = vmul.f32 %v5313_v10, %v2549_v13  ;;  %v2583_v35 = vsel %vm569_vm3, %v8000_v21, -inf }
 0x31e   : >> { %2584 = vmax.xlane.f32.xlu0 %v2583_v35  ;;  %v2553_v16 = vpop.f32.mrb[64].mxu1 }
 0x31f   : >> { %v2554_v41 = vadd.f32 %v5299_v25, %v2553_v16  ;;  %v6119_v18 = vpop.f32.mrb[65].mxu1  ;;  %v8009_v56 = vadd.f32 %v2574_v28, %v9854_v1  ;;  %v5301_v25 = vld [vmem:[%s7256_s29 + $0x110] sm:$0x7f] }
 0x321   : >> { %9860 = vst [vmem:[#allocation13_spill] sm:$0xff] %v8009_v56  ;;  %v2575_v59 = vmul.f32 %v5314_v38, %v2554_v41  ;;  %v2586_v60 = vsel %vm569_vm3, %v8009_v56, -inf  ;;  %v5316_v38 = vld [vmem:[%s9746_s6 + $0x110] sm:$0x7f]  ;;  %v5373_v56 = vld [vmem:[%s7256_s29 + $0x160] sm:$0x7f] }
 0x322   : >> { %2587 = vmax.xlane.f32.xlu1 %v2586_v60  ;;  %v2558_v63 = vpop.f32.mrb[66].mxu1  ;;  %v5333_v60 = vld [vmem:[%s7256_s29 + $0x118] sm:$0xff] }
 0x323   : >> { %v2559_v10 = vadd.f32 %v5300_v57, %v2558_v63  ;;  %v6122_v13 = vpop.f32.mrb[67].mxu1  ;;  %v8018_v17 = vadd.f32 %v2575_v59, %v9853_v2 }
 0x325   : >> { %9861 = vst [vmem:[#allocation14_spill] sm:$0xff] %v8018_v17  ;;  %v2576_v28 = vmul.f32 %v5315_v22, %v2559_v10  ;;  %v2589_v35 = vsel %vm569_vm3, %v8018_v17, -inf  ;;  %v5348_v10 = vld [vmem:[%s9746_s6 + $0x118] sm:$0xff] }
 0x326   : >> { %2590 = vmax.xlane.f32.xlu0 %v2589_v35  ;;  %v2563_v16 = vpop.f32.mrb[68].mxu1 }
 0x327   : >> { %v2564_v41 = vadd.f32 %v5301_v25, %v2563_v16  ;;  %v6125_v18 = vpop.f32.mrb[69].mxu1  ;;  %v8027_v57 = vadd.f32 %v2576_v28, %v9852_v3  ;;  %v5334_v16 = vld [vmem:[%s7256_s29 + $0x120] sm:$0xff] }
 0x328   : >> { %v5349_v18 = vld [vmem:[%s9746_s6 + $0x120] sm:$0xff] }
 0x329   : >> { %9862 = vst [vmem:[#allocation15_spill] sm:$0xff] %v8027_v57  ;;  %v2577_v59 = vmul.f32 %v5316_v38, %v2564_v41  ;;  %v2592_v63 = vsel %vm569_vm3, %v8027_v57, -inf }
 0x32a   : >> { %2593 = vmax.xlane.f32.xlu1 %v2592_v63  ;;  %v2879_v22 = vpop.f32.mrb[70].mxu1 }
 0x32b   : >> { %v2880_v13 = vadd.f32 %v5333_v60, %v2879_v22  ;;  %v6163_v35 = vpop.f32.mrb[71].mxu1  ;;  %v8036_v25 = vadd.f32 %v2577_v59, %v9851_v4  ;;  %v5335_v22 = vld [vmem:[%s7256_s29 + $0x128] sm:$0xff] }
 0x32c   : >> { %v5350_v35 = vld [vmem:[%s9746_s6 + $0x128] sm:$0xff] }
 0x32d   : >> { %9863 = vst [vmem:[#allocation16_spill] sm:$0xff] %v8036_v25  ;;  %v2909_v28 = vmul.f32 %v5348_v10, %v2880_v13  ;;  %v2595_v38 = vsel %vm582_vm4, %v8036_v25, -inf }
 0x32e   : >> { %2596 = vmax.xlane.f32.xlu0 %v2595_v38  ;;  %v2884_v41 = vpop.f32.mrb[72].mxu1 }
 0x32f   : >> { %v2885_v63 = vadd.f32 %v5334_v16, %v2884_v41  ;;  %v6166_v5 = vpop.f32.mrb[73].mxu1  ;;  %v8045_v60 = vadd.f32 %v2909_v28, %v9855_v0 }
 0x330   : >> { %v5336_v5 = vld [vmem:[%s7256_s29 + $0x130] sm:$0xff] }
 0x331   : >> { %9864 = vst [vmem:[#allocation17_spill] sm:$0xff] %v8045_v60  ;;  %v2910_v59 = vmul.f32 %v5349_v18, %v2885_v63  ;;  %v2919_v10 = vsel %vm569_vm3, %v8045_v60, -inf  ;;  %v5351_v63 = vld [vmem:[%s9746_s6 + $0x130] sm:$0xff] }
 0x332   : >> { %2920 = vmax.xlane.f32.xlu1 %v2919_v10  ;;  %v2889_v13 = vpop.f32.mrb[74].mxu1 }
 0x333   : >> { %v2890_v38 = vadd.f32 %v5335_v22, %v2889_v13  ;;  %v6169_v6 = vpop.f32.mrb[75].mxu1  ;;  %v8054_v16 = vadd.f32 %v2910_v59, %v9854_v1 }
 0x334   : >> { %v5337_v6 = vld [vmem:[%s7256_s29 + $0x138] sm:$0x7f] }
 0x335   : >> { %9865 = vst [vmem:[#allocation18_spill] sm:$0xff] %v8054_v16  ;;  %v2911_v28 = vmul.f32 %v5350_v35, %v2890_v38  ;;  %v2922_v41 = vsel %vm569_vm3, %v8054_v16, -inf  ;;  %v5352_v38 = vld [vmem:[%s9746_s6 + $0x138] sm:$0x7f] }
 0x336   : >> { %2923 = vmax.xlane.f32.xlu0 %v2922_v41  ;;  %v2894_v18 = vpop.f32.mrb[76].mxu1 }
 0x337   : >> { %v2895_v10 = vadd.f32 %v5336_v5, %v2894_v18  ;;  %v6172_v60 = vpop.f32.mrb[77].mxu1  ;;  %v8063_v22 = vadd.f32 %v2911_v28, %v9853_v2  ;;  %v591_v28 = vsub.f32 -1e+30, %v7306_v19 }
 0x338   : >> { %v5369_v60 = vld [vmem:[%s7256_s29 + $0x140] sm:$0xff] }
 0x339   : >> { %9866 = vst [vmem:[#allocation19_spill] sm:$0xff] %v8063_v22  ;;  %v2912_v59 = vmul.f32 %v5351_v63, %v2895_v10  ;;  %v2925_v13 = vsel %vm569_vm3, %v8063_v22, -inf  ;;  %v596_v25 = vmul.f32 1.442695, %v591_v28 }
 0x33a   : >> { %2926 = vmax.xlane.f32.xlu1 %v2925_v13  ;;  %v2899_v35 = vpop.f32.mrb[78].mxu1  ;;  %v5384_v13 = vld [vmem:[%s9746_s6 + $0x140] sm:$0xff] }
 0x33b   : >> { %v2900_v41 = vadd.f32 %v5337_v6, %v2899_v35  ;;  %v6175_v16 = vpop.f32.mrb[79].mxu1  ;;  %v8072_v5 = vadd.f32 %v2912_v59, %v9852_v3  ;;  %v592_v59 = vsub.f32 -1e+30, %v7309_v26  ;;  %v5370_v35 = vld [vmem:[%s7256_s29 + $0x148] sm:$0xff]  ;;  %6705 = vpow2.f32 %v596_v25  ;;  %v5372_v25 = vld [vmem:[%s7256_s29 + $0x158] sm:$0xff] }
 0x33d   : >> { %9867 = vst [vmem:[#allocation20_spill] sm:$0xff] %v8072_v5  ;;  %v2913_v18 = vmul.f32 %v5352_v38, %v2900_v41  ;;  %v2928_v63 = vsel %vm569_vm3, %v8072_v5, -inf  ;;  %v5385_v5 = vld [vmem:[%s9746_s6 + $0x148] sm:$0xff] }
 0x33e   : >> { %2929 = vmax.xlane.f32.xlu0 %v2928_v63  ;;  %v3215_v10 = vpop.f32.mrb[80].mxu1 }
 0x33f   : >> { %v3216_v22 = vadd.f32 %v5369_v60, %v3215_v10  ;;  %v6213_v6 = vpop.f32.mrb[81].mxu1  ;;  %v8082_v16 = vadd.f32 %v2913_v18, %v9851_v4  ;;  %v598_v18 = vmul.f32 1.442695, %v592_v59 }
 0x340   : >> { %v5371_v6 = vld [vmem:[%s7256_s29 + $0x150] sm:$0xff] }
 0x341   : >> { %9868 = vst [vmem:[#allocation21_spill] sm:$0xff] %v8082_v16  ;;  %v3245_v38 = vmul.f32 %v5384_v13, %v3216_v22  ;;  %v2931_v41 = vsel %vm582_vm4, %v8082_v16, -inf  ;;  %6707 = vpow2.f32 %v598_v18  ;;  %v5387_v18 = vld [vmem:[%s9746_s6 + $0x158] sm:$0xff] }
 0x342   : >> { %2932 = vmax.xlane.f32.xlu1 %v2931_v41  ;;  %v3220_v63 = vpop.f32.mrb[82].mxu1  ;;  %v5386_v41 = vld [vmem:[%s9746_s6 + $0x150] sm:$0xff] }
 0x343   : >> { %v3221_v57 = vadd.f32 %v5370_v35, %v3220_v63  ;;  %v6216_v60 = vpop.f32.mrb[83].mxu1  ;;  %v8092_v10 = vadd.f32 %v3245_v38, %v9855_v0  ;;  %v593_v35 = vsub.f32 -1e+30, %v7312_v30 }
 0x345   : >> { %9869 = vst [vmem:[#allocation22_spill] sm:$0xff] %v8092_v10  ;;  %v3246_v28 = vmul.f32 %v5385_v5, %v3221_v57  ;;  %v3255_v22 = vsel %vm569_vm3, %v8092_v10, -inf }
 0x346   : >> { %3256 = vmax.xlane.f32.xlu0 %v3255_v22  ;;  %v3225_v13 = vpop.f32.mrb[84].mxu1  ;;  %v594_v22 = vsub.f32 -1e+30, %v7317_v36 }
 0x347   : >> { %v3226_v63 = vadd.f32 %v5371_v6, %v3225_v13  ;;  %v905_v60 = vpop.xlane.xlu1 %904  ;;  %v6219_v38 = vpop.f32.mrb[85].mxu1  ;;  %v8102_v16 = vadd.f32 %v3246_v28, %v9854_v1 }
 0x348   : >> { %v8105_v57 = vmax.f32 %v7306_v19, %v905_v60  ;;  %v600_v60 = vmul.f32 1.442695, %v593_v35  ;;  %v602_v50 = vmul.f32 1.442695, %v594_v22 }
 0x349   : >> { %9870 = vst [vmem:[#allocation23_spill] sm:$0xff] %v8102_v16  ;;  %v3247_v5 = vmul.f32 %v5386_v41, %v3226_v63  ;;  %v3258_v59 = vsel %vm569_vm3, %v8102_v16, -inf }
 0x34a   : >> { %9871 = vst [vmem:[#allocation24_spill] sm:$0xff] %v8105_v57  ;;  %v923_v6 = vsub.f32 %v7306_v19, %v8105_v57  ;;  %v938_v13 = vsub.f32 %v7742_v12, %v8105_v57  ;;  %3259 = vmax.xlane.f32.xlu1 %v3258_v59  ;;  %v3230_v28 = vpop.f32.mrb[86].mxu1 }
 0x34b   : >> { %v3231_v41 = vadd.f32 %v5372_v25, %v3230_v28  ;;  %v908_v63 = vpop.xlane.xlu0 %907  ;;  %v6222_v38 = vpop.f32.mrb[87].mxu1  ;;  %v8119_v16 = vadd.f32 %v3247_v5, %v9853_v2  ;;  %v595_v28 = vsub.f32 -1e+30, %v7322_v42 }
 0x34c   : >> { %v928_v10 = vmul.f32 1.442695, %v923_v6  ;;  %v943_v17 = vmul.f32 1.442695, %v938_v13  ;;  %v8122_v19 = vmax.f32 %v7309_v26, %v908_v63  ;;  %v5388_v6 = vld [vmem:[%s9746_s6 + $0x160] sm:$0x7f]  ;;  %v6706_v13 = vpop.eup %6705 }
 0x34d   : >> { %9872 = vst [vmem:[#allocation25_spill] sm:$0xff] %v8119_v16  ;;  %v3248_v12 = vmul.f32 %v5387_v18, %v3231_v41  ;;  %v3261_v59 = vsel %vm569_vm3, %v8119_v16, -inf  ;;  %v5405_v38 = vld [vmem:[%s7256_s29 + $0x168] sm:$0xff]  ;;  %v6708_v21 = vpop.eup %6707 }
 0x34e   : >> { %9873 = vst [vmem:[#allocation26_spill] sm:$0xff] %v8122_v19  ;;  %6709 = vpow2.f32 %v928_v10  ;;  %v924_v35 = vsub.f32 %v7309_v26, %v8122_v19  ;;  %v939_v25 = vsub.f32 %v7757_v27, %v8122_v19  ;;  %3262 = vmax.xlane.f32.xlu0 %v3261_v59  ;;  %v3235_v5 = vpop.f32.mrb[88].mxu1 }
 0x34f   : >> { %6711 = vpow2.f32 %v943_v17  ;;  %v3236_v18 = vadd.f32 %v5373_v56, %v3235_v5  ;;  %v911_v22 = vpop.xlane.xlu1 %910  ;;  %v6225_v10 = vpop.f32.mrb[89].mxu1  ;;  %v8136_v41 = vadd.f32 %v3248_v12, %v9852_v3  ;;  %v8144_v17 = vmul.f32 0.0, %v6706_v13 }
 0x350   : >> { %6713 = vpow2.f32 %v600_v60  ;;  %v930_v26 = vmul.f32 1.442695, %v924_v35  ;;  %v945_v63 = vmul.f32 1.442695, %v939_v25  ;;  %v8139_v27 = vmax.f32 %v7312_v30, %v911_v22  ;;  %v5420_v35 = vld [vmem:[%s9746_s6 + $0x168] sm:$0xff] }
 0x351   : >> { %9874 = vst [vmem:[#allocation27_spill] sm:$0xff] %v8136_v41  ;;  %v3249_v59 = vmul.f32 %v5388_v6, %v3236_v18  ;;  %v3264_v16 = vsel %vm569_vm3, %v8136_v41, -inf  ;;  %9876 = vst [vmem:[#allocation29_spill] sm:$0xff] %v8144_v17  ;;  %v604_v25 = vmul.f32 1.442695, %v595_v28  ;;  %v8162_v41 = vmul.f32 0.0, %v6708_v21 }
 0x352   : >> { %9875 = vst [vmem:[#allocation28_spill] sm:$0xff] %v8139_v27  ;;  %6715 = vpow2.f32 %v930_v26  ;;  %v925_v56 = vsub.f32 %v7312_v30, %v8139_v27  ;;  %v940_v60 = vsub.f32 %v7770_v37, %v8139_v27  ;;  %3265 = vmax.xlane.f32.xlu1 %v3264_v16  ;;  %v3551_v12 = vpop.f32.mrb[90].mxu1  ;;  %v5406_v30 = vld [vmem:[%s7256_s29 + $0x170] sm:$0xff]  ;;  %v5149_v26 = vld [vmem:[%s7294_s26 + $0xf8] sm:$0xff] }
 0x353   : >> { %6717 = vpow2.f32 %v945_v63  ;;  %v3552_v5 = vadd.f32 %v5405_v38, %v3551_v12  ;;  %v914_v6 = vpop.xlane.xlu0 %913  ;;  %v6263_v13 = vpop.f32.mrb[91].mxu1  ;;  %v8154_v18 = vadd.f32 %v3249_v59, %v9851_v4  ;;  %v5148_v16 = vld [vmem:[%s7294_s26 + $0xf0] sm:$0xff]  ;;  %9879 = vst [vmem:[#allocation32_spill] sm:$0xff] %v8162_v41  ;;  %v755_v38 = vadd.f32 %v7683_v33, %v8144_v17  ;;  %v5151_v17 = vld [vmem:[%s7294_s26 + $0x108] sm:$0xff] }
 0x354   : >> { %6719 = vpow2.f32 %v602_v50  ;;  %v932_v22 = vmul.f32 1.442695, %v925_v56  ;;  %v947_v10 = vmul.f32 1.442695, %v940_v60  ;;  %v8158_v37 = vmax.f32 %v7317_v36, %v914_v6  ;;  %v5421_v21 = vld [vmem:[%s9746_s6 + $0x170] sm:$0xff] }
 0x355   : >> { %9877 = vst [vmem:[#allocation30_spill] sm:$0xff] %v8154_v18  ;;  %v3581_v28 = vmul.f32 %v5420_v35, %v3552_v5  ;;  %v3267_v63 = vsel %vm582_vm4, %v8154_v18, -inf  ;;  %v5407_v5 = vld [vmem:[%s7256_s29 + $0x178] sm:$0xff] }
 0x356   : >> { %9878 = vst [vmem:[#allocation31_spill] sm:$0xff] %v8158_v37  ;;  %6721 = vpow2.f32 %v932_v22  ;;  %v926_v50 = vsub.f32 %v7317_v36, %v8158_v37  ;;  %v941_v59 = vsub.f32 %v7783_v52, %v8158_v37  ;;  %3268 = vmax.xlane.f32.xlu0 %v3267_v63  ;;  %v3556_v56 = vpop.f32.mrb[92].mxu1  ;;  %v6488_v36 = vpack.c.bf16 %v5149_v26, %v5148_v16  ;;  %v5150_v63 = vld [vmem:[%s7294_s26 + $0x100] sm:$0xff] }
 0x357   : >> { %6723 = vpow2.f32 %v947_v10  ;;  %v3557_v60 = vadd.f32 %v5406_v30, %v3556_v56  ;;  %v917_v12 = vpop.xlane.xlu1 %916  ;;  %v6266_v35 = vpop.f32.mrb[93].mxu1  ;;  %v8176_v33 = vadd.f32 %v3581_v28, %v9855_v0 }
 0x358   : >> { %v8179_v6 = vpop.eup %6709  ;;  %6725 = vpow2.f32 %v604_v25  ;;  %v934_v52 = vmul.f32 1.442695, %v926_v50  ;;  %v949_v13 = vmul.f32 1.442695, %v941_v59  ;;  %v8182_v22 = vmax.f32 %v7322_v42, %v917_v12 }
 0x359   : >> { %9880 = vst [vmem:[#allocation33_spill] sm:$0xff] %v8179_v6  ;;  %v8186_v18 = vpop.eup %6711  ;;  %v3582_v30 = vmul.f32 %v5421_v21, %v3557_v60  ;;  %v3591_v10 = vsel %vm569_vm3, %v8176_v33, -inf  ;;  %v8191_v28 = vmul.f32 %v8179_v6, %v755_v38  ;;  %v756_v25 = vadd.f32 %v7692_v39, %v8162_v41  ;;  %v5422_v38 = vld [vmem:[%s9746_s6 + $0x178] sm:$0xff]  ;;  %v5408_v41 = vld [vmem:[%s7256_s29 + $0x180] sm:$0xff] }
 0x35a   : >> { %9881 = vst [vmem:[#allocation34_spill] sm:$0xff] %v8182_v22  ;;  %v6714_v16 = vpop.eup %6713  ;;  %6727 = vpow2.f32 %v934_v52  ;;  %v927_v26 = vsub.f32 %v7322_v42, %v8182_v22  ;;  %v942_v50 = vsub.f32 %v7796_v61, %v8182_v22  ;;  %5887 = vmatmul.mubr.msk.f32.vlgmr.msra.gmra.mrb[10].mxu0 %vm569_vm3, %v8186_v18  ;;  %3592 = vmax.xlane.f32.xlu1 %v3591_v10  ;;  %v3561_v59 = vpop.f32.mrb[94].mxu1  ;;  %v9883_v60 = vmov 0.0  }
 0x35b   : >> { %9882 = vst [vmem:[#allocation35_spill] sm:$0xff] %v8191_v28  ;;  %6729 = vpow2.f32 %v949_v13  ;;  %v3562_v56 = vadd.f32 %v5407_v5, %v3561_v59  ;;  %v1241_v39 = vpop.xlane.xlu0 %1240  ;;  %v6269_v21 = vpop.f32.mrb[95].mxu1  ;;  %5889 = vmatprep.mubr.msk.f32.mxu0 %vm7042_vm0, %v9883_v60  ;;  %v8207_v42 = vadd.f32 %v3582_v30, %v9854_v1  ;;  %6489 = vmatpush3.bf16.msra.mxu0 %v6488_v36  ;;  %v9886_v13 = vmov 0.0|0.0   ;;  %v5187_v28 = vld [vmem:[%s7294_s26 + $0x180] sm:$0xff] }
 0x35c   : >> { %v6491_v61 = vpack.c.bf16 %v5151_v17, %v5150_v63  ;;  %v8209_v12 = vpop.eup %6715  ;;  %v936_v35 = vmul.f32 1.442695, %v927_v26  ;;  %v951_v52 = vmul.f32 1.442695, %v942_v50  ;;  %v8212_v10 = vmax.f32 %v8105_v57, %v1241_v39  ;;  %6490 = vmatprep.subr.bf16.mxu0 %v9886_v13  ;;  %v5222_v57 = vld [vmem:[%s7294_s26 + $0x1f0] sm:$0xff] }
 0x35d   : >> { %9884 = vst [vmem:[#allocation36_spill] sm:$0xff] %v8209_v12  ;;  %v8216_v5 = vpop.eup %6717  ;;  %v8218_v59 = vmul.f32 0.0, %v6714_v16  ;;  %v3583_v21 = vmul.f32 %v5422_v38, %v3562_v56  ;;  %v3594_v30 = vsel %vm569_vm3, %v8207_v42, -inf  ;;  %v8223_v17 = vmul.f32 %v8209_v12, %v756_v25  ;;  %v5423_v25 = vld [vmem:[%s9746_s6 + $0x180] sm:$0xff]  ;;  %v5409_v12 = vld [vmem:[%s7256_s29 + $0x188] sm:$0x7f] }
 0x35e   : >> { %9885 = vst [vmem:[#allocation37_spill] sm:$0xff] %v8212_v10  ;;  %v6720_v36 = vpop.eup %6719  ;;  %6731 = vpow2.f32 %v936_v35  ;;  %v1274_v26 = vsub.f32 %v7809_v11, %v8212_v10  ;;  %5890 = vmatmul.mubr.msk.f32.gmra.mrb[12].mxu0 %vm569_vm3, %v8216_v5  ;;  %3595 = vmax.xlane.f32.xlu0 %v3594_v30  ;;  %v3566_v16 = vpop.f32.mrb[96].mxu1 }
 0x35f   : >> { %9887 = vst [vmem:[#allocation38_spill] sm:$0xff] %v8218_v59  ;;  %9888 = vst [vmem:[#allocation39_spill] sm:$0xff] %v8223_v17  ;;  %v757_v50 = vadd.f32 %v7700_v44, %v8218_v59  ;;  %6733 = vpow2.f32 %v951_v52  ;;  %v3567_v38 = vadd.f32 %v5408_v41, %v3566_v16  ;;  %v1244_v56 = vpop.xlane.xlu1 %1243  ;;  %v6272_v39 = vpop.f32.mrb[97].mxu1  ;;  %5892 = vmatprep.mubr.msk.f32.mxu0 %vm7042_vm0, %v9883_v60  ;;  %6492 = vmatpush3.bf16.msra.mxu0 %v6491_v61  ;;  %v5152_v44 = vld [vmem:[%s7294_s26 + $0x110] sm:$0x7f] }
 0x360   : >> { %v8239_v11 = vadd.f32 %v3583_v21, %v9853_v2  ;;  %v8241_v35 = vpop.eup %6721  ;;  %v1279_v30 = vmul.f32 1.442695, %v1274_v26  ;;  %v8244_v63 = vmax.f32 %v8122_v19, %v1244_v56  ;;  %5934 = vmatprep.subr.mxu0 %v9883_v60  ;;  %v8251_v52 = vmul.f32 0.0, %v6720_v36  ;;  %v5185_v17 = vld [vmem:[%s7294_s26 + $0x170] sm:$0xff] }
 0x361   : >> { %9889 = vst [vmem:[#allocation40_spill] sm:$0xff] %v8241_v35  ;;  %v8249_v41 = vpop.eup %6723  ;;  %v3584_v16 = vmul.f32 %v5423_v25, %v3567_v38  ;;  %v8256_v61 = vmul.f32 %v8241_v35, %v757_v50  ;;  %v5424_v25 = vld [vmem:[%s9746_s6 + $0x188] sm:$0x7f] }
 0x362   : >> { %9890 = vst [vmem:[#allocation41_spill] sm:$0xff] %v8244_v63  ;;  %9891 = vst [vmem:[#allocation42_spill] sm:$0xff] %v8251_v52  ;;  %v3597_v21 = vsel %vm569_vm3, %v8239_v11, -inf  ;;  %v6726_v39 = vpop.eup %6725  ;;  %v1275_v56 = vsub.f32 %v7822_v29, %v8244_v63  ;;  %5893 = vmatmul.mubr.msk.f32.gmra.mrb[14].mxu0 %vm569_vm3, %v8249_v41  ;;  %v3571_v36 = vpop.f32.mrb[98].mxu1  ;;  %v758_v50 = vadd.f32 %v7711_v51, %v8251_v52  ;;  %6735 = vpow2.f32 %v1279_v30  ;;  %v5442_v52 = vld [vmem:[%s7256_s29 + $0x198] sm:$0xff] }
 0x363   : >> { %9892 = vst [vmem:[#allocation43_spill] sm:$0xff] %v8256_v61  ;;  %3598 = vmax.xlane.f32.xlu1 %v3597_v21  ;;  %v3572_v38 = vadd.f32 %v5409_v12, %v3571_v36  ;;  %v1247_v35 = vpop.xlane.xlu0 %1246  ;;  %v6275_v26 = vpop.f32.mrb[99].mxu1  ;;  %5895 = vmatprep.mubr.msk.f32.mxu0 %vm7042_vm0, %v9883_v60  ;;  %v8272_v29 = vadd.f32 %v3584_v16, %v9852_v3  ;;  %v5441_v61 = vld [vmem:[%s7256_s29 + $0x190] sm:$0xff]  ;;  %v8284_v12 = vmul.f32 0.0, %v6726_v39 }
 0x364   : >> { %5935 = vmatpush3.msk.msra.mxu0 %vm661_vm5, %v5152_v44  ;;  %v8275_v21 = vpop.eup %6727  ;;  %v1281_v59 = vmul.f32 1.442695, %v1275_v56  ;;  %v8278_v6 = vmax.f32 %v8139_v27, %v1247_v35  ;;  %v5456_v56 = vld [vmem:[%s9746_s6 + $0x190] sm:$0xff] }
 0x365   : >> { %9893 = vst [vmem:[#allocation44_spill] sm:$0xff] %v8275_v21  ;;  %6501 = vmatprep.subr.bf16.mxu0 %v9886_v13  ;;  %v8282_v51 = vpop.eup %6729  ;;  %9895 = vst [vmem:[#allocation46_spill] sm:$0xff] %v8284_v12  ;;  %v3585_v30 = vmul.f32 %v5424_v25, %v3572_v38  ;;  %v3600_v16 = vsel %vm569_vm3, %v8272_v29, -inf  ;;  %v8289_v26 = vmul.f32 %v8275_v21, %v758_v50 }
 0x366   : >> { %9894 = vst [vmem:[#allocation45_spill] sm:$0xff] %v8278_v6  ;;  %v1276_v35 = vsub.f32 %v7834_v48, %v8278_v6  ;;  %5896 = vmatmul.mubr.msk.f32.gmra.mrb[16].mxu0 %vm569_vm3, %v8282_v51  ;;  %3601 = vmax.xlane.f32.xlu0 %v3600_v16  ;;  %v3887_v39 = vpop.f32.mrb[100].mxu1  ;;  %v759_v36 = vadd.f32 %v7717_v55, %v8284_v12  ;;  %6737 = vpow2.f32 %v1281_v59  ;;  %v5186_v12 = vld [vmem:[%s7294_s26 + $0x178] sm:$0xff] }
 0x367   : >> { %9896 = vst [vmem:[#allocation47_spill] sm:$0xff] %v8289_v26  ;;  %v3888_v25 = vadd.f32 %v5441_v61, %v3887_v39  ;;  %v1250_v50 = vpop.xlane.xlu1 %1249  ;;  %v6313_v38 = vpop.f32.mrb[101].mxu1  ;;  %5898 = vmatprep.mubr.msk.f32.mxu0 %vm7042_vm0, %v9883_v60  ;;  %v8305_v48 = vadd.f32 %v3585_v30, %v9851_v4  ;;  %v5184_v26 = vld [vmem:[%s7294_s26 + $0x168] sm:$0xff] }
 0x368   : >> { %v8307_v44 = vpop.eup %6731  ;;  %v1283_v16 = vmul.f32 1.442695, %v1276_v35  ;;  %v8310_v21 = vmax.f32 %v8158_v37, %v1250_v50 }
 0x369   : >> { %9897 = vst [vmem:[#allocation48_spill] sm:$0xff] %v8307_v44  ;;  %v8315_v55 = vpop.eup %6733  ;;  %v3917_v59 = vmul.f32 %v5456_v56, %v3888_v25  ;;  %v3603_v61 = vsel %vm582_vm4, %v8305_v48, -inf  ;;  %v8320_v39 = vmul.f32 %v8307_v44, %v759_v36  ;;  %v5457_v25 = vld [vmem:[%s9746_s6 + $0x198] sm:$0xff] }
 0x36a   : >> { %9898 = vst [vmem:[#allocation49_spill] sm:$0xff] %v8310_v21  ;;  %v1277_v35 = vsub.f32 %v7844_v62, %v8310_v21  ;;  %5899 = vmatmul.mubr.msk.f32.gmra.mrb[18].mxu0 %vm569_vm3, %v8315_v55  ;;  %3604 = vmax.xlane.f32.xlu1 %v3603_v61  ;;  %v3892_v56 = vpop.f32.mrb[102].mxu1  ;;  %6739 = vpow2.f32 %v1283_v16  ;;  %v6502_v62 = vpack.c.bf16 %v5185_v17, %v5184_v26  ;;  %v5443_v61 = vld [vmem:[%s7256_s29 + $0x1a0] sm:$0xff] }
 0x36b   : >> { %9899 = vst [vmem:[#allocation50_spill] sm:$0xff] %v8320_v39  ;;  %v3893_v36 = vadd.f32 %v5442_v52, %v3892_v56  ;;  %v1253_v50 = vpop.xlane.xlu0 %1252  ;;  %v6316_v38 = vpop.f32.mrb[103].mxu1  ;;  %5936 = vmatprep.mubr.msk.f32.mxu0 %vm7042_vm0, %v9883_v60  ;;  %v8334_v30 = vadd.f32 %v3917_v59, %v9855_v0  ;;  %v5458_v59 = vld [vmem:[%s9746_s6 + $0x1a0] sm:$0xff]  ;;  %v5444_v56 = vld [vmem:[%s7256_s29 + $0x1a8] sm:$0xff] }
 0x36c   : >> { %v1285_v44 = vmul.f32 1.442695, %v1277_v35  ;;  %v8337_v39 = vmax.f32 %v8182_v22, %v1253_v50  ;;  %v8342_v37 = vpop.eup %6735 }
 0x36d   : >> { %v3918_v16 = vmul.f32 %v5457_v25, %v3893_v36  ;;  %v3927_v52 = vsel %vm569_vm3, %v8334_v30, -inf }
 0x36e   : >> { %9900 = vst [vmem:[#allocation51_spill] sm:$0xff] %v8337_v39  ;;  %v1278_v17 = vsub.f32 %v7856_v15, %v8337_v39  ;;  %5937 = vmatmul.mubr.msk.f32.vlgmr.msra.gmra.mrb[20].mxu0 %vm569_vm3, %v8342_v37  ;;  %3928 = vmax.xlane.f32.xlu0 %v3927_v52  ;;  %v3897_v26 = vpop.f32.mrb[104].mxu1  ;;  %6741 = vpow2.f32 %v1285_v44  ;;  %v6505_v15 = vpack.c.bf16 %v5187_v28, %v5186_v12 }
 0x36f   : >> { %v3898_v35 = vadd.f32 %v5443_v61, %v3897_v26  ;;  %v1577_v25 = vpop.xlane.xlu1 %1576  ;;  %v6319_v36 = vpop.f32.mrb[105].mxu1  ;;  %5939 = vmatprep.mubr.msk.f32.mxu0 %vm7042_vm0, %v9883_v60  ;;  %v8358_v50 = vadd.f32 %v3918_v16, %v9854_v1  ;;  %6503 = vmatpush3.bf16.msra.mxu0 %v6502_v62  ;;  %v5459_v62 = vld [vmem:[%s9746_s6 + $0x1a8] sm:$0xff] }
 0x370   : >> { %v1287_v38 = vmul.f32 1.442695, %v1278_v17  ;;  %v8361_v52 = vmax.f32 %v8212_v10, %v1577_v25  ;;  %6504 = vmatprep.subr.bf16.mxu0 %v9886_v13  ;;  %v8365_v22 = vpop.eup %6737  ;;  %v5445_v36 = vld [vmem:[%s7256_s29 + $0x1b0] sm:$0x7f] }
 0x371   : >> { %v3919_v44 = vmul.f32 %v5458_v59, %v3898_v35  ;;  %v3930_v61 = vsel %vm569_vm3, %v8358_v50, -inf }
 0x372   : >> { %9901 = vst [vmem:[#allocation52_spill] sm:$0xff] %v8361_v52  ;;  %v1610_v28 = vsub.f32 %v7865_v32, %v8361_v52  ;;  %5940 = vmatmul.mubr.msk.f32.gmra.mrb[22].mxu0 %vm569_vm3, %v8365_v22  ;;  %3931 = vmax.xlane.f32.xlu1 %v3930_v61  ;;  %v3902_v12 = vpop.f32.mrb[106].mxu1  ;;  %6743 = vpow2.f32 %v1287_v38  ;;  %v5188_v61 = vld [vmem:[%s7294_s26 + $0x188] sm:$0x7f] }
 0x373   : >> { %v3903_v17 = vadd.f32 %v5444_v56, %v3902_v12  ;;  %v1580_v26 = vpop.xlane.xlu0 %1579  ;;  %v6322_v59 = vpop.f32.mrb[107].mxu1  ;;  %5942 = vmatprep.mubr.msk.f32.mxu0 %vm7042_vm0, %v9883_v60  ;;  %v8381_v35 = vadd.f32 %v3919_v44, %v9853_v2  ;;  %6506 = vmatpush3.bf16.msra.mxu0 %v6505_v15  ;;  %v5460_v12 = vld [vmem:[%s9746_s6 + $0x1b0] sm:$0x7f]  ;;  %v5477_v44 = vld [vmem:[%s7256_s29 + $0x1b8] sm:$0xff] }
 0x374   : >> { %v1615_v32 = vmul.f32 1.442695, %v1610_v28  ;;  %v8384_v25 = vmax.f32 %v8244_v63, %v1580_v26  ;;  %5984 = vmatprep.subr.mxu0 %v9883_v60  ;;  %v8389_v16 = vpop.eup %6739  ;;  %v5221_v63 = vld [vmem:[%s7294_s26 + $0x1e8] sm:$0xff] }
 0x375   : >> { %v3920_v56 = vmul.f32 %v5459_v62, %v3903_v17  ;;  %v3933_v38 = vsel %vm569_vm3, %v8381_v35, -inf }
 0x376   : >> { %9902 = vst [vmem:[#allocation53_spill] sm:$0xff] %v8384_v25  ;;  %v1611_v15 = vsub.f32 %v7874_v47, %v8384_v25  ;;  %5943 = vmatmul.mubr.msk.f32.gmra.mrb[24].mxu0 %vm569_vm3, %v8389_v16  ;;  %3934 = vmax.xlane.f32.xlu0 %v3933_v38  ;;  %v3907_v28 = vpop.f32.mrb[108].mxu1  ;;  %6745 = vpow2.f32 %v1615_v32 }
 0x377   : >> { %v3908_v62 = vadd.f32 %v5445_v36, %v3907_v28  ;;  %v1583_v17 = vpop.xlane.xlu1 %1582  ;;  %v6325_v26 = vpop.f32.mrb[109].mxu1  ;;  %5945 = vmatprep.mubr.msk.f32.mxu0 %vm7042_vm0, %v9883_v60  ;;  %v8405_v59 = vadd.f32 %v3920_v56, %v9852_v3  ;;  %5985 = vmatpush3.msk.msra.mxu0 %vm661_vm5, %v5188_v61  ;;  %v5492_v28 = vld [vmem:[%s9746_s6 + $0x1b8] sm:$0xff] }
 0x378   : >> { %v1617_v47 = vmul.f32 1.442695, %v1611_v15  ;;  %v8409_v38 = vmax.f32 %v8278_v6, %v1583_v17  ;;  %6515 = vmatprep.subr.bf16.mxu0 %v9886_v13  ;;  %v8413_v27 = vpop.eup %6741  ;;  %v5220_v6 = vld [vmem:[%s7294_s26 + $0x1e0] sm:$0xff] }
 0x379   : >> { %9903 = vst [vmem:[#allocation54_spill] sm:$0xff] %v8405_v59  ;;  %v3921_v32 = vmul.f32 %v5460_v12, %v3908_v62  ;;  %v3936_v36 = vsel %vm569_vm3, %v8405_v59, -inf }
 0x37a   : >> { %9904 = vst [vmem:[#allocation55_spill] sm:$0xff] %v8409_v38  ;;  %v1612_v61 = vsub.f32 %v7883_v20, %v8409_v38  ;;  %5946 = vmatmul.mubr.msk.f32.gmra.mrb[26].mxu0 %vm569_vm3, %v8413_v27  ;;  %3937 = vmax.xlane.f32.xlu1 %v3936_v36  ;;  %v4223_v15 = vpop.f32.mrb[110].mxu1  ;;  %6747 = vpow2.f32 %v1617_v47  ;;  %v5478_v36 = vld [vmem:[%s7256_s29 + $0x1c0] sm:$0xff] }
 0x37b   : >> { %v4224_v12 = vadd.f32 %v5477_v44, %v4223_v15  ;;  %v1586_v62 = vpop.xlane.xlu0 %1585  ;;  %v6363_v17 = vpop.f32.mrb[111].mxu1  ;;  %5948 = vmatprep.mubr.msk.f32.mxu0 %vm7042_vm0, %v9883_v60  ;;  %v8429_v26 = vadd.f32 %v3921_v32, %v9851_v4  ;;  %v5493_v15 = vld [vmem:[%s9746_s6 + $0x1c0] sm:$0xff] }
 0x37c   : >> { %v1619_v20 = vmul.f32 1.442695, %v1612_v61  ;;  %v8432_v56 = vmax.f32 %v8310_v21, %v1586_v62  ;;  %v8437_v19 = vpop.eup %6743 }
 0x37d   : >> { %9905 = vst [vmem:[#allocation56_spill] sm:$0xff] %v8429_v26  ;;  %v4253_v10 = vmul.f32 %v5492_v28, %v4224_v12  ;;  %v3939_v44 = vsel %vm582_vm4, %v8429_v26, -inf  ;;  %v5223_v26 = vld [vmem:[%s7294_s26 + $0x1f8] sm:$0xff] }
 0x37e   : >> { %9906 = vst [vmem:[#allocation57_spill] sm:$0xff] %v8432_v56  ;;  %v1613_v32 = vsub.f32 %v7892_v14, %v8432_v56  ;;  %5949 = vmatmul.mubr.msk.f32.gmra.mrb[28].mxu0 %vm569_vm3, %v8437_v19  ;;  %3940 = vmax.xlane.f32.xlu0 %v3939_v44  ;;  %v4228_v61 = vpop.f32.mrb[112].mxu1  ;;  %6749 = vpow2.f32 %v1619_v20  ;;  %v6516_v14 = vpack.c.bf16 %v5221_v63, %v5220_v6  ;;  %v5479_v44 = vld [vmem:[%s7256_s29 + $0x1c8] sm:$0xff] }
 0x37f   : >> { %v4229_v28 = vadd.f32 %v5478_v36, %v4228_v61  ;;  %v1589_v12 = vpop.xlane.xlu1 %1588  ;;  %5986 = vmatprep.mubr.msk.f32.mxu0 %vm7042_vm0, %v9883_v60  ;;  %v6366_v62 = vpop.f32.mrb[113].mxu1  ;;  %v8453_v17 = vadd.f32 %v4253_v10, %v9855_v0  ;;  %v5494_v63 = vld [vmem:[%s9746_s6 + $0x1c8] sm:$0xff]  ;;  %v5480_v61 = vld [vmem:[%s7256_s29 + $0x1d0] sm:$0xff] }
 0x380   : >> { %v1621_v47 = vmul.f32 1.442695, %v1613_v32  ;;  %v8456_v21 = vmax.f32 %v8337_v39, %v1589_v12  ;;  %v8461_v59 = vpop.eup %6745 }
 0x381   : >> { %9907 = vst [vmem:[#allocation58_spill] sm:$0xff] %v8453_v17  ;;  %v4254_v20 = vmul.f32 %v5493_v15, %v4229_v28  ;;  %v4263_v36 = vsel %vm569_vm3, %v8453_v17, -inf }
 0x382   : >> { %v1614_v6 = vsub.f32 %v7901_v34, %v8456_v21  ;;  %5987 = vmatmul.mubr.msk.f32.vlgmr.msra.gmra.mrb[30].mxu0 %vm569_vm3, %v8461_v59  ;;  %4264 = vmax.xlane.f32.xlu1 %v4263_v36  ;;  %v4233_v10 = vpop.f32.mrb[114].mxu1  ;;  %6751 = vpow2.f32 %v1621_v47  ;;  %v6519_v34 = vpack.c.bf16 %v5223_v26, %v5222_v57 }
 0x383   : >> { %v4234_v32 = vadd.f32 %v5479_v44, %v4233_v10  ;;  %v1913_v15 = vpop.xlane.xlu0 %1912  ;;  %5989 = vmatprep.mubr.msk.f32.mxu0 %vm7042_vm0, %v9883_v60  ;;  %v6369_v28 = vpop.f32.mrb[115].mxu1  ;;  %v8477_v12 = vadd.f32 %v4254_v20, %v9854_v1  ;;  %6517 = vmatpush3.bf16.msra.mxu0 %v6516_v14  ;;  %v5495_v14 = vld [vmem:[%s9746_s6 + $0x1d0] sm:$0xff] }
 0x384   : >> { %v1623_v62 = vmul.f32 1.442695, %v1614_v6  ;;  %v8480_v36 = vmax.f32 %v8361_v52, %v1913_v15  ;;  %6518 = vmatprep.subr.bf16.mxu0 %v9886_v13  ;;  %v8484_v39 = vpop.eup %6747  ;;  %v5481_v28 = vld [vmem:[%s7256_s29 + $0x1d8] sm:$0x7f]  ;;  %v5257_v52 = vld [vmem:[%s7294_s26 + $0x260] sm:$0xff] }
 0x385   : >> { %9908 = vst [vmem:[#allocation59_spill] sm:$0xff] %v8477_v12  ;;  %v4255_v47 = vmul.f32 %v5494_v63, %v4234_v32  ;;  %v4266_v44 = vsel %vm569_vm3, %v8477_v12, -inf  ;;  %v5259_v12 = vld [vmem:[%s7294_s26 + $0x270] sm:$0xff] }
 0x386   : >> { %v1946_v57 = vsub.f32 %v7910_v53, %v8480_v36  ;;  %5990 = vmatmul.mubr.msk.f32.gmra.mrb[32].mxu0 %vm569_vm3, %v8484_v39  ;;  %4267 = vmax.xlane.f32.xlu0 %v4266_v44  ;;  %v4238_v26 = vpop.f32.mrb[116].mxu1  ;;  %6753 = vpow2.f32 %v1623_v62  ;;  %v5224_v44 = vld [vmem:[%s7294_s26 + $0x200] sm:$0x7f] }
 0x387   : >> { %v4239_v6 = vadd.f32 %v5480_v61, %v4238_v26  ;;  %v1916_v10 = vpop.xlane.xlu1 %1915  ;;  %5992 = vmatprep.mubr.msk.f32.mxu0 %vm7042_vm0, %v9883_v60  ;;  %v6372_v63 = vpop.f32.mrb[117].mxu1  ;;  %v8500_v32 = vadd.f32 %v4255_v47, %v9853_v2  ;;  %6520 = vmatpush3.bf16.msra.mxu0 %v6519_v34  ;;  %v5496_v26 = vld [vmem:[%s9746_s6 + $0x1d8] sm:$0x7f]  ;;  %v5513_v47 = vld [vmem:[%s7256_s29 + $0x1e0] sm:$0xff] }
 0x388   : >> { %v1951_v53 = vmul.f32 1.442695, %v1946_v57  ;;  %v8503_v15 = vmax.f32 %v8384_v25, %v1916_v10  ;;  %6034 = vmatprep.subr.mxu0 %v9883_v60  ;;  %v8508_v20 = vpop.eup %6749 }
 0x389   : >> { %9909 = vst [vmem:[#allocation60_spill] sm:$0xff] %v8500_v32  ;;  %v4256_v61 = vmul.f32 %v5495_v14, %v4239_v6  ;;  %v4269_v62 = vsel %vm569_vm3, %v8500_v32, -inf }
 0x38a   : >> { %v1947_v34 = vsub.f32 %v7919_v7, %v8503_v15  ;;  %5993 = vmatmul.mubr.msk.f32.gmra.mrb[34].mxu0 %vm569_vm3, %v8508_v20  ;;  %4270 = vmax.xlane.f32.xlu1 %v4269_v62  ;;  %v4243_v57 = vpop.f32.mrb[118].mxu1  ;;  %6755 = vpow2.f32 %v1951_v53 }
 0x38b   : >> { %v4244_v14 = vadd.f32 %v5481_v28, %v4243_v57  ;;  %v1919_v6 = vpop.xlane.xlu0 %1918  ;;  %5995 = vmatprep.mubr.msk.f32.mxu0 %vm7042_vm0, %v9883_v60  ;;  %v6375_v10 = vpop.f32.mrb[119].mxu1  ;;  %v8524_v63 = vadd.f32 %v4256_v61, %v9852_v3  ;;  %6035 = vmatpush3.msk.msra.mxu0 %vm661_vm5, %v5224_v44  ;;  %v5528_v57 = vld [vmem:[%s9746_s6 + $0x1e0] sm:$0xff] }
 0x38c   : >> { %v1953_v7 = vmul.f32 1.442695, %v1947_v34  ;;  %v8528_v62 = vmax.f32 %v8409_v38, %v1919_v6  ;;  %6529 = vmatprep.subr.bf16.mxu0 %v9886_v13  ;;  %v8532_v25 = vpop.eup %6751  ;;  %v5256_v38 = vld [vmem:[%s7294_s26 + $0x258] sm:$0xff] }
 0x38d   : >> { %9910 = vst [vmem:[#allocation61_spill] sm:$0xff] %v8524_v63  ;;  %v4257_v53 = vmul.f32 %v5496_v26, %v4244_v14  ;;  %v4272_v28 = vsel %vm569_vm3, %v8524_v63, -inf }
 0x38e   : >> { %v1948_v44 = vsub.f32 %v7928_v23, %v8528_v62  ;;  %5996 = vmatmul.mubr.msk.f32.gmra.mrb[36].mxu0 %vm569_vm3, %v8532_v25  ;;  %4273 = vmax.xlane.f32.xlu0 %v4272_v28  ;;  %v4559_v34 = vpop.f32.mrb[120].mxu1  ;;  %6757 = vpow2.f32 %v1953_v7  ;;  %v5514_v28 = vld [vmem:[%s7256_s29 + $0x1e8] sm:$0xff] }
 0x38f   : >> { %v4560_v26 = vadd.f32 %v5513_v47, %v4559_v34  ;;  %v1922_v14 = vpop.xlane.xlu1 %1921  ;;  %5998 = vmatprep.mubr.msk.f32.mxu0 %vm7042_vm0, %v9883_v60  ;;  %v6413_v6 = vpop.f32.mrb[121].mxu1  ;;  %v8548_v10 = vadd.f32 %v4257_v53, %v9851_v4  ;;  %v5529_v34 = vld [vmem:[%s9746_s6 + $0x1e8] sm:$0xff] }
 0x390   : >> { %v1955_v23 = vmul.f32 1.442695, %v1948_v44  ;;  %v8551_v61 = vmax.f32 %v8432_v56, %v1922_v14  ;;  %v8556_v63 = vpop.eup %6753 }
 0x391   : >> { %9911 = vst [vmem:[#allocation62_spill] sm:$0xff] %v8548_v10  ;;  %v4589_v32 = vmul.f32 %v5528_v57, %v4560_v26  ;;  %v4275_v47 = vsel %vm582_vm4, %v8548_v10, -inf  ;;  %v5258_v10 = vld [vmem:[%s7294_s26 + $0x268] sm:$0xff] }
 0x392   : >> { %v1949_v53 = vsub.f32 %v7937_v43, %v8551_v61  ;;  %5999 = vmatmul.mubr.msk.f32.gmra.mrb[38].mxu0 %vm569_vm3, %v8556_v63  ;;  %4276 = vmax.xlane.f32.xlu1 %v4275_v47  ;;  %v4564_v44 = vpop.f32.mrb[122].mxu1  ;;  %6759 = vpow2.f32 %v1955_v23  ;;  %v6530_v43 = vpack.c.bf16 %v5257_v52, %v5256_v38  ;;  %v5515_v47 = vld [vmem:[%s7256_s29 + $0x1f0] sm:$0xff] }
 0x393   : >> { %v4565_v57 = vadd.f32 %v5514_v28, %v4564_v44  ;;  %v1925_v26 = vpop.xlane.xlu0 %1924  ;;  %6036 = vmatprep.mubr.msk.f32.mxu0 %vm7042_vm0, %v9883_v60  ;;  %v6416_v14 = vpop.f32.mrb[123].mxu1  ;;  %v8572_v6 = vadd.f32 %v4589_v32, %v9855_v0  ;;  %v5530_v32 = vld [vmem:[%s9746_s6 + $0x1f0] sm:$0xff]  ;;  %v5516_v44 = vld [vmem:[%s7256_s29 + $0x1f8] sm:$0xff] }
 0x394   : >> { %v1957_v7 = vmul.f32 1.442695, %v1949_v53  ;;  %v8575_v56 = vmax.f32 %v8456_v21, %v1925_v26  ;;  %v8580_v17 = vpop.eup %6755 }
 0x395   : >> { %v4590_v23 = vmul.f32 %v5529_v34, %v4565_v57  ;;  %v4599_v28 = vsel %vm569_vm3, %v8572_v6, -inf }
 0x396   : >> { %v1950_v52 = vsub.f32 %v7946_v9, %v8575_v56  ;;  %6037 = vmatmul.mubr.msk.f32.vlgmr.msra.gmra.mrb[40].mxu0 %vm569_vm3, %v8580_v17  ;;  %4600 = vmax.xlane.f32.xlu0 %v4599_v28  ;;  %v4569_v38 = vpop.f32.mrb[124].mxu1  ;;  %6761 = vpow2.f32 %v1957_v7  ;;  %v6533_v9 = vpack.c.bf16 %v5259_v12, %v5258_v10 }
 0x397   : >> { %v4570_v53 = vadd.f32 %v5515_v47, %v4569_v38  ;;  %v2249_v34 = vpop.xlane.xlu1 %2248  ;;  %6039 = vmatprep.mubr.msk.f32.mxu0 %vm7042_vm0, %v9883_v60  ;;  %v6419_v57 = vpop.f32.mrb[125].mxu1  ;;  %v8596_v26 = vadd.f32 %v4590_v23, %v9854_v1  ;;  %6531 = vmatpush3.bf16.msra.mxu0 %v6530_v43  ;;  %v5531_v43 = vld [vmem:[%s9746_s6 + $0x1f8] sm:$0xff] }
 0x398   : >> { %v1959_v14 = vmul.f32 1.442695, %v1950_v52  ;;  %v8599_v28 = vmax.f32 %v8480_v36, %v2249_v34  ;;  %6532 = vmatprep.subr.bf16.mxu0 %v9886_v13  ;;  %v8603_v0 = vpop.eup %6757  ;;  %v5517_v57 = vld [vmem:[%s7256_s29 + $0x200] sm:$0x7f] }
 0x399   : >> { %v4591_v7 = vmul.f32 %v5530_v32, %v4570_v53  ;;  %v4602_v47 = vsel %vm569_vm3, %v8596_v26, -inf }
 0x39a   : >> { %v2282_v12 = vsub.f32 %v7955_v24, %v8599_v28  ;;  %6040 = vmatmul.mubr.msk.f32.gmra.mrb[42].mxu0 %vm569_vm3, %v8603_v0  ;;  %4603 = vmax.xlane.f32.xlu1 %v4602_v47  ;;  %v4574_v10 = vpop.f32.mrb[126].mxu1  ;;  %6763 = vpow2.f32 %v1959_v14  ;;  %v5260_v47 = vld [vmem:[%s7294_s26 + $0x278] sm:$0x7f] }
 0x39b   : >> { %v4575_v52 = vadd.f32 %v5516_v44, %v4574_v10  ;;  %v2252_v38 = vpop.xlane.xlu0 %2251  ;;  %6042 = vmatprep.mubr.msk.f32.mxu0 %vm7042_vm0, %v9883_v60  ;;  %v6422_v32 = vpop.f32.mrb[127].mxu1  ;;  %v8619_v53 = vadd.f32 %v4591_v7, %v9853_v2  ;;  %6534 = vmatpush3.bf16.msra.mxu0 %v6533_v9  ;;  %v5294_v2 = vld [vmem:[%s7294_s26 + $0x2e0] sm:$0xff] }
 0x39c   : >> { %v2287_v24 = vmul.f32 1.442695, %v2282_v12  ;;  %v8622_v34 = vmax.f32 %v8503_v15, %v2252_v38  ;;  %6084 = vmatprep.subr.mxu0 %v9883_v60  ;;  %v8627_v23 = vpop.eup %6759  ;;  %v5532_v12 = vld [vmem:[%s9746_s6 + $0x200] sm:$0x7f] }
 0x39d   : >> { %v4592_v44 = vmul.f32 %v5531_v43, %v4575_v52  ;;  %v4605_v14 = vsel %vm569_vm3, %v8619_v53, -inf }
 0x39e   : >> { %9912 = vst [vmem:[#allocation63_spill] sm:$0xff] %v8622_v34  ;;  %v2283_v9 = vsub.f32 %v7964_v45, %v8622_v34  ;;  %6043 = vmatmul.mubr.msk.f32.gmra.mrb[44].mxu0 %vm569_vm3, %v8627_v23  ;;  %4606 = vmax.xlane.f32.xlu0 %v4605_v14  ;;  %v4579_v7 = vpop.f32.mrb[128].mxu1  ;;  %6765 = vpow2.f32 %v2287_v24 }
 0x39f   : >> { %v4580_v43 = vadd.f32 %v5517_v57, %v4579_v7  ;;  %v2255_v52 = vpop.xlane.xlu1 %2254  ;;  %6045 = vmatprep.mubr.msk.f32.mxu0 %vm7042_vm0, %v9883_v60  ;;  %v6425_v38 = vpop.f32.mrb[129].mxu1  ;;  %v8643_v32 = vadd.f32 %v4592_v44, %v9852_v3  ;;  %6085 = vmatpush3.msk.msra.mxu0 %vm661_vm5, %v5260_v47 }
 0x3a0   : >> { %v2289_v45 = vmul.f32 1.442695, %v2283_v9  ;;  %v8647_v14 = vmax.f32 %v8528_v62, %v2255_v52  ;;  %6543 = vmatprep.subr.bf16.mxu0 %v9886_v13  ;;  %v8650_v10 = vpop.eup %6761 }
 0x3a1   : >> { %v4593_v24 = vmul.f32 %v5532_v12, %v4580_v43  ;;  %v4608_v57 = vsel %vm569_vm3, %v8643_v32, -inf }
 0x3a2   : >> { %9913 = vst [vmem:[#allocation64_spill] sm:$0xff] %v8647_v14  ;;  %v2284_v47 = vsub.f32 %v7973_v8, %v8647_v14  ;;  %6046 = vmatmul.mubr.msk.f32.gmra.mrb[46].mxu0 %vm569_vm3, %v8650_v10  ;;  %4609 = vmax.xlane.f32.xlu1 %v4608_v57  ;;  %6767 = vpow2.f32 %v2289_v45  ;;  %v626_v8 = vsel %vm569_vm3, %v7320_v40, 0.0  ;;  %v5292_v45 = vld [vmem:[%s7294_s26 + $0x2d0] sm:$0xff]  ;;  %v5293_v57 = vld [vmem:[%s7294_s26 + $0x2d8] sm:$0xff] }
 0x3a3   : >> { %v2258_v9 = vpop.xlane.xlu0 %2257  ;;  %6048 = vmatprep.mubr.msk.f32.mxu0 %vm7042_vm0, %v9883_v60  ;;  %v8663_v7 = vadd.f32 %v4593_v24, %v9851_v4  ;;  %v6544_v24 = vpack.c.bf16 %v5293_v57, %v5292_v45  ;;  %v629_v45 = vsel %vm569_vm3, %v7334_v46, 0.0  ;;  %v5508_v57 = vld [vmem:[%s7294_s26 + $0x5a0] sm:$0xff]  ;;  %v638_v46 = vsel %vm582_vm4, %v7358_v54, 0.0  ;;  %v5511_v54 = vld [vmem:[%s7294_s26 + $0x5b8] sm:$0xff] }
 0x3a4   : >> { %v2291_v12 = vmul.f32 1.442695, %v2284_v47  ;;  %v8666_v43 = vmax.f32 %v8551_v61, %v2258_v9  ;;  %v8668_v52 = vpop.eup %6763 }
 0x3a5   : >> { %v4611_v38 = vsel %vm582_vm4, %v8663_v7, -inf }
 0x3a6   : >> { %9914 = vst [vmem:[#allocation65_spill] sm:$0xff] %v8666_v43  ;;  %v2285_v47 = vsub.f32 %v7982_v31, %v8666_v43  ;;  %6049 = vmatmul.mubr.msk.f32.gmra.mrb[48].mxu0 %vm569_vm3, %v8668_v52  ;;  %627 = vadd.xlane.f32.xlu1 %v626_v8  ;;  %6769 = vpow2.f32 %v2291_v12  ;;  %v632_v31 = vsel %vm569_vm3, %v7340_v49, 0.0  ;;  %v5295_v8 = vld [vmem:[%s7294_s26 + $0x2e8] sm:$0xff] }
 0x3a7   : >> { %4612 = vmax.xlane.f32.xlu0 %v4611_v38  ;;  %v2261_v40 = vpop.xlane.xlu1 %2260  ;;  %6086 = vmatprep.mubr.msk.f32.mxu0 %vm7042_vm0, %v9883_v60 }
 0x3a8   : >> { %v2293_v9 = vmul.f32 1.442695, %v2285_v47  ;;  %v8685_v44 = vmax.f32 %v8575_v56, %v2261_v40  ;;  %v8687_v1 = vpop.eup %6765  ;;  %v5509_v47 = vld [vmem:[%s7294_s26 + $0x5a8] sm:$0xff] }
 0x3a9   : >> { %v8705_v40 = vpack.c.bf16 %v5509_v47, %v5508_v57 }
 0x3aa   : >> { %v2286_v38 = vsub.f32 %v7991_v58, %v8685_v44  ;;  %6087 = vmatmul.mubr.msk.f32.vlgmr.msra.gmra.mrb[50].mxu0 %vm569_vm3, %v8687_v1  ;;  %633 = vadd.xlane.f32.xlu1 %v632_v31  ;;  %6771 = vpow2.f32 %v2293_v9  ;;  %v6547_v31 = vpack.c.bf16 %v5295_v8, %v5294_v2  ;;  %v5510_v8 = vld [vmem:[%s7294_s26 + $0x5b0] sm:$0xff] }
 0x3ab   : >> { %630 = vadd.xlane.f32.xlu0 %v629_v45  ;;  %v2585_v49 = vpop.xlane.xlu0 %2584  ;;  %6089 = vmatprep.mubr.msk.f32.mxu0 %vm7042_vm0, %v9883_v60  ;;  %v9915_v45 = vld [vmem:[#allocation12_spill] sm:$0xff]  ;;  %v8728_v47 = vpack.c.bf16 %v5511_v54, %v5510_v8 }
 0x3ac   : >> { %v2295_v58 = vmul.f32 1.442695, %v2286_v38  ;;  %v8708_v12 = vmax.f32 %v8599_v28, %v2585_v49  ;;  %6545 = vmatpush3.bf16.msra.mxu0 %v6544_v24  ;;  %v8710_v3 = vpop.eup %6767  ;;  %6636 = vmatpush3.bf16.msra.mxu1 %v8705_v40  ;;  %v9916_v24 = vld [vmem:[#allocation11_spill] sm:$0xff] }
 0x3ad   : >> { %6546 = vmatprep.subr.bf16.mxu0 %v9886_v13  ;;  %v635_v2 = vsel %vm569_vm3, %v9916_v24, 0.0  ;;  %6634 = vmatprep.subr.bf16.mxu1 %v9886_v13 }
 0x3ae   : >> { %v2618_v38 = vsub.f32 %v9915_v45, %v8708_v12  ;;  %6090 = vmatmul.mubr.msk.f32.gmra.mrb[52].mxu0 %vm569_vm3, %v8710_v3  ;;  %639 = vadd.xlane.f32.xlu1 %v638_v46  ;;  %6773 = vpow2.f32 %v2295_v58  ;;  %v961_v46 = vsel %vm569_vm3, %v8216_v5, 0.0  ;;  %v5296_v58 = vld [vmem:[%s7294_s26 + $0x2f0] sm:$0x7f] }
 0x3af   : >> { %636 = vadd.xlane.f32.xlu0 %v635_v2  ;;  %v2588_v57 = vpop.xlane.xlu1 %2587  ;;  %6092 = vmatprep.mubr.msk.f32.mxu0 %vm7042_vm0, %v9883_v60 }
 0x3b0   : >> { %v2623_v49 = vmul.f32 1.442695, %v2618_v38  ;;  %v8731_v45 = vmax.f32 %v8622_v34, %v2588_v57  ;;  %6548 = vmatpush3.bf16.msra.mxu0 %v6547_v31  ;;  %v8734_v24 = vpop.eup %6769  ;;  %6637 = vmatpush3.bf16.msra.mxu1 %v8728_v47  ;;  %v9917_v38 = vld [vmem:[#allocation13_spill] sm:$0xff]  ;;  %v958_v31 = vsel %vm569_vm3, %v8186_v18, 0.0  ;;  %v967_v18 = vsel %vm569_vm3, %v8282_v51, 0.0 }
 0x3b1   : >> { %6134 = vmatprep.subr.mxu0 %v9883_v60  ;;  %6635 = vmatprep.subr.mxu1 %v9883_v60  ;;  %v5330_v34 = vld [vmem:[%s7294_s26 + $0x358] sm:$0xff] }
 0x3b2   : >> { %v2619_v8 = vsub.f32 %v9917_v38, %v8731_v45  ;;  %6093 = vmatmul.mubr.msk.f32.gmra.mrb[54].mxu0 %vm569_vm3, %v8734_v24  ;;  %962 = vadd.xlane.f32.xlu1 %v961_v46  ;;  %6775 = vpow2.f32 %v2623_v49  ;;  %v9918_v46 = vld [vmem:[#allocation14_spill] sm:$0xff] }
 0x3b3   : >> { %959 = vadd.xlane.f32.xlu0 %v958_v31  ;;  %v2591_v5 = vpop.xlane.xlu0 %2590  ;;  %6095 = vmatprep.mubr.msk.f32.mxu0 %vm7042_vm0, %v9883_v60  ;;  %v8772_v31 = vld [vmem:[%s7294_s26 + $0x5c0] sm:$0x7f] }
 0x3b4   : >> { %v2625_v54 = vmul.f32 1.442695, %v2619_v8  ;;  %v8752_v57 = vmax.f32 %v8647_v14, %v2591_v5  ;;  %6135 = vmatpush3.msk.msra.mxu0 %vm661_vm5, %v5296_v58  ;;  %v8756_v38 = vpop.eup %6771  ;;  %v964_v58 = vsel %vm569_vm3, %v8249_v41, 0.0  ;;  %6638 = vmatpush3.msk.msra.mxu1 %vm661_vm5, %v8772_v31  ;;  %v1294_v41 = vsel %vm569_vm3, %v8342_v37, 0.0  ;;  %v5331_v14 = vld [vmem:[%s7294_s26 + $0x360] sm:$0xff] }
 0x3b5   : >> { %6557 = vmatprep.subr.bf16.mxu0 %v9886_v13 }
 0x3b6   : >> { %v2620_v8 = vsub.f32 %v9918_v46, %v8752_v57  ;;  %6096 = vmatmul.mubr.msk.f32.gmra.mrb[56].mxu0 %vm569_vm3, %v8756_v38  ;;  %968 = vadd.xlane.f32.xlu1 %v967_v18  ;;  %6777 = vpow2.f32 %v2625_v54  ;;  %v5328_v54 = vld [vmem:[%s7294_s26 + $0x348] sm:$0xff]  ;;  %v5329_v18 = vld [vmem:[%s7294_s26 + $0x350] sm:$0xff] }
 0x3b7   : >> { %965 = vadd.xlane.f32.xlu0 %v964_v58  ;;  %v2594_v51 = vpop.xlane.xlu1 %2593  ;;  %6098 = vmatprep.mubr.msk.f32.mxu0 %vm7042_vm0, %v9883_v60  ;;  %v6558_v58 = vpack.c.bf16 %v5329_v18, %v5328_v54 }
 0x3b8   : >> { %v2627_v5 = vmul.f32 1.442695, %v2620_v8  ;;  %v8775_v49 = vmax.f32 %v8666_v43, %v2594_v51  ;;  %v8779_v46 = vpop.eup %6773  ;;  %v9919_v8 = vld [vmem:[#allocation15_spill] sm:$0xff]  ;;  %v970_v51 = vsel %vm582_vm4, %v8315_v55, 0.0  ;;  %v5366_v55 = vld [vmem:[%s7294_s26 + $0x3d0] sm:$0xff] }
 0x3ba   : >> { %v2621_v9 = vsub.f32 %v9919_v8, %v8775_v49  ;;  %6099 = vmatmul.mubr.msk.f32.gmra.mrb[58].mxu0 %vm569_vm3, %v8779_v46  ;;  %1295 = vadd.xlane.f32.xlu1 %v1294_v41  ;;  %6779 = vpow2.f32 %v2627_v5  ;;  %v1300_v8 = vsel %vm569_vm3, %v8389_v16, 0.0  ;;  %v9920_v5 = vld [vmem:[#allocation16_spill] sm:$0xff] }
 0x3bb   : >> { %971 = vadd.xlane.f32.xlu0 %v970_v51  ;;  %v2597_v37 = vpop.xlane.xlu0 %2596  ;;  %6136 = vmatprep.mubr.msk.f32.mxu0 %vm7042_vm0, %v9883_v60  ;;  %v6561_v51 = vpack.c.bf16 %v5331_v14, %v5330_v34  ;;  %v1303_v34 = vsel %vm569_vm3, %v8413_v27, 0.0  ;;  %v5332_v27 = vld [vmem:[%s7294_s26 + $0x368] sm:$0x7f] }
 0x3bc   : >> { %v2629_v2 = vmul.f32 1.442695, %v2621_v9  ;;  %v8796_v4 = vmax.f32 %v8685_v44, %v2597_v37  ;;  %v8798_v43 = vpop.eup %6775  ;;  %v1297_v9 = vsel %vm569_vm3, %v8365_v22, 0.0  ;;  %v5367_v22 = vld [vmem:[%s7294_s26 + $0x3d8] sm:$0xff] }
 0x3be   : >> { %v2622_v41 = vsub.f32 %v9920_v5, %v8796_v4  ;;  %6137 = vmatmul.mubr.msk.f32.vlgmr.msra.gmra.mrb[60].mxu0 %vm569_vm3, %v8798_v43  ;;  %1301 = vadd.xlane.f32.xlu1 %v1300_v8  ;;  %6781 = vpow2.f32 %v2629_v2  ;;  %v1306_v5 = vsel %vm582_vm4, %v8437_v19, 0.0  ;;  %v9921_v2 = vld [vmem:[#allocation17_spill] sm:$0xff] }
 0x3bf   : >> { %1298 = vadd.xlane.f32.xlu0 %v1297_v9  ;;  %v2921_v54 = vpop.xlane.xlu1 %2920  ;;  %6139 = vmatprep.mubr.msk.f32.mxu0 %vm7042_vm0, %v9883_v60  ;;  %v1633_v9 = vsel %vm569_vm3, %v8484_v39, 0.0 }
 0x3c0   : >> { %v2631_v16 = vmul.f32 1.442695, %v2622_v41  ;;  %v8815_v18 = vmax.f32 %v8708_v12, %v2921_v54  ;;  %6559 = vmatpush3.bf16.msra.mxu0 %v6558_v58  ;;  %v8817_v37 = vpop.eup %6777  ;;  %v5365_v54 = vld [vmem:[%s7294_s26 + $0x3c8] sm:$0xff] }
 0x3c1   : >> { %6560 = vmatprep.subr.bf16.mxu0 %v9886_v13 }
 0x3c2   : >> { %v2954_v8 = vsub.f32 %v9921_v2, %v8815_v18  ;;  %6140 = vmatmul.mubr.msk.f32.gmra.mrb[62].mxu0 %vm569_vm3, %v8817_v37  ;;  %1307 = vadd.xlane.f32.xlu1 %v1306_v5  ;;  %6783 = vpow2.f32 %v2631_v16  ;;  %v9922_v16 = vld [vmem:[#allocation18_spill] sm:$0xff] }
 0x3c3   : >> { %1304 = vadd.xlane.f32.xlu0 %v1303_v34  ;;  %v2924_v14 = vpop.xlane.xlu0 %2923  ;;  %6142 = vmatprep.mubr.msk.f32.mxu0 %vm7042_vm0, %v9883_v60 }
 0x3c4   : >> { %v2959_v19 = vmul.f32 1.442695, %v2954_v8  ;;  %v8833_v58 = vmax.f32 %v8731_v45, %v2924_v14  ;;  %6562 = vmatpush3.bf16.msra.mxu0 %v6561_v51  ;;  %v8835_v41 = vpop.eup %6779  ;;  %v1630_v51 = vsel %vm569_vm3, %v8461_v59, 0.0  ;;  %v1639_v14 = vsel %vm569_vm3, %v8532_v25, 0.0 }
 0x3c5   : >> { %6184 = vmatprep.subr.mxu0 %v9883_v60 }
 0x3c6   : >> { %v2955_v5 = vsub.f32 %v9922_v16, %v8833_v58  ;;  %6143 = vmatmul.mubr.msk.f32.gmra.mrb[64].mxu0 %vm569_vm3, %v8835_v41  ;;  %1634 = vadd.xlane.f32.xlu1 %v1633_v9  ;;  %6785 = vpow2.f32 %v2959_v19  ;;  %v9923_v19 = vld [vmem:[#allocation19_spill] sm:$0xff] }
 0x3c7   : >> { %1631 = vadd.xlane.f32.xlu0 %v1630_v51  ;;  %v2927_v2 = vpop.xlane.xlu1 %2926  ;;  %6145 = vmatprep.mubr.msk.f32.mxu0 %vm7042_vm0, %v9883_v60 }
 0x3c8   : >> { %v2961_v39 = vmul.f32 1.442695, %v2955_v5  ;;  %v8852_v8 = vmax.f32 %v8752_v57, %v2927_v2  ;;  %6185 = vmatpush3.msk.msra.mxu0 %vm661_vm5, %v5332_v27  ;;  %v8855_v34 = vpop.eup %6781  ;;  %v1636_v27 = vsel %vm569_vm3, %v8508_v20, 0.0  ;;  %v1966_v2 = vsel %vm569_vm3, %v8580_v17, 0.0 }
 0x3c9   : >> { %6571 = vmatprep.subr.bf16.mxu0 %v9886_v13 }
 0x3ca   : >> { %v2956_v9 = vsub.f32 %v9923_v19, %v8852_v8  ;;  %6146 = vmatmul.mubr.msk.f32.gmra.mrb[66].mxu0 %vm569_vm3, %v8855_v34  ;;  %1640 = vadd.xlane.f32.xlu1 %v1639_v14  ;;  %6787 = vpow2.f32 %v2961_v39  ;;  %v5364_v19 = vld [vmem:[%s7294_s26 + $0x3c0] sm:$0xff]  ;;  %v9924_v39 = vld [vmem:[#allocation20_spill] sm:$0xff] }
 0x3cb   : >> { %1637 = vadd.xlane.f32.xlu0 %v1636_v27  ;;  %v2930_v16 = vpop.xlane.xlu0 %2929  ;;  %6148 = vmatprep.mubr.msk.f32.mxu0 %vm7042_vm0, %v9883_v60  ;;  %v6572_v20 = vpack.c.bf16 %v5365_v54, %v5364_v19 }
 0x3cc   : >> { %v2963_v25 = vmul.f32 1.442695, %v2956_v9  ;;  %v8871_v5 = vmax.f32 %v8775_v49, %v2930_v16  ;;  %v8873_v51 = vpop.eup %6783  ;;  %v1642_v9 = vsel %vm582_vm4, %v8556_v63, 0.0  ;;  %v5403_v63 = vld [vmem:[%s7294_s26 + $0x450] sm:$0xff] }
 0x3ce   : >> { %v2957_v14 = vsub.f32 %v9924_v39, %v8871_v5  ;;  %6149 = vmatmul.mubr.msk.f32.gmra.mrb[68].mxu0 %vm569_vm3, %v8873_v51  ;;  %1967 = vadd.xlane.f32.xlu1 %v1966_v2  ;;  %6789 = vpow2.f32 %v2963_v25  ;;  %v1972_v39 = vsel %vm569_vm3, %v8627_v23, 0.0  ;;  %v9925_v25 = vld [vmem:[#allocation21_spill] sm:$0xff] }
 0x3cf   : >> { %1643 = vadd.xlane.f32.xlu0 %v1642_v9  ;;  %v2933_v17 = vpop.xlane.xlu1 %2932  ;;  %6186 = vmatprep.mubr.msk.f32.mxu0 %vm7042_vm0, %v9883_v60  ;;  %v6575_v9 = vpack.c.bf16 %v5367_v22, %v5366_v55  ;;  %v1975_v55 = vsel %vm569_vm3, %v8650_v10, 0.0  ;;  %v5368_v10 = vld [vmem:[%s7294_s26 + $0x3e0] sm:$0x7f] }
 0x3d0   : >> { %v2965_v27 = vmul.f32 1.442695, %v2957_v14  ;;  %v8890_v16 = vmax.f32 %v8796_v4, %v2933_v17  ;;  %v8892_v59 = vpop.eup %6785  ;;  %v1969_v14 = vsel %vm569_vm3, %v8603_v0, 0.0 }
 0x3d2   : >> { %v2958_v2 = vsub.f32 %v9925_v25, %v8890_v16  ;;  %6187 = vmatmul.mubr.msk.f32.vlgmr.msra.gmra.mrb[70].mxu0 %vm569_vm3, %v8892_v59  ;;  %1973 = vadd.xlane.f32.xlu1 %v1972_v39  ;;  %6791 = vpow2.f32 %v2965_v27  ;;  %v1978_v25 = vsel %vm582_vm4, %v8668_v52, 0.0  ;;  %v9926_v27 = vld [vmem:[#allocation22_spill] sm:$0xff] }
 0x3d3   : >> { %1970 = vadd.xlane.f32.xlu0 %v1969_v14  ;;  %v3257_v54 = vpop.xlane.xlu0 %3256  ;;  %6189 = vmatprep.mubr.msk.f32.mxu0 %vm7042_vm0, %v9883_v60  ;;  %v2305_v14 = vsel %vm569_vm3, %v8710_v3, 0.0 }
 0x3d4   : >> { %v2967_v23 = vmul.f32 1.442695, %v2958_v2  ;;  %v8909_v19 = vmax.f32 %v8815_v18, %v3257_v54  ;;  %6573 = vmatpush3.bf16.msra.mxu0 %v6572_v20  ;;  %v8911_v17 = vpop.eup %6787  ;;  %v5402_v54 = vld [vmem:[%s7294_s26 + $0x448] sm:$0xff] }
 0x3d5   : >> { %6574 = vmatprep.subr.bf16.mxu0 %v9886_v13 }
 0x3d6   : >> { %v3290_v39 = vsub.f32 %v9926_v27, %v8909_v19  ;;  %6190 = vmatmul.mubr.msk.f32.gmra.mrb[72].mxu0 %vm569_vm3, %v8911_v17  ;;  %1979 = vadd.xlane.f32.xlu1 %v1978_v25  ;;  %6793 = vpow2.f32 %v2967_v23  ;;  %v9927_v23 = vld [vmem:[#allocation23_spill] sm:$0xff] }
 0x3d7   : >> { %1976 = vadd.xlane.f32.xlu0 %v1975_v55  ;;  %v3260_v22 = vpop.xlane.xlu1 %3259  ;;  %6192 = vmatprep.mubr.msk.f32.mxu0 %vm7042_vm0, %v9883_v60 }
 0x3d8   : >> { %v3295_v52 = vmul.f32 1.442695, %v3290_v39  ;;  %v8927_v20 = vmax.f32 %v8833_v58, %v3260_v22  ;;  %6576 = vmatpush3.bf16.msra.mxu0 %v6575_v9  ;;  %v8929_v2 = vpop.eup %6789  ;;  %v2302_v9 = vsel %vm569_vm3, %v8687_v1, 0.0  ;;  %v2311_v22 = vsel %vm569_vm3, %v8756_v38, 0.0  ;;  %v5401_v1 = vld [vmem:[%s7294_s26 + $0x440] sm:$0xff] }
 0x3d9   : >> { %6234 = vmatprep.subr.mxu0 %v9883_v60 }
 0x3da   : >> { %v3291_v25 = vsub.f32 %v9927_v23, %v8927_v20  ;;  %6193 = vmatmul.mubr.msk.f32.gmra.mrb[74].mxu0 %vm569_vm3, %v8929_v2  ;;  %2306 = vadd.xlane.f32.xlu1 %v2305_v14  ;;  %6795 = vpow2.f32 %v3295_v52  ;;  %v9928_v52 = vld [vmem:[#allocation25_spill] sm:$0xff] }
 0x3db   : >> { %2303 = vadd.xlane.f32.xlu0 %v2302_v9  ;;  %v3263_v27 = vpop.xlane.xlu0 %3262  ;;  %6195 = vmatprep.mubr.msk.f32.mxu0 %vm7042_vm0, %v9883_v60 }
 0x3dc   : >> { %v3297_v3 = vmul.f32 1.442695, %v3291_v25  ;;  %v8946_v39 = vmax.f32 %v8852_v8, %v3263_v27  ;;  %6235 = vmatpush3.msk.msra.mxu0 %vm661_vm5, %v5368_v10  ;;  %v8949_v55 = vpop.eup %6791  ;;  %v2308_v10 = vsel %vm569_vm3, %v8734_v24, 0.0  ;;  %v2638_v27 = vsel %vm569_vm3, %v8798_v43, 0.0 }
 0x3dd   : >> { %6585 = vmatprep.subr.bf16.mxu0 %v9886_v13 }
 0x3de   : >> { %v3292_v14 = vsub.f32 %v9928_v52, %v8946_v39  ;;  %6196 = vmatmul.mubr.msk.f32.gmra.mrb[76].mxu0 %vm569_vm3, %v8949_v55  ;;  %2312 = vadd.xlane.f32.xlu1 %v2311_v22  ;;  %6797 = vpow2.f32 %v3297_v3  ;;  %v5400_v52 = vld [vmem:[%s7294_s26 + $0x438] sm:$0xff]  ;;  %v9929_v3 = vld [vmem:[#allocation27_spill] sm:$0xff] }
 0x3df   : >> { %2309 = vadd.xlane.f32.xlu0 %v2308_v10  ;;  %v3266_v23 = vpop.xlane.xlu1 %3265  ;;  %6198 = vmatprep.mubr.msk.f32.mxu0 %vm7042_vm0, %v9883_v60  ;;  %v6586_v24 = vpack.c.bf16 %v5401_v1, %v5400_v52 }
 0x3e0   : >> { %v3299_v38 = vmul.f32 1.442695, %v3292_v14  ;;  %v8965_v25 = vmax.f32 %v8871_v5, %v3266_v23  ;;  %v8967_v9 = vpop.eup %6793  ;;  %v2314_v14 = vsel %vm582_vm4, %v8779_v46, 0.0 }
 0x3e2   : >> { %v3293_v22 = vsub.f32 %v9929_v3, %v8965_v25  ;;  %6199 = vmatmul.mubr.msk.f32.gmra.mrb[78].mxu0 %vm569_vm3, %v8967_v9  ;;  %2639 = vadd.xlane.f32.xlu1 %v2638_v27  ;;  %6799 = vpow2.f32 %v3299_v38  ;;  %v2644_v3 = vsel %vm569_vm3, %v8835_v41, 0.0  ;;  %v9930_v38 = vld [vmem:[#allocation30_spill] sm:$0xff] }
 0x3e3   : >> { %2315 = vadd.xlane.f32.xlu0 %v2314_v14  ;;  %v3269_v43 = vpop.xlane.xlu0 %3268  ;;  %6236 = vmatprep.mubr.msk.f32.mxu0 %vm7042_vm0, %v9883_v60  ;;  %v6589_v14 = vpack.c.bf16 %v5403_v63, %v5402_v54  ;;  %v2647_v63 = vsel %vm569_vm3, %v8855_v34, 0.0 }
 0x3e4   : >> { %v3301_v10 = vmul.f32 1.442695, %v3293_v22  ;;  %v8984_v23 = vmax.f32 %v8890_v16, %v3269_v43  ;;  %v8986_v0 = vpop.eup %6795  ;;  %v2641_v22 = vsel %vm569_vm3, %v8817_v37, 0.0 }
 0x3e6   : >> { %v3294_v27 = vsub.f32 %v9930_v38, %v8984_v23  ;;  %6237 = vmatmul.mubr.msk.f32.vlgmr.msra.gmra.mrb[80].mxu0 %vm569_vm3, %v8986_v0  ;;  %2645 = vadd.xlane.f32.xlu1 %v2644_v3  ;;  %6801 = vpow2.f32 %v3301_v10  ;;  %v2650_v38 = vsel %vm582_vm4, %v8873_v51, 0.0 }
 0x3e7   : >> { %2642 = vadd.xlane.f32.xlu0 %v2641_v22  ;;  %v3593_v1 = vpop.xlane.xlu1 %3592  ;;  %6239 = vmatprep.mubr.msk.f32.mxu0 %vm7042_vm0, %v9883_v60 }
 0x3e8   : >> { %v3303_v41 = vmul.f32 1.442695, %v3294_v27  ;;  %v9003_v52 = vmax.f32 %v8909_v19, %v3593_v1  ;;  %6587 = vmatpush3.bf16.msra.mxu0 %v6586_v24  ;;  %v9005_v43 = vpop.eup %6797  ;;  %v5404_v27 = vld [vmem:[%s7294_s26 + $0x458] sm:$0x7f]  ;;  %v2974_v1 = vsel %vm569_vm3, %v8892_v59, 0.0 }
 0x3e9   : >> { %6588 = vmatprep.subr.bf16.mxu0 %v9886_v13 }
 0x3ea   : >> { %v3626_v10 = vsub.f32 %v8176_v33, %v9003_v52  ;;  %6240 = vmatmul.mubr.msk.f32.gmra.mrb[82].mxu0 %vm569_vm3, %v9005_v43  ;;  %2651 = vadd.xlane.f32.xlu1 %v2650_v38  ;;  %6803 = vpow2.f32 %v3303_v41  ;;  %v2977_v33 = vsel %vm569_vm3, %v8911_v17, 0.0 }
 0x3eb   : >> { %2648 = vadd.xlane.f32.xlu0 %v2647_v63  ;;  %v3596_v54 = vpop.xlane.xlu0 %3595  ;;  %6242 = vmatprep.mubr.msk.f32.mxu0 %vm7042_vm0, %v9883_v60  ;;  %v2980_v63 = vsel %vm569_vm3, %v8929_v2, 0.0  ;;  %v5439_v2 = vld [vmem:[%s7294_s26 + $0x4c8] sm:$0xff] }
 0x3ec   : >> { %v3631_v51 = vmul.f32 1.442695, %v3626_v10  ;;  %v9021_v24 = vmax.f32 %v8927_v20, %v3596_v54  ;;  %6590 = vmatpush3.bf16.msra.mxu0 %v6589_v14  ;;  %v6800_v3 = vpop.eup %6799 }
 0x3ed   : >> { %6284 = vmatprep.subr.mxu0 %v9883_v60 }
 0x3ee   : >> { %v3627_v22 = vsub.f32 %v8207_v42, %v9021_v24  ;;  %6243 = vmatmul.mubr.msk.f32.gmra.mrb[84].mxu0 %vm569_vm3, %v6800_v3  ;;  %2978 = vadd.xlane.f32.xlu1 %v2977_v33  ;;  %6805 = vpow2.f32 %v3631_v51  ;;  %v2983_v42 = vsel %vm569_vm3, %v8949_v55, 0.0 }
 0x3ef   : >> { %2975 = vadd.xlane.f32.xlu0 %v2974_v1  ;;  %6245 = vmatprep.mubr.msk.f32.mxu0 %vm7042_vm0, %v9883_v60 }
 0x3f0   : >> { %v3599_v41 = vpop.xlane.xlu1 %3598  ;;  %v3633_v17 = vmul.f32 1.442695, %v3627_v22  ;;  %6285 = vmatpush3.msk.msra.mxu0 %vm661_vm5, %v5404_v27  ;;  %v6802_v38 = vpop.eup %6801  ;;  %v5436_v27 = vld [vmem:[%s7294_s26 + $0x4b0] sm:$0xff]  ;;  %v5437_v22 = vld [vmem:[%s7294_s26 + $0x4b8] sm:$0xff] }
 0x3f1   : >> { %v9037_v14 = vmax.f32 %v8946_v39, %v3599_v41  ;;  %6599 = vmatprep.subr.bf16.mxu0 %v9886_v13  ;;  %v2986_v41 = vsel %vm582_vm4, %v8967_v9, 0.0 }
 0x3f2   : >> { %6246 = vmatmul.mubr.msk.f32.gmra.mrb[86].mxu0 %vm569_vm3, %v6802_v38  ;;  %2984 = vadd.xlane.f32.xlu1 %v2983_v42  ;;  %6807 = vpow2.f32 %v3633_v17 }
 0x3f3   : >> { %v3628_v10 = vsub.f32 %v8239_v11, %v9037_v14  ;;  %2981 = vadd.xlane.f32.xlu0 %v2980_v63  ;;  %v3602_v54 = vpop.xlane.xlu0 %3601  ;;  %6248 = vmatprep.mubr.msk.f32.mxu0 %vm7042_vm0, %v9883_v60  ;;  %v3310_v11 = vsel %vm569_vm3, %v8986_v0, 0.0 }
 0x3f4   : >> { %v9053_v51 = vmax.f32 %v8965_v25, %v3602_v54  ;;  %v6804_v33 = vpop.eup %6803  ;;  %v5438_v54 = vld [vmem:[%s7294_s26 + $0x4c0] sm:$0xff] }
 0x3f5   : >> { %v3635_v55 = vmul.f32 1.442695, %v3628_v10  ;;  %v6600_v10 = vpack.c.bf16 %v5437_v22, %v5436_v27 }
 0x3f6   : >> { %v3629_v1 = vsub.f32 %v8272_v29, %v9053_v51  ;;  %6249 = vmatmul.mubr.msk.f32.gmra.mrb[88].mxu0 %vm569_vm3, %v6804_v33  ;;  %3311 = vadd.xlane.f32.xlu1 %v3310_v11  ;;  %v3316_v29 = vsel %vm569_vm3, %v6800_v3, 0.0  ;;  %v3313_v11 = vsel %vm569_vm3, %v9005_v43, 0.0  ;;  %v9947_v43 = vld [vmem:[#allocation24_spill] sm:$0xff] }
 0x3f7   : >> { %6809 = vpow2.f32 %v3635_v55  ;;  %2987 = vadd.xlane.f32.xlu0 %v2986_v41  ;;  %v3605_v17 = vpop.xlane.xlu1 %3604  ;;  %6286 = vmatprep.mubr.msk.f32.mxu0 %vm7042_vm0, %v9883_v60 }
 0x3f8   : >> { %v3637_v0 = vmul.f32 1.442695, %v3629_v1  ;;  %v9069_v42 = vmax.f32 %v8984_v23, %v3605_v17  ;;  %v6806_v63 = vpop.eup %6805  ;;  %v6603_v1 = vpack.c.bf16 %v5439_v2, %v5438_v54 }
 0x3fa   : >> { %v3630_v55 = vsub.f32 %v8305_v48, %v9069_v42  ;;  %6287 = vmatmul.mubr.msk.f32.vlgmr.msra.gmra.mrb[90].mxu0 %vm569_vm3, %v6806_v63  ;;  %3317 = vadd.xlane.f32.xlu1 %v3316_v29  ;;  %6811 = vpow2.f32 %v3637_v0  ;;  %v3322_v48 = vsel %vm582_vm4, %v6804_v33, 0.0  ;;  %v3319_v0 = vsel %vm569_vm3, %v6802_v38, 0.0 }
 0x3fb   : >> { %3314 = vadd.xlane.f32.xlu0 %v3313_v11  ;;  %v3929_v27 = vpop.xlane.xlu0 %3928  ;;  %6289 = vmatprep.mubr.msk.f32.mxu0 %vm7042_vm0, %v9883_v60  ;;  %v3646_v11 = vsel %vm569_vm3, %v6806_v63, 0.0 }
 0x3fc   : >> { %v3639_v3 = vmul.f32 1.442695, %v3630_v55  ;;  %v9084_v22 = vmax.f32 %v9003_v52, %v3929_v27  ;;  %6601 = vmatpush3.bf16.msra.mxu0 %v6600_v10  ;;  %v6808_v41 = vpop.eup %6807 }
 0x3fd   : >> { %6602 = vmatprep.subr.bf16.mxu0 %v9886_v13  ;;  %v3649_v54 = vsel %vm569_vm3, %v6808_v41, 0.0 }
 0x3fe   : >> { %9931 = vst [vmem:[#allocation12_spill] sm:$0xff] %v9084_v22  ;;  %v3962_v17 = vsub.f32 %v8334_v30, %v9084_v22  ;;  %6290 = vmatmul.mubr.msk.f32.gmra.mrb[92].mxu0 %vm569_vm3, %v6808_v41  ;;  %3323 = vadd.xlane.f32.xlu1 %v3322_v48  ;;  %6813 = vpow2.f32 %v3639_v3  ;;  %v5440_v30 = vld [vmem:[%s7294_s26 + $0x4d0] sm:$0x7f] }
 0x3ff   : >> { %3320 = vadd.xlane.f32.xlu0 %v3319_v0  ;;  %v3932_v2 = vpop.xlane.xlu1 %3931  ;;  %6292 = vmatprep.mubr.msk.f32.mxu0 %vm7042_vm0, %v9883_v60 }
 0x400   : >> { %v3967_v33 = vmul.f32 1.442695, %v3962_v17  ;;  %v9097_v10 = vmax.f32 %v9021_v24, %v3932_v2  ;;  %6604 = vmatpush3.bf16.msra.mxu0 %v6603_v1 }
 0x401   : >> { %v6810_v29 = vpop.eup %6809  ;;  %6334 = vmatprep.subr.mxu0 %v9883_v60 }
 0x402   : >> { %9932 = vst [vmem:[#allocation11_spill] sm:$0xff] %v9097_v10  ;;  %v3963_v55 = vsub.f32 %v8358_v50, %v9097_v10  ;;  %6293 = vmatmul.mubr.msk.f32.gmra.mrb[94].mxu0 %vm569_vm3, %v6810_v29  ;;  %3650 = vadd.xlane.f32.xlu1 %v3649_v54  ;;  %6815 = vpow2.f32 %v3967_v33  ;;  %v3652_v48 = vsel %vm569_vm3, %v6810_v29, 0.0  ;;  %v5475_v29 = vld [vmem:[%s7294_s26 + $0x540] sm:$0xff]  ;;  %v9937_v50 = vld [vmem:[#allocation56_spill] sm:$0xff] }
 0x403   : >> { %3647 = vadd.xlane.f32.xlu0 %v3646_v11  ;;  %v3935_v27 = vpop.xlane.xlu0 %3934  ;;  %6295 = vmatprep.mubr.msk.f32.mxu0 %vm7042_vm0, %v9883_v60 }
 0x404   : >> { %v3969_v3 = vmul.f32 1.442695, %v3963_v55  ;;  %v9111_v1 = vmax.f32 %v9037_v14, %v3935_v27  ;;  %6335 = vmatpush3.msk.msra.mxu0 %vm661_vm5, %v5440_v30  ;;  %v6812_v41 = vpop.eup %6811  ;;  %v5473_v30 = vld [vmem:[%s7294_s26 + $0x530] sm:$0xff]  ;;  %v9935_v55 = vld [vmem:[#allocation54_spill] sm:$0xff] }
 0x405   : >> { %6613 = vmatprep.subr.bf16.mxu0 %v9886_v13  ;;  %v3655_v17 = vsel %vm569_vm3, %v6812_v41, 0.0 }
 0x406   : >> { %9933 = vst [vmem:[#allocation13_spill] sm:$0xff] %v9111_v1  ;;  %v3964_v63 = vsub.f32 %v8381_v35, %v9111_v1  ;;  %6296 = vmatmul.mubr.msk.f32.gmra.mrb[96].mxu0 %vm569_vm3, %v6812_v41  ;;  %6817 = vpow2.f32 %v3969_v3  ;;  %3656 = vadd.xlane.f32.xlu1 %v3655_v17  ;;  %v5472_v35 = vld [vmem:[%s7294_s26 + $0x528] sm:$0xff] }
 0x407   : >> { %3653 = vadd.xlane.f32.xlu0 %v3652_v48  ;;  %v3938_v0 = vpop.xlane.xlu1 %3937  ;;  %6298 = vmatprep.mubr.msk.f32.mxu0 %vm7042_vm0, %v9883_v60  ;;  %v6614_v48 = vpack.c.bf16 %v5473_v30, %v5472_v35 }
 0x408   : >> { %v3971_v2 = vmul.f32 1.442695, %v3964_v63  ;;  %v9123_v33 = vmax.f32 %v9053_v51, %v3938_v0  ;;  %v6814_v54 = vpop.eup %6813  ;;  %v5474_v0 = vld [vmem:[%s7294_s26 + $0x538] sm:$0xff] }
 0x409   : >> { %v3658_v27 = vsel %vm582_vm4, %v6814_v54, 0.0 }
 0x40a   : >> { %9934 = vst [vmem:[#allocation14_spill] sm:$0xff] %v9123_v33  ;;  %v3965_v11 = vsub.f32 %v9935_v55, %v9123_v33  ;;  %6299 = vmatmul.mubr.msk.f32.gmra.mrb[98].mxu0 %vm569_vm3, %v6814_v54  ;;  %6819 = vpow2.f32 %v3971_v2 }
 0x40b   : >> { %3659 = vadd.xlane.f32.xlu0 %v3658_v27  ;;  %v3941_v3 = vpop.xlane.xlu0 %3940  ;;  %6336 = vmatprep.mubr.msk.f32.mxu0 %vm7042_vm0, %v9883_v60  ;;  %v6617_v27 = vpack.c.bf16 %v5475_v29, %v5474_v0 }
 0x40c   : >> { %v3973_v41 = vmul.f32 1.442695, %v3965_v11  ;;  %v9138_v63 = vmax.f32 %v9069_v42, %v3941_v3  ;;  %v6816_v17 = vpop.eup %6815 }
 0x40d   : >> { %v3982_v2 = vsel %vm569_vm3, %v6816_v17, 0.0 }
 0x40e   : >> { %9936 = vst [vmem:[#allocation15_spill] sm:$0xff] %v9138_v63  ;;  %v3966_v54 = vsub.f32 %v9937_v50, %v9138_v63  ;;  %6337 = vmatmul.mubr.msk.f32.vlgmr.msra.gmra.mrb[100].mxu0 %vm569_vm3, %v6816_v17  ;;  %6821 = vpow2.f32 %v3973_v41  ;;  %3983 = vadd.xlane.f32.xlu1 %v3982_v2  ;;  %v9939_v41 = vld [vmem:[#allocation58_spill] sm:$0xff] }
 0x40f   : >> { %v4265_v11 = vpop.xlane.xlu1 %4264  ;;  %6339 = vmatprep.mubr.msk.f32.mxu0 %vm7042_vm0, %v9883_v60  ;;  %6615 = vmatpush3.bf16.msra.mxu0 %v6614_v48 }
 0x410   : >> { %v3975_v35 = vmul.f32 1.442695, %v3966_v54  ;;  %v9151_v30 = vmax.f32 %v9084_v22, %v4265_v11  ;;  %v6818_v3 = vpop.eup %6817  ;;  %6616 = vmatprep.subr.bf16.mxu0 %v9886_v13  ;;  %v5476_v11 = vld [vmem:[%s7294_s26 + $0x548] sm:$0x7f] }
 0x411   : >> { %v3985_v2 = vsel %vm569_vm3, %v6818_v3, 0.0 }
 0x412   : >> { %9938 = vst [vmem:[#allocation16_spill] sm:$0xff] %v9151_v30  ;;  %v4298_v17 = vsub.f32 %v9939_v41, %v9151_v30  ;;  %6340 = vmatmul.mubr.msk.f32.gmra.mrb[102].mxu0 %vm569_vm3, %v6818_v3  ;;  %6823 = vpow2.f32 %v3975_v35  ;;  %3986 = vadd.xlane.f32.xlu0 %v3985_v2  ;;  %v9941_v3 = vld [vmem:[#allocation59_spill] sm:$0xff] }
 0x413   : >> { %v4268_v54 = vpop.xlane.xlu0 %4267  ;;  %6342 = vmatprep.mubr.msk.f32.mxu0 %vm7042_vm0, %v9883_v60  ;;  %6618 = vmatpush3.bf16.msra.mxu0 %v6617_v27 }
 0x414   : >> { %v4303_v29 = vmul.f32 1.442695, %v4298_v17  ;;  %v9163_v48 = vmax.f32 %v9097_v10, %v4268_v54  ;;  %v6820_v0 = vpop.eup %6819  ;;  %6384 = vmatprep.subr.mxu0 %v9883_v60 }
 0x415   : >> { %v3988_v2 = vsel %vm569_vm3, %v6820_v0, 0.0 }
 0x416   : >> { %9940 = vst [vmem:[#allocation17_spill] sm:$0xff] %v9163_v48  ;;  %v4299_v35 = vsub.f32 %v9941_v3, %v9163_v48  ;;  %6343 = vmatmul.mubr.msk.f32.gmra.mrb[104].mxu0 %vm569_vm3, %v6820_v0  ;;  %6825 = vpow2.f32 %v4303_v29  ;;  %3989 = vadd.xlane.f32.xlu1 %v3988_v2  ;;  %v9943_v0 = vld [vmem:[#allocation60_spill] sm:$0xff]  ;;  %v9948_v3 = vld [vmem:[#allocation37_spill] sm:$0xff] }
 0x417   : >> { %v4271_v17 = vpop.xlane.xlu1 %4270  ;;  %6345 = vmatprep.mubr.msk.f32.mxu0 %vm7042_vm0, %v9883_v60  ;;  %6385 = vmatpush3.msk.msra.mxu0 %vm661_vm5, %v5476_v11  ;;  %v9949_v38 = vsub.f32 %v9947_v43, %v9948_v3 }
 0x418   : >> { %v4305_v27 = vmul.f32 1.442695, %v4299_v35  ;;  %v9176_v54 = vmax.f32 %v9111_v1, %v4271_v17  ;;  %v6822_v41 = vpop.eup %6821  ;;  %6627 = vmatprep.subr.bf16.mxu0 %v9886_v13  ;;  %v9986_v1 = vld [vmem:[#allocation50_spill] sm:$0xff] }
 0x419   : >> { %v3991_v2 = vsel %vm569_vm3, %v6822_v41, 0.0  ;;  %v1264_v9 = vmul.f32 1.442695, %v9949_v38 }
 0x41a   : >> { %9942 = vst [vmem:[#allocation18_spill] sm:$0xff] %v9176_v54  ;;  %v4300_v29 = vsub.f32 %v9943_v0, %v9176_v54  ;;  %6346 = vmatmul.mubr.msk.f32.gmra.mrb[106].mxu0 %vm569_vm3, %v6822_v41  ;;  %6827 = vpow2.f32 %v4305_v27  ;;  %3992 = vadd.xlane.f32.xlu0 %v3991_v2  ;;  %v9945_v0 = vld [vmem:[#allocation61_spill] sm:$0xff] }
 0x41b   : >> { %v4274_v35 = vpop.xlane.xlu0 %4273  ;;  %6348 = vmatprep.mubr.msk.f32.mxu0 %vm7042_vm0, %v9883_v60 }
 0x41c   : >> { %v4307_v11 = vmul.f32 1.442695, %v4300_v29  ;;  %v9189_v17 = vmax.f32 %v9123_v33, %v4274_v35  ;;  %v6824_v50 = vpop.eup %6823 }
 0x41d   : >> { %v3994_v41 = vsel %vm582_vm4, %v6824_v50, 0.0 }
 0x41e   : >> { %9944 = vst [vmem:[#allocation19_spill] sm:$0xff] %v9189_v17  ;;  %v4301_v55 = vsub.f32 %v9945_v0, %v9189_v17  ;;  %6349 = vmatmul.mubr.msk.f32.gmra.mrb[108].mxu0 %vm569_vm3, %v6824_v50  ;;  %6829 = vpow2.f32 %v4307_v11  ;;  %3995 = vadd.xlane.f32.xlu1 %v3994_v41  ;;  %v9950_v50 = vld [vmem:[#allocation62_spill] sm:$0xff] }
 0x41f   : >> { %v4277_v27 = vpop.xlane.xlu1 %4276  ;;  %6386 = vmatprep.mubr.msk.f32.mxu0 %vm7042_vm0, %v9883_v60  ;;  %v9952_v0 = vld [vmem:[#allocation26_spill] sm:$0xff] }
 0x420   : >> { %v4309_v29 = vmul.f32 1.442695, %v4301_v55  ;;  %v9200_v2 = vmax.f32 %v9138_v63, %v4277_v27  ;;  %v6826_v35 = vpop.eup %6825 }
 0x421   : >> { %v4318_v41 = vsel %vm569_vm3, %v6826_v35, 0.0 }
 0x422   : >> { %9946 = vst [vmem:[#allocation20_spill] sm:$0xff] %v9200_v2  ;;  %v4302_v11 = vsub.f32 %v9950_v50, %v9200_v2  ;;  %6387 = vmatmul.mubr.msk.f32.vlgmr.msra.gmra.mrb[110].mxu0 %vm569_vm3, %v6826_v35  ;;  %6831 = vpow2.f32 %v4309_v29  ;;  %4319 = vadd.xlane.f32.xlu0 %v4318_v41  ;;  %v9953_v50 = vld [vmem:[#allocation41_spill] sm:$0xff] }
 0x423   : >> { %v4601_v55 = vpop.xlane.xlu0 %4600  ;;  %6389 = vmatprep.mubr.msk.f32.mxu0 %vm7042_vm0, %v9883_v60  ;;  %6629 = vmatpush3.bf16.msra.mxu0 %v8705_v40  ;;  %6833 = vpow2.f32 %v1264_v9  ;;  %v9954_v34 = vsub.f32 %v9952_v0, %v9953_v50  ;;  %v9956_v0 = vld [vmem:[#allocation28_spill] sm:$0xff] }
 0x424   : >> { %v4311_v27 = vmul.f32 1.442695, %v4302_v11  ;;  %v9214_v43 = vmax.f32 %v9151_v30, %v4601_v55  ;;  %v6828_v38 = vpop.eup %6827  ;;  %6630 = vmatprep.subr.bf16.mxu0 %v9886_v13 }
 0x425   : >> { %v1266_v59 = vmul.f32 1.442695, %v9954_v34  ;;  %v4321_v11 = vsel %vm569_vm3, %v6828_v38, 0.0 }
 0x426   : >> { %9951 = vst [vmem:[#allocation21_spill] sm:$0xff] %v9214_v43  ;;  %v4634_v35 = vsub.f32 %v8572_v6, %v9214_v43  ;;  %6390 = vmatmul.mubr.msk.f32.gmra.mrb[112].mxu0 %vm569_vm3, %v6828_v38  ;;  %6835 = vpow2.f32 %v4311_v27  ;;  %4322 = vadd.xlane.f32.xlu1 %v4321_v11  ;;  %v9957_v6 = vld [vmem:[#allocation45_spill] sm:$0xff] }
 0x427   : >> { %v4604_v40 = vpop.xlane.xlu1 %4603  ;;  %6392 = vmatprep.mubr.msk.f32.mxu0 %vm7042_vm0, %v9883_v60  ;;  %6632 = vmatpush3.bf16.msra.mxu0 %v8728_v47  ;;  %6837 = vpow2.f32 %v1266_v59  ;;  %v9958_v41 = vsub.f32 %v9956_v0, %v9957_v6  ;;  %v9961_v0 = vld [vmem:[#allocation49_spill] sm:$0xff] }
 0x428   : >> { %v4639_v9 = vmul.f32 1.442695, %v4634_v35  ;;  %v9230_v34 = vmax.f32 %v9163_v48, %v4604_v40  ;;  %v6830_v13 = vpop.eup %6829  ;;  %6434 = vmatprep.subr.mxu0 %v9883_v60 }
 0x429   : >> { %v1268_v55 = vmul.f32 1.442695, %v9958_v41  ;;  %v4324_v35 = vsel %vm569_vm3, %v6830_v13, 0.0 }
 0x42a   : >> { %9955 = vst [vmem:[#allocation22_spill] sm:$0xff] %v9230_v34  ;;  %v4635_v38 = vsub.f32 %v8596_v26, %v9230_v34  ;;  %6393 = vmatmul.mubr.msk.f32.gmra.mrb[114].mxu0 %vm569_vm3, %v6830_v13  ;;  %6839 = vpow2.f32 %v4639_v9  ;;  %4325 = vadd.xlane.f32.xlu0 %v4324_v35  ;;  %v9960_v26 = vld [vmem:[#allocation31_spill] sm:$0xff] }
 0x42b   : >> { %v4607_v47 = vpop.xlane.xlu0 %4606  ;;  %6395 = vmatprep.mubr.msk.f32.mxu0 %vm7042_vm0, %v9883_v60  ;;  %6435 = vmatpush3.msk.msra.mxu0 %vm661_vm5, %v8772_v31  ;;  %6841 = vpow2.f32 %v1268_v55  ;;  %v9962_v41 = vsub.f32 %v9960_v26, %v9961_v0 }
 0x42c   : >> { %v4641_v59 = vmul.f32 1.442695, %v4635_v38  ;;  %v9246_v11 = vmax.f32 %v9176_v54, %v4607_v47  ;;  %v6832_v40 = vpop.eup %6831  ;;  %v9963_v38 = vld [vmem:[#allocation35_spill] sm:$0xff] }
 0x42d   : >> { %v1270_v27 = vmul.f32 1.442695, %v9962_v41  ;;  %v1067_v13 = vpop.f32.mrb[10].mxu0  ;;  %v9259_v46 = vpop.eup %6833  ;;  %v4327_v31 = vsel %vm569_vm3, %v6832_v40, 0.0 }
 0x42e   : >> { %9959 = vst [vmem:[#allocation23_spill] sm:$0xff] %v9246_v11  ;;  %v4636_v35 = vsub.f32 %v8619_v53, %v9246_v11  ;;  %v1091_v29 = vadd.f32 %v1067_v13, %v9963_v38  ;;  %v5888_v47 = vpop.f32.mrb[11].mxu0  ;;  %6396 = vmatmul.mubr.msk.f32.gmra.mrb[116].mxu0 %vm569_vm3, %v6832_v40  ;;  %6843 = vpow2.f32 %v4641_v59  ;;  %4328 = vadd.xlane.f32.xlu1 %v4327_v31  ;;  %v9965_v38 = vld [vmem:[#allocation34_spill] sm:$0xff]  ;;  %v9968_v31 = vld [vmem:[#allocation39_spill] sm:$0xff] }
 0x42f   : >> { %v4610_v55 = vpop.xlane.xlu1 %4609  ;;  %6398 = vmatprep.mubr.msk.f32.mxu0 %vm7042_vm0, %v9883_v60  ;;  %6845 = vpow2.f32 %v1270_v27  ;;  %v9966_v47 = vld [vmem:[#allocation51_spill] sm:$0xff] }
 0x430   : >> { %v4643_v26 = vmul.f32 1.442695, %v4636_v35  ;;  %v9265_v41 = vmax.f32 %v9189_v17, %v4610_v55  ;;  %v9268_v53 = vmul.f32 %v9259_v46, %v1091_v29  ;;  %v6836_v13 = vpop.eup %6835  ;;  %v9967_v9 = vsub.f32 %v9965_v38, %v9966_v47  ;;  %v9969_v38 = vld [vmem:[#allocation29_spill] sm:$0xff]  ;;  %v9973_v17 = vld [vmem:[#allocation43_spill] sm:$0xff] }
 0x431   : >> { %v1072_v37 = vpop.f32.mrb[12].mxu0  ;;  %v9279_v29 = vpop.eup %6837  ;;  %v4330_v27 = vsel %vm582_vm4, %v6836_v13, 0.0 }
 0x432   : >> { %9964 = vst [vmem:[#allocation25_spill] sm:$0xff] %v9265_v41  ;;  %v1272_v59 = vmul.f32 1.442695, %v9967_v9  ;;  %v4637_v35 = vsub.f32 %v8643_v32, %v9265_v41  ;;  %v1092_v11 = vadd.f32 %v1072_v37, %v9968_v31  ;;  %v5891_v55 = vpop.f32.mrb[13].mxu0  ;;  %6399 = vmatmul.mubr.msk.f32.gmra.mrb[118].mxu0 %vm569_vm3, %v6836_v13  ;;  %6847 = vpow2.f32 %v4643_v26  ;;  %4331 = vadd.xlane.f32.xlu0 %v4330_v27  ;;  %v9970_v31 = vld [vmem:[#allocation52_spill] sm:$0xff]  ;;  %v9974_v27 = vld [vmem:[#allocation33_spill] sm:$0xff] }
 0x433   : >> { %v628_v34 = vpop.xlane.xlu1 %627  ;;  %6436 = vmatprep.mubr.msk.f32.mxu0 %vm7042_vm0, %v9883_v60  ;;  %v9971_v55 = vsub.f32 %v9948_v3, %v9970_v31 }
 0x434   : >> { %v4645_v9 = vmul.f32 1.442695, %v4637_v35  ;;  %v641_v40 = vadd.f32 %v628_v34, %v9969_v38  ;;  %v4613_v43 = vpop.xlane.xlu0 %4612  ;;  %v9286_v32 = vmul.f32 %v9279_v29, %v1092_v11  ;;  %v6840_v37 = vpop.eup %6839  ;;  %6849 = vpow2.f32 %v1272_v59 }
 0x435   : >> { %v1600_v26 = vmul.f32 1.442695, %v9971_v55  ;;  %v9292_v13 = vmax.f32 %v9200_v2, %v4613_v43  ;;  %v1077_v41 = vpop.f32.mrb[14].mxu0  ;;  %v4654_v34 = vsel %vm569_vm3, %v6840_v37, 0.0  ;;  %v9298_v38 = vpop.eup %6841  ;;  %v9978_v2 = vld [vmem:[#allocation32_spill] sm:$0xff] }
 0x436   : >> { %v1093_v54 = vadd.f32 %v1077_v41, %v9973_v17  ;;  %v5894_v35 = vpop.f32.mrb[15].mxu0  ;;  %6437 = vmatmul.mubr.msk.f32.vlgmr.msra.gmra.mrb[120].mxu0 %vm569_vm3, %v6840_v37  ;;  %v953_v11 = vmul.f32 %v9974_v27, %v641_v40  ;;  %6851 = vpow2.f32 %v4645_v9  ;;  %4655 = vadd.xlane.f32.xlu1 %v4654_v34  ;;  %v9975_v17 = vld [vmem:[#allocation38_spill] sm:$0xff]  ;;  %v9976_v9 = vld [vmem:[#allocation53_spill] sm:$0xff] }
 0x437   : >> { %9972 = vst [vmem:[#allocation27_spill] sm:$0xff] %v9292_v13  ;;  %v4638_v43 = vsub.f32 %v8663_v7, %v9292_v13  ;;  %v634_v59 = vpop.xlane.xlu1 %633  ;;  %6439 = vmatprep.mubr.msk.f32.mxu0 %vm7042_vm0, %v9883_v60  ;;  %6853 = vpow2.f32 %v1600_v26  ;;  %v9977_v35 = vsub.f32 %v9953_v50, %v9976_v9  ;;  %v9979_v13 = vld [vmem:[#allocation47_spill] sm:$0xff]  ;;  %v9981_v50 = vld [vmem:[#allocation36_spill] sm:$0xff] }
 0x438   : >> { %v643_v41 = vadd.f32 %v634_v59, %v9975_v17  ;;  %v631_v55 = vpop.xlane.xlu0 %630  ;;  %v9308_v37 = vmul.f32 %v9298_v38, %v1093_v54  ;;  %v6844_v40 = vpop.eup %6843  ;;  %v9980_v17 = vld [vmem:[#allocation40_spill] sm:$0xff] }
 0x439   : >> { %v1602_v27 = vmul.f32 1.442695, %v9977_v35  ;;  %v4647_v3 = vmul.f32 1.442695, %v4638_v43  ;;  %v642_v7 = vadd.f32 %v631_v55, %v9978_v2  ;;  %v1082_v34 = vpop.f32.mrb[16].mxu0  ;;  %v4657_v59 = vsel %vm569_vm3, %v6844_v40, 0.0  ;;  %v6846_v63 = vpop.eup %6845 }
 0x43a   : >> { %v1094_v48 = vadd.f32 %v1082_v34, %v9979_v13  ;;  %v5897_v30 = vpop.f32.mrb[17].mxu0  ;;  %6440 = vmatmul.mubr.msk.f32.gmra.mrb[122].mxu0 %vm569_vm3, %v6844_v40  ;;  %v955_v54 = vmul.f32 %v9980_v17, %v643_v41  ;;  %4658 = vadd.xlane.f32.xlu0 %v4657_v59  ;;  %v9982_v55 = vld [vmem:[#allocation46_spill] sm:$0xff]  ;;  %v9983_v40 = vld [vmem:[#allocation55_spill] sm:$0xff] }
 0x43b   : >> { %v640_v26 = vpop.xlane.xlu1 %639  ;;  %6442 = vmatprep.mubr.msk.f32.mxu0 %vm7042_vm0, %v9883_v60  ;;  %v954_v43 = vmul.f32 %v9981_v50, %v642_v7  ;;  %6855 = vpow2.f32 %v4647_v3  ;;  %v9984_v34 = vsub.f32 %v9957_v6, %v9983_v40  ;;  %v9985_v17 = vld [vmem:[#allocation42_spill] sm:$0xff]  ;;  %v9987_v7 = vld [vmem:[#allocation48_spill] sm:$0xff] }
 0x43c   : >> { %v637_v2 = vpop.xlane.xlu0 %636  ;;  %v645_v35 = vadd.f32 %v640_v26, %v9982_v55  ;;  %v9322_v13 = vmul.f32 %v6846_v63, %v1094_v48  ;;  %v6848_v30 = vpop.eup %6847  ;;  %6857 = vpow2.f32 %v1602_v27  ;;  %v9988_v6 = vld [vmem:[#allocation44_spill] sm:$0xff] }
 0x43d   : >> { %v1604_v41 = vmul.f32 1.442695, %v9984_v34  ;;  %v644_v59 = vadd.f32 %v637_v2, %v9985_v17  ;;  %v1087_v33 = vpop.f32.mrb[18].mxu0  ;;  %v4660_v3 = vsel %vm569_vm3, %v6848_v30, 0.0 }
 0x43e   : >> { %v1095_v22 = vadd.f32 %v1087_v33, %v9986_v1  ;;  %v5900_v10 = vpop.f32.mrb[19].mxu0  ;;  %6443 = vmatmul.mubr.msk.f32.gmra.mrb[124].mxu0 %vm569_vm3, %v6848_v30  ;;  %v957_v26 = vmul.f32 %v9987_v7, %v645_v35  ;;  %v6850_v48 = vpop.eup %6849  ;;  %4661 = vadd.xlane.f32.xlu1 %v4660_v3 }
 0x43f   : >> { %v963_v50 = vpop.xlane.xlu1 %962  ;;  %6445 = vmatprep.mubr.msk.f32.mxu0 %vm7042_vm0, %v9883_v60  ;;  %v956_v27 = vmul.f32 %v9988_v6, %v644_v59  ;;  %6859 = vpow2.f32 %v1604_v41  ;;  %v9989_v10 = vld [vmem:[#allocation57_spill] sm:$0xff] }
 0x440   : >> { %v960_v55 = vpop.xlane.xlu0 %959  ;;  %v974_v2 = vadd.f32 %v963_v50, %v954_v43  ;;  %v9335_v34 = vmul.f32 %v6850_v48, %v1095_v22  ;;  %v6852_v1 = vpop.eup %6851  ;;  %v9990_v33 = vsub.f32 %v9961_v0, %v9989_v10  ;;  %v9991_v22 = vsub.f32 %v9966_v47, %v8456_v21 }
 0x441   : >> { %v973_v17 = vadd.f32 %v960_v55, %v953_v11  ;;  %v1403_v35 = vpop.f32.mrb[20].mxu0  ;;  %v4663_v60 = vsel %vm569_vm3, %v6852_v1, 0.0  ;;  %v6854_v43 = vpop.eup %6853  ;;  %v9992_v47 = vsub.f32 %v9976_v9, %v8503_v15 }
 0x442   : >> { %v1606_v30 = vmul.f32 1.442695, %v9990_v33  ;;  %v1427_v3 = vadd.f32 %v1403_v35, %v9268_v53  ;;  %v5938_v7 = vpop.f32.mrb[21].mxu0  ;;  %6446 = vmatmul.mubr.msk.f32.gmra.mrb[126].mxu0 %vm569_vm3, %v6852_v1  ;;  %v1290_v59 = vmul.f32 %v9279_v29, %v974_v2  ;;  %v1608_v41 = vmul.f32 1.442695, %v9991_v22  ;;  %4664 = vadd.xlane.f32.xlu0 %v4663_v60 }
 0x443   : >> { %v969_v50 = vpop.xlane.xlu1 %968  ;;  %v1289_v0 = vmul.f32 %v9259_v46, %v973_v17  ;;  %v1938_v60 = vmul.f32 1.442695, %v9992_v47 }
 0x444   : >> { %v966_v11 = vpop.xlane.xlu0 %965  ;;  %v976_v6 = vadd.f32 %v969_v50, %v956_v27  ;;  %v9348_v55 = vmul.f32 %v6854_v43, %v1427_v3  ;;  %6861 = vpow2.f32 %v1606_v30 }
 0x445   : >> { %v975_v53 = vadd.f32 %v966_v11, %v955_v54  ;;  %v1408_v33 = vpop.f32.mrb[22].mxu0  ;;  %v6856_v35 = vpop.eup %6855  ;;  %6863 = vpow2.f32 %v1608_v41  ;;  %v9993_v54 = vsub.f32 %v9970_v31, %v8480_v36 }
 0x446   : >> { %v1428_v1 = vadd.f32 %v1408_v33, %v9286_v32  ;;  %v5941_v29 = vpop.f32.mrb[23].mxu0  ;;  %v1292_v2 = vmul.f32 %v6846_v63, %v976_v6  ;;  %v6858_v7 = vpop.eup %6857  ;;  %6449 = vmatmul.mubr.msk.f32.vlgmr.msra.gmra.mrb[130].mxu1 %vm569_vm3, %v6856_v35  ;;  %v4666_v46 = vsel %vm582_vm4, %v6856_v35, 0.0  ;;  %6865 = vpow2.f32 %v1938_v60 }
 0x447   : >> { %v1296_v27 = vpop.xlane.xlu1 %1295  ;;  %v1291_v30 = vmul.f32 %v9298_v38, %v975_v53  ;;  %v1936_v17 = vmul.f32 1.442695, %v9993_v54  ;;  %4667 = vadd.xlane.f32.xlu1 %v4666_v46  ;;  %v9994_v38 = vsub.f32 %v9989_v10, %v8551_v61 }
 0x448   : >> { %v972_v32 = vpop.xlane.xlu0 %971  ;;  %v1309_v63 = vadd.f32 %v1296_v27, %v1289_v0  ;;  %v9360_v3 = vmul.f32 %v6858_v7, %v1428_v1  ;;  %v9995_v0 = vsub.f32 %v9983_v40, %v8528_v62  ;;  %v9997_v40 = vsub.f32 %v8456_v21, %v8575_v56  ;;  %v10000_v21 = vld [vmem:[#allocation63_spill] sm:$0xff] }
 0x449   : >> { %v977_v22 = vadd.f32 %v972_v32, %v957_v26  ;;  %v1413_v41 = vpop.f32.mrb[24].mxu0  ;;  %v6860_v6 = vpop.eup %6859  ;;  %v1942_v53 = vmul.f32 1.442695, %v9994_v38  ;;  %6867 = vpow2.f32 %v1936_v17 }
 0x44a   : >> { %v1429_v9 = vadd.f32 %v1413_v41, %v9308_v37  ;;  %v5944_v50 = vpop.f32.mrb[25].mxu0  ;;  %v1625_v11 = vmul.f32 %v6854_v43, %v1309_v63  ;;  %v1940_v35 = vmul.f32 1.442695, %v9995_v0 }
 0x44b   : >> { %v1302_v33 = vpop.xlane.xlu1 %1301  ;;  %v1293_v31 = vmul.f32 %v6850_v48, %v977_v22  ;;  %6869 = vpow2.f32 %v1942_v53  ;;  %v9996_v48 = vsub.f32 %v8480_v36, %v8599_v28  ;;  %v9998_v36 = vld [vmem:[#allocation64_spill] sm:$0xff] }
 0x44c   : >> { %v1299_v1 = vpop.xlane.xlu0 %1298  ;;  %v1311_v26 = vadd.f32 %v1302_v33, %v1291_v30  ;;  %v9369_v29 = vmul.f32 %v6860_v6, %v1429_v9  ;;  %6871 = vpow2.f32 %v1940_v35  ;;  %v1944_v30 = vmul.f32 1.442695, %v9997_v40 }
 0x44d   : >> { %v1310_v37 = vadd.f32 %v1299_v1, %v1290_v59  ;;  %v1418_v47 = vpop.f32.mrb[26].mxu0  ;;  %v2272_v10 = vmul.f32 1.442695, %v9996_v48 }
 0x44e   : >> { %v1430_v43 = vadd.f32 %v1418_v47, %v9322_v13  ;;  %v5947_v60 = vpop.f32.mrb[27].mxu0  ;;  %v1627_v46 = vmul.f32 %v6860_v6, %v1311_v26  ;;  %v6862_v27 = vpop.eup %6861 }
 0x44f   : >> { %v1308_v54 = vpop.xlane.xlu1 %1307  ;;  %v1626_v17 = vmul.f32 %v6858_v7, %v1310_v37  ;;  %v6864_v13 = vpop.eup %6863  ;;  %6873 = vpow2.f32 %v2272_v10  ;;  %v9999_v7 = vsub.f32 %v8528_v62, %v9998_v36 }
 0x450   : >> { %v1305_v32 = vpop.xlane.xlu0 %1304  ;;  %v1313_v59 = vadd.f32 %v1308_v54, %v1293_v31  ;;  %v9378_v63 = vmul.f32 %v6862_v27, %v1430_v43  ;;  %6875 = vpow2.f32 %v1944_v30  ;;  %v10001_v31 = vsub.f32 %v8503_v15, %v10000_v21  ;;  %v6866_v26 = vpop.eup %6865  ;;  %v10003_v54 = vld [vmem:[#allocation65_spill] sm:$0xff] }
 0x451   : >> { %v1312_v22 = vadd.f32 %v1305_v32, %v1292_v2  ;;  %v1423_v41 = vpop.f32.mrb[28].mxu0  ;;  %v2276_v38 = vmul.f32 1.442695, %v9999_v7 }
 0x452   : >> { %v1431_v9 = vadd.f32 %v1423_v41, %v9335_v34  ;;  %v5950_v50 = vpop.f32.mrb[29].mxu0  ;;  %v1629_v6 = vmul.f32 %v6864_v13, %v1313_v59  ;;  %v2274_v0 = vmul.f32 1.442695, %v10001_v31 }
 0x453   : >> { %v1635_v53 = vpop.xlane.xlu1 %1634  ;;  %v1628_v33 = vmul.f32 %v6862_v27, %v1312_v22  ;;  %v6868_v47 = vpop.eup %6867  ;;  %6877 = vpow2.f32 %v2276_v38  ;;  %v10002_v27 = vsub.f32 %v8575_v56, %v8685_v44  ;;  %v10005_v50 = vsub.f32 %v10000_v21, %v8731_v45 }
 0x454   : >> { %v1632_v35 = vpop.xlane.xlu0 %1631  ;;  %v1646_v1 = vadd.f32 %v1635_v53, %v1626_v17  ;;  %v9387_v2 = vmul.f32 %v6864_v13, %v1431_v9  ;;  %6879 = vpow2.f32 %v2274_v0  ;;  %v10004_v17 = vsub.f32 %v8551_v61, %v10003_v54 }
 0x455   : >> { %v1645_v34 = vadd.f32 %v1632_v35, %v1625_v11  ;;  %v1739_v37 = vpop.f32.mrb[30].mxu0  ;;  %v2280_v48 = vmul.f32 1.442695, %v10002_v27  ;;  %v6870_v59 = vpop.eup %6869  ;;  %v2610_v7 = vmul.f32 1.442695, %v10005_v50  ;;  %v10006_v53 = vsub.f32 %v8599_v28, %v8708_v12 }
 0x456   : >> { %v1763_v43 = vadd.f32 %v1739_v37, %v9348_v55  ;;  %v5988_v60 = vpop.f32.mrb[31].mxu0  ;;  %v1962_v62 = vmul.f32 %v6866_v26, %v1646_v1  ;;  %v2278_v40 = vmul.f32 1.442695, %v10004_v17  ;;  %v6872_v22 = vpop.eup %6871 }
 0x457   : >> { %v1641_v10 = vpop.xlane.xlu1 %1640  ;;  %v1961_v15 = vmul.f32 %v6868_v47, %v1645_v34  ;;  %6881 = vpow2.f32 %v2280_v48 }
 0x458   : >> { %v1638_v30 = vpop.xlane.xlu0 %1637  ;;  %v1648_v11 = vadd.f32 %v1641_v10, %v1628_v33  ;;  %v9396_v32 = vmul.f32 %v6868_v47, %v1763_v43  ;;  %6883 = vpow2.f32 %v2278_v40  ;;  %v2608_v33 = vmul.f32 1.442695, %v10006_v53 }
 0x459   : >> { %v1647_v55 = vadd.f32 %v1638_v30, %v1627_v46  ;;  %v1744_v13 = vpop.f32.mrb[32].mxu0  ;;  %v9407_v35 = vpop.eup %6873  ;;  %6885 = vpow2.f32 %v2610_v7  ;;  %v10007_v43 = vsub.f32 %v10003_v54, %v8775_v49 }
 0x45a   : >> { %v1764_v41 = vadd.f32 %v1744_v13, %v9360_v3  ;;  %v5991_v9 = vpop.f32.mrb[33].mxu0  ;;  %v1964_v56 = vmul.f32 %v6870_v59, %v1648_v11  ;;  %v6876_v34 = vpop.eup %6875  ;;  %6887 = vpow2.f32 %v2608_v33  ;;  %v10009_v13 = vsub.f32 %v8708_v12, %v8815_v18 }
 0x45b   : >> { %v1968_v38 = vpop.xlane.xlu1 %1967  ;;  %v1963_v61 = vmul.f32 %v6872_v22, %v1647_v55  ;;  %v2614_v28 = vmul.f32 1.442695, %v10007_v43 }
 0x45c   : >> { %v1644_v31 = vpop.xlane.xlu0 %1643  ;;  %v1981_v46 = vadd.f32 %v1968_v38, %v1961_v15  ;;  %v9405_v0 = vmul.f32 %v6866_v26, %v1764_v41  ;;  %v10008_v26 = vsub.f32 %v9998_v36, %v8752_v57  ;;  %v2944_v36 = vmul.f32 1.442695, %v10009_v13 }
 0x45d   : >> { %v1649_v3 = vadd.f32 %v1644_v31, %v1629_v6  ;;  %v1749_v1 = vpop.f32.mrb[34].mxu0  ;;  %6889 = vpow2.f32 %v2614_v28 }
 0x45e   : >> { %v1765_v37 = vadd.f32 %v1749_v1, %v9369_v29  ;;  %v5994_v21 = vpop.f32.mrb[35].mxu0  ;;  %v2297_v47 = vmul.f32 %v9407_v35, %v1981_v46  ;;  %v2612_v48 = vmul.f32 1.442695, %v10008_v26  ;;  %v9419_v29 = vpop.eup %6877 }
 0x45f   : >> { %v1974_v60 = vpop.xlane.xlu1 %1973  ;;  %v1965_v27 = vmul.f32 %v6876_v34, %v1649_v3  ;;  %v6880_v30 = vpop.eup %6879 }
 0x460   : >> { %v1971_v6 = vpop.xlane.xlu0 %1970  ;;  %v1983_v10 = vadd.f32 %v1974_v60, %v1963_v61  ;;  %v9417_v15 = vmul.f32 %v6872_v22, %v1765_v37  ;;  %6891 = vpow2.f32 %v2612_v48  ;;  %v10010_v22 = vsub.f32 %v8685_v44, %v8796_v4 }
 0x461   : >> { %v1982_v17 = vadd.f32 %v1971_v6, %v1962_v62  ;;  %v1754_v40 = vpop.f32.mrb[36].mxu0  ;;  %6893 = vpow2.f32 %v2944_v36  ;;  %v10011_v44 = vsub.f32 %v8752_v57, %v8852_v8 }
 0x462   : >> { %v1766_v11 = vadd.f32 %v1754_v40, %v9378_v63  ;;  %v5997_v54 = vpop.f32.mrb[37].mxu0  ;;  %v2299_v55 = vmul.f32 %v9419_v29, %v1983_v10  ;;  %v2616_v50 = vmul.f32 1.442695, %v10010_v22  ;;  %v9431_v63 = vpop.eup %6881 }
 0x463   : >> { %v1980_v41 = vpop.xlane.xlu1 %1979  ;;  %v2298_v9 = vmul.f32 %v6880_v30, %v1982_v17  ;;  %v9433_v33 = vpop.eup %6883  ;;  %v2948_v3 = vmul.f32 1.442695, %v10011_v44 }
 0x464   : >> { %v1977_v62 = vpop.xlane.xlu0 %1976  ;;  %v1985_v7 = vadd.f32 %v1980_v41, %v1965_v27  ;;  %v9429_v38 = vmul.f32 %v6870_v59, %v1766_v11  ;;  %6895 = vpow2.f32 %v2616_v50 }
 0x465   : >> { %v1984_v61 = vadd.f32 %v1977_v62, %v1964_v56  ;;  %v1759_v53 = vpop.f32.mrb[38].mxu0  ;;  %v10012_v56 = vsub.f32 %v8731_v45, %v8833_v58  ;;  %6897 = vpow2.f32 %v2948_v3  ;;  %v10013_v45 = vsub.f32 %v8796_v4, %v8890_v16 }
 0x466   : >> { %v1767_v12 = vadd.f32 %v1759_v53, %v9387_v2  ;;  %v6000_v31 = vpop.f32.mrb[39].mxu0  ;;  %v2301_v46 = vmul.f32 %v9431_v63, %v1985_v7  ;;  %v9446_v2 = vpop.eup %6885 }
 0x467   : >> { %v2307_v1 = vpop.xlane.xlu1 %2306  ;;  %v2300_v59 = vmul.f32 %v9433_v33, %v1984_v61  ;;  %v2946_v37 = vmul.f32 1.442695, %v10012_v56  ;;  %v9448_v26 = vpop.eup %6887  ;;  %v2952_v10 = vmul.f32 1.442695, %v10013_v45 }
 0x468   : >> { %v2304_v21 = vpop.xlane.xlu0 %2303  ;;  %v2318_v43 = vadd.f32 %v2307_v1, %v2298_v9  ;;  %v9444_v28 = vmul.f32 %v6876_v34, %v1767_v12  ;;  %v9462_v13 = vpop.eup %6889 }
 0x469   : >> { %v2317_v60 = vadd.f32 %v2304_v21, %v2297_v47  ;;  %v2075_v27 = vpop.f32.mrb[40].mxu0  ;;  %6899 = vpow2.f32 %v2946_v37  ;;  %v10014_v47 = vsub.f32 %v8775_v49, %v8871_v5  ;;  %v10015_v49 = vsub.f32 %v8833_v58, %v8927_v20 }
 0x46a   : >> { %v2099_v57 = vadd.f32 %v2075_v27, %v9396_v32  ;;  %v6038_v48 = vpop.f32.mrb[41].mxu0  ;;  %v2634_v6 = vmul.f32 %v9446_v2, %v2318_v43  ;;  %v9464_v9 = vpop.eup %6891  ;;  %6901 = vpow2.f32 %v2952_v10 }
 0x46b   : >> { %v2313_v17 = vpop.xlane.xlu1 %2312  ;;  %v2633_v34 = vmul.f32 %v9448_v26, %v2317_v60  ;;  %v2950_v40 = vmul.f32 1.442695, %v10014_v47  ;;  %v3282_v62 = vmul.f32 1.442695, %v10015_v49 }
 0x46c   : >> { %v2310_v11 = vpop.xlane.xlu0 %2309  ;;  %v2320_v54 = vadd.f32 %v2313_v17, %v2300_v59  ;;  %v9460_v32 = vmul.f32 %v9407_v35, %v2099_v57 }
 0x46d   : >> { %v2319_v36 = vadd.f32 %v2310_v11, %v2299_v55  ;;  %v2080_v41 = vpop.f32.mrb[42].mxu0  ;;  %6903 = vpow2.f32 %v2950_v40  ;;  %v10016_v55 = vsub.f32 %v8815_v18, %v8909_v19  ;;  %v10017_v18 = vsub.f32 %v8871_v5, %v8965_v25 }
 0x46e   : >> { %v2100_v4 = vadd.f32 %v2080_v41, %v9405_v0  ;;  %v6041_v22 = vpop.f32.mrb[43].mxu0  ;;  %v2636_v50 = vmul.f32 %v9462_v13, %v2320_v54  ;;  %v9477_v0 = vpop.eup %6893  ;;  %6905 = vpow2.f32 %v3282_v62 }
 0x46f   : >> { %v2640_v7 = vpop.xlane.xlu1 %2639  ;;  %v2635_v35 = vmul.f32 %v9464_v9, %v2319_v36  ;;  %v3280_v61 = vmul.f32 1.442695, %v10016_v55  ;;  %v9479_v1 = vpop.eup %6895  ;;  %v3286_v37 = vmul.f32 1.442695, %v10017_v18 }
 0x470   : >> { %v2316_v53 = vpop.xlane.xlu0 %2315  ;;  %v2653_v12 = vadd.f32 %v2640_v7, %v2633_v34  ;;  %v9475_v31 = vmul.f32 %v6880_v30, %v2100_v4  ;;  %v9493_v57 = vpop.eup %6897 }
 0x471   : >> { %v2321_v44 = vadd.f32 %v2316_v53, %v2301_v46  ;;  %v2085_v3 = vpop.f32.mrb[44].mxu0  ;;  %6907 = vpow2.f32 %v3280_v61  ;;  %v10018_v46 = vsub.f32 %v8852_v8, %v8946_v39  ;;  %v10019_v8 = vsub.f32 %v8909_v19, %v9003_v52 }
 0x472   : >> { %v2101_v58 = vadd.f32 %v2085_v3, %v9417_v15  ;;  %v6044_v59 = vpop.f32.mrb[45].mxu0  ;;  %v2969_v56 = vmul.f32 %v9477_v0, %v2653_v12  ;;  %6909 = vpow2.f32 %v3286_v37 }
 0x473   : >> { %v2646_v21 = vpop.xlane.xlu1 %2645  ;;  %v2637_v30 = vmul.f32 %v9479_v1, %v2321_v44  ;;  %v3284_v43 = vmul.f32 1.442695, %v10018_v46  ;;  %v9495_v10 = vpop.eup %6899  ;;  %v3616_v47 = vmul.f32 1.442695, %v10019_v8 }
 0x474   : >> { %v2643_v60 = vpop.xlane.xlu0 %2642  ;;  %v2655_v27 = vadd.f32 %v2646_v21, %v2635_v35  ;;  %v9491_v15 = vmul.f32 %v9419_v29, %v2101_v58  ;;  %v9509_v41 = vpop.eup %6901 }
 0x475   : >> { %v2654_v48 = vadd.f32 %v2643_v60, %v2634_v6  ;;  %v2090_v45 = vpop.f32.mrb[46].mxu0  ;;  %6911 = vpow2.f32 %v3284_v43  ;;  %v10020_v6 = vsub.f32 %v8890_v16, %v8984_v23  ;;  %v10021_v16 = vsub.f32 %v8946_v39, %v9037_v14 }
 0x476   : >> { %v2102_v5 = vadd.f32 %v2090_v45, %v9429_v38  ;;  %v6047_v17 = vpop.f32.mrb[47].mxu0  ;;  %v2971_v34 = vmul.f32 %v9493_v57, %v2655_v27  ;;  %6913 = vpow2.f32 %v3616_v47 }
 0x477   : >> { %v2652_v40 = vpop.xlane.xlu1 %2651  ;;  %v2970_v29 = vmul.f32 %v9495_v10, %v2654_v48  ;;  %v3288_v11 = vmul.f32 1.442695, %v10020_v6  ;;  %v9511_v49 = vpop.eup %6903  ;;  %v3620_v35 = vmul.f32 1.442695, %v10021_v16  ;;  %v10027_v6 = vld [vmem:[#allocation12_spill] sm:$0xff] }
 0x478   : >> { %v2649_v54 = vpop.xlane.xlu0 %2648  ;;  %v2657_v36 = vadd.f32 %v2652_v40, %v2637_v30  ;;  %v9507_v38 = vmul.f32 %v9433_v33, %v2102_v5  ;;  %v9525_v44 = vpop.eup %6905 }
 0x479   : >> { %v2656_v4 = vadd.f32 %v2649_v54, %v2636_v50  ;;  %v2095_v22 = vpop.f32.mrb[48].mxu0  ;;  %6915 = vpow2.f32 %v3288_v11  ;;  %v10022_v50 = vsub.f32 %v8927_v20, %v9021_v24  ;;  %v10023_v20 = vsub.f32 %v8984_v23, %v9069_v42 }
 0x47a   : >> { %v2103_v19 = vadd.f32 %v2095_v22, %v9444_v28  ;;  %v6050_v62 = vpop.f32.mrb[49].mxu0  ;;  %v2973_v7 = vmul.f32 %v9509_v41, %v2657_v36  ;;  %6917 = vpow2.f32 %v3620_v35 }
 0x47b   : >> { %v2979_v55 = vpop.xlane.xlu1 %2978  ;;  %v2972_v33 = vmul.f32 %v9511_v49, %v2656_v4  ;;  %v3618_v61 = vmul.f32 1.442695, %v10022_v50  ;;  %v9527_v59 = vpop.eup %6907  ;;  %v3624_v21 = vmul.f32 1.442695, %v10023_v20 }
 0x47c   : >> { %v2976_v53 = vpop.xlane.xlu0 %2975  ;;  %v2990_v12 = vadd.f32 %v2979_v55, %v2970_v29  ;;  %v9523_v28 = vmul.f32 %v9431_v63, %v2103_v19  ;;  %v9541_v27 = vpop.eup %6909 }
 0x47d   : >> { %v2989_v3 = vadd.f32 %v2976_v53, %v2969_v56  ;;  %v2411_v58 = vpop.f32.mrb[50].mxu0  ;;  %6919 = vpow2.f32 %v3618_v61  ;;  %v10024_v56 = vsub.f32 %v8965_v25, %v9053_v51  ;;  %v10025_v25 = vld [vmem:[#allocation11_spill] sm:$0xff]  ;;  %v10031_v61 = vld [vmem:[#allocation14_spill] sm:$0xff] }
 0x47e   : >> { %v2435_v39 = vadd.f32 %v2411_v58, %v9460_v32  ;;  %v6088_v18 = vpop.f32.mrb[51].mxu0  ;;  %v3306_v37 = vmul.f32 %v9525_v44, %v2990_v12  ;;  %6921 = vpow2.f32 %v3624_v21  ;;  %v10026_v47 = vsub.f32 %v9021_v24, %v10025_v25 }
 0x47f   : >> { %v2985_v30 = vpop.xlane.xlu1 %2984  ;;  %v3305_v63 = vmul.f32 %v9527_v59, %v2989_v3  ;;  %v3622_v46 = vmul.f32 1.442695, %v10024_v56  ;;  %v9543_v5 = vpop.eup %6911  ;;  %v10033_v56 = vld [vmem:[#allocation15_spill] sm:$0xff] }
 0x480   : >> { %v2982_v43 = vpop.xlane.xlu0 %2981  ;;  %v2992_v60 = vadd.f32 %v2985_v30, %v2972_v33  ;;  %v9539_v32 = vmul.f32 %v9448_v26, %v2435_v39  ;;  %v3954_v40 = vmul.f32 1.442695, %v10026_v47  ;;  %v9557_v4 = vpop.eup %6913 }
 0x481   : >> { %v2991_v48 = vadd.f32 %v2982_v43, %v2971_v34  ;;  %v2416_v45 = vpop.f32.mrb[52].mxu0  ;;  %6923 = vpow2.f32 %v3622_v46  ;;  %v10028_v34 = vsub.f32 %v9003_v52, %v10027_v6  ;;  %v10029_v52 = vld [vmem:[#allocation13_spill] sm:$0xff]  ;;  %v10034_v46 = vsub.f32 %v9069_v42, %v10033_v56  ;;  %v10035_v42 = vld [vmem:[#allocation16_spill] sm:$0xff] }
 0x482   : >> { %v2436_v23 = vadd.f32 %v2416_v45, %v9475_v31  ;;  %v6091_v17 = vpop.f32.mrb[53].mxu0  ;;  %v3308_v8 = vmul.f32 %v9541_v27, %v2992_v60  ;;  %6925 = vpow2.f32 %v3954_v40  ;;  %v10030_v55 = vsub.f32 %v9037_v14, %v10029_v52 }
 0x483   : >> { %v3312_v29 = vpop.xlane.xlu1 %3311  ;;  %v3307_v26 = vmul.f32 %v9543_v5, %v2991_v48  ;;  %v3952_v11 = vmul.f32 1.442695, %v10028_v34  ;;  %v9559_v62 = vpop.eup %6915  ;;  %v10036_v34 = vsub.f32 %v10027_v6, %v10035_v42  ;;  %v10037_v6 = vld [vmem:[#allocation17_spill] sm:$0xff] }
 0x484   : >> { %v2988_v54 = vpop.xlane.xlu0 %2987  ;;  %v3325_v36 = vadd.f32 %v3312_v29, %v3305_v63  ;;  %v9555_v31 = vmul.f32 %v9446_v2, %v2436_v23  ;;  %v3956_v33 = vmul.f32 1.442695, %v10030_v55  ;;  %v9571_v58 = vpop.eup %6917 }
 0x485   : >> { %v2993_v22 = vadd.f32 %v2988_v54, %v2973_v7  ;;  %v2421_v19 = vpop.f32.mrb[54].mxu0  ;;  %6927 = vpow2.f32 %v3952_v11  ;;  %v10032_v7 = vsub.f32 %v9053_v51, %v10031_v61  ;;  %v4288_v11 = vmul.f32 1.442695, %v10036_v34 }
 0x486   : >> { %v2437_v24 = vadd.f32 %v2421_v19, %v9491_v15  ;;  %v6094_v16 = vpop.f32.mrb[55].mxu0  ;;  %v3641_v35 = vmul.f32 %v9557_v4, %v3325_v36  ;;  %6929 = vpow2.f32 %v3956_v33 }
 0x487   : >> { %v3318_v50 = vpop.xlane.xlu1 %3317  ;;  %v3309_v2 = vmul.f32 %v9559_v62, %v2993_v22  ;;  %v3958_v53 = vmul.f32 1.442695, %v10032_v7  ;;  %v9573_v20 = vpop.eup %6919 }
 0x488   : >> { %v3315_v12 = vpop.xlane.xlu0 %3314  ;;  %v3327_v3 = vadd.f32 %v3318_v50, %v3307_v26  ;;  %v2660_v15 = vmul.f32 %v9464_v9, %v2437_v24  ;;  %v3960_v9 = vmul.f32 1.442695, %v10034_v46  ;;  %v9582_v48 = vpop.eup %6921  ;;  %v10038_v50 = vsub.f32 %v10025_v25, %v10037_v6  ;;  %v10039_v25 = vld [vmem:[#allocation18_spill] sm:$0xff] }
 0x489   : >> { %v3326_v39 = vadd.f32 %v3315_v12, %v3306_v37  ;;  %v2426_v18 = vpop.f32.mrb[56].mxu0  ;;  %6931 = vpow2.f32 %v3958_v53 }
 0x48a   : >> { %v2438_v14 = vadd.f32 %v2426_v18, %v9507_v38  ;;  %v6097_v21 = vpop.f32.mrb[57].mxu0  ;;  %v3643_v30 = vmul.f32 %v9571_v58, %v3327_v3  ;;  %6933 = vpow2.f32 %v3960_v9 }
 0x48b   : >> { %v3324_v63 = vpop.xlane.xlu1 %3323  ;;  %v3642_v51 = vmul.f32 %v9573_v20, %v3326_v39  ;;  %v9584_v23 = vpop.eup %6923  ;;  %6935 = vpow2.f32 %v4288_v11 }
 0x48c   : >> { %v3321_v43 = vpop.xlane.xlu0 %3320  ;;  %v3329_v60 = vadd.f32 %v3324_v63, %v3309_v2  ;;  %v2661_v37 = vmul.f32 %v9462_v13, %v2438_v14  ;;  %v9593_v36 = vpop.eup %6925  ;;  %v4290_v2 = vmul.f32 1.442695, %v10038_v50 }
 0x48d   : >> { %v3328_v45 = vadd.f32 %v3321_v43, %v3308_v8  ;;  %v2431_v38 = vpop.f32.mrb[58].mxu0 }
 0x48e   : >> { %v2439_v17 = vadd.f32 %v2431_v38, %v9523_v28  ;;  %v6100_v47 = vpop.f32.mrb[59].mxu0  ;;  %v3645_v40 = vmul.f32 %v9582_v48, %v3329_v60  ;;  %6937 = vpow2.f32 %v4290_v2 }
 0x48f   : >> { %v3651_v29 = vpop.xlane.xlu1 %3650  ;;  %v3644_v26 = vmul.f32 %v9584_v23, %v3328_v45  ;;  %v9595_v28 = vpop.eup %6927 }
 0x490   : >> { %v3648_v13 = vpop.xlane.xlu0 %3647  ;;  %v3662_v54 = vadd.f32 %v3651_v29, %v3642_v51  ;;  %v2662_v8 = vmul.f32 %v9479_v1, %v2439_v17  ;;  %v10040_v51 = vsub.f32 %v10029_v52, %v10039_v25  ;;  %v10041_v17 = vld [vmem:[#allocation19_spill] sm:$0xff] }
 0x491   : >> { %v3661_v22 = vadd.f32 %v3648_v13, %v3641_v35  ;;  %v2747_v19 = vpop.f32.mrb[60].mxu0  ;;  %v9604_v35 = vpop.eup %6929  ;;  %v10042_v47 = vsub.f32 %v10031_v61, %v10041_v17 }
 0x492   : >> { %v2771_v24 = vadd.f32 %v2747_v19, %v9539_v32  ;;  %v6138_v16 = vpop.f32.mrb[61].mxu0  ;;  %v3978_v55 = vmul.f32 %v9593_v36, %v3662_v54  ;;  %v4292_v46 = vmul.f32 1.442695, %v10040_v51 }
 0x493   : >> { %v3977_v33 = vmul.f32 %v9595_v28, %v3661_v22  ;;  %v3657_v1 = vpop.xlane.xlu1 %3656  ;;  %v9606_v32 = vpop.eup %6931  ;;  %v4294_v29 = vmul.f32 1.442695, %v10042_v47 }
 0x494   : >> { %v3654_v7 = vpop.xlane.xlu0 %3653  ;;  %v2994_v53 = vmul.f32 %v9477_v0, %v2771_v24  ;;  %v3664_v3 = vadd.f32 %v3657_v1, %v3644_v26  ;;  %v9615_v60 = vpop.eup %6933  ;;  %6939 = vpow2.f32 %v4292_v46 }
 0x495   : >> { %v3663_v12 = vadd.f32 %v3654_v7, %v3643_v30  ;;  %v2752_v39 = vpop.f32.mrb[62].mxu0  ;;  %v9622_v13 = vpop.eup %6935  ;;  %6941 = vpow2.f32 %v4294_v29 }
 0x496   : >> { %v2772_v18 = vadd.f32 %v2752_v39, %v9555_v31  ;;  %v6141_v14 = vpop.f32.mrb[63].mxu0  ;;  %v3980_v63 = vmul.f32 %v9606_v32, %v3664_v3 }
 0x497   : >> { %v3979_v21 = vmul.f32 %v9604_v35, %v3663_v12 }
 0x498   : >> { %v3660_v0 = vpop.xlane.xlu0 %3659  ;;  %v2995_v9 = vmul.f32 %v9495_v10, %v2772_v18  ;;  %v9629_v2 = vpop.eup %6937 }
 0x499   : >> { %v3665_v30 = vadd.f32 %v3660_v0, %v3645_v40  ;;  %v2757_v43 = vpop.f32.mrb[64].mxu0 }
 0x49a   : >> { %v2773_v45 = vadd.f32 %v2757_v43, %v2660_v15  ;;  %v6144_v38 = vpop.f32.mrb[65].mxu0  ;;  %v10043_v15 = vld [vmem:[#allocation20_spill] sm:$0xff] }
 0x49b   : >> { %v3981_v31 = vmul.f32 %v9615_v60, %v3665_v30  ;;  %v3984_v26 = vpop.xlane.xlu1 %3983  ;;  %v10044_v22 = vsub.f32 %v10033_v56, %v10043_v15 }
 0x49c   : >> { %v2996_v52 = vmul.f32 %v9493_v57, %v2773_v45  ;;  %v3997_v34 = vadd.f32 %v3984_v26, %v3977_v33 }
 0x49d   : >> { %v2762_v11 = vpop.f32.mrb[66].mxu0  ;;  %v4296_v19 = vmul.f32 1.442695, %v10044_v22 }
 0x49e   : >> { %v2774_v10 = vadd.f32 %v2762_v11, %v2661_v37  ;;  %v6147_v40 = vpop.f32.mrb[67].mxu0  ;;  %v4313_v54 = vmul.f32 %v9622_v13, %v3997_v34  ;;  %v10045_v37 = vld [vmem:[#allocation21_spill] sm:$0xff]  ;;  %v9636_v14 = vpop.eup %6939 }
 0x49f   : >> { %v3987_v24 = vpop.xlane.xlu0 %3986  ;;  %6943 = vpow2.f32 %v4296_v19  ;;  %v10046_v1 = vsub.f32 %v10035_v42, %v10045_v37  ;;  %v9643_v38 = vpop.eup %6941 }
 0x4a0   : >> { %v2997_v61 = vmul.f32 %v9511_v49, %v2774_v10  ;;  %v3998_v16 = vadd.f32 %v3987_v24, %v3978_v55  ;;  %v10051_v24 = vld [vmem:[#allocation25_spill] sm:$0xff] }
 0x4a1   : >> { %v2767_v50 = vpop.f32.mrb[68].mxu0  ;;  %v4624_v12 = vmul.f32 1.442695, %v10046_v1 }
 0x4a2   : >> { %v2775_v57 = vadd.f32 %v2767_v50, %v2662_v8  ;;  %v6150_v33 = vpop.f32.mrb[69].mxu0  ;;  %v4314_v7 = vmul.f32 %v9629_v2, %v3998_v16  ;;  %v10047_v8 = vld [vmem:[#allocation22_spill] sm:$0xff]  ;;  %v10052_v16 = vsub.f32 %v10041_v17, %v10051_v24 }
 0x4a3   : >> { %v3990_v3 = vpop.xlane.xlu1 %3989  ;;  %6945 = vpow2.f32 %v4624_v12  ;;  %v10048_v46 = vsub.f32 %v10037_v6, %v10047_v8  ;;  %v10053_v12 = vld [vmem:[#allocation27_spill] sm:$0xff] }
 0x4a4   : >> { %v2998_v56 = vmul.f32 %v9509_v41, %v2775_v57  ;;  %v3999_v39 = vadd.f32 %v3990_v3, %v3979_v21 }
 0x4a5   : >> { %v3083_v18 = vpop.f32.mrb[70].mxu0  ;;  %v4626_v0 = vmul.f32 1.442695, %v10048_v46 }
 0x4a6   : >> { %v3107_v49 = vadd.f32 %v3083_v18, %v2994_v53  ;;  %v6188_v55 = vpop.f32.mrb[71].mxu0  ;;  %v4315_v51 = vmul.f32 %v9636_v14, %v3999_v39  ;;  %v10049_v53 = vld [vmem:[#allocation23_spill] sm:$0xff] }
 0x4a7   : >> { %v3993_v30 = vpop.xlane.xlu0 %3992  ;;  %6947 = vpow2.f32 %v4626_v0  ;;  %v10050_v29 = vsub.f32 %v10039_v25, %v10049_v53  ;;  %v4630_v25 = vmul.f32 1.442695, %v10052_v16 }
 0x4a8   : >> { %v3330_v42 = vmul.f32 %v9527_v59, %v3107_v49  ;;  %v4000_v43 = vadd.f32 %v3993_v30, %v3980_v63 }
 0x4a9   : >> { %v3088_v45 = vpop.f32.mrb[72].mxu0  ;;  %v4628_v26 = vmul.f32 1.442695, %v10050_v29  ;;  %v9650_v40 = vpop.eup %6943 }
 0x4aa   : >> { %v3108_v41 = vadd.f32 %v3088_v45, %v2995_v9  ;;  %v6191_v21 = vpop.f32.mrb[73].mxu0  ;;  %v4316_v47 = vmul.f32 %v9643_v38, %v4000_v43 }
 0x4ab   : >> { %v3996_v34 = vpop.xlane.xlu1 %3995  ;;  %6949 = vpow2.f32 %v4628_v26 }
 0x4ac   : >> { %v3331_v6 = vmul.f32 %v9525_v44, %v3108_v41  ;;  %v4001_v11 = vadd.f32 %v3996_v34, %v3981_v31  ;;  %6951 = vpow2.f32 %v4630_v25 }
 0x4ad   : >> { %v3093_v10 = vpop.f32.mrb[74].mxu0  ;;  %v9657_v33 = vpop.eup %6945 }
 0x4ae   : >> { %v3109_v59 = vadd.f32 %v3093_v10, %v2996_v52  ;;  %v6194_v63 = vpop.f32.mrb[75].mxu0  ;;  %v4317_v22 = vmul.f32 %v9650_v40, %v4001_v11 }
 0x4af   : >> { %v4320_v9 = vpop.xlane.xlu0 %4319 }
 0x4b0   : >> { %v3332_v19 = vmul.f32 %v9543_v5, %v3109_v59  ;;  %v4333_v50 = vadd.f32 %v4320_v9, %v4313_v54  ;;  %v10054_v5 = vsub.f32 %v10043_v15, %v10053_v12 }
 0x4b1   : >> { %v3098_v57 = vpop.f32.mrb[76].mxu0  ;;  %v9666_v18 = vpop.eup %6947 }
 0x4b2   : >> { %v3110_v44 = vadd.f32 %v3098_v57, %v2997_v61  ;;  %v6197_v31 = vpop.f32.mrb[77].mxu0  ;;  %v9660_v37 = vmul.f32 %v9657_v33, %v4333_v50  ;;  %v4632_v3 = vmul.f32 1.442695, %v10054_v5 }
 0x4b3   : >> { %v4323_v52 = vpop.xlane.xlu1 %4322 }
 0x4b4   : >> { %v3333_v1 = vmul.f32 %v9541_v27, %v3110_v44  ;;  %v4334_v39 = vadd.f32 %v4323_v52, %v4314_v7  ;;  %6953 = vpow2.f32 %v4632_v3 }
 0x4b5   : >> { %v3103_v17 = vpop.f32.mrb[78].mxu0  ;;  %v9672_v0 = vpop.eup %6949 }
 0x4b6   : >> { %v3111_v54 = vadd.f32 %v3103_v17, %v2998_v56  ;;  %v6200_v49 = vpop.f32.mrb[79].mxu0  ;;  %v9669_v61 = vmul.f32 %v9666_v18, %v4334_v39  ;;  %v9678_v29 = vpop.eup %6951 }
 0x4b7   : >> { %v4326_v55 = vpop.xlane.xlu0 %4325 }
 0x4b8   : >> { %v3334_v8 = vmul.f32 %v9559_v62, %v3111_v54  ;;  %v4335_v46 = vadd.f32 %v4326_v55, %v4315_v51 }
 0x4b9   : >> { %v3419_v27 = vpop.f32.mrb[80].mxu0 }
 0x4ba   : >> { %v3443_v30 = vadd.f32 %v3419_v27, %v3330_v42  ;;  %v6238_v15 = vpop.f32.mrb[81].mxu0  ;;  %v9675_v7 = vmul.f32 %v9672_v0, %v4335_v46 }
 0x4bb   : >> { %v4329_v56 = vpop.xlane.xlu1 %4328 }
 0x4bc   : >> { %v3666_v43 = vmul.f32 %v9557_v4, %v3443_v30  ;;  %v4336_v41 = vadd.f32 %v4329_v56, %v4316_v47 }
 0x4bd   : >> { %v3424_v45 = vpop.f32.mrb[82].mxu0 }
 0x4be   : >> { %v3444_v21 = vadd.f32 %v3424_v45, %v3331_v6  ;;  %v6241_v53 = vpop.f32.mrb[83].mxu0  ;;  %v9681_v62 = vmul.f32 %v9678_v29, %v4336_v41  ;;  %v9684_v59 = vpop.eup %6953 }
 0x4bf   : >> { %v4332_v26 = vpop.xlane.xlu0 %4331 }
 0x4c0   : >> { %v3667_v51 = vmul.f32 %v9573_v20, %v3444_v21  ;;  %v4337_v34 = vadd.f32 %v4332_v26, %v4317_v22 }
 0x4c1   : >> { %v3429_v42 = vpop.f32.mrb[84].mxu0 }
 0x4c2   : >> { %v3445_v11 = vadd.f32 %v3429_v42, %v3332_v19  ;;  %v6244_v10 = vpop.f32.mrb[85].mxu0  ;;  %v9687_v4 = vmul.f32 %v9684_v59, %v4337_v34 }
 0x4c4   : >> { %v3668_v47 = vmul.f32 %v9571_v58, %v3445_v11 }
 0x4c5   : >> { %v3434_v6 = vpop.f32.mrb[86].mxu0 }
 0x4c6   : >> { %v3446_v63 = vadd.f32 %v3434_v6, %v3333_v1  ;;  %v6247_v9 = vpop.f32.mrb[87].mxu0 }
 0x4c7   : >> { %v4656_v9 = vpop.xlane.xlu1 %4655 }
 0x4c8   : >> { %v3669_v24 = vmul.f32 %v9584_v23, %v3446_v63 }
 0x4c9   : >> { %v3439_v16 = vpop.f32.mrb[88].mxu0 }
 0x4ca   : >> { %v3447_v25 = vadd.f32 %v3439_v16, %v3334_v8  ;;  %v6250_v20 = vpop.f32.mrb[89].mxu0 }
 0x4cc   : >> { %v3670_v50 = vmul.f32 %v9582_v48, %v3447_v25  ;;  %v4669_v25 = vadd.f32 %v4656_v9, %v9660_v37 }
 0x4cd   : >> { %v3755_v22 = vpop.f32.mrb[90].mxu0 }
 0x4ce   : >> { %v3779_v19 = vadd.f32 %v3755_v22, %v3666_v43  ;;  %v6288_v57 = vpop.f32.mrb[91].mxu0  ;;  %6955 = vrcp.f32 %v4669_v25 }
 0x4d0   : >> { %v4002_v44 = vmul.f32 %v9595_v28, %v3779_v19 }
 0x4d1   : >> { %v3760_v31 = vpop.f32.mrb[92].mxu0 }
 0x4d2   : >> { %v3780_v52 = vadd.f32 %v3760_v31, %v3667_v51  ;;  %v6291_v12 = vpop.f32.mrb[93].mxu0 }
 0x4d4   : >> { %v4003_v58 = vmul.f32 %v9593_v36, %v3780_v52 }
 0x4d5   : >> { %v3765_v5 = vpop.f32.mrb[94].mxu0 }
 0x4d6   : >> { %v3781_v1 = vadd.f32 %v3765_v5, %v3668_v47  ;;  %v6294_v3 = vpop.f32.mrb[95].mxu0 }
 0x4d8   : >> { %v4004_v23 = vmul.f32 %v9604_v35, %v3781_v1 }
 0x4d9   : >> { %v3770_v39 = vpop.f32.mrb[96].mxu0 }
 0x4da   : >> { %v3782_v17 = vadd.f32 %v3770_v39, %v3669_v24  ;;  %v6297_v54 = vpop.f32.mrb[97].mxu0  ;;  %v6956_v39 = vpop.eup %6955 }
 0x4dc   : >> { %v4005_v48 = vmul.f32 %v9606_v32, %v3782_v17 }
 0x4dd   : >> { %v3775_v49 = vpop.f32.mrb[98].mxu0 }
 0x4de   : >> { %v3783_v55 = vadd.f32 %v3775_v49, %v3670_v50  ;;  %v6300_v8 = vpop.f32.mrb[99].mxu0 }
 0x4e0   : >> { %v4006_v28 = vmul.f32 %v9615_v60, %v3783_v55 }
 0x4e1   : >> { %v4091_v46 = vpop.f32.mrb[100].mxu0 }
 0x4e2   : >> { %v4115_v27 = vadd.f32 %v4091_v46, %v4002_v44  ;;  %v6338_v30 = vpop.f32.mrb[101].mxu0  ;;  %v4662_v44 = vpop.xlane.xlu1 %4661 }
 0x4e3   : >> { %v4671_v37 = vadd.f32 %v4662_v44, %v9675_v7 }
 0x4e4   : >> { %v4338_v36 = vmul.f32 %v9622_v13, %v4115_v27 }
 0x4e5   : >> { %v4096_v15 = vpop.f32.mrb[102].mxu0 }
 0x4e6   : >> { %v4116_v43 = vadd.f32 %v4096_v15, %v4003_v58  ;;  %v6341_v56 = vpop.f32.mrb[103].mxu0  ;;  %v4668_v17 = vpop.xlane.xlu1 %4667 }
 0x4e7   : >> { %v4673_v54 = vadd.f32 %v4668_v17, %v9687_v4 }
 0x4e8   : >> { %v4339_v35 = vmul.f32 %v9629_v2, %v4116_v43 }
 0x4e9   : >> { %v4101_v45 = vpop.f32.mrb[104].mxu0 }
 0x4ea   : >> { %v4117_v41 = vadd.f32 %v4101_v45, %v4004_v23  ;;  %v6344_v21 = vpop.f32.mrb[105].mxu0 }
 0x4ec   : >> { %v4340_v32 = vmul.f32 %v9636_v14, %v4117_v41 }
 0x4ed   : >> { %v4106_v53 = vpop.f32.mrb[106].mxu0 }
 0x4ee   : >> { %v4118_v51 = vadd.f32 %v4106_v53, %v4005_v48  ;;  %v6347_v26 = vpop.f32.mrb[107].mxu0 }
 0x4f0   : >> { %v4341_v60 = vmul.f32 %v9643_v38, %v4118_v51  ;;  %v4659_v38 = vpop.xlane.xlu0 %4658 }
 0x4f1   : >> { %v4111_v42 = vpop.f32.mrb[108].mxu0 }
 0x4f2   : >> { %v4119_v34 = vadd.f32 %v4111_v42, %v4006_v28  ;;  %v6350_v11 = vpop.f32.mrb[109].mxu0 }
 0x4f4   : >> { %v4342_v13 = vmul.f32 %v9650_v40, %v4119_v34  ;;  %v4670_v40 = vadd.f32 %v4659_v38, %v9669_v61  ;;  %v4665_v12 = vpop.xlane.xlu0 %4664 }
 0x4f5   : >> { %v4427_v10 = vpop.f32.mrb[110].mxu0  ;;  %v4672_v61 = vadd.f32 %v4665_v12, %v9681_v62 }
 0x4f6   : >> { %v4451_v47 = vadd.f32 %v4427_v10, %v4338_v36  ;;  %v6388_v6 = vpop.f32.mrb[111].mxu0  ;;  %6957 = vrcp.f32 %v4670_v40 }
 0x4f7   : >> { %6959 = vrcp.f32 %v4671_v37 }
 0x4f8   : >> { %v4674_v2 = vmul.f32 %v9657_v33, %v4451_v47  ;;  %6961 = vrcp.f32 %v4672_v61 }
 0x4f9   : >> { %v4432_v63 = vpop.f32.mrb[112].mxu0  ;;  %6963 = vrcp.f32 %v4673_v54 }
 0x4fa   : >> { %v4452_v24 = vadd.f32 %v4432_v63, %v4339_v35  ;;  %v6391_v16 = vpop.f32.mrb[113].mxu0 }
 0x4fc   : >> { %v4675_v14 = vmul.f32 %v9666_v18, %v4452_v24 }
 0x4fd   : >> { %v4437_v20 = vpop.f32.mrb[114].mxu0 }
 0x4fe   : >> { %v4453_v50 = vadd.f32 %v4437_v20, %v4340_v32  ;;  %v6394_v22 = vpop.f32.mrb[115].mxu0 }
 0x500   : >> { %v4676_v19 = vmul.f32 %v9672_v0, %v4453_v50  ;;  %v6958_v48 = vpop.eup %6957 }
 0x501   : >> { %v4442_v57 = vpop.f32.mrb[116].mxu0  ;;  %v6960_v46 = vpop.eup %6959 }
 0x502   : >> { %v4454_v33 = vadd.f32 %v4442_v57, %v4341_v60  ;;  %v6397_v31 = vpop.f32.mrb[117].mxu0  ;;  %v6962_v4 = vpop.eup %6961 }
 0x503   : >> { %v6964_v41 = vpop.eup %6963 }
 0x504   : >> { %v4677_v52 = vmul.f32 %v9678_v29, %v4454_v33 }
 0x505   : >> { %v4447_v18 = vpop.f32.mrb[118].mxu0 }
 0x506   : >> { %v4455_v58 = vadd.f32 %v4447_v18, %v4342_v13  ;;  %v6400_v5 = vpop.f32.mrb[119].mxu0 }
 0x508   : >> { %v4678_v0 = vmul.f32 %v9684_v59, %v4455_v58 }
 0x509   : >> { %v4763_v1 = vpop.f32.mrb[120].mxu0 }
 0x50a   : >> { %v4787_v3 = vadd.f32 %v4763_v1, %v4674_v2  ;;  %v6438_v23 = vpop.f32.mrb[121].mxu0 }
 0x50c   : >> { %v4797_v7 = vmul.f32 %v6956_v39, %v4787_v3 }
 0x50d   : >> { %v4768_v29 = vpop.f32.mrb[122].mxu0 }
 0x50e   : >> { %4803 = vst.msk [vmem:[%s4802_s13] sm:$0xff] %vm433_vm1, %v4797_v7  ;;  %v4788_v59 = vadd.f32 %v4768_v29, %v4675_v14  ;;  %v6441_v62 = vpop.f32.mrb[123].mxu0 }
 0x510   : >> { %v4798_v49 = vmul.f32 %v6958_v48, %v4788_v59 }
 0x511   : >> { %v4773_v55 = vpop.f32.mrb[124].mxu0 }
 0x512   : >> { %4804 = vst.msk [vmem:[%s4802_s13 + $0x8] sm:$0xff] %vm433_vm1, %v4798_v49  ;;  %v4789_v8 = vadd.f32 %v4773_v55, %v4676_v19  ;;  %v6444_v28 = vpop.f32.mrb[125].mxu0 }
 0x514   : >> { %v4799_v27 = vmul.f32 %v6960_v46, %v4789_v8 }
 0x515   : >> { %v4778_v30 = vpop.f32.mrb[126].mxu0 }
 0x516   : >> { %4805 = vst.msk [vmem:[%s4802_s13 + $0x10] sm:$0xff] %vm433_vm1, %v4799_v27  ;;  %v4790_v36 = vadd.f32 %v4778_v30, %v4677_v52  ;;  %v6447_v15 = vpop.f32.mrb[127].mxu0 }
 0x518   : >> { %v4800_v43 = vmul.f32 %v6962_v4, %v4790_v36  ;;  %397 = sbr.rel (!%p395_p3) target bundleno = 49 (0x31), region = 143 }
 0x519   : >> { %v4783_v56 = vpop.f32.mrb[130].mxu1 }
 0x51a   : >> { %4806 = vst.msk [vmem:[%s4802_s13 + $0x18] sm:$0xff] %vm433_vm1, %v4800_v43  ;;  %v4791_v35 = vadd.f32 %v4783_v56, %v4678_v0  ;;  %v6450_v45 = vpop.f32.mrb[131].mxu1 }
 0x51c   : >> { %v4801_v21 = vmul.f32 %v6964_v41, %v4791_v35 }
 0x51e   : >> { %4808 = vst.msk [vmem:[%s4802_s13 + $0x20] sm:$0x7f] %vm4807_vm6, %v4801_v21 }
 0x51f PF: > { %s28_s17 = sadd.s32 1, %s7033_s17   ;;  %s10055_s1 = smov %s7025_s15 }
 0x520   : > { %p25_p4 = scmp.ge.s32.totalorder %s28_s17, 10   ;;  %s10056_s14 = smov %s7029_s16 }
 0x521   : > { %s10057_s15 = smov %s10060_s18  ;;  %s10058_s16 = smov %s10064_s19 }
 0x522   :  { %27 = sbr.rel (!%p25_p4) target bundleno = 28 (0x1c), region = 154 }

</bundles_post_ra>
